<compile_context>
chip_gen: v7x
topology: tpu7x:2x2x1
jax: 0.10.0
libtpu: 0.0.40
codegen_flags: <defaults>
</compile_context>

<pallas_src>
import numpy as np
import jax
import jax.numpy as jnp
from jax import lax
from jax.experimental import pallas as pl
from jax.experimental.pallas import tpu as pltpu


# ----------------------------------------------------------------------------
# Single fused kernel: one batch tile of tb images end-to-end.
# ----------------------------------------------------------------------------
def fused_cnn_kernel(x_ref, w1_ref, b1_ref, w2_ref, b2_ref,
                     fc1w_ref, fc1b_ref, fc2w_ref, fc2b_ref,
                     o_ref, p2_ref, p3_ref):
    tb = x_ref.shape[0]

    # ---- conv1 patches, built in VMEM from the deinterleaved padded image -------------------
    # x_ref row g*9 + j holds zero-padded-image row 4*j + g (image is 36x32, content at
    # [1:29, 1:29]).  A1 row ordering per image (32 rows):
    #   [a=0 | a=1 pool-H offset] x [even pool rows hp=0,2,..,12, pad, odd pool rows 1,..,13, pad]
    # patch lane k = ky*32 + (padded input column).  All taps are static contiguous 8-row slices.
    def conv1_tap(a, odd_half, ky):
        q = a + ky                              # padded input row = 2*hp + a + ky
        if not odd_half:                        # hp = 2*pos       -> rows 4*pos + q
            g, r0 = q, 0
        elif q + 2 <= 3:                        # hp = 2*pos + 1   -> rows 4*pos + q + 2
            g, r0 = q + 2, 0
        else:                                   #                  -> rows 4*(pos+1) + q - 2
            g, r0 = q - 2, 1
        return x_ref[:, g * 9 + r0:g * 9 + r0 + 8, :]                      # (tb, 8, 32)

    parts = []
    for a in range(2):
        for odd_half in (0, 1):
            parts.append(jnp.concatenate(
                [conv1_tap(a, odd_half, ky) for ky in range(3)], axis=-1))  # (tb, 8, 96)
    a1 = jnp.concatenate(parts, axis=1).reshape(tb * 32, 96).astype(jnp.bfloat16)

    # ---- conv1 + bias + ReLU as one banded matmul; pool1 = two whole-tensor maxes ------------
    # Output lane n = s*512 + (w_pool + 1)*32 + c  (s = output-column parity), so the W-max is a
    # max of two 128-aligned 512-lane halves and the result is already the zero-padded (W dir)
    # conv2 input row: lanes 0..31 and 480..511 are exactly 0 (zero weight columns & bias).
    y1 = jnp.dot(a1, w1_ref[...], preferred_element_type=jnp.float32)       # (tb*32, 1024)
    y1 = jnp.maximum(y1 + b1_ref[...], 0.0)
    wmax1 = jnp.maximum(y1[:, :512], y1[:, 512:])                           # (tb*32, 512)
    r1 = wmax1.reshape(tb, 2, 16, 512)
    pooled1 = jnp.maximum(r1[:, 0], r1[:, 1])                               # (tb, 16, 512)
    # rows 0..6 = pool rows 0,2,..,12 ; rows 8..14 = pool rows 1,3,..,13 ; rows 7,15 junk.

    # ---- zero-padded conv2 input tile (parity-grouped rows): 2 slice stores + border zeros ---
    # p2 row j (j < 8) = padded conv2 row 2j (row 0 = top zero pad);
    # p2 row 8+m       = padded conv2 row 2m+1 (row 15 = bottom zero pad, row 16 = extra zero).
    p2_ref[:, 0:1, :] = jnp.zeros((tb, 1, 512), jnp.float32)
    p2_ref[:, 15:17, :] = jnp.zeros((tb, 2, 512), jnp.float32)
    p2_ref[:, 1:8, :] = pooled1[:, 8:15, :]
    p2_ref[:, 8:15, :] = pooled1[:, 0:7, :]

    # ---- conv2 patches (contiguous 8-row slices of p2), banded matmul, pool2 -----------------
    def conv2_rows(q2):                          # rows holding padded conv2 rows 2*hp2 + q2
        r0 = (q2 % 2) * 8 + q2 // 2              # q2=0 -> 0, q2=1 -> 8, q2=2 -> 1, q2=3 -> 9
        return p2_ref[:, r0:r0 + 8, :]                                      # (tb, 8, 512)

    patches2_parts = []
    for a2 in range(2):
        patches2_parts.append(jnp.concatenate(
            [conv2_rows(a2 + ky) for ky in range(3)], axis=-1))             # (tb, 8, 1536)
    patches2 = (jnp.concatenate(patches2_parts, axis=1)
                .reshape(tb * 16, 1536).astype(jnp.bfloat16))

    y2 = jnp.dot(patches2, w2_ref[...], preferred_element_type=jnp.float32)  # (tb*16, 1024)
    y2 = jnp.maximum(y2 + b2_ref[...], 0.0)
    wmax2 = jnp.maximum(y2[:, :512], y2[:, 512:])                            # (tb*16, 512)
    r2 = wmax2.reshape(tb, 2, 8, 512)
    p3_ref[...] = jnp.maximum(r2[:, 0], r2[:, 1]).astype(jnp.bfloat16)       # (tb, 8, 512)
    # p3 rows 0..6 = pool2 rows, row 7 junk; lanes wq2*64 + c (wq2 < 7), lanes 448..511 = 0.

    # ---- fc1 (7 accumulated K=512 matmuls, no activation flatten), ReLU, fc2 -----------------
    acc = jnp.zeros((tb, 128), jnp.float32)
    for h in range(7):
        acc = acc + jnp.dot(p3_ref[:, h, :], fc1w_ref[h],
                            preferred_element_type=jnp.float32)
    h1 = jnp.maximum(acc + fc1b_ref[...], 0.0)
    out = jnp.dot(h1.astype(jnp.bfloat16), fc2w_ref[...],
                  preferred_element_type=jnp.float32) + fc2b_ref[...]
    o_ref[...] = out.astype(o_ref.dtype)


# ----------------------------------------------------------------------------
# Wrapper: batch tiling, tiny input prep, pallas_call.
# ----------------------------------------------------------------------------
def _pick_batch_tiling(B):
    if B <= 8:
        return B, B
    Bp = ((B + 7) // 8) * 8
    for t in (32, 16, 8):                      # prefer >= 2 grid steps (v7x megacore sharding)
        if Bp % t == 0 and Bp // t >= 2:
            return t, Bp
    return 8, Bp


def simple_cnn_forward(x_nchw, params):
    B = x_nchw.shape[0]
    tb, Bp = _pick_batch_tiling(B)
    if Bp != B:
        x_nchw = jnp.pad(x_nchw, ((0, Bp - B), (0, 0), (0, 0), (0, 0)))

    # Zero-pad the 28x28 image to 36x32 (conv SAME pad + alignment) and deinterleave rows by 4 so
    # every in-kernel conv1 tap is a contiguous 8-row static slice (~4.5 KB/image of real data).
    xp = jnp.pad(x_nchw[:, 0].astype(jnp.float32), ((0, 0), (1, 7), (1, 3)))   # (Bp, 36, 32)
    xk = xp.reshape(Bp, 9, 4, 32).transpose(0, 2, 1, 3).reshape(Bp, 36, 32)

    grid = (Bp // tb,)
    flops = 2 * Bp * (32 * 96 * 1024 + 16 * 1536 * 1024 + 7 * 512 * 128 + 128 * 10)
    bytes_accessed = (xk.size * 4 + params["w1big"].size * 2 + params["w2big"].size * 2 +
                      params["fc1w_k"].size * 2 + params["fc2w_k"].size * 2 +
                      (1024 + 1024 + 128 + 10) * 4 + Bp * 10 * 4)

    out = pl.pallas_call(
        fused_cnn_kernel,
        out_shape=jax.ShapeDtypeStruct((Bp, 10), jnp.float32),
        grid=grid,
        in_specs=[
            pl.BlockSpec((tb, 36, 32), lambda i: (i, 0, 0)),
            pl.BlockSpec((96, 1024), lambda i: (0, 0)),
            pl.BlockSpec((1, 1024), lambda i: (0, 0)),
            pl.BlockSpec((1536, 1024), lambda i: (0, 0)),
            pl.BlockSpec((1, 1024), lambda i: (0, 0)),
            pl.BlockSpec((8, 512, 128), lambda i: (0, 0, 0)),
            pl.BlockSpec((1, 128), lambda i: (0, 0)),
            pl.BlockSpec((128, 10), lambda i: (0, 0)),
            pl.BlockSpec((1, 10), lambda i: (0, 0)),
        ],
        out_specs=pl.BlockSpec((tb, 10), lambda i: (i, 0)),
        scratch_shapes=[pltpu.VMEM((tb, 24, 512), jnp.float32),    # padded conv2 input tile
                        pltpu.VMEM((tb, 8, 512), jnp.bfloat16)],   # pooled2 for fc1
        compiler_params=pltpu.CompilerParams(
            dimension_semantics=("parallel",),
            vmem_limit_bytes=48 * 1024 * 1024),
        cost_estimate=pl.CostEstimate(flops=flops, transcendentals=0,
                                      bytes_accessed=bytes_accessed),
    )(xk, params["w1big"], params["b1big"], params["w2big"], params["b2big"],
      params["fc1w_k"], params["fc1b"], params["fc2w_k"], params["fc2b"])
    return out[:B] if Bp != B else out


# ----------------------------------------------------------------------------
# Banded / regrouped weight construction (init-time, numpy).
# ----------------------------------------------------------------------------
def _build_kernel_weights(w1, b1, w2, b2, fc1w_t, fc2w_t):
    w1n = np.asarray(w1, np.float32)             # (32, 1, 3, 3)  torch OIHW
    w2n = np.asarray(w2, np.float32)             # (64, 32, 3, 3)
    b1n = np.asarray(b1, np.float32).reshape(-1)
    b2n = np.asarray(b2, np.float32).reshape(-1)
    f1n = np.asarray(fc1w_t, np.float32)         # (128, 3136)  torch (out, in)

    # conv1: row k = ky*32 + padded_col, col n = s*512 + (wq + 1)*32 + cout
    W1 = np.zeros((96, 1024), np.float32)
    B1 = np.zeros((1, 1024), np.float32)
    for s in range(2):
        for wq in range(14):
            col = s * 512 + (wq + 1) * 32
            B1[0, col:col + 32] = b1n
            w_out = 2 * wq + s
            for ky in range(3):
                for kx in range(3):
                    W1[ky * 32 + w_out + kx, col:col + 32] = w1n[:, 0, ky, kx]

    # conv2: row = ky*512 + padded_col*32 + cin, col = s*512 + wq*64 + cout
    W2 = np.zeros((1536, 1024), np.float32)
    B2 = np.zeros((1, 1024), np.float32)
    for s in range(2):
        for wq in range(7):
            col = s * 512 + wq * 64
            B2[0, col:col + 64] = b2n
            w_out = 2 * wq + s
            for ky in range(3):
                for kx in range(3):
                    row = ky * 512 + (w_out + kx) * 32
                    W2[row:row + 32, col:col + 64] = w2n[:, :, ky, kx].T   # (cin, cout)

    # fc1 regrouped to the kernel layout: block h, lane = wq*64 + c  <->  torch index c*49+h*7+wq
    F1 = np.zeros((8, 512, 128), np.float32)
    cidx = np.arange(64) * 49
    for h in range(7):
        for wq in range(7):
            F1[h, wq * 64:wq * 64 + 64, :] = f1n[:, cidx + h * 7 + wq].T

    F2 = np.asarray(fc2w_t, np.float32).T        # (128, 10)
    return (jnp.asarray(W1, jnp.bfloat16), jnp.asarray(B1),
            jnp.asarray(W2, jnp.bfloat16), jnp.asarray(B2),
            jnp.asarray(F1, jnp.bfloat16), jnp.asarray(F2, jnp.bfloat16))


# ----------------------------------------------------------------------------
# Pure-JAX reference (f32) for the correctness check.
# ----------------------------------------------------------------------------
def reference_forward(x_nchw, params):
    x = jnp.transpose(x_nchw, (0, 2, 3, 1))

    def conv(x, w_oihw, b):
        w = jnp.transpose(w_oihw, (2, 3, 1, 0))                  # HWIO
        y = lax.conv_general_dilated(x, w, (1, 1), "SAME",
                                     dimension_numbers=("NHWC", "HWIO", "NHWC"))
        return y + b.reshape(1, 1, 1, -1)

    def pool(x):
        return lax.reduce_window(x, -jnp.inf, lax.max,
                                 (1, 2, 2, 1), (1, 2, 2, 1), "VALID")

    y = pool(jnp.maximum(conv(x, params["w1"], params["b1"][0]), 0.0))
    y = pool(jnp.maximum(conv(y, params["w2"], params["b2"][0]), 0.0))
    flat = jnp.transpose(y, (0, 3, 1, 2)).reshape(x.shape[0], 64 * 7 * 7)   # NCHW flatten
    h = jnp.maximum(flat @ params["fc1w"] + params["fc1b"], 0.0)
    return h @ params["fc2w"] + params["fc2b"]


# ----------------------------------------------------------------------------
# Deterministic parameter init (shapes from SimpleCNN.__init__).
# ----------------------------------------------------------------------------
def init_params(key):
    ks = jax.random.split(key, 8)
    scale = 0.05
    w1 = scale * jax.random.normal(ks[0], (32, 1, 3, 3), jnp.float32)       # conv1
    b1 = scale * jax.random.normal(ks[1], (1, 32), jnp.float32)
    w2 = scale * jax.random.normal(ks[2], (64, 32, 3, 3), jnp.float32)      # conv2
    b2 = scale * jax.random.normal(ks[3], (1, 64), jnp.float32)
    fc1w_t = scale * jax.random.normal(ks[4], (128, 64 * 7 * 7), jnp.float32)  # torch (out, in)
    fc1b = scale * jax.random.normal(ks[5], (1, 128), jnp.float32)
    fc2w_t = scale * jax.random.normal(ks[6], (10, 128), jnp.float32)
    fc2b = scale * jax.random.normal(ks[7], (1, 10), jnp.float32)

    w1big, b1big, w2big, b2big, fc1w_k, fc2w_k = _build_kernel_weights(
        w1, b1, w2, b2, fc1w_t, fc2w_t)

    return {
        # f32 torch-layout params for the pure-JAX reference.
        "w1": w1, "b1": b1, "w2": w2, "b2": b2,
        "fc1w": fc1w_t.T, "fc1b": fc1b, "fc2w": fc2w_t.T, "fc2b": fc2b,
        # bf16 kernel-layout (banded / regrouped) matmul weights.
        "w1big": w1big, "b1big": b1big, "w2big": w2big, "b2big": b2big,
        "fc1w_k": fc1w_k, "fc2w_k": fc2w_k,
    }


if __name__ == "__main__":
    key = jax.random.PRNGKey(0)
    pkey, xkey = jax.random.split(key)
    params = init_params(pkey)

    # Input implied by fc1 (64*7*7): 28x28, 1 channel (MNIST-like), small batch.
    x = jax.random.normal(xkey, (2, 1, 28, 28), jnp.float32)

    out = jax.block_until_ready(simple_cnn_forward(x, params))
    assert out.shape == (2, 10) and out.dtype == jnp.float32

    ref = jax.block_until_ready(reference_forward(x, params))
    assert jnp.allclose(out, ref, rtol=5e-2, atol=5e-2), "mismatch vs JAX reference"

    print("KERNEL_OK")
</pallas_src>

<mosaic_0001>
module attributes {stable_mosaic.version = 11 : i64} {
  func.func @fused_cnn_kernel(%arg0: i32, %arg1: memref<2x36x32xf32, #tpu.memory_space<vmem>>, %arg2: memref<96x1024xbf16, #tpu.memory_space<vmem>>, %arg3: memref<1x1024xf32, #tpu.memory_space<vmem>>, %arg4: memref<1536x1024xbf16, #tpu.memory_space<vmem>>, %arg5: memref<1x1024xf32, #tpu.memory_space<vmem>>, %arg6: memref<8x512x128xbf16, #tpu.memory_space<vmem>>, %arg7: memref<1x128xf32, #tpu.memory_space<vmem>>, %arg8: memref<128x10xbf16, #tpu.memory_space<vmem>>, %arg9: memref<1x10xf32, #tpu.memory_space<vmem>>, %arg10: memref<2x10xf32, #tpu.memory_space<vmem>>, %arg11: memref<2x24x512xf32, #tpu.memory_space<vmem>>, %arg12: memref<2x8x512xbf16, #tpu.memory_space<vmem>>) attributes {dimension_semantics = [#tpu.dimension_semantics<parallel>], iteration_bounds = array<i64: 1>, scalar_prefetch = 0 : i64, scratch_operands = 2 : i64, tpu.core_type = #tpu.core_type<tc>, window_params = [{transform_indices = @transform_0, window_bounds = array<i64: 2, 36, 32>}, {pipeline_mode = #tpu.pipeline_mode<synchronous>, transform_indices = @transform_1, window_bounds = array<i64: 96, 1024>}, {pipeline_mode = #tpu.pipeline_mode<synchronous>, transform_indices = @transform_2, window_bounds = array<i64: 1, 1024>}, {pipeline_mode = #tpu.pipeline_mode<synchronous>, transform_indices = @transform_3, window_bounds = array<i64: 1536, 1024>}, {pipeline_mode = #tpu.pipeline_mode<synchronous>, transform_indices = @transform_4, window_bounds = array<i64: 1, 1024>}, {pipeline_mode = #tpu.pipeline_mode<synchronous>, transform_indices = @transform_5, window_bounds = array<i64: 8, 512, 128>}, {pipeline_mode = #tpu.pipeline_mode<synchronous>, transform_indices = @transform_6, window_bounds = array<i64: 1, 128>}, {pipeline_mode = #tpu.pipeline_mode<synchronous>, transform_indices = @transform_7, window_bounds = array<i64: 128, 10>}, {pipeline_mode = #tpu.pipeline_mode<synchronous>, transform_indices = @transform_8, window_bounds = array<i64: 1, 10>}, {transform_indices = @transform_9, window_bounds = array<i64: 2, 10>}]} {
    %c0 = arith.constant 0 : index
    %c0_0 = arith.constant 0 : index
    %c0_1 = arith.constant 0 : index
    %0 = vector.load %arg1[%c0, %c0_0, %c0_1] : memref<2x36x32xf32, #tpu.memory_space<vmem>>, vector<2x8x32xf32>
    %c0_2 = arith.constant 0 : index
    %c9 = arith.constant 9 : index
    %c0_3 = arith.constant 0 : index
    %1 = vector.load %arg1[%c0_2, %c9, %c0_3] : memref<2x36x32xf32, #tpu.memory_space<vmem>>, vector<2x8x32xf32>
    %c0_4 = arith.constant 0 : index
    %c18 = arith.constant 18 : index
    %c0_5 = arith.constant 0 : index
    %2 = vector.load %arg1[%c0_4, %c18, %c0_5] : memref<2x36x32xf32, #tpu.memory_space<vmem>>, vector<2x8x32xf32>
    %3 = tpu.concatenate %0, %1, %2 in 2 : vector<2x8x32xf32>, vector<2x8x32xf32>, vector<2x8x32xf32> -> vector<2x8x96xf32>
    %c0_6 = arith.constant 0 : index
    %c18_7 = arith.constant 18 : index
    %c0_8 = arith.constant 0 : index
    %4 = vector.load %arg1[%c0_6, %c18_7, %c0_8] : memref<2x36x32xf32, #tpu.memory_space<vmem>>, vector<2x8x32xf32>
    %c0_9 = arith.constant 0 : index
    %c27 = arith.constant 27 : index
    %c0_10 = arith.constant 0 : index
    %5 = vector.load %arg1[%c0_9, %c27, %c0_10] : memref<2x36x32xf32, #tpu.memory_space<vmem>>, vector<2x8x32xf32>
    %c0_11 = arith.constant 0 : index
    %c1 = arith.constant 1 : index
    %c0_12 = arith.constant 0 : index
    %6 = vector.load %arg1[%c0_11, %c1, %c0_12] : memref<2x36x32xf32, #tpu.memory_space<vmem>>, vector<2x8x32xf32>
    %7 = tpu.concatenate %4, %5, %6 in 2 : vector<2x8x32xf32>, vector<2x8x32xf32>, vector<2x8x32xf32> -> vector<2x8x96xf32>
    %c0_13 = arith.constant 0 : index
    %c9_14 = arith.constant 9 : index
    %c0_15 = arith.constant 0 : index
    %8 = vector.load %arg1[%c0_13, %c9_14, %c0_15] : memref<2x36x32xf32, #tpu.memory_space<vmem>>, vector<2x8x32xf32>
    %c0_16 = arith.constant 0 : index
    %c18_17 = arith.constant 18 : index
    %c0_18 = arith.constant 0 : index
    %9 = vector.load %arg1[%c0_16, %c18_17, %c0_18] : memref<2x36x32xf32, #tpu.memory_space<vmem>>, vector<2x8x32xf32>
    %c0_19 = arith.constant 0 : index
    %c27_20 = arith.constant 27 : index
    %c0_21 = arith.constant 0 : index
    %10 = vector.load %arg1[%c0_19, %c27_20, %c0_21] : memref<2x36x32xf32, #tpu.memory_space<vmem>>, vector<2x8x32xf32>
    %11 = tpu.concatenate %8, %9, %10 in 2 : vector<2x8x32xf32>, vector<2x8x32xf32>, vector<2x8x32xf32> -> vector<2x8x96xf32>
    %c0_22 = arith.constant 0 : index
    %c27_23 = arith.constant 27 : index
    %c0_24 = arith.constant 0 : index
    %12 = vector.load %arg1[%c0_22, %c27_23, %c0_24] : memref<2x36x32xf32, #tpu.memory_space<vmem>>, vector<2x8x32xf32>
    %c0_25 = arith.constant 0 : index
    %c1_26 = arith.constant 1 : index
    %c0_27 = arith.constant 0 : index
    %13 = vector.load %arg1[%c0_25, %c1_26, %c0_27] : memref<2x36x32xf32, #tpu.memory_space<vmem>>, vector<2x8x32xf32>
    %c0_28 = arith.constant 0 : index
    %c10 = arith.constant 10 : index
    %c0_29 = arith.constant 0 : index
    %14 = vector.load %arg1[%c0_28, %c10, %c0_29] : memref<2x36x32xf32, #tpu.memory_space<vmem>>, vector<2x8x32xf32>
    %15 = tpu.concatenate %12, %13, %14 in 2 : vector<2x8x32xf32>, vector<2x8x32xf32>, vector<2x8x32xf32> -> vector<2x8x96xf32>
    %16 = tpu.concatenate %3, %7, %11, %15 in 1 : vector<2x8x96xf32>, vector<2x8x96xf32>, vector<2x8x96xf32>, vector<2x8x96xf32> -> vector<2x32x96xf32>
    %17 = vector.shape_cast %16 : vector<2x32x96xf32> to vector<64x96xf32>
    %18 = arith.truncf %17 : vector<64x96xf32> to vector<64x96xbf16>
    %c0_30 = arith.constant 0 : index
    %c0_31 = arith.constant 0 : index
    %19 = vector.load %arg2[%c0_30, %c0_31] : memref<96x1024xbf16, #tpu.memory_space<vmem>>, vector<96x1024xbf16>
    %cst = arith.constant dense<0.000000e+00> : vector<64x1024xf32>
    %20 = tpu.matmul %18, %19, %cst {dimension_numbers = #tpu.dot_dimension_numbers<[1], [0], [0], [1], [0, 0, 1, 1], [], []>} : vector<64x96xbf16>, vector<96x1024xbf16>, vector<64x1024xf32> -> vector<64x1024xf32>
    %c0_32 = arith.constant 0 : index
    %c0_33 = arith.constant 0 : index
    %21 = vector.load %arg3[%c0_32, %c0_33] : memref<1x1024xf32, #tpu.memory_space<vmem>>, vector<1x1024xf32>
    %22 = vector.broadcast %21 : vector<1x1024xf32> to vector<64x1024xf32>
    %23 = arith.addf %20, %22 : vector<64x1024xf32>
    %cst_34 = arith.constant 0.000000e+00 : f32
    %24 = vector.broadcast %cst_34 : f32 to vector<64x1024xf32>
    %25 = arith.maximumf %23, %24 : vector<64x1024xf32>
    %26 = vector.extract_strided_slice %25 {offsets = [0, 0], sizes = [64, 512], strides = [1, 1]} : vector<64x1024xf32> to vector<64x512xf32>
    %27 = vector.extract_strided_slice %25 {offsets = [0, 512], sizes = [64, 512], strides = [1, 1]} : vector<64x1024xf32> to vector<64x512xf32>
    %28 = arith.maximumf %26, %27 : vector<64x512xf32>
    %29 = vector.shape_cast %28 : vector<64x512xf32> to vector<2x2x16x512xf32>
    %30 = vector.extract_strided_slice %29 {offsets = [0, 0, 0, 0], sizes = [2, 1, 16, 512], strides = [1, 1, 1, 1]} : vector<2x2x16x512xf32> to vector<2x1x16x512xf32>
    %31 = vector.shape_cast %30 : vector<2x1x16x512xf32> to vector<2x16x512xf32>
    %32 = vector.extract_strided_slice %29 {offsets = [0, 1, 0, 0], sizes = [2, 1, 16, 512], strides = [1, 1, 1, 1]} : vector<2x2x16x512xf32> to vector<2x1x16x512xf32>
    %33 = vector.shape_cast %32 : vector<2x1x16x512xf32> to vector<2x16x512xf32>
    %34 = arith.maximumf %31, %33 : vector<2x16x512xf32>
    %cst_35 = arith.constant 0.000000e+00 : f32
    %35 = vector.broadcast %cst_35 : f32 to vector<2x1x512xf32>
    %c0_36 = arith.constant 0 : index
    %c0_37 = arith.constant 0 : index
    %c0_38 = arith.constant 0 : index
    %36 = vector.load %arg11[%c0_36, %c0_37, %c0_38] : memref<2x24x512xf32, #tpu.memory_space<vmem>>, vector<2x1x512xf32>
    tpu.vector_store %arg11[%c0_36, %c0_37, %c0_38], %35 {strides = array<i32>} : memref<2x24x512xf32, #tpu.memory_space<vmem>>, vector<2x1x512xf32>,
    %cst_39 = arith.constant 0.000000e+00 : f32
    %37 = vector.broadcast %cst_39 : f32 to vector<2x2x512xf32>
    %c0_40 = arith.constant 0 : index
    %c15 = arith.constant 15 : index
    %c0_41 = arith.constant 0 : index
    %38 = vector.load %arg11[%c0_40, %c15, %c0_41] : memref<2x24x512xf32, #tpu.memory_space<vmem>>, vector<2x2x512xf32>
    tpu.vector_store %arg11[%c0_40, %c15, %c0_41], %37 {strides = array<i32>} : memref<2x24x512xf32, #tpu.memory_space<vmem>>, vector<2x2x512xf32>,
    %39 = vector.extract_strided_slice %34 {offsets = [0, 8, 0], sizes = [2, 7, 512], strides = [1, 1, 1]} : vector<2x16x512xf32> to vector<2x7x512xf32>
    %c0_42 = arith.constant 0 : index
    %c1_43 = arith.constant 1 : index
    %c0_44 = arith.constant 0 : index
    %40 = vector.load %arg11[%c0_42, %c1_43, %c0_44] : memref<2x24x512xf32, #tpu.memory_space<vmem>>, vector<2x7x512xf32>
    tpu.vector_store %arg11[%c0_42, %c1_43, %c0_44], %39 {strides = array<i32>} : memref<2x24x512xf32, #tpu.memory_space<vmem>>, vector<2x7x512xf32>,
    %41 = vector.extract_strided_slice %34 {offsets = [0, 0, 0], sizes = [2, 7, 512], strides = [1, 1, 1]} : vector<2x16x512xf32> to vector<2x7x512xf32>
    %c0_45 = arith.constant 0 : index
    %c8 = arith.constant 8 : index
    %c0_46 = arith.constant 0 : index
    %42 = vector.load %arg11[%c0_45, %c8, %c0_46] : memref<2x24x512xf32, #tpu.memory_space<vmem>>, vector<2x7x512xf32>
    tpu.vector_store %arg11[%c0_45, %c8, %c0_46], %41 {strides = array<i32>} : memref<2x24x512xf32, #tpu.memory_space<vmem>>, vector<2x7x512xf32>,
    %c0_47 = arith.constant 0 : index
    %c0_48 = arith.constant 0 : index
    %c0_49 = arith.constant 0 : index
    %43 = vector.load %arg11[%c0_47, %c0_48, %c0_49] : memref<2x24x512xf32, #tpu.memory_space<vmem>>, vector<2x8x512xf32>
    %c0_50 = arith.constant 0 : index
    %c8_51 = arith.constant 8 : index
    %c0_52 = arith.constant 0 : index
    %44 = vector.load %arg11[%c0_50, %c8_51, %c0_52] : memref<2x24x512xf32, #tpu.memory_space<vmem>>, vector<2x8x512xf32>
    %c0_53 = arith.constant 0 : index
    %c1_54 = arith.constant 1 : index
    %c0_55 = arith.constant 0 : index
    %45 = vector.load %arg11[%c0_53, %c1_54, %c0_55] : memref<2x24x512xf32, #tpu.memory_space<vmem>>, vector<2x8x512xf32>
    %46 = tpu.concatenate %43, %44, %45 in 2 : vector<2x8x512xf32>, vector<2x8x512xf32>, vector<2x8x512xf32> -> vector<2x8x1536xf32>
    %c0_56 = arith.constant 0 : index
    %c8_57 = arith.constant 8 : index
    %c0_58 = arith.constant 0 : index
    %47 = vector.load %arg11[%c0_56, %c8_57, %c0_58] : memref<2x24x512xf32, #tpu.memory_space<vmem>>, vector<2x8x512xf32>
    %c0_59 = arith.constant 0 : index
    %c1_60 = arith.constant 1 : index
    %c0_61 = arith.constant 0 : index
    %48 = vector.load %arg11[%c0_59, %c1_60, %c0_61] : memref<2x24x512xf32, #tpu.memory_space<vmem>>, vector<2x8x512xf32>
    %c0_62 = arith.constant 0 : index
    %c9_63 = arith.constant 9 : index
    %c0_64 = arith.constant 0 : index
    %49 = vector.load %arg11[%c0_62, %c9_63, %c0_64] : memref<2x24x512xf32, #tpu.memory_space<vmem>>, vector<2x8x512xf32>
    %50 = tpu.concatenate %47, %48, %49 in 2 : vector<2x8x512xf32>, vector<2x8x512xf32>, vector<2x8x512xf32> -> vector<2x8x1536xf32>
    %51 = tpu.concatenate %46, %50 in 1 : vector<2x8x1536xf32>, vector<2x8x1536xf32> -> vector<2x16x1536xf32>
    %52 = vector.shape_cast %51 : vector<2x16x1536xf32> to vector<32x1536xf32>
    %53 = arith.truncf %52 : vector<32x1536xf32> to vector<32x1536xbf16>
    %c0_65 = arith.constant 0 : index
    %c0_66 = arith.constant 0 : index
    %54 = vector.load %arg4[%c0_65, %c0_66] : memref<1536x1024xbf16, #tpu.memory_space<vmem>>, vector<1536x1024xbf16>
    %cst_67 = arith.constant dense<0.000000e+00> : vector<32x1024xf32>
    %55 = tpu.matmul %53, %54, %cst_67 {dimension_numbers = #tpu.dot_dimension_numbers<[1], [0], [0], [1], [0, 0, 1, 1], [], []>} : vector<32x1536xbf16>, vector<1536x1024xbf16>, vector<32x1024xf32> -> vector<32x1024xf32>
    %c0_68 = arith.constant 0 : index
    %c0_69 = arith.constant 0 : index
    %56 = vector.load %arg5[%c0_68, %c0_69] : memref<1x1024xf32, #tpu.memory_space<vmem>>, vector<1x1024xf32>
    %57 = vector.broadcast %56 : vector<1x1024xf32> to vector<32x1024xf32>
    %58 = arith.addf %55, %57 : vector<32x1024xf32>
    %cst_70 = arith.constant 0.000000e+00 : f32
    %59 = vector.broadcast %cst_70 : f32 to vector<32x1024xf32>
    %60 = arith.maximumf %58, %59 : vector<32x1024xf32>
    %61 = vector.extract_strided_slice %60 {offsets = [0, 0], sizes = [32, 512], strides = [1, 1]} : vector<32x1024xf32> to vector<32x512xf32>
    %62 = vector.extract_strided_slice %60 {offsets = [0, 512], sizes = [32, 512], strides = [1, 1]} : vector<32x1024xf32> to vector<32x512xf32>
    %63 = arith.maximumf %61, %62 : vector<32x512xf32>
    %64 = vector.shape_cast %63 : vector<32x512xf32> to vector<2x2x8x512xf32>
    %65 = vector.extract_strided_slice %64 {offsets = [0, 0, 0, 0], sizes = [2, 1, 8, 512], strides = [1, 1, 1, 1]} : vector<2x2x8x512xf32> to vector<2x1x8x512xf32>
    %66 = vector.shape_cast %65 : vector<2x1x8x512xf32> to vector<2x8x512xf32>
    %67 = vector.extract_strided_slice %64 {offsets = [0, 1, 0, 0], sizes = [2, 1, 8, 512], strides = [1, 1, 1, 1]} : vector<2x2x8x512xf32> to vector<2x1x8x512xf32>
    %68 = vector.shape_cast %67 : vector<2x1x8x512xf32> to vector<2x8x512xf32>
    %69 = arith.maximumf %66, %68 : vector<2x8x512xf32>
    %70 = arith.truncf %69 : vector<2x8x512xf32> to vector<2x8x512xbf16>
    %c0_71 = arith.constant 0 : index
    %c0_72 = arith.constant 0 : index
    %c0_73 = arith.constant 0 : index
    %71 = vector.load %arg12[%c0_71, %c0_72, %c0_73] : memref<2x8x512xbf16, #tpu.memory_space<vmem>>, vector<2x8x512xbf16>
    tpu.vector_store %arg12[%c0_71, %c0_72, %c0_73], %70 {strides = array<i32>} : memref<2x8x512xbf16, #tpu.memory_space<vmem>>, vector<2x8x512xbf16>,
    %cst_74 = arith.constant 0.000000e+00 : f32
    %72 = vector.broadcast %cst_74 : f32 to vector<2x128xf32>
    %c0_75 = arith.constant 0 : index
    %c0_76 = arith.constant 0 : index
    %c0_77 = arith.constant 0 : index
    %73 = vector.load %arg12[%c0_75, %c0_76, %c0_77] : memref<2x8x512xbf16, #tpu.memory_space<vmem>>, vector<2x1x512xbf16>
    %74 = vector.shape_cast %73 : vector<2x1x512xbf16> to vector<2x512xbf16>
    %c0_78 = arith.constant 0 : index
    %c0_79 = arith.constant 0 : index
    %c0_80 = arith.constant 0 : index
    %75 = vector.load %arg6[%c0_78, %c0_79, %c0_80] : memref<8x512x128xbf16, #tpu.memory_space<vmem>>, vector<1x512x128xbf16>
    %76 = vector.shape_cast %75 : vector<1x512x128xbf16> to vector<512x128xbf16>
    %cst_81 = arith.constant dense<0.000000e+00> : vector<2x128xf32>
    %77 = tpu.matmul %74, %76, %cst_81 {dimension_numbers = #tpu.dot_dimension_numbers<[1], [0], [0], [1], [0, 0, 1, 1], [], []>} : vector<2x512xbf16>, vector<512x128xbf16>, vector<2x128xf32> -> vector<2x128xf32>
    %78 = arith.addf %72, %77 : vector<2x128xf32>
    %c0_82 = arith.constant 0 : index
    %c1_83 = arith.constant 1 : index
    %c0_84 = arith.constant 0 : index
    %79 = vector.load %arg12[%c0_82, %c1_83, %c0_84] : memref<2x8x512xbf16, #tpu.memory_space<vmem>>, vector<2x1x512xbf16>
    %80 = vector.shape_cast %79 : vector<2x1x512xbf16> to vector<2x512xbf16>
    %c1_85 = arith.constant 1 : index
    %c0_86 = arith.constant 0 : index
    %c0_87 = arith.constant 0 : index
    %81 = vector.load %arg6[%c1_85, %c0_86, %c0_87] : memref<8x512x128xbf16, #tpu.memory_space<vmem>>, vector<1x512x128xbf16>
    %82 = vector.shape_cast %81 : vector<1x512x128xbf16> to vector<512x128xbf16>
    %cst_88 = arith.constant dense<0.000000e+00> : vector<2x128xf32>
    %83 = tpu.matmul %80, %82, %cst_88 {dimension_numbers = #tpu.dot_dimension_numbers<[1], [0], [0], [1], [0, 0, 1, 1], [], []>} : vector<2x512xbf16>, vector<512x128xbf16>, vector<2x128xf32> -> vector<2x128xf32>
    %84 = arith.addf %78, %83 : vector<2x128xf32>
    %c0_89 = arith.constant 0 : index
    %c2 = arith.constant 2 : index
    %c0_90 = arith.constant 0 : index
    %85 = vector.load %arg12[%c0_89, %c2, %c0_90] : memref<2x8x512xbf16, #tpu.memory_space<vmem>>, vector<2x1x512xbf16>
    %86 = vector.shape_cast %85 : vector<2x1x512xbf16> to vector<2x512xbf16>
    %c2_91 = arith.constant 2 : index
    %c0_92 = arith.constant 0 : index
    %c0_93 = arith.constant 0 : index
    %87 = vector.load %arg6[%c2_91, %c0_92, %c0_93] : memref<8x512x128xbf16, #tpu.memory_space<vmem>>, vector<1x512x128xbf16>
    %88 = vector.shape_cast %87 : vector<1x512x128xbf16> to vector<512x128xbf16>
    %cst_94 = arith.constant dense<0.000000e+00> : vector<2x128xf32>
    %89 = tpu.matmul %86, %88, %cst_94 {dimension_numbers = #tpu.dot_dimension_numbers<[1], [0], [0], [1], [0, 0, 1, 1], [], []>} : vector<2x512xbf16>, vector<512x128xbf16>, vector<2x128xf32> -> vector<2x128xf32>
    %90 = arith.addf %84, %89 : vector<2x128xf32>
    %c0_95 = arith.constant 0 : index
    %c3 = arith.constant 3 : index
    %c0_96 = arith.constant 0 : index
    %91 = vector.load %arg12[%c0_95, %c3, %c0_96] : memref<2x8x512xbf16, #tpu.memory_space<vmem>>, vector<2x1x512xbf16>
    %92 = vector.shape_cast %91 : vector<2x1x512xbf16> to vector<2x512xbf16>
    %c3_97 = arith.constant 3 : index
    %c0_98 = arith.constant 0 : index
    %c0_99 = arith.constant 0 : index
    %93 = vector.load %arg6[%c3_97, %c0_98, %c0_99] : memref<8x512x128xbf16, #tpu.memory_space<vmem>>, vector<1x512x128xbf16>
    %94 = vector.shape_cast %93 : vector<1x512x128xbf16> to vector<512x128xbf16>
    %cst_100 = arith.constant dense<0.000000e+00> : vector<2x128xf32>
    %95 = tpu.matmul %92, %94, %cst_100 {dimension_numbers = #tpu.dot_dimension_numbers<[1], [0], [0], [1], [0, 0, 1, 1], [], []>} : vector<2x512xbf16>, vector<512x128xbf16>, vector<2x128xf32> -> vector<2x128xf32>
    %96 = arith.addf %90, %95 : vector<2x128xf32>
    %c0_101 = arith.constant 0 : index
    %c4 = arith.constant 4 : index
    %c0_102 = arith.constant 0 : index
    %97 = vector.load %arg12[%c0_101, %c4, %c0_102] : memref<2x8x512xbf16, #tpu.memory_space<vmem>>, vector<2x1x512xbf16>
    %98 = vector.shape_cast %97 : vector<2x1x512xbf16> to vector<2x512xbf16>
    %c4_103 = arith.constant 4 : index
    %c0_104 = arith.constant 0 : index
    %c0_105 = arith.constant 0 : index
    %99 = vector.load %arg6[%c4_103, %c0_104, %c0_105] : memref<8x512x128xbf16, #tpu.memory_space<vmem>>, vector<1x512x128xbf16>
    %100 = vector.shape_cast %99 : vector<1x512x128xbf16> to vector<512x128xbf16>
    %cst_106 = arith.constant dense<0.000000e+00> : vector<2x128xf32>
    %101 = tpu.matmul %98, %100, %cst_106 {dimension_numbers = #tpu.dot_dimension_numbers<[1], [0], [0], [1], [0, 0, 1, 1], [], []>} : vector<2x512xbf16>, vector<512x128xbf16>, vector<2x128xf32> -> vector<2x128xf32>
    %102 = arith.addf %96, %101 : vector<2x128xf32>
    %c0_107 = arith.constant 0 : index
    %c5 = arith.constant 5 : index
    %c0_108 = arith.constant 0 : index
    %103 = vector.load %arg12[%c0_107, %c5, %c0_108] : memref<2x8x512xbf16, #tpu.memory_space<vmem>>, vector<2x1x512xbf16>
    %104 = vector.shape_cast %103 : vector<2x1x512xbf16> to vector<2x512xbf16>
    %c5_109 = arith.constant 5 : index
    %c0_110 = arith.constant 0 : index
    %c0_111 = arith.constant 0 : index
    %105 = vector.load %arg6[%c5_109, %c0_110, %c0_111] : memref<8x512x128xbf16, #tpu.memory_space<vmem>>, vector<1x512x128xbf16>
    %106 = vector.shape_cast %105 : vector<1x512x128xbf16> to vector<512x128xbf16>
    %cst_112 = arith.constant dense<0.000000e+00> : vector<2x128xf32>
    %107 = tpu.matmul %104, %106, %cst_112 {dimension_numbers = #tpu.dot_dimension_numbers<[1], [0], [0], [1], [0, 0, 1, 1], [], []>} : vector<2x512xbf16>, vector<512x128xbf16>, vector<2x128xf32> -> vector<2x128xf32>
    %108 = arith.addf %102, %107 : vector<2x128xf32>
    %c0_113 = arith.constant 0 : index
    %c6 = arith.constant 6 : index
    %c0_114 = arith.constant 0 : index
    %109 = vector.load %arg12[%c0_113, %c6, %c0_114] : memref<2x8x512xbf16, #tpu.memory_space<vmem>>, vector<2x1x512xbf16>
    %110 = vector.shape_cast %109 : vector<2x1x512xbf16> to vector<2x512xbf16>
    %c6_115 = arith.constant 6 : index
    %c0_116 = arith.constant 0 : index
    %c0_117 = arith.constant 0 : index
    %111 = vector.load %arg6[%c6_115, %c0_116, %c0_117] : memref<8x512x128xbf16, #tpu.memory_space<vmem>>, vector<1x512x128xbf16>
    %112 = vector.shape_cast %111 : vector<1x512x128xbf16> to vector<512x128xbf16>
    %cst_118 = arith.constant dense<0.000000e+00> : vector<2x128xf32>
    %113 = tpu.matmul %110, %112, %cst_118 {dimension_numbers = #tpu.dot_dimension_numbers<[1], [0], [0], [1], [0, 0, 1, 1], [], []>} : vector<2x512xbf16>, vector<512x128xbf16>, vector<2x128xf32> -> vector<2x128xf32>
    %114 = arith.addf %108, %113 : vector<2x128xf32>
    %c0_119 = arith.constant 0 : index
    %c0_120 = arith.constant 0 : index
    %115 = vector.load %arg7[%c0_119, %c0_120] : memref<1x128xf32, #tpu.memory_space<vmem>>, vector<1x128xf32>
    %116 = vector.broadcast %115 : vector<1x128xf32> to vector<2x128xf32>
    %117 = arith.addf %114, %116 : vector<2x128xf32>
    %cst_121 = arith.constant 0.000000e+00 : f32
    %118 = vector.broadcast %cst_121 : f32 to vector<2x128xf32>
    %119 = arith.maximumf %117, %118 : vector<2x128xf32>
    %120 = arith.truncf %119 : vector<2x128xf32> to vector<2x128xbf16>
    %c0_122 = arith.constant 0 : index
    %c0_123 = arith.constant 0 : index
    %121 = vector.load %arg8[%c0_122, %c0_123] : memref<128x10xbf16, #tpu.memory_space<vmem>>, vector<128x10xbf16>
    %cst_124 = arith.constant dense<0.000000e+00> : vector<2x10xf32>
    %122 = tpu.matmul %120, %121, %cst_124 {dimension_numbers = #tpu.dot_dimension_numbers<[1], [0], [0], [1], [0, 0, 1, 1], [], []>} : vector<2x128xbf16>, vector<128x10xbf16>, vector<2x10xf32> -> vector<2x10xf32>
    %c0_125 = arith.constant 0 : index
    %c0_126 = arith.constant 0 : index
    %123 = vector.load %arg9[%c0_125, %c0_126] : memref<1x10xf32, #tpu.memory_space<vmem>>, vector<1x10xf32>
    %124 = vector.broadcast %123 : vector<1x10xf32> to vector<2x10xf32>
    %125 = arith.addf %122, %124 : vector<2x10xf32>
    %c0_127 = arith.constant 0 : index
    %c0_128 = arith.constant 0 : index
    %126 = vector.load %arg10[%c0_127, %c0_128] : memref<2x10xf32, #tpu.memory_space<vmem>>, vector<2x10xf32>
    tpu.vector_store %arg10[%c0_127, %c0_128], %125 {strides = array<i32>} : memref<2x10xf32, #tpu.memory_space<vmem>>, vector<2x10xf32>,
    return
  }
  func.func @transform_0(%arg0: i32) -> (i32, i32, i32) {
    %c0_i32 = arith.constant 0 : i32
    %c0_i32_0 = arith.constant 0 : i32
    %c0_i32_1 = arith.constant 0 : i32
    return %arg0, %c0_i32, %c0_i32_0 : i32, i32, i32
  }
  func.func @transform_1(%arg0: i32) -> (i32, i32) {
    %c0_i32 = arith.constant 0 : i32
    %c0_i32_0 = arith.constant 0 : i32
    %c0_i32_1 = arith.constant 0 : i32
    return %c0_i32, %c0_i32_0 : i32, i32
  }
  func.func @transform_2(%arg0: i32) -> (i32, i32) {
    %c0_i32 = arith.constant 0 : i32
    %c0_i32_0 = arith.constant 0 : i32
    %c0_i32_1 = arith.constant 0 : i32
    return %c0_i32, %c0_i32_0 : i32, i32
  }
  func.func @transform_3(%arg0: i32) -> (i32, i32) {
    %c0_i32 = arith.constant 0 : i32
    %c0_i32_0 = arith.constant 0 : i32
    %c0_i32_1 = arith.constant 0 : i32
    return %c0_i32, %c0_i32_0 : i32, i32
  }
  func.func @transform_4(%arg0: i32) -> (i32, i32) {
    %c0_i32 = arith.constant 0 : i32
    %c0_i32_0 = arith.constant 0 : i32
    %c0_i32_1 = arith.constant 0 : i32
    return %c0_i32, %c0_i32_0 : i32, i32
  }
  func.func @transform_5(%arg0: i32) -> (i32, i32, i32) {
    %c0_i32 = arith.constant 0 : i32
    %c0_i32_0 = arith.constant 0 : i32
    %c0_i32_1 = arith.constant 0 : i32
    %c0_i32_2 = arith.constant 0 : i32
    return %c0_i32, %c0_i32_0, %c0_i32_1 : i32, i32, i32
  }
  func.func @transform_6(%arg0: i32) -> (i32, i32) {
    %c0_i32 = arith.constant 0 : i32
    %c0_i32_0 = arith.constant 0 : i32
    %c0_i32_1 = arith.constant 0 : i32
    return %c0_i32, %c0_i32_0 : i32, i32
  }
  func.func @transform_7(%arg0: i32) -> (i32, i32) {
    %c0_i32 = arith.constant 0 : i32
    %c0_i32_0 = arith.constant 0 : i32
    %c0_i32_1 = arith.constant 0 : i32
    return %c0_i32, %c0_i32_0 : i32, i32
  }
  func.func @transform_8(%arg0: i32) -> (i32, i32) {
    %c0_i32 = arith.constant 0 : i32
    %c0_i32_0 = arith.constant 0 : i32
    %c0_i32_1 = arith.constant 0 : i32
    return %c0_i32, %c0_i32_0 : i32, i32
  }
  func.func @transform_9(%arg0: i32) -> (i32, i32) {
    %c0_i32 = arith.constant 0 : i32
    %c0_i32_0 = arith.constant 0 : i32
    return %arg0, %c0_i32 : i32, i32
  }
}

</mosaic_0001>

<bundles_post_ra>
// kernel: tpu_custom_call.1
= control target key start
LH: loop header
LB: loop body
LE: loop exit
PB: predicated region body
PF: predicated region fallthrough
CT: control target
= control target key end

     0   :  { %14 = vsyncpa [#allocation5], 0  ;;  %s13594_s0 = inlined_call_operand.vmem [shape: f32[2,36,32], index: 0, kind: input, shape index: {}]   ;;  %s13595_s1 = inlined_call_operand.hbm [shape: bf16[96,1024], index: 1, kind: input, shape index: {}]   ;;  %s13596_s2 = inlined_call_operand.hbm [shape: f32[1,1024], index: 2, kind: input, shape index: {}]   ;;  %s13597_s3 = inlined_call_operand.hbm [shape: bf16[1536,1024], index: 3, kind: input, shape index: {}]   ;;  %s13598_s4 = inlined_call_operand.hbm [shape: f32[1,1024], index: 4, kind: input, shape index: {}]   ;;  %s13599_s5 = inlined_call_operand.hbm [shape: bf16[8,512,128], index: 5, kind: input, shape index: {}]   ;;  %s13600_s6 = inlined_call_operand.hbm [shape: f32[1,128], index: 6, kind: input, shape index: {}]   ;;  %s13601_s7 = inlined_call_operand.vmem [shape: bf16[128,10], index: 7, kind: input, shape index: {}]   ;;  %s13602_s8 = inlined_call_operand.hbm [shape: f32[1,10], index: 8, kind: input, shape index: {}]   ;;  %s13603_s9 = inlined_call_operand.hbm [shape: f32[2,10], index: 9, kind: output, shape index: {}]  }
   0x1   :  { %15 = vsyncpa [#allocation8], 0 }
   0x2   :  { %16 = vsyncpa [#allocation11], 0 }
   0x3   :  { %17 = vsyncpa [#allocation14], 0 }
   0x4   :  { %18 = vsyncpa [#allocation6], 0  ;;  %s12127_s30 = smov [#allocation7]   ;;  %s12128_s11 = smov [#allocation10]  }
   0x5   :  { %s39_s10 = sshll.u32 %s12127_s30, 4  ;;  %s61_s12 = sshll.u32 %s12128_s11, 4  ;;  %s40_s10 = int_to_ptr.vmem [resolvable:$true] %s39_s10  ;;  %s62_s12 = int_to_ptr.vmem [resolvable:$true] %s61_s12 }
   0x6   :  { %s11941_s15 = scalar_lea.hbm %s13596_s2, 128 }
   0x7   :  { %p11942_p0 = scmp.ne.s32.totalorder %s13596_s2, %s11941_s15  ;;  %p11945_p1 = scmp.lt.u32.totalorder %s11941_s15, %s13596_s2 }
   0x9   :  { %p11947_p2 = pnand %p11945_p1, %p11942_p0 }
   0xb   :  { %11950 = shalt.err (!%p11947_p2)
}
   0xc   :  { %s11951_s20 = scalar_lea.vmem %s40_s10, 128  ;;  %p11956_p4 = scmp.lt.s32.totalorder %s40_s10, %s40_s10 }
   0xd   :  { %p11952_p3 = scmp.ne.s32.totalorder %s40_s10, %s11951_s20  ;;  %p11957_p5 = scmp.lt.s32.totalorder %s11951_s20, %s11951_s20 }
   0xf   :  { %p11958_p6 = por %p11957_p5, %p11956_p4 }
  0x11   :  { %p11959_p7 = pnand %p11958_p6, %p11952_p3 }
  0x13   :  { %11962 = shalt.err (!%p11959_p7)
}
  0x14   :  { %42 = dma.hbm_to_vmem [thread:$0]  %s13596_s2, 128, %s40_s10, [#allocation8]  }
  0x15   :  { %s11963_s25 = scalar_lea.hbm %s13598_s4, 128 }
  0x16   :  { %p11964_p8 = scmp.ne.s32.totalorder %s13598_s4, %s11963_s25  ;;  %p11967_p9 = scmp.lt.u32.totalorder %s11963_s25, %s13598_s4 }
  0x18   :  { %p11969_p10 = pnand %p11967_p9, %p11964_p8 }
  0x1a   :  { %11972 = shalt.err (!%p11969_p10)
}
  0x1b   :  { %s11973_s30 = scalar_lea.vmem %s62_s12, 128  ;;  %p11978_p12 = scmp.lt.s32.totalorder %s62_s12, %s62_s12 }
  0x1c   :  { %p11974_p11 = scmp.ne.s32.totalorder %s62_s12, %s11973_s30  ;;  %p11979_p13 = scmp.lt.s32.totalorder %s11973_s30, %s11973_s30 }
  0x1e   :  { %p11980_p0 = por %p11979_p13, %p11978_p12 }
  0x20   :  { %p11981_p1 = pnand %p11980_p0, %p11974_p11 }
  0x22   :  { %11984 = shalt.err (!%p11981_p1)
}
  0x23   :  { %64 = dma.hbm_to_vmem [thread:$0]  %s13598_s4, 128, %s62_s12, [#allocation11]  }
  0x24   :  { %s12129_s11 = smov [#allocation13]   ;;  %s12130_s14 = smov [#allocation4]  }
  0x25   :  { %s83_s13 = sshll.u32 %s12129_s11, 4  ;;  %s26_s15 = sshll.u32 %s12130_s14, 4  ;;  %s84_s13 = int_to_ptr.vmem [resolvable:$true] %s83_s13  ;;  %s12216_s15 = int_to_ptr.vmem [resolvable:$true] %s26_s15 }
  0x26   :  { %s11985_s18 = scalar_lea.hbm %s13600_s6, 16 }
  0x27   :  { %p11986_p2 = scmp.ne.s32.totalorder %s13600_s6, %s11985_s18  ;;  %p11989_p3 = scmp.lt.u32.totalorder %s11985_s18, %s13600_s6 }
  0x29   :  { %p11991_p4 = pnand %p11989_p3, %p11986_p2 }
  0x2b   :  { %11994 = shalt.err (!%p11991_p4)
}
  0x2c   :  { %s11995_s4 = scalar_lea.vmem %s84_s13, 16  ;;  %s11999_s12 = scalar_lea.vmem %s84_s13, 32 }
  0x2d   :  { %p11996_p5 = scmp.ne.s32.totalorder %s84_s13, %s11995_s4  ;;  %p12000_p6 = scmp.lt.s32.totalorder %s84_s13, %s84_s13 }
  0x2e   :  { %p12001_p7 = scmp.lt.s32.totalorder %s11999_s12, %s11995_s4 }
  0x30   :  { %p12002_p8 = por %p12001_p7, %p12000_p6 }
  0x32   :  { %p12003_p9 = pnand %p12002_p8, %p11996_p5 }
  0x34   :  { %12006 = shalt.err (!%p12003_p9)
}
  0x35   :  { %86 = dma.hbm_to_vmem [thread:$0]  %s13600_s6, 16, %s84_s13, [#allocation14]  }
  0x36   :  { %s12007_s27 = scalar_lea.hbm %s13595_s1, 6144 }
  0x37   :  { %p12008_p10 = scmp.ne.s32.totalorder %s13595_s1, %s12007_s27  ;;  %p12011_p11 = scmp.lt.u32.totalorder %s12007_s27, %s13595_s1 }
  0x39   :  { %p12013_p12 = pnand %p12011_p11, %p12008_p10 }
  0x3b   :  { %12016 = shalt.err (!%p12013_p12)
}
  0x3c   :  { %s12017_s10 = scalar_lea.vmem %s12216_s15, 6144  ;;  %p12022_p0 = scmp.lt.s32.totalorder %s12216_s15, %s12216_s15 }
  0x3d   :  { %p12018_p13 = scmp.ne.s32.totalorder %s12216_s15, %s12017_s10  ;;  %p12023_p1 = scmp.lt.s32.totalorder %s12017_s10, %s12017_s10 }
  0x3f   :  { %p12024_p2 = por %p12023_p1, %p12022_p0 }
  0x41   :  { %p12025_p3 = pnand %p12024_p2, %p12018_p13 }
  0x43   :  { %12028 = shalt.err (!%p12025_p3)
}
  0x44   :  { %s12131_s6 = smov 512   ;;  %s12132_s11 = smov 32  }
  0x45   :  { %32 = dma.hbm_to_vmem [thread:$0]  %s13595_s1, 6144, %s12216_s15, [#allocation5], %s12131_s6, %s12131_s6, %s12132_s11  }
  0x46   :  { %s12133_s16 = smov [#allocation9]   ;;  %s12134_s18 = smov [#allocation12]  }
  0x47   :  { %s48_s17 = sshll.u32 %s12133_s16, 4  ;;  %s70_s19 = sshll.u32 %s12134_s18, 4  ;;  %s49_s17 = int_to_ptr.vmem [resolvable:$true] %s48_s17  ;;  %s12248_s19 = int_to_ptr.vmem [resolvable:$true] %s70_s19 }
  0x48   :  { %s12029_s22 = scalar_lea.hbm %s13597_s3, 98304 }
  0x49   :  { %p12030_p4 = scmp.ne.s32.totalorder %s13597_s3, %s12029_s22  ;;  %p12033_p5 = scmp.lt.u32.totalorder %s12029_s22, %s13597_s3 }
  0x4b   :  { %p12035_p6 = pnand %p12033_p5, %p12030_p4 }
  0x4d   :  { %12038 = shalt.err (!%p12035_p6)
}
  0x4e   :  { %s12039_s1 = scalar_lea.vmem %s49_s17, 98304  ;;  %p12044_p8 = scmp.lt.s32.totalorder %s49_s17, %s49_s17 }
  0x4f   :  { %p12040_p7 = scmp.ne.s32.totalorder %s49_s17, %s12039_s1  ;;  %p12045_p9 = scmp.lt.s32.totalorder %s12039_s1, %s12039_s1 }
  0x51   :  { %p12046_p10 = por %p12045_p9, %p12044_p8 }
  0x53   :  { %p12047_p11 = pnand %p12046_p10, %p12040_p7 }
  0x55   :  { %12050 = shalt.err (!%p12047_p11)
}
  0x56   :  { %54 = dma.hbm_to_vmem [thread:$0]  %s13597_s3, 98304, %s49_s17, [#allocation8], %s12131_s6, %s12131_s6, %s12132_s11  }
  0x57   :  { %s12051_s28 = scalar_lea.hbm %s13599_s5, 32768 }
  0x58   :  { %p12052_p12 = scmp.ne.s32.totalorder %s13599_s5, %s12051_s28  ;;  %p12055_p13 = scmp.lt.u32.totalorder %s12051_s28, %s13599_s5 }
  0x5a   :  { %p12057_p0 = pnand %p12055_p13, %p12052_p12 }
  0x5c   :  { %12060 = shalt.err (!%p12057_p0)
}
  0x5d   :  { %s12061_s13 = scalar_lea.vmem %s12248_s19, 32768  ;;  %p12066_p2 = scmp.lt.s32.totalorder %s12248_s19, %s12248_s19 }
  0x5e   :  { %p12062_p1 = scmp.ne.s32.totalorder %s12248_s19, %s12061_s13  ;;  %p12067_p3 = scmp.lt.s32.totalorder %s12061_s13, %s12061_s13 }
  0x60   :  { %p12068_p4 = por %p12067_p3, %p12066_p2 }
  0x62   :  { %p12069_p5 = pnand %p12068_p4, %p12062_p1 }
  0x64   :  { %12072 = shalt.err (!%p12069_p5)
}
  0x65   :  { %s12135_s3 = smov 64   ;;  %s12136_s6 = smov 4  }
  0x66   :  { %76 = dma.hbm_to_vmem [thread:$0]  %s13599_s5, 32768, %s12248_s19, [#allocation11], %s12135_s3, %s12135_s3, %s12136_s6  }
  0x67   :  { %s12137_s17 = smov [#allocation15]   ;;  %s12073_s22 = scalar_lea.hbm %s13602_s8, 16 }
  0x68   :  { %s95_s18 = sshll.u32 %s12137_s17, 4  ;;  %p12074_p6 = scmp.ne.s32.totalorder %s13602_s8, %s12073_s22  ;;  %s96_s18 = int_to_ptr.vmem [resolvable:$true] %s95_s18 }
  0x69   :  { %p12077_p7 = scmp.lt.u32.totalorder %s12073_s22, %s13602_s8 }
  0x6b   :  { %p12079_p8 = pnand %p12077_p7, %p12074_p6 }
  0x6d   :  { %12082 = shalt.err (!%p12079_p8)
}
  0x6e   :  { %s12083_s1 = scalar_lea.vmem %s96_s18, 16  ;;  %s12087_s5 = scalar_lea.vmem %s96_s18, 32 }
  0x6f   :  { %p12084_p9 = scmp.ne.s32.totalorder %s96_s18, %s12083_s1  ;;  %p12088_p10 = scmp.lt.s32.totalorder %s96_s18, %s96_s18 }
  0x70   :  { %p12089_p11 = scmp.lt.s32.totalorder %s12087_s5, %s12083_s1 }
  0x72   :  { %p12090_p12 = por %p12089_p11, %p12088_p10 }
  0x74   :  { %p12091_p13 = pnand %p12090_p12, %p12084_p9 }
  0x76   :  { %12094 = shalt.err (!%p12091_p13)
}
  0x77   :  { %98 = dma.hbm_to_vmem [thread:$0]  %s13602_s8, 16, %s96_s18, [#allocation14]  }
  0x78   :  { %12117 = dma.done.wait [#allocation5], 6144  }
  0x79   :  { %12118 = vsyncadd [#allocation5], 4294961152 }
  0x7a   :  { %12119 = dma.done.wait [#allocation8], 98432  }
  0x7b   :  { %12120 = vsyncadd [#allocation8], 4294868864 }
  0x7c   :  { %12121 = dma.done.wait [#allocation11], 32896  }
  0x7d   :  { %12122 = vsyncadd [#allocation11], 4294934400 }
  0x7e   :  { %12123 = dma.done.wait [#allocation14], 32  }
  0x7f   :  { %12124 = vsyncadd [#allocation14], 4294967264  ;;  %v12138_v0 = vmov 0   ;;  %v12299_v1 = vld [vmem:[%s13594_s0 + $0x9] sm:$0xff]  ;;  %v12304_v2 = vld [vmem:[%s13594_s0 + $0x1b] sm:$0xff]  ;;  %vm143_vm0 = vcmask 261120  }
  0x80   :  { %588 = vmatprep.mubr.bf16.mxu0 %v12138_v0  ;;  %618 = vmatprep.mubr.bf16.mxu1 %v12138_v0  ;;  %v12309_v3 = vld [vmem:[%s13594_s0 + $0x12] sm:$0xff]  ;;  %v11635_v4 = vpack.i.bf16 %v12304_v2, %v12299_v1  ;;  %v151_v5 = vld [vmem:[%s13594_s0 + $0x1] sm:$0xff]  ;;  %v189_v6 = vld [vmem:[%s13594_s0 + $0xa] sm:$0xff]  ;;  %vm146_vm1 = vcmask 523264   ;;  %vm543_vm2 = vcmask 785408   ;;  %vm1073_vm4 = vcmask 1046528  }
  0x81   :  { %v11645_v7 = vpack.i.bf16 %v151_v5, %v12309_v3  ;;  %v12323_v8 = vld [vmem:[%s13594_s0 + $0x31] sm:$0xff]  ;;  %v12329_v9 = vld [vmem:[%s13594_s0 + $0x43] sm:$0xff]  ;;  %v11650_v12 = vpack.i.bf16 %v189_v6, %v12304_v2  ;;  %v12336_v13 = vld [vmem:[%s13594_s0 + $0x3a] sm:$0xff]  ;;  %vm7370_vm5 = vcmask 1041409   ;;  %vm12140_vm6 = vmmov 0  }
  0x82   :  { %11636 = vrot.lane.b32.xlu0 %v11635_v4, %s12132_s11  ;;  %v213_v10 = vld [vmem:[#allocation4] sm:$0xff]  ;;  %v152_v18 = vld [vmem:[%s13594_s0 + $0x29] sm:$0xff]  ;;  %v11655_v22 = vpack.i.bf16 %v12329_v9, %v12323_v8  ;;  %v190_v28 = vld [vmem:[%s13594_s0 + $0x32] sm:$0xff]  ;;  %vm9953_vm7 = vcmask 74752  }
  0x83   :  { %v217_v11 = vld [vmem:[#allocation4 + $0x20] sm:$0xff]  ;;  %11646 = vrot.lane.b32.xlu1 %v11645_v7, %s12132_s11  ;;  %v11660_v24 = vpack.i.bf16 %v152_v18, %v12336_v13  ;;  %v12346_v26 = vld [vmem:[#allocation4 + $0x10] sm:$0xff]  ;;  %v12355_v32 = vld [vmem:[#allocation4 + $0x8] sm:$0xff]  ;;  %v11670_v36 = vpack.i.bf16 %v190_v28, %v12329_v9 }
  0x84   :  { %v9974_v14 = vcombine.high %v213_v10, %v217_v11  ;;  %v9973_v15 = vcombine.low %v213_v10, %v217_v11  ;;  %v221_v16 = vld [vmem:[#allocation4 + $0x40] sm:$0xff]  ;;  %v12348_v27 = vld [vmem:[#allocation4 + $0x30] sm:$0xff]  ;;  %v12357_v33 = vld [vmem:[#allocation4 + $0x28] sm:$0xff] }
  0x85   :  { %v225_v17 = vld [vmem:[#allocation4 + $0x60] sm:$0xff]  ;;  %v9977_v31 = vcombine.low %v12346_v26, %v12348_v27  ;;  %v9975_v35 = vcombine.low %v12355_v32, %v12357_v33  ;;  %v9978_v47 = vcombine.high %v12346_v26, %v12348_v27  ;;  %v9976_v48 = vcombine.high %v12355_v32, %v12357_v33  ;;  %v223_v54 = vld [vmem:[#allocation4 + $0x50] sm:$0xff]  ;;  %v222_v28 = vld [vmem:[#allocation4 + $0x48] sm:$0xff] }
  0x86   :  { %v9982_v19 = vcombine.high %v221_v16, %v225_v17  ;;  %v229_v20 = vld [vmem:[#allocation4 + $0x80] sm:$0xff]  ;;  %556 = vmatprep.subr.bf16.mxu0 %v9974_v14  ;;  %11416 = vmatprep.subr.bf16.mxu1 %v9974_v14  ;;  %v9981_v23 = vcombine.low %v221_v16, %v225_v17  ;;  %v227_v55 = vld [vmem:[#allocation4 + $0x70] sm:$0xff] }
  0x87   :  { %v233_v21 = vld [vmem:[#allocation4 + $0xa0] sm:$0xff]  ;;  %11641 = vrot.lane.b32.xlu0 %v11645_v7, %s12135_s3  ;;  %557 = vmatpush1.bf16.msra.mxu0 %v9973_v15  ;;  %v231_v10 = vld [vmem:[#allocation4 + $0x90] sm:$0xff] }
  0x88   :  { %11651 = vrot.lane.b32.xlu1 %v11650_v12, %s12135_s3  ;;  %558 = vmatprep.subr.bf16.mxu0 %v9982_v19  ;;  %v9990_v25 = vcombine.high %v229_v20, %v233_v21  ;;  %v237_v29 = vld [vmem:[#allocation4 + $0xc0] sm:$0xff]  ;;  %v9989_v34 = vcombine.low %v229_v20, %v233_v21  ;;  %v235_v11 = vld [vmem:[#allocation4 + $0xb0] sm:$0xff] }
  0x89   :  { %11422 = vmatpush1.bf16.msra.mxu1 %v9973_v15  ;;  %v241_v30 = vld [vmem:[#allocation4 + $0xe0] sm:$0xff]  ;;  %v239_v18 = vld [vmem:[#allocation4 + $0xd0] sm:$0xff] }
  0x8a   :  { %11417 = vmatprep.subr.bf16.mxu1 %v9982_v19  ;;  %v9998_v37 = vcombine.high %v237_v29, %v241_v30  ;;  %v245_v38 = vld [vmem:[#allocation4 + $0x100] sm:$0xff]  ;;  %v9997_v40 = vcombine.low %v237_v29, %v241_v30  ;;  %v243_v19 = vld [vmem:[#allocation4 + $0xf0] sm:$0xff]  ;;  %v226_v29 = vld [vmem:[#allocation4 + $0x68] sm:$0xff] }
  0x8b   :  { %11656 = vrot.lane.b32.xlu0 %v11655_v22, %s12132_s11  ;;  %559 = vmatpush1.bf16.msra.mxu0 %v9981_v23  ;;  %v249_v39 = vld [vmem:[#allocation4 + $0x120] sm:$0xff]  ;;  %v10002_v26 = vcombine.high %v239_v18, %v243_v19 }
  0x8c   :  { %11661 = vrot.lane.b32.xlu1 %v11660_v24, %s12135_s3  ;;  %560 = vmatprep.subr.bf16.mxu0 %v9990_v25  ;;  %v10006_v41 = vcombine.high %v245_v38, %v249_v39  ;;  %v253_v42 = vld [vmem:[#allocation4 + $0x140] sm:$0xff]  ;;  %v10005_v44 = vcombine.low %v245_v38, %v249_v39 }
  0x8d   :  { %11423 = vmatpush1.bf16.msra.mxu1 %v9981_v23  ;;  %v257_v43 = vld [vmem:[#allocation4 + $0x160] sm:$0xff] }
  0x8e   :  { %11418 = vmatprep.subr.bf16.mxu1 %v9990_v25  ;;  %v10014_v45 = vcombine.high %v253_v42, %v257_v43  ;;  %v10013_v46 = vcombine.low %v253_v42, %v257_v43  ;;  %v121_v50 = vld [vmem:[%s13594_s0] sm:$0xff]  ;;  %v9994_v25 = vcombine.high %v231_v10, %v235_v11  ;;  %v247_v43 = vld [vmem:[#allocation4 + $0x110] sm:$0xff] }
  0x8f   :  { %11666 = vrot.lane.b32.xlu0 %v11660_v24, %s12132_s11  ;;  %561 = vmatpush1.bf16.msra.mxu0 %v9989_v34 }
  0x90   :  { %11671 = vrot.lane.b32.xlu1 %v11670_v36, %s12135_s3  ;;  %562 = vmatprep.subr.bf16.mxu0 %v9998_v37 }
  0x91   :  { %11424 = vmatpush1.bf16.msra.mxu1 %v9989_v34 }
  0x92   :  { %11419 = vmatprep.subr.bf16.mxu1 %v9998_v37  ;;  %v9993_v37 = vcombine.low %v231_v10, %v235_v11  ;;  %v1206_v10 = vld [vmem:[#allocation9 + $0x60] sm:$0xff] }
  0x93   :  { %563 = vmatpush1.bf16.msra.mxu0 %v9997_v40 }
  0x94   :  { %564 = vmatprep.subr.bf16.mxu0 %v10006_v41 }
  0x95   :  { %11425 = vmatpush1.bf16.msra.mxu1 %v9997_v40 }
  0x96   :  { %11420 = vmatprep.subr.bf16.mxu1 %v10006_v41 }
  0x97   :  { %565 = vmatpush1.bf16.msra.mxu0 %v10005_v44 }
  0x98   :  { %566 = vmatprep.subr.bf16.mxu0 %v10014_v45 }
  0x99   :  { %11426 = vmatpush1.bf16.msra.mxu1 %v10005_v44  ;;  %v251_v44 = vld [vmem:[#allocation4 + $0x130] sm:$0xff] }
  0x9a   :  { %11421 = vmatprep.subr.bf16.mxu1 %v10014_v45 }
  0x9b   :  { %567 = vmatpush1.bf16.msra.mxu0 %v10013_v46 }
  0x9c   :  { %702 = vmatprep.subr.bf16.mxu0 %v9978_v47 }
  0x9d   :  { %11427 = vmatpush1.bf16.msra.mxu1 %v10013_v46 }
  0x9e   :  { %629 = vmatprep.subr.bf16.mxu1 %v9976_v48 }
  0xf4   :  { %v11637_v49 = vpop.permute.xlu0 %11636 }
  0xf5   :  { %v11647_v51 = vpop.permute.xlu1 %11646  ;;  %v11639_v52 = vunpack.i.h.bf16 %v11637_v49  ;;  %v11638_v53 = vunpack.i.l.bf16 %v11637_v49  ;;  %v230_v49 = vld [vmem:[#allocation4 + $0x88] sm:$0xff] }
  0xf6   :  { %v11649_v56 = vunpack.i.h.bf16 %v11647_v51  ;;  %v11648_v57 = vunpack.i.l.bf16 %v11647_v51 }
  0xf7   :  { %v169_v62 = vsel %vm143_vm0, %v12309_v3, %v11639_v52  ;;  %v144_v63 = vsel %vm143_vm0, %v121_v50, %v11638_v53  ;;  %v9986_v3 = vcombine.high %v223_v54, %v227_v55  ;;  %v234_v50 = vld [vmem:[#allocation4 + $0xa8] sm:$0xff]  ;;  %v255_v53 = vld [vmem:[#allocation4 + $0x150] sm:$0xff] }
  0xf8   :  { %v205_v12 = vsel %vm143_vm0, %v12304_v2, %v11649_v56  ;;  %v185_v14 = vsel %vm143_vm0, %v12299_v1, %v11648_v57  ;;  %v122_v2 = vld [vmem:[%s13594_s0 + $0x28] sm:$0xff]  ;;  %v9985_v1 = vcombine.low %v223_v54, %v227_v55  ;;  %v259_v54 = vld [vmem:[#allocation4 + $0x170] sm:$0xff]  ;;  %v9983_v55 = vcombine.low %v222_v28, %v226_v29 }
  0xf9   :  { %v11642_v58 = vpop.permute.xlu0 %11641  ;;  %v10010_v56 = vcombine.high %v247_v43, %v251_v44  ;;  %v238_v57 = vld [vmem:[#allocation4 + $0xc8] sm:$0xff]  ;;  %v9991_v32 = vcombine.low %v230_v49, %v234_v50  ;;  %v10018_v33 = vcombine.high %v255_v53, %v259_v54 }
  0xfa   :  { %v11644_v59 = vunpack.i.h.bf16 %v11642_v58  ;;  %v11643_v60 = vunpack.i.l.bf16 %v11642_v58  ;;  %v11652_v61 = vpop.permute.xlu1 %11651  ;;  %v242_v58 = vld [vmem:[#allocation4 + $0xe8] sm:$0xff] }
  0xfb   :  { %v11654_v6 = vunpack.i.h.bf16 %v11652_v61  ;;  %v11653_v7 = vunpack.i.l.bf16 %v11652_v61  ;;  %v10009_v61 = vcombine.low %v247_v43, %v251_v44  ;;  %v9999_v11 = vcombine.low %v238_v57, %v242_v58  ;;  %v256_v43 = vld [vmem:[#allocation4 + $0x158] sm:$0xff] }
  0xfc   :  { %v147_v4 = vsel %vm146_vm1, %v144_v63, %v11643_v60  ;;  %v171_v5 = vsel %vm146_vm1, %v169_v62, %v11644_v59  ;;  %v9992_v59 = vcombine.high %v230_v49, %v234_v50  ;;  %v1194_v62 = vld [vmem:[#allocation9] sm:$0xff]  ;;  %v260_v44 = vld [vmem:[#allocation4 + $0x178] sm:$0xff] }
  0xfd   :  { %v12382_v15 = vpack.c.bf16 %v171_v5, %v147_v4  ;;  %v11657_v16 = vpop.permute.xlu0 %11656  ;;  %v187_v20 = vsel %vm146_vm1, %v185_v14, %v11653_v7  ;;  %v207_v21 = vsel %vm146_vm1, %v205_v12, %v11654_v6  ;;  %v1198_v63 = vld [vmem:[#allocation9 + $0x20] sm:$0xff]  ;;  %v10000_v5 = vcombine.high %v238_v57, %v242_v58  ;;  %v1211_v57 = vld [vmem:[#allocation9 + $0x88] sm:$0xff] }
  0xfe   :  { %v11662_v17 = vpop.permute.xlu1 %11661  ;;  %v11659_v22 = vunpack.i.h.bf16 %v11657_v16  ;;  %v11658_v23 = vunpack.i.l.bf16 %v11657_v16  ;;  %v12395_v38 = vpack.c.bf16 %v207_v21, %v187_v20  ;;  %v250_v4 = vld [vmem:[#allocation4 + $0x128] sm:$0xff]  ;;  %v10017_v6 = vcombine.low %v255_v53, %v259_v54  ;;  %v220_v20 = vld [vmem:[#allocation4 + $0x38] sm:$0xff]  ;;  %v1215_v58 = vld [vmem:[#allocation9 + $0xa8] sm:$0xff] }
  0xff   :  { %10021 = vmatmul.mubr.msk.bf16.vlgmr.msra.gmra.mrb[0].mxu0 %vm543_vm2, %v12382_v15  ;;  %v11664_v27 = vunpack.i.h.bf16 %v11662_v17  ;;  %v1202_v7 = vld [vmem:[#allocation9 + $0x40] sm:$0xff]  ;;  %v10038_v16 = vcombine.high %v1194_v62, %v1198_v63  ;;  %v10020_v49 = vcombine.high %v256_v43, %v260_v44  ;;  %v10019_v50 = vcombine.low %v256_v43, %v260_v44  ;;  %v1259_v43 = vld [vmem:[#allocation9 + $0x208] sm:$0xff] }
 0x100   :  { %703 = vmatpush1.bf16.msra.mxu0 %v9977_v31  ;;  %598 = vmatprep.mubr.bf16.mxu0 %v12138_v0  ;;  %v11663_v31 = vunpack.i.l.bf16 %v11662_v17  ;;  %v170_v45 = vsel %vm143_vm0, %v12336_v13, %v11659_v22  ;;  %v145_v46 = vsel %vm143_vm0, %v122_v2, %v11658_v23  ;;  %v10001_v13 = vcombine.low %v239_v18, %v243_v19  ;;  %v254_v12 = vld [vmem:[#allocation4 + $0x148] sm:$0xff]  ;;  %v216_v19 = vld [vmem:[#allocation4 + $0x18] sm:$0xff] }
 0x101   :  { %v11667_v24 = vpop.permute.xlu0 %11666  ;;  %704 = vmatprep.subr.bf16.mxu0 %v9986_v3  ;;  %v172_v52 = vsel %vm146_vm1, %v170_v45, %v11664_v27  ;;  %v258_v14 = vld [vmem:[#allocation4 + $0x168] sm:$0xff]  ;;  %v10037_v17 = vcombine.low %v1194_v62, %v1198_v63  ;;  %v10046_v21 = vcombine.high %v1202_v7, %v1206_v10  ;;  %v224_v23 = vld [vmem:[#allocation4 + $0x58] sm:$0xff]  ;;  %v10056_v62 = vcombine.high %v1211_v57, %v1215_v58 }
 0x102   :  { %v11669_v30 = vunpack.i.h.bf16 %v11667_v24  ;;  %v11668_v34 = vunpack.i.l.bf16 %v11667_v24  ;;  %v11672_v36 = vpop.permute.xlu1 %11671  ;;  %v10016_v2 = vcombine.high %v254_v12, %v258_v14  ;;  %v10015_v22 = vcombine.low %v254_v12, %v258_v14  ;;  %v228_v24 = vld [vmem:[#allocation4 + $0x78] sm:$0xff]  ;;  %v1218_v63 = vld [vmem:[#allocation9 + $0xc0] sm:$0xff] }
 0x103   :  { %v11674_v39 = vunpack.i.h.bf16 %v11672_v36  ;;  %v11673_v40 = vunpack.i.l.bf16 %v11672_v36  ;;  %v9987_v36 = vcombine.low %v224_v23, %v228_v24  ;;  %v248_v27 = vld [vmem:[#allocation4 + $0x118] sm:$0xff] }
 0x104   :  { %v206_v41 = vsel %vm143_vm0, %v12329_v9, %v11669_v30  ;;  %v186_v42 = vsel %vm143_vm0, %v12323_v8, %v11668_v34  ;;  %705 = vmatpush1.bf16.msra.mxu0 %v9985_v1  ;;  %v9984_v9 = vcombine.high %v222_v28, %v226_v29  ;;  %v148_v8 = vsel %vm146_vm1, %v145_v46, %v11663_v31  ;;  %v232_v29 = vld [vmem:[#allocation4 + $0x98] sm:$0xff] }
 0x105   :  { %v188_v47 = vsel %vm146_vm1, %v186_v42, %v11673_v40  ;;  %v208_v48 = vsel %vm146_vm1, %v206_v41, %v11674_v39  ;;  %706 = vmatprep.subr.bf16.mxu0 %v9994_v25  ;;  %v12418_v60 = vpack.c.bf16 %v172_v52, %v148_v8  ;;  %v10045_v1 = vcombine.low %v1202_v7, %v1206_v10  ;;  %v236_v30 = vld [vmem:[#allocation4 + $0xb8] sm:$0xff]  ;;  %v1203_v8 = vld [vmem:[#allocation9 + $0x48] sm:$0xff] }
 0x106   :  { %v12406_v51 = vpack.c.bf16 %v208_v48, %v188_v47  ;;  %v9980_v25 = vcombine.high %v216_v19, %v220_v20  ;;  %v9979_v28 = vcombine.low %v216_v19, %v220_v20  ;;  %v9988_v34 = vcombine.high %v224_v23, %v228_v24  ;;  %v244_v39 = vld [vmem:[#allocation4 + $0xf8] sm:$0xff]  ;;  %v1195_v47 = vld [vmem:[#allocation9 + $0x8] sm:$0xff] }
 0x107   :  { %10022 = vmatmul.mubr.msk.bf16.gmra.mrb[4].mxu0 %vm543_vm2, %v12395_v38  ;;  %v9996_v40 = vcombine.high %v232_v29, %v236_v30  ;;  %v252_v31 = vld [vmem:[#allocation4 + $0x138] sm:$0xff]  ;;  %v1199_v48 = vld [vmem:[#allocation9 + $0x28] sm:$0xff] }
 0x108   :  { %707 = vmatpush1.bf16.msra.mxu0 %v9993_v37  ;;  %10024 = vmatmul.mubr.msk.bf16.vlgmr.msra.gmra.mrb[0].mxu1 %vm543_vm2, %v12406_v51  ;;  %v240_v37 = vld [vmem:[#allocation4 + $0xd8] sm:$0xff]  ;;  %v10012_v45 = vcombine.high %v248_v27, %v252_v31  ;;  %v10011_v46 = vcombine.low %v248_v27, %v252_v31  ;;  %v1207_v52 = vld [vmem:[#allocation9 + $0x68] sm:$0xff] }
 0x109   :  { %630 = vmatpush1.bf16.msra.mxu1 %v9975_v35  ;;  %708 = vmatprep.subr.bf16.mxu0 %v10002_v26  ;;  %v246_v35 = vld [vmem:[#allocation4 + $0x108] sm:$0xff]  ;;  %v9995_v26 = vcombine.low %v232_v29, %v236_v30  ;;  %v10004_v41 = vcombine.high %v240_v37, %v244_v39  ;;  %v10003_v42 = vcombine.low %v240_v37, %v244_v39  ;;  %v1227_v7 = vld [vmem:[#allocation9 + $0x108] sm:$0xff] }
 0x10a   :  { %631 = vmatprep.subr.bf16.mxu1 %v9984_v9  ;;  %608 = vmatprep.mubr.bf16.mxu0 %v12138_v0  ;;  %v10008_v3 = vcombine.high %v246_v35, %v250_v4  ;;  %v10007_v18 = vcombine.low %v246_v35, %v250_v4  ;;  %v10040_v9 = vcombine.high %v1195_v47, %v1199_v48  ;;  %v1223_v35 = vld [vmem:[#allocation9 + $0xe8] sm:$0xff] }
 0x10b   :  { %661 = vmatprep.mubr.bf16.mxu1 %v12138_v0  ;;  %v10048_v53 = vcombine.high %v1203_v8, %v1207_v52  ;;  %v10047_v54 = vcombine.low %v1203_v8, %v1207_v52  ;;  %v1243_v23 = vld [vmem:[#allocation9 + $0x188] sm:$0xff] }
 0x10c   :  { %709 = vmatpush1.bf16.msra.mxu0 %v10001_v13  ;;  %v10039_v13 = vcombine.low %v1195_v47, %v1199_v48  ;;  %v1251_v37 = vld [vmem:[#allocation9 + $0x1c8] sm:$0xff] }
 0x10d   :  { %632 = vmatpush1.bf16.msra.mxu1 %v9983_v55  ;;  %710 = vmatprep.subr.bf16.mxu0 %v10010_v56  ;;  %v1210_v55 = vld [vmem:[#allocation9 + $0x80] sm:$0xff]  ;;  %v1271_v52 = vld [vmem:[#allocation9 + $0x268] sm:$0xff] }
 0x10e   :  { %633 = vmatprep.subr.bf16.mxu1 %v9992_v59  ;;  %v1214_v56 = vld [vmem:[#allocation9 + $0xa0] sm:$0xff] }
 0x10f   :  { %10023 = vmatmul.mubr.msk.bf16.gmra.mrb[8].mxu0 %vm543_vm2, %v12418_v60  ;;  %v10053_v59 = vcombine.low %v1210_v55, %v1214_v56 }
 0x110   :  { %711 = vmatpush1.bf16.msra.mxu0 %v10009_v61  ;;  %734 = vmatprep.mubr.bf16.mxu0 %v12138_v0  ;;  %v10055_v61 = vcombine.low %v1211_v57, %v1215_v58  ;;  %v1275_v57 = vld [vmem:[#allocation9 + $0x288] sm:$0xff] }
 0x111   :  { %634 = vmatpush1.bf16.msra.mxu1 %v9991_v32  ;;  %712 = vmatprep.subr.bf16.mxu0 %v10018_v33  ;;  %v1219_v32 = vld [vmem:[#allocation9 + $0xc8] sm:$0xff] }
 0x112   :  { %635 = vmatprep.subr.bf16.mxu1 %v10000_v5  ;;  %v10063_v4 = vcombine.low %v1219_v32, %v1223_v35  ;;  %v10064_v5 = vcombine.high %v1219_v32, %v1223_v35  ;;  %v1279_v58 = vld [vmem:[#allocation9 + $0x2a8] sm:$0xff] }
 0x113   :  { %v1283_v32 = vld [vmem:[#allocation9 + $0x2c8] sm:$0xff] }
 0x114   :  { %713 = vmatpush1.bf16.msra.mxu0 %v10017_v6  ;;  %v1230_v6 = vld [vmem:[#allocation9 + $0x120] sm:$0xff]  ;;  %v1287_v35 = vld [vmem:[#allocation9 + $0x2e8] sm:$0xff] }
 0x115   :  { %636 = vmatpush1.bf16.msra.mxu1 %v9999_v11  ;;  %5844 = vmatprep.subr.bf16.mxu0 %v10038_v16  ;;  %v1231_v11 = vld [vmem:[#allocation9 + $0x128] sm:$0xff] }
 0x116   :  { %637 = vmatprep.subr.bf16.mxu1 %v10008_v3  ;;  %v10071_v14 = vcombine.low %v1227_v7, %v1231_v11  ;;  %v10072_v16 = vcombine.high %v1227_v7, %v1231_v11  ;;  %v1234_v3 = vld [vmem:[#allocation9 + $0x140] sm:$0xff]  ;;  %v1291_v7 = vld [vmem:[#allocation9 + $0x308] sm:$0xff] }
 0x117   :  { %10029 = vmatmul.mubr.msk.bf16.vlgmr.msra.gmra.mrb[12].mxu0 %vm543_vm2, %v12382_v15  ;;  %v1295_v11 = vld [vmem:[#allocation9 + $0x328] sm:$0xff] }
 0x118   :  { %744 = vmatprep.mubr.bf16.mxu0 %v12138_v0  ;;  %5845 = vmatpush1.bf16.msra.mxu0 %v10037_v17  ;;  %v1238_v17 = vld [vmem:[#allocation9 + $0x160] sm:$0xff] }
 0x119   :  { %638 = vmatpush1.bf16.msra.mxu1 %v10007_v18  ;;  %5846 = vmatprep.subr.bf16.mxu0 %v10046_v21  ;;  %v1235_v18 = vld [vmem:[#allocation9 + $0x148] sm:$0xff]  ;;  %v10078_v19 = vcombine.high %v1234_v3, %v1238_v17  ;;  %v10077_v20 = vcombine.low %v1234_v3, %v1238_v17  ;;  %v1298_v3 = vld [vmem:[#allocation9 + $0x340] sm:$0xff] }
 0x11a   :  { %639 = vmatprep.subr.bf16.mxu1 %v10016_v2  ;;  %v1302_v17 = vld [vmem:[#allocation9 + $0x360] sm:$0xff] }
 0x11c   :  { %5847 = vmatpush1.bf16.msra.mxu0 %v10045_v1  ;;  %v1242_v1 = vld [vmem:[#allocation9 + $0x180] sm:$0xff] }
 0x11d   :  { %640 = vmatpush1.bf16.msra.mxu1 %v10015_v22  ;;  %v1246_v22 = vld [vmem:[#allocation9 + $0x1a0] sm:$0xff] }
 0x11e   :  { %775 = vmatprep.subr.bf16.mxu1 %v9980_v25  ;;  %v10086_v24 = vcombine.high %v1242_v1, %v1246_v22  ;;  %v1247_v25 = vld [vmem:[#allocation9 + $0x1a8] sm:$0xff] }
 0x11f   :  { %10030 = vmatmul.mubr.msk.bf16.gmra.mrb[16].mxu0 %vm543_vm2, %v12395_v38  ;;  %v10087_v29 = vcombine.low %v1243_v23, %v1247_v25  ;;  %v10088_v30 = vcombine.high %v1243_v23, %v1247_v25  ;;  %v1306_v23 = vld [vmem:[#allocation9 + $0x380] sm:$0xff]  ;;  %v1307_v25 = vld [vmem:[#allocation9 + $0x388] sm:$0xff] }
 0x120   :  { %10025 = vmatmul.mubr.msk.bf16.vlgmr.msra.gmra.mrb[4].mxu1 %vm543_vm2, %v12382_v15  ;;  %754 = vmatprep.mubr.bf16.mxu0 %v12138_v0 }
 0x121   :  { %671 = vmatprep.mubr.bf16.mxu1 %v12138_v0  ;;  %776 = vmatpush1.bf16.msra.mxu1 %v9979_v28  ;;  %v10085_v28 = vcombine.low %v1242_v1, %v1246_v22 }
 0x122   :  { %777 = vmatprep.subr.bf16.mxu1 %v9988_v34  ;;  %v1250_v34 = vld [vmem:[#allocation9 + $0x1c0] sm:$0xff] }
 0x125   :  { %778 = vmatpush1.bf16.msra.mxu1 %v9987_v36  ;;  %v1254_v36 = vld [vmem:[#allocation9 + $0x1e0] sm:$0xff] }
 0x126   :  { %779 = vmatprep.subr.bf16.mxu1 %v9996_v40  ;;  %v10094_v39 = vcombine.high %v1250_v34, %v1254_v36  ;;  %v1255_v40 = vld [vmem:[#allocation9 + $0x1e8] sm:$0xff] }
 0x127   :  { %10031 = vmatmul.mubr.msk.bf16.gmra.mrb[20].mxu0 %vm543_vm2, %v12418_v60  ;;  %v10095_v27 = vcombine.low %v1251_v37, %v1255_v40  ;;  %v10096_v31 = vcombine.high %v1251_v37, %v1255_v40  ;;  %v1314_v37 = vld [vmem:[#allocation9 + $0x3c0] sm:$0xff]  ;;  %v1315_v40 = vld [vmem:[#allocation9 + $0x3c8] sm:$0xff] }
 0x128   :  { %10026 = vmatmul.mubr.msk.bf16.gmra.mrb[8].mxu1 %vm543_vm2, %v12395_v38  ;;  %764 = vmatprep.mubr.bf16.mxu0 %v12138_v0 }
 0x129   :  { %681 = vmatprep.mubr.bf16.mxu1 %v12138_v0  ;;  %780 = vmatpush1.bf16.msra.mxu1 %v9995_v26  ;;  %v10093_v26 = vcombine.low %v1250_v34, %v1254_v36 }
 0x12a   :  { %781 = vmatprep.subr.bf16.mxu1 %v10004_v41  ;;  %v1258_v41 = vld [vmem:[#allocation9 + $0x200] sm:$0xff] }
 0x12d   :  { %782 = vmatpush1.bf16.msra.mxu1 %v10003_v42  ;;  %v1262_v42 = vld [vmem:[#allocation9 + $0x220] sm:$0xff] }
 0x12e   :  { %783 = vmatprep.subr.bf16.mxu1 %v10012_v45  ;;  %v10102_v44 = vcombine.high %v1258_v41, %v1262_v42  ;;  %v1263_v45 = vld [vmem:[#allocation9 + $0x228] sm:$0xff] }
 0x12f   :  { %10032 = vmatmul.mubr.msk.bf16.gmra.mrb[24].mxu0 %vm543_vm2, %v12406_v51  ;;  %v10103_v47 = vcombine.low %v1259_v43, %v1263_v45  ;;  %v10104_v48 = vcombine.high %v1259_v43, %v1263_v45  ;;  %v12476_v43 = vld [vmem:[#allocation9 + $0x400] sm:$0xff]  ;;  %v12480_v45 = vld [vmem:[#allocation9 + $0x408] sm:$0xff] }
 0x130   :  { %10027 = vmatmul.mubr.msk.bf16.gmra.mrb[12].mxu1 %vm543_vm2, %v12418_v60 }
 0x131   :  { %691 = vmatprep.mubr.bf16.mxu1 %v12138_v0  ;;  %784 = vmatpush1.bf16.msra.mxu1 %v10011_v46  ;;  %v10101_v46 = vcombine.low %v1258_v41, %v1262_v42 }
 0x132   :  { %785 = vmatprep.subr.bf16.mxu1 %v10020_v49  ;;  %v1266_v49 = vld [vmem:[#allocation9 + $0x240] sm:$0xff] }
 0x135   :  { %786 = vmatpush1.bf16.msra.mxu1 %v10019_v50  ;;  %v1270_v50 = vld [vmem:[#allocation9 + $0x260] sm:$0xff] }
 0x136   :  { %6162 = vmatprep.subr.bf16.mxu1 %v10040_v9  ;;  %v1267_v9 = vld [vmem:[#allocation9 + $0x248] sm:$0xff]  ;;  %v10110_v8 = vcombine.high %v1266_v49, %v1270_v50 }
 0x138   :  { %10028 = vmatmul.mubr.msk.bf16.gmra.mrb[16].mxu1 %vm543_vm2, %v12406_v51 }
 0x139   :  { %807 = vmatprep.mubr.bf16.mxu1 %v12138_v0 }
 0x140   :  { %10033 = vmatmul.mubr.msk.bf16.vlgmr.msra.gmra.mrb[20].mxu1 %vm543_vm2, %v12382_v15  ;;  %v10054_v15 = vcombine.high %v1210_v55, %v1214_v56  ;;  %v1274_v55 = vld [vmem:[#allocation9 + $0x280] sm:$0xff] }
 0x141   :  { %817 = vmatprep.mubr.bf16.mxu1 %v12138_v0  ;;  %6163 = vmatpush1.bf16.msra.mxu1 %v10039_v13  ;;  %v10109_v13 = vcombine.low %v1266_v49, %v1270_v50  ;;  %v1278_v56 = vld [vmem:[#allocation9 + $0x2a0] sm:$0xff] }
 0x142   :  { %6164 = vmatprep.subr.bf16.mxu1 %v10048_v53  ;;  %5848 = vmatprep.subr.bf16.mxu0 %v10054_v15  ;;  %v10111_v53 = vcombine.low %v1267_v9, %v1271_v52  ;;  %v10118_v15 = vcombine.high %v1274_v55, %v1278_v56 }
 0x143   :  { %5849 = vmatpush1.bf16.msra.mxu0 %v10053_v59  ;;  %v10117_v59 = vcombine.low %v1274_v55, %v1278_v56 }
 0x145   :  { %6165 = vmatpush1.bf16.msra.mxu1 %v10047_v54  ;;  %v10112_v54 = vcombine.high %v1267_v9, %v1271_v52 }
 0x146   :  { %6166 = vmatprep.subr.bf16.mxu1 %v10056_v62  ;;  %v10120_v62 = vcombine.high %v1275_v57, %v1279_v58 }
 0x148   :  { %10034 = vmatmul.mubr.msk.bf16.gmra.mrb[24].mxu1 %vm543_vm2, %v12395_v38  ;;  %v1222_v38 = vld [vmem:[#allocation9 + $0xe0] sm:$0xff] }
 0x149   :  { %827 = vmatprep.mubr.bf16.mxu1 %v12138_v0  ;;  %6167 = vmatpush1.bf16.msra.mxu1 %v10055_v61  ;;  %v10062_v33 = vcombine.high %v1218_v63, %v1222_v38  ;;  %v10119_v61 = vcombine.low %v1275_v57, %v1279_v58 }
 0x14a   :  { %6168 = vmatprep.subr.bf16.mxu1 %v10064_v5  ;;  %v10128_v5 = vcombine.high %v1283_v32, %v1287_v35 }
 0x14b   :  { %5850 = vmatprep.subr.bf16.mxu0 %v10062_v33 }
 0x14d   :  { %6169 = vmatpush1.bf16.msra.mxu1 %v10063_v4  ;;  %v10127_v4 = vcombine.low %v1283_v32, %v1287_v35 }
 0x14e   :  { %6170 = vmatprep.subr.bf16.mxu1 %v10072_v16  ;;  %v10136_v16 = vcombine.high %v1291_v7, %v1295_v11 }
 0x150   :  { %10035 = vmatmul.mubr.msk.bf16.gmra.mrb[28].mxu1 %vm543_vm2, %v12418_v60  ;;  %v10061_v60 = vcombine.low %v1218_v63, %v1222_v38  ;;  %v1282_v63 = vld [vmem:[#allocation9 + $0x2c0] sm:$0xff] }
 0x151   :  { %837 = vmatprep.mubr.bf16.mxu1 %v12138_v0  ;;  %v1226_v0 = vld [vmem:[#allocation9 + $0x100] sm:$0xff]  ;;  %6171 = vmatpush1.bf16.msra.mxu1 %v10071_v14  ;;  %v10135_v14 = vcombine.low %v1291_v7, %v1295_v11 }
 0x152   :  { %5851 = vmatpush1.bf16.msra.mxu0 %v10061_v60  ;;  %v10070_v10 = vcombine.high %v1226_v0, %v1230_v6  ;;  %v10069_v12 = vcombine.low %v1226_v0, %v1230_v6  ;;  %v1286_v38 = vld [vmem:[#allocation9 + $0x2e0] sm:$0xff] }
 0x153   :  { %v10126_v33 = vcombine.high %v1282_v63, %v1286_v38  ;;  %v10125_v60 = vcombine.low %v1282_v63, %v1286_v38  ;;  %v1290_v0 = vld [vmem:[#allocation9 + $0x300] sm:$0xff]  ;;  %v12503_v63 = vld [vmem:[#allocation7] sm:$0xff] }
 0x154   :  { %5852 = vmatprep.subr.bf16.mxu0 %v10070_v10  ;;  %v1294_v6 = vld [vmem:[#allocation9 + $0x320] sm:$0xff] }
 0x155   :  { %v10134_v10 = vcombine.high %v1290_v0, %v1294_v6 }
 0x156   :  { %5853 = vmatpush1.bf16.msra.mxu0 %v10069_v12  ;;  %v10133_v12 = vcombine.low %v1290_v0, %v1294_v6 }
 0x157   :  { %5854 = vmatprep.subr.bf16.mxu0 %v10078_v19  ;;  %v13604_v19 = vmov 0.0  }
 0x158   :  { %10036 = vmatmul.mubr.msk.bf16.gmra.mrb[32].mxu1 %vm543_vm2, %v12406_v51  ;;  %v1239_v51 = vld [vmem:[#allocation9 + $0x168] sm:$0xff]  ;;  %970 = vst [vmem:[#allocation2 + $0x28] sm:$0x80] %v13604_v19  ;;  %969 = vst [vmem:[#allocation2 + $0x20] sm:$0x80] %v13604_v19 }
 0x159   :  { %v10079_v21 = vcombine.low %v1235_v18, %v1239_v51  ;;  %v10080_v2 = vcombine.high %v1235_v18, %v1239_v51  ;;  %v1299_v18 = vld [vmem:[#allocation9 + $0x348] sm:$0xff]  ;;  %971 = vst [vmem:[#allocation2 + $0x30] sm:$0x80] %v13604_v19  ;;  %972 = vst [vmem:[#allocation2 + $0x38] sm:$0x80] %v13604_v19  ;;  %v263_v51 = vlaneseq }
 0x15a   :  { %5855 = vmatpush1.bf16.msra.mxu0 %v10077_v20  ;;  %973 = vst [vmem:[#allocation2 + $0x40] sm:$0x1] %v13604_v19  ;;  %974 = vst [vmem:[#allocation2 + $0x48] sm:$0x1] %v13604_v19  ;;  %v10142_v20 = vcombine.high %v1298_v3, %v1302_v17 }
 0x15b   :  { %6172 = vmatprep.subr.bf16.mxu1 %v10080_v2  ;;  %5856 = vmatprep.subr.bf16.mxu0 %v10086_v24  ;;  %975 = vst [vmem:[#allocation2 + $0x50] sm:$0x1] %v13604_v19  ;;  %976 = vst [vmem:[#allocation2 + $0x58] sm:$0x1] %v13604_v19  ;;  %v10141_v2 = vcombine.low %v1298_v3, %v1302_v17  ;;  %vm962_vm3 = vcmp.lt.s32.totalorder %v263_v51, 512  ;;  %v1310_v24 = vld [vmem:[#allocation9 + $0x3a0] sm:$0xff] }
 0x15c   :  { %6173 = vmatpush1.bf16.msra.mxu1 %v10079_v21  ;;  %977 = vst [vmem:[#allocation2 + $0x80] sm:$0x80] %v13604_v19  ;;  %978 = vst [vmem:[#allocation2 + $0x88] sm:$0x80] %v13604_v19  ;;  %v1303_v21 = vld [vmem:[#allocation9 + $0x368] sm:$0xff] }
 0x15d   :  { %6174 = vmatprep.subr.bf16.mxu1 %v10088_v30  ;;  %979 = vst [vmem:[#allocation2 + $0x90] sm:$0x80] %v13604_v19  ;;  %980 = vst [vmem:[#allocation2 + $0x98] sm:$0x80] %v13604_v19  ;;  %v10143_v1 = vcombine.low %v1299_v18, %v1303_v21  ;;  %v10144_v22 = vcombine.high %v1299_v18, %v1303_v21  ;;  %v10149_v30 = vcombine.low %v1306_v23, %v1310_v24 }
 0x15e   :  { %5857 = vmatpush1.bf16.msra.mxu0 %v10085_v28  ;;  %981 = vst [vmem:[#allocation2 + $0xa0] sm:$0x1] %v13604_v19  ;;  %982 = vst [vmem:[#allocation2 + $0xa8] sm:$0x1] %v13604_v19  ;;  %v10150_v28 = vcombine.high %v1306_v23, %v1310_v24 }
 0x15f   :  { %5858 = vmatprep.subr.bf16.mxu0 %v10094_v39  ;;  %983 = vst [vmem:[#allocation2 + $0xb0] sm:$0x1] %v13604_v19  ;;  %984 = vst [vmem:[#allocation2 + $0xb8] sm:$0x1] %v13604_v19  ;;  %v1318_v39 = vld [vmem:[#allocation9 + $0x3e0] sm:$0xff] }
 0x160   :  { %6175 = vmatpush1.bf16.msra.mxu1 %v10087_v29  ;;  %964 = vst.msk [vmem:[#allocation2] ss:$8 sm:$0xf] %vm962_vm3, %v13604_v19  ;;  %967 = vst.msk [vmem:[#allocation2 + $0x60] ss:$8 sm:$0xf] %vm962_vm3, %v13604_v19 }
 0x161   :  { %6176 = vmatprep.subr.bf16.mxu1 %v10096_v31  ;;  %v1311_v29 = vld [vmem:[#allocation9 + $0x3a8] sm:$0xff]  ;;  %v10157_v31 = vcombine.low %v1314_v37, %v1318_v39 }
 0x162   :  { %5859 = vmatpush1.bf16.msra.mxu0 %v10093_v26  ;;  %v10151_v34 = vcombine.low %v1307_v25, %v1311_v29  ;;  %v10152_v36 = vcombine.high %v1307_v25, %v1311_v29  ;;  %v10158_v26 = vcombine.high %v1314_v37, %v1318_v39 }
 0x163   :  { %5860 = vmatprep.subr.bf16.mxu0 %v10102_v44  ;;  %v12478_v44 = vld [vmem:[#allocation9 + $0x420] sm:$0xff] }
 0x164   :  { %6177 = vmatpush1.bf16.msra.mxu1 %v10095_v27  ;;  %v1319_v27 = vld [vmem:[#allocation9 + $0x3e8] sm:$0xff] }
 0x165   :  { %6178 = vmatprep.subr.bf16.mxu1 %v10104_v48  ;;  %v10159_v41 = vcombine.low %v1315_v40, %v1319_v27  ;;  %v10160_v42 = vcombine.high %v1315_v40, %v1319_v27  ;;  %v10165_v48 = vcombine.low %v12476_v43, %v12478_v44 }
 0x166   :  { %5861 = vmatpush1.bf16.msra.mxu0 %v10101_v46  ;;  %v10166_v46 = vcombine.high %v12476_v43, %v12478_v44  ;;  %v12780_v44 = vld [vmem:[#allocation9 + $0x608] sm:$0xff] }
 0x167   :  { %5862 = vmatprep.subr.bf16.mxu0 %v10110_v8  ;;  %13643 = vst [vmem:[#allocation30_spill] sm:$0xff] %v12780_v44 }
 0x168   :  { %6179 = vmatpush1.bf16.msra.mxu1 %v10103_v47  ;;  %v12484_v47 = vld [vmem:[#allocation9 + $0x428] sm:$0xff] }
 0x169   :  { %6180 = vmatprep.subr.bf16.mxu1 %v10112_v54  ;;  %v10167_v49 = vcombine.low %v12480_v45, %v12484_v47  ;;  %v10168_v50 = vcombine.high %v12480_v45, %v12484_v47  ;;  %v12752_v47 = vld [vmem:[#allocation9 + $0x5c8] sm:$0xff]  ;;  %v12768_v45 = vld [vmem:[#allocation9 + $0x620] sm:$0xff] }
 0x16a   :  { %5863 = vmatpush1.bf16.msra.mxu0 %v10109_v13  ;;  %13642 = vst [vmem:[#allocation29_spill] sm:$0xff] %v12768_v45 }
 0x16b   :  { %5864 = vmatprep.subr.bf16.mxu0 %v10118_v15  ;;  %v12496_v15 = vshrl.u32 %v263_v51, 7 }
 0x16c   :  { %6181 = vmatpush1.bf16.msra.mxu1 %v10111_v53 }
 0x16d   :  { %6182 = vmatprep.subr.bf16.mxu1 %v10120_v62  ;;  %13635 = vst [vmem:[#allocation22_spill] sm:$0xff] %v12496_v15  ;;  %v13612_v62 = vsub.s32 0, %v12496_v15  ;;  %v13610_v38 = vsub.s32 1, %v12496_v15  ;;  %v13608_v35 = vsub.s32 4, %v12496_v15 }
 0x16e   :  { %5865 = vmatpush1.bf16.msra.mxu0 %v10117_v59 }
 0x16f   :  { %5866 = vmatprep.subr.bf16.mxu0 %v10126_v33  ;;  %v12522_v6 = vrot.slane %v12503_v63, %v13610_v38  ;;  %v12527_v7 = vrot.slane %v12503_v63, %v13608_v35 }
 0x170   :  { %6183 = vmatpush1.bf16.msra.mxu1 %v10119_v61 }
 0x171   :  { %6184 = vmatprep.subr.bf16.mxu1 %v10128_v5  ;;  %v12515_v5 = vrot.slane %v12503_v63, %v13612_v62 }
 0x172   :  { %5867 = vmatpush1.bf16.msra.mxu0 %v10125_v60 }
 0x173   :  { %5868 = vmatprep.subr.bf16.mxu0 %v10134_v10 }
 0x174   :  { %6185 = vmatpush1.bf16.msra.mxu1 %v10127_v4  ;;  %v13606_v4 = vsub.s32 5, %v12496_v15 }
 0x175   :  { %6186 = vmatprep.subr.bf16.mxu1 %v10136_v16 }
 0x176   :  { %5869 = vmatpush1.bf16.msra.mxu0 %v10133_v12  ;;  %v12532_v10 = vrot.slane %v12503_v63, %v13606_v4 }
 0x177   :  { %5870 = vmatprep.subr.bf16.mxu0 %v10142_v20 }
 0x178   :  { %6187 = vmatpush1.bf16.msra.mxu1 %v10135_v14 }
 0x179   :  { %6188 = vmatprep.subr.bf16.mxu1 %v10144_v22 }
 0x17a   :  { %5871 = vmatpush1.bf16.msra.mxu0 %v10141_v2 }
 0x17b   :  { %5872 = vmatprep.subr.bf16.mxu0 %v10150_v28 }
 0x17c   :  { %6189 = vmatpush1.bf16.msra.mxu1 %v10143_v1 }
 0x17d   :  { %6190 = vmatprep.subr.bf16.mxu1 %v10152_v36 }
 0x17e   :  { %5873 = vmatpush1.bf16.msra.mxu0 %v10149_v30 }
 0x17f   :  { %5874 = vmatprep.subr.bf16.mxu0 %v10158_v26 }
 0x180   :  { %6191 = vmatpush1.bf16.msra.mxu1 %v10151_v34 }
 0x181   :  { %6192 = vmatprep.subr.bf16.mxu1 %v10160_v42 }
 0x182   :  { %5875 = vmatpush1.bf16.msra.mxu0 %v10157_v31 }
 0x183   :  { %5897 = vmatprep.subr.bf16.mxu0 %v10166_v46 }
 0x184   :  { %6193 = vmatpush1.bf16.msra.mxu1 %v10159_v41 }
 0x185   :  { %6215 = vmatprep.subr.bf16.mxu1 %v10168_v50 }
 0x1d2   :  { %v590_v9 = vpop.f32.mrb[0].mxu0 }
 0x1d3   :  { %v592_v8 = vpop.f32.mrb[1].mxu0  ;;  %v591_v11 = vadd.f32 %v590_v9, %v12515_v5 }
 0x1d4   :  { %v594_v52 = vpop.f32.mrb[2].mxu0  ;;  %v593_v12 = vadd.f32 %v592_v8, %v12522_v6 }
 0x1d5   :  { %v596_v13 = vpop.f32.mrb[3].mxu0  ;;  %v595_v16 = vadd.f32 %v594_v52, %v12515_v5  ;;  %v848_v21 = vmax.f32 %v591_v11, 0.0 }
 0x1d6   :  { %v597_v18 = vadd.f32 %v596_v13, %v12522_v6  ;;  %v849_v23 = vmax.f32 %v593_v12, 0.0 }
 0x1d7   :  { %v856_v28 = vmax.f32 %v595_v16, 0.0  ;;  %v13611_v16 = vsub.s32 2, %v12496_v15 }
 0x1d8   :  { %v857_v34 = vmax.f32 %v597_v18, 0.0 }
 0x1da   :  { %v600_v53 = vpop.f32.mrb[4].mxu0 }
 0x1db   :  { %v602_v54 = vpop.f32.mrb[5].mxu0  ;;  %v12492_v55 = vpop.f32.mrb[0].mxu1  ;;  %v601_v39 = vadd.f32 %v600_v53, %v12515_v5 }
 0x1dc   :  { %v604_v56 = vpop.f32.mrb[6].mxu0  ;;  %v12494_v57 = vpop.f32.mrb[1].mxu1  ;;  %v603_v26 = vadd.f32 %v602_v54, %v12522_v6 }
 0x1dd   :  { %v606_v58 = vpop.f32.mrb[7].mxu0  ;;  %v12498_v59 = vpop.f32.mrb[2].mxu1  ;;  %v605_v41 = vadd.f32 %v604_v56, %v12515_v5  ;;  %v864_v53 = vmax.f32 %v601_v39, 0.0 }
 0x1de   :  { %v12500_v61 = vpop.f32.mrb[3].mxu1  ;;  %v607_v9 = vadd.f32 %v606_v58, %v12522_v6  ;;  %v865_v56 = vmax.f32 %v603_v26, 0.0 }
 0x1df   :  { %v872_v18 = vmax.f32 %v605_v41, 0.0 }
 0x1e2   :  { %v610_v32 = vpop.f32.mrb[8].mxu0 }
 0x1e3   :  { %v12506_v33 = vpop.f32.mrb[9].mxu0 }
 0x1e4   :  { %v12509_v60 = vpop.f32.mrb[10].mxu0 }
 0x1e5   :  { %v12517_v0 = vpop.f32.mrb[11].mxu0 }
 0x1ea   :  { %v736_v14 = vpop.f32.mrb[12].mxu0 }
 0x1eb   :  { %v737_v3 = vadd.f32 %v736_v14, %v12527_v7  ;;  %v738_v17 = vpop.f32.mrb[13].mxu0 }
 0x1ec   :  { %v739_v51 = vadd.f32 %v738_v17, %v12532_v10  ;;  %v740_v20 = vpop.f32.mrb[14].mxu0 }
 0x1ed   :  { %v852_v2 = vmax.f32 %v737_v3, 0.0  ;;  %v741_v1 = vadd.f32 %v740_v20, %v12527_v7  ;;  %v742_v22 = vpop.f32.mrb[15].mxu0  ;;  %v13609_v20 = vsub.s32 3, %v12496_v15 }
 0x1ee   :  { %v853_v24 = vmax.f32 %v739_v51, 0.0  ;;  %v743_v25 = vadd.f32 %v742_v22, %v12532_v10 }
 0x1ef   :  { %v912_v29 = vmax.f32 %v848_v21, %v852_v2  ;;  %v860_v30 = vmax.f32 %v741_v1, 0.0  ;;  %v873_v2 = vmax.f32 %v607_v9, 0.0 }
 0x1f0   :  { %v913_v36 = vmax.f32 %v849_v23, %v853_v24  ;;  %v861_v37 = vmax.f32 %v743_v25, 0.0  ;;  %v611_v23 = vadd.f32 %v610_v32, %v12515_v5  ;;  %v615_v32 = vadd.f32 %v12509_v60, %v12515_v5 }
 0x1f1   :  { %v916_v40 = vmax.f32 %v856_v28, %v860_v30  ;;  %v12561_v28 = vld [vmem:[#allocation9 + $0x440] sm:$0xff] }
 0x1f2   :  { %v917_v27 = vmax.f32 %v857_v34, %v861_v37  ;;  %v746_v31 = vpop.f32.mrb[16].mxu0  ;;  %v12563_v30 = vld [vmem:[#allocation9 + $0x460] sm:$0xff]  ;;  %v613_v34 = vadd.f32 %v12506_v33, %v12522_v6  ;;  %v12570_v37 = vrot.slane %v12503_v63, %v13611_v16 }
 0x1f3   :  { %v12545_v42 = vpop.f32.mrb[4].mxu1  ;;  %v747_v46 = vadd.f32 %v746_v31, %v12527_v7  ;;  %v748_v50 = vpop.f32.mrb[17].mxu0  ;;  %v10174_v60 = vcombine.high %v12561_v28, %v12563_v30 }
 0x1f4   :  { %v12549_v8 = vpop.f32.mrb[5].mxu1  ;;  %v749_v52 = vadd.f32 %v748_v50, %v12532_v10  ;;  %v750_v13 = vpop.f32.mrb[18].mxu0 }
 0x1f5   :  { %v868_v11 = vmax.f32 %v747_v46, 0.0  ;;  %v12552_v12 = vpop.f32.mrb[6].mxu1  ;;  %v751_v54 = vadd.f32 %v750_v13, %v12527_v7  ;;  %v752_v14 = vpop.f32.mrb[19].mxu0 }
 0x1f6   :  { %v869_v3 = vmax.f32 %v749_v52, 0.0  ;;  %v12556_v17 = vpop.f32.mrb[7].mxu1  ;;  %v753_v58 = vadd.f32 %v752_v14, %v12532_v10 }
 0x1f7   :  { %v920_v51 = vmax.f32 %v864_v53, %v868_v11  ;;  %v876_v21 = vmax.f32 %v751_v54, 0.0  ;;  %v12587_v53 = vld [vmem:[#allocation9 + $0x448] sm:$0xff]  ;;  %v13607_v11 = vsub.s32 6, %v12496_v15 }
 0x1f8   :  { %v921_v1 = vmax.f32 %v865_v56, %v869_v3  ;;  %v877_v22 = vmax.f32 %v753_v58, 0.0  ;;  %v12593_v58 = vld [vmem:[#allocation9 + $0x468] sm:$0xff] }
 0x1f9   :  { %v944_v24 = vmax.f32 %v912_v29, %v920_v51  ;;  %v924_v25 = vmax.f32 %v872_v18, %v876_v21  ;;  %v12577_v29 = vrot.slane %v12503_v63, %v13609_v20  ;;  %v881_v18 = vmax.f32 %v613_v34, 0.0 }
 0x1fa   :  { %v945_v39 = vmax.f32 %v913_v36, %v921_v1  ;;  %v925_v26 = vmax.f32 %v873_v2, %v877_v22  ;;  %v756_v31 = vpop.f32.mrb[20].mxu0  ;;  %v617_v51 = vadd.f32 %v12517_v0, %v12522_v6  ;;  %v12599_v22 = vld [vmem:[#allocation9 + $0x480] sm:$0xff]  ;;  %v13646_v43 = vcombine.low %v12587_v53, %v12593_v58 }
 0x1fb   :  { %1017 = vst [vmem:[#allocation2 + $0x20] sm:$0x7f] %v944_v24  ;;  %v948_v41 = vmax.f32 %v916_v40, %v924_v25  ;;  %v12579_v46 = vpop.f32.mrb[8].mxu1  ;;  %v757_v33 = vadd.f32 %v756_v31, %v12527_v7  ;;  %v758_v50 = vpop.f32.mrb[21].mxu0  ;;  %v880_v40 = vmax.f32 %v611_v23, 0.0  ;;  %v12601_v23 = vld [vmem:[#allocation9 + $0x4a0] sm:$0xff] }
 0x1fc   :  { %1018 = vst [vmem:[#allocation2 + $0x28] sm:$0x7f] %v945_v39  ;;  %v949_v9 = vmax.f32 %v917_v27, %v925_v26  ;;  %v12582_v36 = vpop.f32.mrb[9].mxu1  ;;  %v759_v52 = vadd.f32 %v758_v50, %v12532_v10  ;;  %v760_v13 = vpop.f32.mrb[22].mxu0  ;;  %v888_v24 = vmax.f32 %v615_v32, 0.0  ;;  %v12616_v32 = vld [vmem:[#allocation9 + $0x4a8] sm:$0xff]  ;;  %v621_v50 = vadd.f32 %v12492_v55, %v12515_v5 }
 0x1fd   :  { %v993_v54 = vrot.slane %v948_v41, 7  ;;  %v884_v14 = vmax.f32 %v757_v33, 0.0  ;;  %v12590_v56 = vpop.f32.mrb[10].mxu1  ;;  %v761_v3 = vadd.f32 %v760_v13, %v12527_v7  ;;  %v762_v27 = vpop.f32.mrb[23].mxu0  ;;  %v10176_v41 = vcombine.high %v12587_v53, %v12593_v58  ;;  %v12614_v33 = vld [vmem:[#allocation9 + $0x488] sm:$0xff]  ;;  %v12680_v31 = vld [vmem:[#allocation9 + $0x520] sm:$0xff] }
 0x1fe   :  { %v994_v21 = vrot.slane %v949_v9, 7  ;;  %v885_v2 = vmax.f32 %v759_v52, 0.0  ;;  %v12597_v1 = vpop.f32.mrb[11].mxu1  ;;  %v763_v0 = vadd.f32 %v762_v27, %v12532_v10  ;;  %v13613_v13 = vsub.s32 7, %v12496_v15  ;;  %v12678_v52 = vld [vmem:[#allocation9 + $0x500] sm:$0xff]  ;;  %v12782_v26 = vld [vmem:[#allocation9 + $0x628] sm:$0xff] }
 0x1ff   :  { %1009 = vst [vmem:[#allocation2] sm:$0xfe] %v993_v54  ;;  %v12603_v25 = vmax.f32 %v880_v40, %v884_v14  ;;  %v892_v39 = vmax.f32 %v761_v3, 0.0  ;;  %v889_v40 = vmax.f32 %v617_v51, 0.0  ;;  %v623_v54 = vadd.f32 %v12494_v57, %v12522_v6  ;;  %v12669_v57 = vld [vmem:[#allocation9 + $0x4e8] sm:$0xff]  ;;  %13644 = vst [vmem:[#allocation31_spill] sm:$0xff] %v12782_v26 }
 0x200   :  { %1010 = vst [vmem:[#allocation2 + $0x8] sm:$0xfe] %v994_v21  ;;  %v12607_v34 = vmax.f32 %v881_v18, %v885_v2  ;;  %v893_v14 = vmax.f32 %v763_v0, 0.0  ;;  %v12630_v27 = vrot.slane %v12503_v63, %v13607_v11  ;;  %v625_v55 = vadd.f32 %v12498_v59, %v12515_v5  ;;  %v12784_v15 = vld [vmem:[#allocation2 + $0xa8] sm:$0x1] }
 0x201   :  { %v12620_v9 = vmax.f32 %v888_v24, %v892_v39  ;;  %v12641_v24 = vld [vmem:[#allocation9 + $0x4c0] sm:$0xff]  ;;  %v627_v0 = vadd.f32 %v12500_v61, %v12522_v6  ;;  %v896_v11 = vmax.f32 %v621_v50, 0.0  ;;  %v12660_v61 = vrot.slane %v12503_v63, %v13613_v13 }
 0x202   :  { %v766_v3 = vpop.f32.mrb[24].mxu0  ;;  %v12643_v39 = vld [vmem:[#allocation9 + $0x4e0] sm:$0xff]  ;;  %v12647_v19 = vmax.f32 %v889_v40, %v893_v14  ;;  %v897_v6 = vmax.f32 %v623_v54, 0.0  ;;  %v1033_v50 = vld [vmem:[#allocation2 + $0x20] sm:$0xff]  ;;  %v12687_v54 = vld [vmem:[#allocation9 + $0x508] sm:$0xff]  ;;  %v13650_v53 = vcombine.high %v12614_v33, %v12616_v32  ;;  %v13654_v58 = vcombine.low %v12614_v33, %v12616_v32 }
 0x203   :  { %v12634_v18 = vpop.f32.mrb[12].mxu1  ;;  %v767_v21 = vadd.f32 %v766_v3, %v12527_v7  ;;  %v768_v2 = vpop.f32.mrb[25].mxu0  ;;  %v12671_v63 = vld [vmem:[#allocation2 + $0x28] sm:$0xff]  ;;  %v12867_v32 = vadd.f32 %v12582_v36, %v12577_v29  ;;  %v1106_v26 = vld [vmem:[#allocation2 + $0x20] sm:$0xfe] }
 0x204   :  { %v12649_v59 = vpop.f32.mrb[13].mxu1  ;;  %v769_v5 = vadd.f32 %v768_v2, %v12532_v10  ;;  %v770_v3 = vpop.f32.mrb[26].mxu0  ;;  %13636 = vst [vmem:[#allocation23_spill] sm:$0xff] %v12671_v63  ;;  %v12880_v36 = vadd.f32 %v12634_v18, %v12570_v37 }
 0x205   :  { %v900_v35 = vmax.f32 %v767_v21, 0.0  ;;  %v12654_v20 = vpop.f32.mrb[14].mxu1  ;;  %v771_v38 = vadd.f32 %v770_v3, %v12527_v7  ;;  %v772_v16 = vpop.f32.mrb[27].mxu0  ;;  %v12667_v21 = vld [vmem:[#allocation9 + $0x4c8] sm:$0xff]  ;;  %v904_v7 = vmax.f32 %v625_v55, 0.0 }
 0x206   :  { %v901_v40 = vmax.f32 %v769_v5, 0.0  ;;  %v12662_v14 = vpop.f32.mrb[15].mxu1  ;;  %v773_v2 = vadd.f32 %v772_v16, %v12532_v10  ;;  %v1025_v62 = vld [vmem:[#allocation2] sm:$0xff]  ;;  %v905_v5 = vmax.f32 %v627_v0, 0.0  ;;  %v12689_v0 = vld [vmem:[#allocation9 + $0x528] sm:$0xff] }
 0x207   :  { %v936_v3 = vmax.f32 %v896_v11, %v900_v35  ;;  %v908_v51 = vmax.f32 %v771_v38, 0.0  ;;  %v1026_v4 = vld [vmem:[#allocation2 + $0x8] sm:$0xff]  ;;  %v12683_v11 = vpack.c.bf16 %v1033_v50, %v1025_v62 }
 0x208   :  { %v937_v13 = vmax.f32 %v897_v6, %v901_v40  ;;  %v909_v10 = vmax.f32 %v773_v2, 0.0  ;;  %v12676_v16 = vpack.c.bf16 %v12671_v63, %v1026_v4  ;;  %v12691_v6 = vld [vmem:[#allocation9 + $0x540] sm:$0xff]  ;;  %v12702_v2 = vld [vmem:[#allocation9 + $0x568] sm:$0xff]  ;;  %v1045_v63 = vld [vmem:[#allocation2 + $0x20] sm:$0x1] }
 0x209   :  { %v952_v35 = vmax.f32 %v12603_v25, %v936_v3  ;;  %v940_v38 = vmax.f32 %v904_v7, %v908_v51  ;;  %13638 = vst [vmem:[#allocation25_spill] sm:$0xff] %v12683_v11  ;;  %v12698_v25 = vld [vmem:[#allocation9 + $0x560] sm:$0xff]  ;;  %v12700_v51 = vld [vmem:[#allocation9 + $0x548] sm:$0xff] }
 0x20a   :  { %13637 = vst [vmem:[#allocation24_spill] sm:$0xff] %v12676_v16  ;;  %v953_v4 = vmax.f32 %v12607_v34, %v937_v13  ;;  %v941_v40 = vmax.f32 %v905_v5, %v909_v10  ;;  %5876 = vmatprep.mubr.bf16.mxu0 %v12676_v16  ;;  %6194 = vmatprep.mubr.bf16.mxu1 %v12676_v16  ;;  %v12713_v3 = vld [vmem:[#allocation9 + $0x580] sm:$0xff]  ;;  %v12717_v10 = vld [vmem:[#allocation9 + $0x588] sm:$0xff]  ;;  %v12770_v34 = vld [vmem:[#allocation2 + $0x40] sm:$0x1] }
 0x20b   :  { %1021 = vst [vmem:[#allocation2 + $0x80] sm:$0x7f] %v952_v35  ;;  %v956_v50 = vmax.f32 %v12620_v9, %v940_v38  ;;  %v12705_v7 = vpop.f32.mrb[16].mxu1  ;;  %5877 = vmatmul.mubr.bf16.vlgmr.msra.gmra.mrb[28].mxu0 %v12683_v11  ;;  %6195 = vmatmul.mubr.bf16.vlgmr.msra.gmra.mrb[36].mxu1 %v12683_v11  ;;  %v12715_v5 = vld [vmem:[#allocation9 + $0x5a0] sm:$0xff]  ;;  %v12732_v13 = vld [vmem:[#allocation9 + $0x5a8] sm:$0xff] }
 0x20c   :  { %1022 = vst [vmem:[#allocation2 + $0x88] sm:$0x7f] %v953_v4  ;;  %v957_v9 = vmax.f32 %v12647_v19, %v941_v40  ;;  %v12720_v35 = vpop.f32.mrb[17].mxu1  ;;  %5898 = vmatpush1.bf16.msra.mxu0 %v10165_v48  ;;  %6216 = vmatpush1.bf16.msra.mxu1 %v10167_v49  ;;  %v12734_v4 = vld [vmem:[#allocation9 + $0x5c0] sm:$0xff]  ;;  %v12754_v48 = vld [vmem:[#allocation9 + $0x5e8] sm:$0xff] }
 0x20d   :  { %13639 = vst [vmem:[#allocation26_spill] sm:$0xff] %v12720_v35  ;;  %v12736_v19 = vld [vmem:[#allocation9 + $0x5e0] sm:$0xff]  ;;  %v997_v40 = vrot.slane %v956_v50, 7  ;;  %v12738_v55 = vpop.f32.mrb[18].mxu1  ;;  %5899 = vmatprep.subr.bf16.mxu0 %v10174_v60  ;;  %6217 = vmatprep.subr.bf16.mxu1 %v10176_v41  ;;  %v13645_v41 = vcombine.low %v12561_v28, %v12563_v30  ;;  %v12813_v28 = vadd.f32 %v12556_v17, %v12577_v29 }
 0x20e   :  { %13640 = vst [vmem:[#allocation27_spill] sm:$0xff] %v12738_v55  ;;  %v12756_v49 = vld [vmem:[#allocation2 + $0x48] sm:$0x1]  ;;  %v998_v60 = vrot.slane %v957_v9, 7  ;;  %v12758_v50 = vpop.f32.mrb[19].mxu1  ;;  %v12790_v9 = vadd.f32 %v12549_v8, %v12577_v29  ;;  %v13649_v30 = vcombine.high %v12599_v22, %v12601_v23  ;;  %v13657_v35 = vcombine.low %v12641_v24, %v12643_v39 }
 0x20f   :  { %13641 = vst [vmem:[#allocation28_spill] sm:$0xff] %v12758_v50  ;;  %v12766_v38 = vld [vmem:[#allocation9 + $0x600] sm:$0xff]  ;;  %1013 = vst [vmem:[#allocation2 + $0x60] sm:$0xfe] %v997_v40  ;;  %v664_v40 = vadd.f32 %v12545_v42, %v12570_v37  ;;  %v12805_v8 = vld [vmem:[#allocation2 + $0xa0] sm:$0x1] }
 0x210   :  { %1014 = vst [vmem:[#allocation2 + $0x68] sm:$0xfe] %v998_v60  ;;  %5900 = vmatpush1.bf16.msra.mxu0 %v13645_v41  ;;  %6218 = vmatpush1.bf16.msra.mxu1 %v13646_v43  ;;  %v12800_v11 = vld [vmem:[#allocation9 + $0x640] sm:$0xff]  ;;  %v12809_v60 = vadd.f32 %v12552_v12, %v12570_v37  ;;  %v12823_v43 = vld [vmem:[#allocation9 + $0x648] sm:$0xff]  ;;  %v851_v62 = vmax.f32 %v12790_v9, 0.0  ;;  %v12856_v9 = vadd.f32 %v12579_v46, %v12570_v37 }
 0x211   :  { %13647 = vst [vmem:[#allocation32_spill] sm:$0xff] %v12800_v11  ;;  %v12802_v16 = vld [vmem:[#allocation9 + $0x660] sm:$0xff]  ;;  %5901 = vmatprep.subr.bf16.mxu0 %v13649_v30  ;;  %6219 = vmatprep.subr.bf16.mxu1 %v13650_v53  ;;  %13651 = vst [vmem:[#allocation34_spill] sm:$0xff] %v12823_v43  ;;  %v12825_v41 = vld [vmem:[#allocation9 + $0x668] sm:$0xff]  ;;  %v850_v50 = vmax.f32 %v664_v40, 0.0  ;;  %v13653_v53 = vcombine.low %v12599_v22, %v12601_v23  ;;  %v859_v40 = vmax.f32 %v12813_v28, 0.0 }
 0x212   :  { %13648 = vst [vmem:[#allocation33_spill] sm:$0xff] %v12802_v16  ;;  %13652 = vst [vmem:[#allocation35_spill] sm:$0xff] %v12825_v41  ;;  %v858_v12 = vmax.f32 %v12809_v60, 0.0  ;;  %v13655_v22 = vcombine.high %v12641_v24, %v12643_v39  ;;  %v13656_v23 = vcombine.high %v12667_v21, %v12669_v57  ;;  %v1042_v33 = vld [vmem:[#allocation2 + $0x8] sm:$0xfe]  ;;  %v12871_v46 = vadd.f32 %v12590_v56, %v12570_v37 }
 0x213   :  { %v809_v42 = vpop.f32.mrb[20].mxu1  ;;  %v13660_v24 = vcombine.high %v12687_v54, %v12689_v0 }
 0x214   :  { %v810_v30 = vadd.f32 %v809_v42, %v12630_v27  ;;  %v811_v55 = vpop.f32.mrb[21].mxu1  ;;  %5902 = vmatpush1.bf16.msra.mxu0 %v13653_v53  ;;  %6220 = vmatpush1.bf16.msra.mxu1 %v13654_v58  ;;  %v1046_v53 = vld [vmem:[#allocation2 + $0x28] sm:$0x1] }
 0x215   :  { %v812_v42 = vadd.f32 %v811_v55, %v12660_v61  ;;  %v813_v17 = vpop.f32.mrb[22].mxu1  ;;  %5903 = vmatprep.subr.bf16.mxu0 %v13655_v22  ;;  %6221 = vmatprep.subr.bf16.mxu1 %v13656_v23  ;;  %v1041_v22 = vld [vmem:[#allocation2] sm:$0xfe]  ;;  %v12876_v23 = vadd.f32 %v12597_v1, %v12577_v29  ;;  %v13658_v1 = vcombine.low %v12667_v21, %v12669_v57  ;;  %v866_v21 = vmax.f32 %v12856_v9, 0.0 }
 0x216   :  { %v854_v60 = vmax.f32 %v810_v30, 0.0  ;;  %v814_v55 = vadd.f32 %v813_v17, %v12630_v27  ;;  %v815_v28 = vpop.f32.mrb[23].mxu1  ;;  %v1029_v58 = vld [vmem:[#allocation2 + $0x60] sm:$0xff]  ;;  %v12883_v30 = vld [vmem:[#allocation2 + $0x88] sm:$0xff]  ;;  %v1074_v57 = vrot.slane %v1041_v22, 1  ;;  %v1138_v9 = vrot.slane %v1106_v26, 1 }
 0x217   :  { %v855_v16 = vmax.f32 %v812_v42, 0.0  ;;  %v816_v56 = vadd.f32 %v815_v28, %v12660_v61  ;;  %v1030_v11 = vld [vmem:[#allocation2 + $0x68] sm:$0xff]  ;;  %v1037_v42 = vld [vmem:[#allocation2 + $0x80] sm:$0xff]  ;;  %v1077_v28 = vrot.slane %v1042_v33, 1  ;;  %v13661_v22 = vcombine.low %v12678_v52, %v12680_v31 }
 0x218   :  { %v1107_v17 = vld [vmem:[#allocation2 + $0x28] sm:$0xfe]  ;;  %v12885_v43 = vmax.f32 %v850_v50, %v854_v60  ;;  %v862_v41 = vmax.f32 %v814_v55, 0.0  ;;  %5904 = vmatpush1.bf16.msra.mxu0 %v13657_v35  ;;  %6222 = vmatpush1.bf16.msra.mxu1 %v13658_v1  ;;  %v12894_v18 = vpack.c.bf16 %v12883_v30, %v1030_v11  ;;  %v13659_v50 = vcombine.high %v12678_v52, %v12680_v31 }
 0x219   :  { %v12896_v44 = vmax.f32 %v851_v62, %v855_v16  ;;  %v863_v45 = vmax.f32 %v816_v56, 0.0  ;;  %6223 = vmatprep.subr.bf16.mxu1 %v13660_v24  ;;  %v12904_v39 = vpack.c.bf16 %v1037_v42, %v1029_v58  ;;  %v867_v11 = vmax.f32 %v12867_v32, 0.0  ;;  %v1054_v58 = vld [vmem:[#allocation2 + $0x88] sm:$0x1]  ;;  %v1050_v26 = vld [vmem:[#allocation2 + $0x68] sm:$0xfe] }
 0x21a   :  { %5905 = vmatprep.subr.bf16.mxu0 %v13659_v50  ;;  %v12908_v35 = vmax.f32 %v858_v12, %v862_v41  ;;  %5886 = vmatprep.mubr.bf16.mxu0 %v12894_v18  ;;  %v1141_v16 = vrot.slane %v1107_v17, 1  ;;  %v1078_v60 = vrot.slane %v1046_v53, 1  ;;  %v1075_v55 = vrot.slane %v1045_v63, 1 }
 0x21b   :  { %6204 = vmatprep.mubr.bf16.mxu1 %v12894_v18  ;;  %v12912_v62 = vmax.f32 %v859_v40, %v863_v45  ;;  %v819_v33 = vpop.f32.mrb[24].mxu1  ;;  %5887 = vmatmul.mubr.bf16.gmra.mrb[32].mxu0 %v12904_v39  ;;  %v874_v32 = vmax.f32 %v12871_v46, 0.0  ;;  %v875_v41 = vmax.f32 %v12876_v23, 0.0  ;;  %v12920_v12 = vadd.f32 %v12649_v59, %v12577_v29 }
 0x21c   :  { %6205 = vmatmul.mubr.bf16.gmra.mrb[40].mxu1 %v12904_v39  ;;  %v820_v45 = vadd.f32 %v819_v33, %v12630_v27  ;;  %v821_v40 = vpop.f32.mrb[25].mxu1  ;;  %5906 = vmatpush1.bf16.msra.mxu0 %v13661_v22  ;;  %v13662_v63 = vcombine.low %v12687_v54, %v12689_v0  ;;  %v882_v46 = vmax.f32 %v12880_v36, 0.0  ;;  %v13663_v59 = vcombine.high %v12691_v6, %v12698_v25  ;;  %v1049_v54 = vld [vmem:[#allocation2 + $0x60] sm:$0xfe]  ;;  %v1115_v0 = vld [vmem:[#allocation2 + $0x88] sm:$0xfe] }
 0x21d   :  { %v822_v53 = vadd.f32 %v821_v40, %v12660_v61  ;;  %v823_v23 = vpop.f32.mrb[26].mxu1  ;;  %v13664_v56 = vcombine.high %v12700_v51, %v12702_v2  ;;  %v12938_v31 = vsel %vm1073_vm4, %v1077_v28, %v1078_v60  ;;  %v12941_v52 = vsel %vm1073_vm4, %v1074_v57, %v1075_v55  ;;  %v1053_v28 = vld [vmem:[#allocation2 + $0x80] sm:$0x1] }
 0x21e   :  { %6224 = vmatpush1.bf16.msra.mxu1 %v13662_v63  ;;  %5907 = vmatprep.subr.bf16.mxu0 %v13663_v59  ;;  %v870_v17 = vmax.f32 %v820_v45, 0.0  ;;  %v824_v1 = vadd.f32 %v823_v23, %v12630_v27  ;;  %v825_v42 = vpop.f32.mrb[27].mxu1  ;;  %v1090_v50 = vrot.slane %v1054_v58, 1  ;;  %v13665_v24 = vrot.slane %v12756_v49, 1 }
 0x21f   :  { %6225 = vmatprep.subr.bf16.mxu1 %v13664_v56  ;;  %v871_v40 = vmax.f32 %v822_v53, 0.0  ;;  %v826_v22 = vadd.f32 %v825_v42, %v12660_v61  ;;  %v1089_v63 = vrot.slane %v1050_v26, 1  ;;  %v13666_v60 = vrot.slane %v12770_v34, 1 }
 0x220   :  { %v1143_v33 = vsel %vm1073_vm4, %v1141_v16, %v13665_v24  ;;  %v922_v55 = vmax.f32 %v866_v21, %v870_v17  ;;  %v878_v59 = vmax.f32 %v824_v1, 0.0  ;;  %v13667_v45 = vcombine.low %v12691_v6, %v12698_v25  ;;  %v1114_v25 = vld [vmem:[#allocation2 + $0x80] sm:$0xfe] }
 0x221   :  { %v1140_v57 = vsel %vm1073_vm4, %v1138_v9, %v13666_v60  ;;  %v13668_v49 = vcombine.low %v12700_v51, %v12702_v2  ;;  %v1086_v16 = vrot.slane %v1049_v54, 1  ;;  %v1153_v58 = vrot.slane %v1115_v0, 1 }
 0x222   :  { %5908 = vmatpush1.bf16.msra.mxu0 %v13667_v45  ;;  %v923_v53 = vmax.f32 %v867_v11, %v871_v40  ;;  %v879_v23 = vmax.f32 %v826_v22, 0.0  ;;  %v13669_v26 = vcombine.high %v12713_v3, %v12715_v5  ;;  %v13670_v34 = vcombine.high %v12717_v10, %v12732_v13 }
 0x223   :  { %6226 = vmatpush1.bf16.msra.mxu1 %v13668_v49  ;;  %v12964_v21 = vpack.c.bf16 %v1143_v33, %v12938_v31  ;;  %v12967_v6 = vpack.c.bf16 %v1140_v57, %v12941_v52  ;;  %v688_v51 = vadd.f32 %v12654_v20, %v12570_v37  ;;  %v946_v2 = vmax.f32 %v12885_v43, %v922_v55  ;;  %v829_v17 = vpop.f32.mrb[28].mxu1 }
 0x224   :  { %5909 = vmatprep.subr.bf16.mxu0 %v13669_v26  ;;  %6227 = vmatprep.subr.bf16.mxu1 %v13670_v34  ;;  %v926_v11 = vmax.f32 %v874_v32, %v878_v59  ;;  %v1087_v9 = vrot.slane %v1053_v28, 1  ;;  %v690_v56 = vadd.f32 %v12662_v14, %v12577_v29  ;;  %v947_v54 = vmax.f32 %v12896_v44, %v923_v53  ;;  %v831_v20 = vpop.f32.mrb[29].mxu1  ;;  %v13018_v53 = vld [vmem:[#allocation9 + $0x6a0] sm:$0xff] }
 0x225   :  { %v927_v0 = vmax.f32 %v875_v41, %v879_v23  ;;  %v12976_v1 = vsel %vm1073_vm4, %v1089_v63, %v1090_v50  ;;  %1019 = vst [vmem:[#allocation2 + $0x30] sm:$0x7f] %v946_v2  ;;  %v830_v24 = vadd.f32 %v829_v17, %v12630_v27  ;;  %v13671_v43 = vcombine.low %v12713_v3, %v12715_v5  ;;  %v833_v33 = vpop.f32.mrb[30].mxu1  ;;  %v13687_v17 = vld [vmem:[#allocation34_spill] sm:$0xff] }
 0x226   :  { %v950_v42 = vmax.f32 %v12908_v35, %v926_v11  ;;  %v13672_v14 = vcombine.low %v12717_v10, %v12732_v13  ;;  %v12987_v44 = vsel %vm1073_vm4, %v1086_v16, %v1087_v9  ;;  %v1150_v32 = vrot.slane %v1114_v25, 1  ;;  %1020 = vst [vmem:[#allocation2 + $0x38] sm:$0x7f] %v947_v54  ;;  %v13685_v9 = vld [vmem:[#allocation27_spill] sm:$0xff] }
 0x227   :  { %5910 = vmatpush1.bf16.msra.mxu0 %v13671_v43  ;;  %v883_v41 = vmax.f32 %v12920_v12, 0.0  ;;  %v951_v35 = vmax.f32 %v12912_v62, %v927_v0  ;;  %v832_v50 = vadd.f32 %v831_v20, %v12660_v61  ;;  %v13673_v3 = vcombine.high %v12734_v4, %v12736_v19  ;;  %v835_v62 = vpop.f32.mrb[31].mxu1  ;;  %v13686_v0 = vld [vmem:[#allocation35_spill] sm:$0xff]  ;;  %v13050_v20 = vld [vmem:[#allocation9 + $0x6e0] sm:$0xff] }
 0x228   :  { %6228 = vmatpush1.bf16.msra.mxu1 %v13672_v14  ;;  %v13674_v13 = vcombine.high %v12752_v47, %v12754_v48  ;;  %v13675_v5 = vrot.slane %v12784_v15, 1  ;;  %v995_v40 = vrot.slane %v950_v42, 7  ;;  %v886_v12 = vmax.f32 %v830_v24, 0.0  ;;  %v13048_v24 = vld [vmem:[#allocation9 + $0x6c0] sm:$0xff] }
 0x229   :  { %5911 = vmatprep.subr.bf16.mxu0 %v13673_v3  ;;  %v834_v22 = vadd.f32 %v833_v33, %v12630_v27  ;;  %v890_v28 = vmax.f32 %v688_v51, 0.0  ;;  %v996_v60 = vrot.slane %v951_v35, 7  ;;  %v887_v57 = vmax.f32 %v832_v50, 0.0  ;;  %v13033_v51 = vld [vmem:[#allocation9 + $0x688] sm:$0xff]  ;;  %v13688_v43 = vld [vmem:[#allocation28_spill] sm:$0xff] }
 0x22a   :  { %6229 = vmatprep.subr.bf16.mxu1 %v13674_v13  ;;  %v1155_v10 = vsel %vm1073_vm4, %v1153_v58, %v13675_v5  ;;  %v836_v55 = vadd.f32 %v835_v62, %v12660_v61  ;;  %v891_v59 = vmax.f32 %v690_v56, 0.0  ;;  %1011 = vst [vmem:[#allocation2 + $0x10] sm:$0xfe] %v995_v40  ;;  %v13008_v15 = vmax.f32 %v882_v46, %v886_v12  ;;  %v13016_v58 = vld [vmem:[#allocation9 + $0x680] sm:$0xff] }
 0x22b   :  { %v13003_v63 = vpack.c.bf16 %v1155_v10, %v12976_v1  ;;  %v894_v45 = vmax.f32 %v834_v22, 0.0  ;;  %v13676_v49 = vcombine.low %v12734_v4, %v12736_v19  ;;  %v13677_v16 = vcombine.low %v12752_v47, %v12754_v48  ;;  %1012 = vst [vmem:[#allocation2 + $0x18] sm:$0xfe] %v996_v60  ;;  %v13679_v19 = vld [vmem:[#allocation29_spill] sm:$0xff]  ;;  %v13681_v47 = vld [vmem:[#allocation30_spill] sm:$0xff]  ;;  %v13682_v48 = vld [vmem:[#allocation31_spill] sm:$0xff] }
 0x22c   :  { %v13678_v23 = vrot.slane %v12805_v8, 1  ;;  %v694_v36 = vadd.f32 %v12705_v7, %v12570_v37  ;;  %v13025_v46 = vmax.f32 %v883_v41, %v887_v57  ;;  %v895_v4 = vmax.f32 %v836_v55, 0.0  ;;  %v13035_v8 = vld [vmem:[#allocation9 + $0x6a8] sm:$0xff]  ;;  %v839_v41 = vpop.f32.mrb[32].mxu1  ;;  %v13691_v62 = vld [vmem:[#allocation32_spill] sm:$0xff] }
 0x22d   :  { %5912 = vmatpush1.bf16.msra.mxu0 %v13676_v49  ;;  %6230 = vmatpush1.bf16.msra.mxu1 %v13677_v16  ;;  %v13680_v34 = vcombine.high %v12766_v38, %v13679_v19  ;;  %v13683_v25 = vcombine.high %v13681_v47, %v13682_v48  ;;  %v13684_v7 = vld [vmem:[#allocation26_spill] sm:$0xff]  ;;  %v698_v56 = vadd.f32 %v13685_v9, %v12570_v37  ;;  %v841_v33 = vpop.f32.mrb[33].mxu1 }
 0x22e   :  { %v1152_v26 = vsel %vm1073_vm4, %v1150_v32, %v13678_v23  ;;  %v696_v11 = vadd.f32 %v13684_v7, %v12577_v29  ;;  %v13044_v54 = vmax.f32 %v890_v28, %v894_v45  ;;  %v10239_v42 = vcombine.low %v13687_v17, %v13686_v0  ;;  %v1048_v10 = vld [vmem:[#allocation2 + $0x38] sm:$0x1]  ;;  %v843_v22 = vpop.f32.mrb[34].mxu1  ;;  %v13692_v28 = vld [vmem:[#allocation33_spill] sm:$0xff] }
 0x22f   :  { %5913 = vmatprep.subr.bf16.mxu0 %v13680_v34  ;;  %6231 = vmatprep.subr.bf16.mxu1 %v13683_v25  ;;  %v13038_v2 = vpack.c.bf16 %v1152_v26, %v12987_v44  ;;  %v700_v14 = vadd.f32 %v13688_v43, %v12577_v29  ;;  %v13054_v32 = vmax.f32 %v891_v59, %v895_v4  ;;  %v898_v40 = vmax.f32 %v694_v36, 0.0  ;;  %v13082_v59 = vld [vmem:[#allocation9 + $0x6c8] sm:$0xff]  ;;  %v845_v36 = vpop.f32.mrb[35].mxu1  ;;  %v13087_v4 = vld [vmem:[#allocation2 + $0x58] sm:$0x1]  ;;  %v13090_v25 = vld [vmem:[#allocation9 + $0x700] sm:$0xff] }
 0x230   :  { %v10245_v35 = vcombine.low %v13016_v58, %v13018_v53  ;;  %v10246_v37 = vcombine.high %v13016_v58, %v13018_v53  ;;  %v840_v50 = vadd.f32 %v839_v41, %v12630_v27  ;;  %v13689_v3 = vcombine.low %v12766_v38, %v13679_v19  ;;  %v13084_v45 = vld [vmem:[#allocation9 + $0x6e8] sm:$0xff]  ;;  %v1109_v43 = vld [vmem:[#allocation2 + $0x38] sm:$0xfe] }
 0x231   :  { %v13690_v13 = vcombine.low %v13681_v47, %v13682_v48  ;;  %v10247_v29 = vcombine.low %v13033_v51, %v13035_v8  ;;  %v10248_v5 = vcombine.high %v13033_v51, %v13035_v8  ;;  %v842_v12 = vadd.f32 %v841_v33, %v12660_v61  ;;  %v1036_v48 = vld [vmem:[#allocation2 + $0x38] sm:$0xff]  ;;  %v13092_v51 = vld [vmem:[#allocation9 + $0x720] sm:$0xff]  ;;  %v1043_v7 = vld [vmem:[#allocation2 + $0x10] sm:$0xfe] }
 0x232   :  { %5914 = vmatpush1.bf16.msra.mxu0 %v13689_v3  ;;  %v13693_v60 = vcombine.high %v13691_v62, %v13692_v28  ;;  %v13694_v38 = vcombine.high %v13687_v17, %v13686_v0  ;;  %v10253_v57 = vcombine.low %v13048_v24, %v13050_v20  ;;  %v10254_v55 = vcombine.high %v13048_v24, %v13050_v20  ;;  %v1044_v17 = vld [vmem:[#allocation2 + $0x18] sm:$0xfe]  ;;  %v1419_v33 = vld [vmem:[#allocation9 + $0x708] sm:$0xff] }
 0x233   :  { %6232 = vmatpush1.bf16.msra.mxu1 %v13690_v13  ;;  %v899_v49 = vmax.f32 %v696_v11, 0.0  ;;  %v906_v16 = vmax.f32 %v698_v56, 0.0  ;;  %v902_v23 = vmax.f32 %v840_v50, 0.0  ;;  %v844_v26 = vadd.f32 %v843_v22, %v12630_v27  ;;  %v1028_v27 = vld [vmem:[#allocation2 + $0x18] sm:$0xff]  ;;  %v1423_v3 = vld [vmem:[#allocation9 + $0x728] sm:$0xff] }
 0x234   :  { %5915 = vmatprep.subr.bf16.mxu0 %v13693_v60  ;;  %6233 = vmatprep.subr.bf16.mxu1 %v13694_v38  ;;  %v907_v19 = vmax.f32 %v700_v14, 0.0  ;;  %v903_v34 = vmax.f32 %v842_v12, 0.0  ;;  %v846_v47 = vadd.f32 %v845_v36, %v12660_v61  ;;  %v1084_v8 = vrot.slane %v1048_v10, 1  ;;  %v1047_v10 = vld [vmem:[#allocation2 + $0x30] sm:$0x1] }
 0x235   :  { %v938_v9 = vmax.f32 %v898_v40, %v902_v23  ;;  %v910_v11 = vmax.f32 %v844_v26, 0.0  ;;  %v13695_v56 = vcombine.low %v13691_v62, %v13692_v28  ;;  %v10255_v0 = vcombine.low %v13082_v59, %v13084_v45  ;;  %v1108_v62 = vld [vmem:[#allocation2 + $0x30] sm:$0xfe]  ;;  %v1112_v28 = vld [vmem:[#allocation2 + $0x50] sm:$0x1]  ;;  %v1426_v23 = vld [vmem:[#allocation9 + $0x740] sm:$0xff] }
 0x236   :  { %v10256_v61 = vcombine.high %v13082_v59, %v13084_v45  ;;  %v939_v14 = vmax.f32 %v899_v49, %v903_v34  ;;  %v911_v41 = vmax.f32 %v846_v47, 0.0  ;;  %v13101_v50 = vpack.c.bf16 %v1036_v48, %v1028_v27  ;;  %v1430_v26 = vld [vmem:[#allocation9 + $0x760] sm:$0xff]  ;;  %v1427_v58 = vld [vmem:[#allocation9 + $0x748] sm:$0xff] }
 0x237   :  { %5916 = vmatpush1.bf16.msra.mxu0 %v13695_v56  ;;  %6234 = vmatpush1.bf16.msra.mxu1 %v10239_v42  ;;  %v1083_v13 = vrot.slane %v1044_v17, 1  ;;  %v954_v42 = vmax.f32 %v13008_v15, %v938_v9  ;;  %v942_v40 = vmax.f32 %v906_v16, %v910_v11  ;;  %v1080_v12 = vrot.slane %v1043_v7, 1  ;;  %v1431_v53 = vld [vmem:[#allocation9 + $0x768] sm:$0xff]  ;;  %v1434_v9 = vld [vmem:[#allocation9 + $0x780] sm:$0xff] }
 0x238   :  { %5917 = vmatprep.subr.bf16.mxu0 %v10246_v37  ;;  %6235 = vmatprep.subr.bf16.mxu1 %v10248_v5  ;;  %v1148_v22 = vrot.slane %v13087_v4, 1  ;;  %v955_v60 = vmax.f32 %v13025_v46, %v939_v14  ;;  %v943_v38 = vmax.f32 %v907_v19, %v911_v41  ;;  %v1147_v5 = vrot.slane %v1109_v43, 1  ;;  %v1438_v56 = vld [vmem:[#allocation9 + $0x7a0] sm:$0xff]  ;;  %v1435_v27 = vld [vmem:[#allocation9 + $0x788] sm:$0xff] }
 0x239   :  { %5929 = vmatprep.mubr.bf16.mxu0 %v13101_v50  ;;  %6247 = vmatprep.mubr.bf16.mxu1 %v13101_v50  ;;  %v1085_v37 = vsel %vm1073_vm4, %v1083_v13, %v1084_v8  ;;  %1023 = vst [vmem:[#allocation2 + $0x90] sm:$0x7f] %v954_v42  ;;  %v958_v59 = vmax.f32 %v13044_v54, %v942_v40  ;;  %v1081_v45 = vrot.slane %v1047_v10, 1  ;;  %v1144_v54 = vrot.slane %v1108_v62, 1  ;;  %v1120_v17 = vld [vmem:[#allocation2 + $0xb0] sm:$0x1] }
 0x23a   :  { %v10262_v15 = vcombine.high %v13090_v25, %v13092_v51  ;;  %v13115_v46 = vpack.c.bf16 %v1085_v37, %v1036_v48  ;;  %1024 = vst [vmem:[#allocation2 + $0x98] sm:$0x7f] %v955_v60  ;;  %v959_v49 = vmax.f32 %v13054_v32, %v943_v38  ;;  %v10264_v16 = vcombine.high %v1419_v33, %v1423_v3  ;;  %v1443_v13 = vld [vmem:[#allocation9 + $0x7c8] sm:$0xff]  ;;  %v1454_v62 = vld [vmem:[#allocation9 + $0x820] sm:$0xff] }
 0x23b   :  { %5918 = vmatpush1.bf16.msra.mxu0 %v10245_v35  ;;  %6236 = vmatpush1.bf16.msra.mxu1 %v10247_v29  ;;  %v1145_v36 = vrot.slane %v1112_v28, 1  ;;  %v999_v4 = vrot.slane %v958_v59, 7  ;;  %v13118_v35 = vld [vmem:[#allocation2 + $0x30] sm:$0xff]  ;;  %v1082_v29 = vsel %vm1073_vm4, %v1080_v12, %v1081_v45  ;;  %v1149_v32 = vsel %vm1073_vm4, %v1147_v5, %v1148_v22  ;;  %v1450_v22 = vld [vmem:[#allocation9 + $0x800] sm:$0xff] }
 0x23c   :  { %5919 = vmatprep.subr.bf16.mxu0 %v10254_v55  ;;  %6237 = vmatprep.subr.bf16.mxu1 %v10256_v61  ;;  %v1000_v19 = vrot.slane %v959_v49, 7  ;;  %v13122_v34 = vpack.c.bf16 %v1082_v29, %v13118_v35  ;;  %v10261_v55 = vcombine.low %v13090_v25, %v13092_v51  ;;  %v10263_v47 = vcombine.low %v1419_v33, %v1423_v3  ;;  %v1439_v61 = vld [vmem:[#allocation9 + $0x7a8] sm:$0xff]  ;;  %v1442_v25 = vld [vmem:[#allocation9 + $0x7c0] sm:$0xff] }
 0x23d   :  { %1015 = vst [vmem:[#allocation2 + $0x70] sm:$0xfe] %v999_v4  ;;  %v13130_v48 = vpack.c.bf16 %v1149_v32, %v1085_v37  ;;  %v10270_v8 = vcombine.high %v1426_v23, %v1430_v26  ;;  %v10272_v7 = vcombine.high %v1427_v58, %v1431_v53  ;;  %v1146_v11 = vsel %vm1073_vm4, %v1144_v54, %v1145_v36  ;;  %v1446_v51 = vld [vmem:[#allocation9 + $0x7e0] sm:$0xff]  ;;  %v1447_v10 = vld [vmem:[#allocation9 + $0x7e8] sm:$0xff] }
 0x23e   :  { %1016 = vst [vmem:[#allocation2 + $0x78] sm:$0xfe] %v1000_v19  ;;  %v13133_v24 = vpack.c.bf16 %v1146_v11, %v1082_v29  ;;  %v10269_v20 = vcombine.low %v1426_v23, %v1430_v26  ;;  %v10278_v43 = vcombine.high %v1434_v9, %v1438_v56  ;;  %v10280_v14 = vcombine.high %v1435_v27, %v1439_v61  ;;  %v1451_v36 = vld [vmem:[#allocation9 + $0x808] sm:$0xff] }
 0x23f   :  { %5920 = vmatpush1.bf16.msra.mxu0 %v10253_v57  ;;  %6238 = vmatpush1.bf16.msra.mxu1 %v10255_v0  ;;  %v10271_v57 = vcombine.low %v1427_v58, %v1431_v53  ;;  %v1121_v0 = vld [vmem:[#allocation2 + $0xb8] sm:$0x1]  ;;  %v10277_v40 = vcombine.low %v1434_v9, %v1438_v56  ;;  %v10279_v12 = vcombine.low %v1435_v27, %v1439_v61  ;;  %v1157_v38 = vrot.slane %v1120_v17, 1  ;;  %v1455_v4 = vld [vmem:[#allocation9 + $0x828] sm:$0xff] }
 0x240   :  { %5921 = vmatprep.subr.bf16.mxu0 %v10262_v15  ;;  %6239 = vmatprep.subr.bf16.mxu1 %v10264_v16  ;;  %v1055_v41 = vld [vmem:[#allocation2 + $0x90] sm:$0x1]  ;;  %v1116_v3 = vld [vmem:[#allocation2 + $0x90] sm:$0xfe]  ;;  %v1160_v60 = vrot.slane %v1121_v0, 1  ;;  %v10286_v49 = vcombine.high %v1442_v25, %v1446_v51  ;;  %v10288_v16 = vcombine.high %v1443_v13, %v1447_v10  ;;  %v10285_v54 = vcombine.low %v1442_v25, %v1446_v51 }
 0x241   :  { %v1117_v33 = vld [vmem:[#allocation2 + $0x98] sm:$0xfe]  ;;  %v1056_v42 = vld [vmem:[#allocation2 + $0x98] sm:$0x1]  ;;  %v1093_v59 = vrot.slane %v1055_v41, 1  ;;  %v1156_v45 = vrot.slane %v1116_v3, 1  ;;  %v10287_v29 = vcombine.low %v1443_v13, %v1447_v10  ;;  %v10294_v19 = vcombine.high %v1450_v22, %v1454_v62 }
 0x242   :  { %v1159_v15 = vrot.slane %v1117_v33, 1  ;;  %v1096_v26 = vrot.slane %v1056_v42, 1  ;;  %v1039_v58 = vld [vmem:[#allocation2 + $0x90] sm:$0xff]  ;;  %v1040_v32 = vld [vmem:[#allocation2 + $0x98] sm:$0xff]  ;;  %v10296_v11 = vcombine.high %v1451_v36, %v1455_v4  ;;  %v10293_v17 = vcombine.low %v1450_v22, %v1454_v62  ;;  %v1466_v13 = vld [vmem:[#allocation9 + $0x880] sm:$0xff] }
 0x243   :  { %5922 = vmatpush1.bf16.msra.mxu0 %v10261_v55  ;;  %6240 = vmatpush1.bf16.msra.mxu1 %v10263_v47  ;;  %v1158_v9 = vsel %vm1073_vm4, %v1156_v45, %v1157_v38  ;;  %v1027_v61 = vld [vmem:[#allocation2 + $0x10] sm:$0xff]  ;;  %v1470_v10 = vld [vmem:[#allocation9 + $0x8a0] sm:$0xff] }
 0x244   :  { %5923 = vmatprep.subr.bf16.mxu0 %v10270_v8  ;;  %6241 = vmatprep.subr.bf16.mxu1 %v10272_v7  ;;  %v1051_v28 = vld [vmem:[#allocation2 + $0x70] sm:$0xfe]  ;;  %v1161_v7 = vsel %vm1073_vm4, %v1159_v15, %v1160_v60  ;;  %v10310_v22 = vcombine.high %v1466_v13, %v1470_v10  ;;  %v1474_v60 = vld [vmem:[#allocation9 + $0x8c0] sm:$0xff] }
 0x245   :  { %v1052_v37 = vld [vmem:[#allocation2 + $0x78] sm:$0xfe]  ;;  %v1092_v5 = vrot.slane %v1051_v28, 1  ;;  %v1459_v51 = vld [vmem:[#allocation9 + $0x848] sm:$0xff]  ;;  %v1478_v38 = vld [vmem:[#allocation9 + $0x8e0] sm:$0xff] }
 0x246   :  { %v1095_v23 = vrot.slane %v1052_v37, 1  ;;  %v1032_v25 = vld [vmem:[#allocation2 + $0x78] sm:$0xff]  ;;  %v1463_v0 = vld [vmem:[#allocation9 + $0x868] sm:$0xff] }
 0x247   :  { %5924 = vmatpush1.bf16.msra.mxu0 %v10269_v20  ;;  %6242 = vmatpush1.bf16.msra.mxu1 %v10271_v57  ;;  %v1094_v53 = vsel %vm1073_vm4, %v1092_v5, %v1093_v59  ;;  %v1458_v20 = vld [vmem:[#allocation9 + $0x840] sm:$0xff]  ;;  %v13150_v41 = vpack.c.bf16 %v1040_v32, %v1032_v25  ;;  %v10304_v3 = vcombine.high %v1459_v51, %v1463_v0  ;;  %v1467_v42 = vld [vmem:[#allocation9 + $0x888] sm:$0xff] }
 0x248   :  { %5925 = vmatprep.subr.bf16.mxu0 %v10278_v43  ;;  %6243 = vmatprep.subr.bf16.mxu1 %v10280_v14  ;;  %v1097_v55 = vsel %vm1073_vm4, %v1095_v23, %v1096_v26  ;;  %v13137_v47 = vpack.c.bf16 %v1094_v53, %v1039_v58  ;;  %v13145_v27 = vpack.c.bf16 %v1158_v9, %v1094_v53  ;;  %v1462_v57 = vld [vmem:[#allocation9 + $0x860] sm:$0xff]  ;;  %v1031_v62 = vld [vmem:[#allocation2 + $0x70] sm:$0xff] }
 0x249   :  { %v13139_v8 = vpack.c.bf16 %v1097_v55, %v1040_v32  ;;  %v13143_v56 = vpack.c.bf16 %v1161_v7, %v1097_v55  ;;  %v13148_v43 = vpack.c.bf16 %v13118_v35, %v1027_v61  ;;  %v10295_v14 = vcombine.low %v1451_v36, %v1455_v4  ;;  %v1475_v37 = vld [vmem:[#allocation9 + $0x8c8] sm:$0xff]  ;;  %v1486_v36 = vld [vmem:[#allocation9 + $0x920] sm:$0xff] }
 0x24a   :  { %v10302_v33 = vcombine.high %v1458_v20, %v1462_v57  ;;  %v10301_v35 = vcombine.low %v1458_v20, %v1462_v57  ;;  %v1479_v5 = vld [vmem:[#allocation9 + $0x8e8] sm:$0xff]  ;;  %v10309_v59 = vcombine.low %v1466_v13, %v1470_v10  ;;  %v13156_v15 = vpack.c.bf16 %v1039_v58, %v1031_v62  ;;  %v1490_v32 = vld [vmem:[#allocation9 + $0x940] sm:$0xff] }
 0x24b   :  { %5926 = vmatpush1.bf16.msra.mxu0 %v10277_v40  ;;  %6244 = vmatpush1.bf16.msra.mxu1 %v10279_v12  ;;  %v1471_v40 = vld [vmem:[#allocation9 + $0x8a8] sm:$0xff]  ;;  %v10303_v12 = vcombine.low %v1459_v51, %v1463_v0  ;;  %v10318_v23 = vcombine.high %v1474_v60, %v1478_v38  ;;  %v10320_v26 = vcombine.high %v1475_v37, %v1479_v5  ;;  %v1494_v55 = vld [vmem:[#allocation9 + $0x960] sm:$0xff] }
 0x24c   :  { %5927 = vmatprep.subr.bf16.mxu0 %v10286_v49  ;;  %6245 = vmatprep.subr.bf16.mxu1 %v10288_v16  ;;  %v10312_v28 = vcombine.high %v1467_v42, %v1471_v40  ;;  %v10311_v45 = vcombine.low %v1467_v42, %v1471_v40  ;;  %v13696_v49 = vld [vmem:[#allocation23_spill] sm:$0xff]  ;;  %v1483_v4 = vld [vmem:[#allocation9 + $0x908] sm:$0xff]  ;;  %v10317_v58 = vcombine.low %v1474_v60, %v1478_v38  ;;  %v1498_v25 = vld [vmem:[#allocation9 + $0x980] sm:$0xff] }
 0x24d   :  { %v13160_v16 = vpack.c.bf16 %v12938_v31, %v13696_v49  ;;  %v1487_v53 = vld [vmem:[#allocation9 + $0x928] sm:$0xff]  ;;  %v10334_v20 = vcombine.high %v1490_v32, %v1494_v55  ;;  %v1502_v51 = vld [vmem:[#allocation9 + $0x9a0] sm:$0xff] }
 0x24e   :  { %v1491_v7 = vld [vmem:[#allocation9 + $0x948] sm:$0xff]  ;;  %v10327_v61 = vcombine.low %v1483_v4, %v1487_v53  ;;  %v1506_v10 = vld [vmem:[#allocation9 + $0x9c0] sm:$0xff] }
 0x24f   :  { %5928 = vmatpush1.bf16.msra.mxu0 %v10285_v54  ;;  %6246 = vmatpush1.bf16.msra.mxu1 %v10287_v29  ;;  %v1482_v54 = vld [vmem:[#allocation9 + $0x900] sm:$0xff]  ;;  %v10319_v29 = vcombine.low %v1475_v37, %v1479_v5  ;;  %v1495_v9 = vld [vmem:[#allocation9 + $0x968] sm:$0xff] }
 0x250   :  { %5950 = vmatprep.subr.bf16.mxu0 %v10294_v19  ;;  %6268 = vmatprep.subr.bf16.mxu1 %v10296_v11  ;;  %v10326_v31 = vcombine.high %v1482_v54, %v1486_v36  ;;  %v10328_v19 = vcombine.high %v1483_v4, %v1487_v53  ;;  %v10325_v11 = vcombine.low %v1482_v54, %v1486_v36  ;;  %v1499_v0 = vld [vmem:[#allocation9 + $0x988] sm:$0xff]  ;;  %v1510_v42 = vld [vmem:[#allocation9 + $0x9e0] sm:$0xff] }
 0x251   :  { %v10336_v57 = vcombine.high %v1491_v7, %v1495_v9  ;;  %v1507_v40 = vld [vmem:[#allocation9 + $0x9c8] sm:$0xff]  ;;  %v10350_v62 = vcombine.high %v1506_v10, %v1510_v42  ;;  %v1514_v60 = vld [vmem:[#allocation9 + $0xa00] sm:$0xff] }
 0x252   :  { %5930 = vmatmul.mubr.bf16.vlgmr.msra.gmra.mrb[28].mxu0 %v13148_v43  ;;  %6248 = vmatmul.mubr.bf16.vlgmr.msra.gmra.mrb[36].mxu1 %v13148_v43  ;;  %v1518_v38 = vld [vmem:[#allocation9 + $0xa20] sm:$0xff]  ;;  %v1515_v37 = vld [vmem:[#allocation9 + $0xa08] sm:$0xff] }
 0x253   :  { %5939 = vmatprep.mubr.bf16.mxu0 %v13150_v41  ;;  %5951 = vmatpush1.bf16.msra.mxu0 %v10293_v17  ;;  %v1503_v17 = vld [vmem:[#allocation9 + $0x9a8] sm:$0xff]  ;;  %v10358_v49 = vcombine.high %v1514_v60, %v1518_v38  ;;  %v1526_v54 = vld [vmem:[#allocation9 + $0xa60] sm:$0xff]  ;;  %v10357_v53 = vcombine.low %v1514_v60, %v1518_v38 }
 0x254   :  { %6257 = vmatprep.mubr.bf16.mxu1 %v13150_v41  ;;  %6269 = vmatpush1.bf16.msra.mxu1 %v10295_v14  ;;  %v10333_v14 = vcombine.low %v1490_v32, %v1494_v55  ;;  %v10344_v13 = vcombine.high %v1499_v0, %v1503_v17  ;;  %v1519_v5 = vld [vmem:[#allocation9 + $0xa28] sm:$0xff]  ;;  %v1534_v32 = vld [vmem:[#allocation9 + $0xaa0] sm:$0xff] }
 0x255   :  { %5952 = vmatprep.subr.bf16.mxu0 %v10302_v33  ;;  %6270 = vmatprep.subr.bf16.mxu1 %v10304_v3  ;;  %v10335_v33 = vcombine.low %v1491_v7, %v1495_v9  ;;  %v10342_v3 = vcombine.high %v1498_v25, %v1502_v51  ;;  %v1523_v36 = vld [vmem:[#allocation9 + $0xa48] sm:$0xff]  ;;  %v1558_v60 = vld [vmem:[#allocation9 + $0xb60] sm:$0xff] }
 0x256   :  { %v1527_v4 = vld [vmem:[#allocation9 + $0xa68] sm:$0xff] }
 0x257   :  { %5953 = vmatpush1.bf16.msra.mxu0 %v10301_v35  ;;  %v1511_v35 = vld [vmem:[#allocation9 + $0x9e8] sm:$0xff] }
 0x258   :  { %6271 = vmatpush1.bf16.msra.mxu1 %v10303_v12  ;;  %5954 = vmatprep.subr.bf16.mxu0 %v10310_v22  ;;  %v10341_v12 = vcombine.low %v1498_v25, %v1502_v51  ;;  %v10343_v22 = vcombine.low %v1499_v0, %v1503_v17  ;;  %v1531_v55 = vld [vmem:[#allocation9 + $0xa88] sm:$0xff]  ;;  %v1542_v25 = vld [vmem:[#allocation9 + $0xae0] sm:$0xff] }
 0x259   :  { %6272 = vmatprep.subr.bf16.mxu1 %v10312_v28  ;;  %v10352_v28 = vcombine.high %v1507_v40, %v1511_v35  ;;  %v1535_v7 = vld [vmem:[#allocation9 + $0xaa8] sm:$0xff] }
 0x25a   :  { %5940 = vmatmul.mubr.bf16.gmra.mrb[32].mxu0 %v13156_v15  ;;  %6258 = vmatmul.mubr.bf16.gmra.mrb[40].mxu1 %v13156_v15  ;;  %v1539_v51 = vld [vmem:[#allocation9 + $0xac8] sm:$0xff] }
 0x25b   :  { %5955 = vmatpush1.bf16.msra.mxu0 %v10309_v59  ;;  %5982 = vmatprep.mubr.bf16.mxu0 %v13160_v16  ;;  %v10349_v59 = vcombine.low %v1506_v10, %v1510_v42  ;;  %v1543_v0 = vld [vmem:[#allocation9 + $0xae8] sm:$0xff]  ;;  %v1550_v10 = vld [vmem:[#allocation9 + $0xb20] sm:$0xff] }
 0x25c   :  { %6273 = vmatpush1.bf16.msra.mxu1 %v10311_v45  ;;  %6300 = vmatprep.mubr.bf16.mxu1 %v13160_v16  ;;  %v10351_v45 = vcombine.low %v1507_v40, %v1511_v35  ;;  %v1547_v42 = vld [vmem:[#allocation9 + $0xb08] sm:$0xff] }
 0x25d   :  { %5956 = vmatprep.subr.bf16.mxu0 %v10318_v23  ;;  %6274 = vmatprep.subr.bf16.mxu1 %v10320_v26  ;;  %v10360_v23 = vcombine.high %v1515_v37, %v1519_v5  ;;  %v1522_v26 = vld [vmem:[#allocation9 + $0xa40] sm:$0xff]  ;;  %v1551_v40 = vld [vmem:[#allocation9 + $0xb28] sm:$0xff] }
 0x25e   :  { %v10365_v9 = vcombine.low %v1522_v26, %v1526_v54  ;;  %v1555_v38 = vld [vmem:[#allocation9 + $0xb48] sm:$0xff] }
 0x25f   :  { %5957 = vmatpush1.bf16.msra.mxu0 %v10317_v58  ;;  %v10359_v58 = vcombine.low %v1515_v37, %v1519_v5  ;;  %v1559_v37 = vld [vmem:[#allocation9 + $0xb68] sm:$0xff] }
 0x260   :  { %6275 = vmatpush1.bf16.msra.mxu1 %v10319_v29  ;;  %5958 = vmatprep.subr.bf16.mxu0 %v10326_v31  ;;  %v10366_v29 = vcombine.high %v1522_v26, %v1526_v54  ;;  %v10368_v31 = vcombine.high %v1523_v36, %v1527_v4  ;;  %v1566_v26 = vld [vmem:[#allocation9 + $0xba0] sm:$0xff]  ;;  %v1563_v54 = vld [vmem:[#allocation9 + $0xb88] sm:$0xff] }
 0x261   :  { %6276 = vmatprep.subr.bf16.mxu1 %v10328_v19  ;;  %v1530_v19 = vld [vmem:[#allocation9 + $0xa80] sm:$0xff] }
 0x262   :  { %v10373_v17 = vcombine.low %v1530_v19, %v1534_v32 }
 0x263   :  { %5959 = vmatpush1.bf16.msra.mxu0 %v10325_v11  ;;  %v10367_v11 = vcombine.low %v1523_v36, %v1527_v4  ;;  %v1567_v36 = vld [vmem:[#allocation9 + $0xba8] sm:$0xff] }
 0x264   :  { %6277 = vmatpush1.bf16.msra.mxu1 %v10327_v61  ;;  %5960 = vmatprep.subr.bf16.mxu0 %v10334_v20  ;;  %v10374_v61 = vcombine.high %v1530_v19, %v1534_v32  ;;  %v10376_v20 = vcombine.high %v1531_v55, %v1535_v7  ;;  %v1574_v19 = vld [vmem:[#allocation9 + $0xbe0] sm:$0xff]  ;;  %v1571_v32 = vld [vmem:[#allocation9 + $0xbc8] sm:$0xff] }
 0x265   :  { %6278 = vmatprep.subr.bf16.mxu1 %v10336_v57  ;;  %v1538_v57 = vld [vmem:[#allocation9 + $0xac0] sm:$0xff] }
 0x266   :  { %v10381_v35 = vcombine.low %v1538_v57, %v1542_v25 }
 0x267   :  { %5961 = vmatpush1.bf16.msra.mxu0 %v10333_v14  ;;  %v10375_v14 = vcombine.low %v1531_v55, %v1535_v7  ;;  %v1575_v55 = vld [vmem:[#allocation9 + $0xbe8] sm:$0xff] }
 0x268   :  { %6279 = vmatpush1.bf16.msra.mxu1 %v10335_v33  ;;  %5962 = vmatprep.subr.bf16.mxu0 %v10342_v3  ;;  %v10382_v33 = vcombine.high %v1538_v57, %v1542_v25  ;;  %v10384_v3 = vcombine.high %v1539_v51, %v1543_v0  ;;  %v1582_v57 = vld [vmem:[#allocation9 + $0xc20] sm:$0xff]  ;;  %v1579_v25 = vld [vmem:[#allocation9 + $0xc08] sm:$0xff] }
 0x269   :  { %6280 = vmatprep.subr.bf16.mxu1 %v10344_v13  ;;  %v1546_v13 = vld [vmem:[#allocation9 + $0xb00] sm:$0xff] }
 0x26a   :  { %v10389_v5 = vcombine.low %v1546_v13, %v1550_v10 }
 0x26b   :  { %5963 = vmatpush1.bf16.msra.mxu0 %v10341_v12  ;;  %v10383_v12 = vcombine.low %v1539_v51, %v1543_v0  ;;  %v1583_v51 = vld [vmem:[#allocation9 + $0xc28] sm:$0xff] }
 0x26c   :  { %6281 = vmatpush1.bf16.msra.mxu1 %v10343_v22  ;;  %5964 = vmatprep.subr.bf16.mxu0 %v10350_v62  ;;  %v10390_v22 = vcombine.high %v1546_v13, %v1550_v10  ;;  %v10392_v62 = vcombine.high %v1547_v42, %v1551_v40  ;;  %v1590_v13 = vld [vmem:[#allocation9 + $0xc60] sm:$0xff]  ;;  %v1587_v10 = vld [vmem:[#allocation9 + $0xc48] sm:$0xff] }
 0x26d   :  { %6282 = vmatprep.subr.bf16.mxu1 %v10352_v28  ;;  %v1554_v28 = vld [vmem:[#allocation9 + $0xb40] sm:$0xff] }
 0x26e   :  { %v10397_v4 = vcombine.low %v1554_v28, %v1558_v60 }
 0x26f   :  { %5965 = vmatpush1.bf16.msra.mxu0 %v10349_v59  ;;  %v10391_v59 = vcombine.low %v1547_v42, %v1551_v40  ;;  %v1591_v42 = vld [vmem:[#allocation9 + $0xc68] sm:$0xff]  ;;  %v11939_v40 = vld [vmem:[#allocation2 + $0x20] sm:$0xff] }
 0x270   :  { %6283 = vmatpush1.bf16.msra.mxu1 %v10351_v45  ;;  %5966 = vmatprep.subr.bf16.mxu0 %v10358_v49  ;;  %v10398_v45 = vcombine.high %v1554_v28, %v1558_v60  ;;  %v10400_v49 = vcombine.high %v1555_v38, %v1559_v37  ;;  %v10432_v60 = vcombine.high %v1587_v10, %v1591_v42 }
 0x271   :  { %6284 = vmatprep.subr.bf16.mxu1 %v10360_v23  ;;  %v1562_v23 = vld [vmem:[#allocation9 + $0xb80] sm:$0xff] }
 0x272   :  { %v10405_v7 = vcombine.low %v1562_v23, %v1566_v26 }
 0x273   :  { %5967 = vmatpush1.bf16.msra.mxu0 %v10357_v53  ;;  %v10399_v53 = vcombine.low %v1555_v38, %v1559_v37  ;;  %v1594_v38 = vld [vmem:[#allocation9 + $0xc80] sm:$0xff] }
 0x274   :  { %6285 = vmatpush1.bf16.msra.mxu1 %v10359_v58  ;;  %5968 = vmatprep.subr.bf16.mxu0 %v10366_v29  ;;  %v10406_v58 = vcombine.high %v1562_v23, %v1566_v26  ;;  %v10408_v29 = vcombine.high %v1563_v54, %v1567_v36  ;;  %v1598_v37 = vld [vmem:[#allocation9 + $0xca0] sm:$0xff]  ;;  %v1603_v26 = vld [vmem:[#allocation9 + $0xcc8] sm:$0xff] }
 0x275   :  { %6286 = vmatprep.subr.bf16.mxu1 %v10368_v31  ;;  %v1570_v31 = vld [vmem:[#allocation9 + $0xbc0] sm:$0xff] }
 0x276   :  { %v10413_v0 = vcombine.low %v1570_v31, %v1574_v19  ;;  %v1606_v23 = vld [vmem:[#allocation9 + $0xce0] sm:$0xff] }
 0x277   :  { %5969 = vmatpush1.bf16.msra.mxu0 %v10365_v9  ;;  %v10407_v9 = vcombine.low %v1563_v54, %v1567_v36  ;;  %v1607_v54 = vld [vmem:[#allocation9 + $0xce8] sm:$0xff]  ;;  %v11940_v36 = vld [vmem:[#allocation2 + $0x80] sm:$0xff] }
 0x278   :  { %6287 = vmatpush1.bf16.msra.mxu1 %v10367_v11  ;;  %5970 = vmatprep.subr.bf16.mxu0 %v10374_v61  ;;  %v10414_v11 = vcombine.high %v1570_v31, %v1574_v19  ;;  %v10416_v61 = vcombine.high %v1571_v32, %v1575_v55  ;;  %v10448_v31 = vcombine.high %v1603_v26, %v1607_v54  ;;  %v1610_v19 = vld [vmem:[#allocation9 + $0xd00] sm:$0xff] }
 0x279   :  { %6288 = vmatprep.subr.bf16.mxu1 %v10376_v20  ;;  %v1578_v20 = vld [vmem:[#allocation9 + $0xc00] sm:$0xff] }
 0x27b   :  { %5971 = vmatpush1.bf16.msra.mxu0 %v10373_v17  ;;  %v10415_v17 = vcombine.low %v1571_v32, %v1575_v55  ;;  %v1614_v32 = vld [vmem:[#allocation9 + $0xd20] sm:$0xff]  ;;  %v1611_v55 = vld [vmem:[#allocation9 + $0xd08] sm:$0xff] }
 0x27c   :  { %6289 = vmatpush1.bf16.msra.mxu1 %v10375_v14  ;;  %5972 = vmatprep.subr.bf16.mxu0 %v10382_v33  ;;  %v10422_v14 = vcombine.high %v1578_v20, %v1582_v57  ;;  %v10424_v33 = vcombine.high %v1579_v25, %v1583_v51 }
 0x27d   :  { %6290 = vmatprep.subr.bf16.mxu1 %v10384_v3  ;;  %v1586_v3 = vld [vmem:[#allocation9 + $0xc40] sm:$0xff] }
 0x27e   :  { %v10430_v28 = vcombine.high %v1586_v3, %v1590_v13 }
 0x27f   :  { %5973 = vmatpush1.bf16.msra.mxu0 %v10381_v35  ;;  %v13167_v35 = vpack.c.bf16 %v12941_v52, %v11939_v40  ;;  %v1595_v52 = vld [vmem:[#allocation9 + $0xc88] sm:$0xff] }
 0x280   :  { %6291 = vmatpush1.bf16.msra.mxu1 %v10383_v12  ;;  %5974 = vmatprep.subr.bf16.mxu0 %v10390_v22  ;;  %v10421_v12 = vcombine.low %v1578_v20, %v1582_v57  ;;  %v10423_v22 = vcombine.low %v1579_v25, %v1583_v51  ;;  %v1618_v20 = vld [vmem:[#allocation9 + $0xd40] sm:$0xff]  ;;  %v1619_v25 = vld [vmem:[#allocation9 + $0xd48] sm:$0xff] }
 0x281   :  { %6292 = vmatprep.subr.bf16.mxu1 %v10392_v62  ;;  %v13171_v62 = vpack.c.bf16 %v12976_v1, %v12883_v30  ;;  %v10431_v30 = vcombine.low %v1587_v10, %v1591_v42  ;;  %v10438_v1 = vcombine.high %v1594_v38, %v1598_v37  ;;  %v1622_v57 = vld [vmem:[#allocation9 + $0xd60] sm:$0xff]  ;;  %v1623_v51 = vld [vmem:[#allocation9 + $0xd68] sm:$0xff] }
 0x282   :  { %v1627_v10 = vld [vmem:[#allocation9 + $0xd88] sm:$0xff]  ;;  %v10461_v40 = vcombine.low %v1618_v20, %v1622_v57 }
 0x283   :  { %5975 = vmatpush1.bf16.msra.mxu0 %v10389_v5  ;;  %v1599_v5 = vld [vmem:[#allocation9 + $0xca8] sm:$0xff] }
 0x284   :  { %6293 = vmatpush1.bf16.msra.mxu1 %v10391_v59  ;;  %5976 = vmatprep.subr.bf16.mxu0 %v10398_v45  ;;  %v10429_v59 = vcombine.low %v1586_v3, %v1590_v13  ;;  %v10440_v45 = vcombine.high %v1595_v52, %v1599_v5  ;;  %v1626_v3 = vld [vmem:[#allocation9 + $0xd80] sm:$0xff]  ;;  %v1631_v42 = vld [vmem:[#allocation9 + $0xda8] sm:$0xff] }
 0x285   :  { %6294 = vmatprep.subr.bf16.mxu1 %v10400_v49  ;;  %v1602_v49 = vld [vmem:[#allocation9 + $0xcc0] sm:$0xff] }
 0x286   :  { %v1630_v13 = vld [vmem:[#allocation9 + $0xda0] sm:$0xff] }
 0x287   :  { %5977 = vmatpush1.bf16.msra.mxu0 %v10397_v4  ;;  %v13178_v4 = vpack.c.bf16 %v12987_v44, %v11940_v36  ;;  %v10445_v44 = vcombine.low %v1602_v49, %v1606_v23 }
 0x288   :  { %6295 = vmatpush1.bf16.msra.mxu1 %v10399_v53  ;;  %5978 = vmatprep.subr.bf16.mxu0 %v10406_v58  ;;  %v10437_v53 = vcombine.low %v1594_v38, %v1598_v37  ;;  %v10439_v58 = vcombine.low %v1595_v52, %v1599_v5  ;;  %v1638_v38 = vld [vmem:[#allocation9 + $0xde0] sm:$0xff]  ;;  %v1635_v37 = vld [vmem:[#allocation9 + $0xdc8] sm:$0xff]  ;;  %v10469_v5 = vcombine.low %v1626_v3, %v1630_v13 }
 0x289   :  { %6296 = vmatprep.subr.bf16.mxu1 %v10408_v29  ;;  %v10446_v29 = vcombine.high %v1602_v49, %v1606_v23  ;;  %v1639_v52 = vld [vmem:[#allocation9 + $0xde8] sm:$0xff]  ;;  %v1646_v49 = vld [vmem:[#allocation9 + $0xe20] sm:$0xff] }
 0x28a   :  { %v1643_v23 = vld [vmem:[#allocation9 + $0xe08] sm:$0xff]  ;;  %v10479_v36 = vcombine.low %v1635_v37, %v1639_v52 }
 0x28b   :  { %5979 = vmatpush1.bf16.msra.mxu0 %v10405_v7  ;;  %v1615_v7 = vld [vmem:[#allocation9 + $0xd28] sm:$0xff] }
 0x28c   :  { %6297 = vmatpush1.bf16.msra.mxu1 %v10407_v9  ;;  %5980 = vmatprep.subr.bf16.mxu0 %v10414_v11  ;;  %v10447_v9 = vcombine.low %v1603_v26, %v1607_v54  ;;  %v10454_v11 = vcombine.high %v1610_v19, %v1614_v32  ;;  %v1647_v26 = vld [vmem:[#allocation9 + $0xe28] sm:$0xff] }
 0x28d   :  { %6298 = vmatprep.subr.bf16.mxu1 %v10416_v61  ;;  %v10456_v61 = vcombine.high %v1611_v55, %v1615_v7 }
 0x28f   :  { %5981 = vmatpush1.bf16.msra.mxu0 %v10413_v0  ;;  %v10453_v0 = vcombine.low %v1610_v19, %v1614_v32  ;;  %v1651_v19 = vld [vmem:[#allocation9 + $0xe48] sm:$0xff] }
 0x290   :  { %6299 = vmatpush1.bf16.msra.mxu1 %v10415_v17  ;;  %6003 = vmatprep.subr.bf16.mxu0 %v10422_v14  ;;  %v10455_v17 = vcombine.low %v1611_v55, %v1615_v7  ;;  %v10462_v14 = vcombine.high %v1618_v20, %v1622_v57  ;;  %v1655_v32 = vld [vmem:[#allocation9 + $0xe68] sm:$0xff]  ;;  %v10487_v7 = vcombine.low %v1643_v23, %v1647_v26 }
 0x291   :  { %6321 = vmatprep.subr.bf16.mxu1 %v10424_v33  ;;  %v10464_v33 = vcombine.high %v1619_v25, %v1623_v51  ;;  %v1659_v20 = vld [vmem:[#allocation9 + $0xe88] sm:$0xff] }
 0x292   :  { %5983 = vmatmul.mubr.bf16.vlgmr.msra.gmra.mrb[28].mxu0 %v13167_v35  ;;  %v1663_v57 = vld [vmem:[#allocation9 + $0xea8] sm:$0xff] }
 0x293   :  { %6301 = vmatmul.mubr.bf16.vlgmr.msra.gmra.mrb[36].mxu1 %v13167_v35  ;;  %5992 = vmatprep.mubr.bf16.mxu0 %v13171_v62 }
 0x294   :  { %6004 = vmatpush1.bf16.msra.mxu0 %v10421_v12  ;;  %6310 = vmatprep.mubr.bf16.mxu1 %v13171_v62  ;;  %v10463_v12 = vcombine.low %v1619_v25, %v1623_v51  ;;  %v10495_v51 = vcombine.low %v1651_v19, %v1655_v32 }
 0x295   :  { %6322 = vmatpush1.bf16.msra.mxu1 %v10423_v22  ;;  %6005 = vmatprep.subr.bf16.mxu0 %v10430_v28  ;;  %v10470_v22 = vcombine.high %v1626_v3, %v1630_v13  ;;  %v10472_v28 = vcombine.high %v1627_v10, %v1631_v42  ;;  %v1667_v3 = vld [vmem:[#allocation9 + $0xec8] sm:$0xff] }
 0x296   :  { %6323 = vmatprep.subr.bf16.mxu1 %v10432_v60  ;;  %v1634_v60 = vld [vmem:[#allocation9 + $0xdc0] sm:$0xff]  ;;  %v1671_v13 = vld [vmem:[#allocation9 + $0xee8] sm:$0xff] }
 0x297   :  { %v10477_v54 = vcombine.low %v1634_v60, %v1638_v38 }
 0x298   :  { %6006 = vmatpush1.bf16.msra.mxu0 %v10429_v59  ;;  %v10471_v59 = vcombine.low %v1627_v10, %v1631_v42  ;;  %v10503_v42 = vcombine.low %v1659_v20, %v1663_v57 }
 0x299   :  { %6324 = vmatpush1.bf16.msra.mxu1 %v10431_v30  ;;  %6007 = vmatprep.subr.bf16.mxu0 %v10438_v1  ;;  %v10478_v30 = vcombine.high %v1634_v60, %v1638_v38  ;;  %v10480_v1 = vcombine.high %v1635_v37, %v1639_v52  ;;  %v1675_v60 = vld [vmem:[#allocation9 + $0xf08] sm:$0xff]  ;;  %v10511_v52 = vcombine.low %v1667_v3, %v1671_v13 }
 0x29a   :  { %5993 = vmatmul.mubr.bf16.gmra.mrb[32].mxu0 %v13178_v4  ;;  %6325 = vmatprep.subr.bf16.mxu1 %v10440_v45  ;;  %v1642_v45 = vld [vmem:[#allocation9 + $0xe00] sm:$0xff]  ;;  %v1679_v38 = vld [vmem:[#allocation9 + $0xf28] sm:$0xff] }
 0x29b   :  { %6311 = vmatmul.mubr.bf16.gmra.mrb[40].mxu1 %v13178_v4  ;;  %6035 = vmatprep.mubr.bf16.mxu0 %v13115_v46  ;;  %v10485_v55 = vcombine.low %v1642_v45, %v1646_v49 }
 0x29c   :  { %6008 = vmatpush1.bf16.msra.mxu0 %v10437_v53  ;;  %6353 = vmatprep.mubr.bf16.mxu1 %v13115_v46  ;;  %v10486_v53 = vcombine.high %v1642_v45, %v1646_v49  ;;  %v1683_v45 = vld [vmem:[#allocation9 + $0xf48] sm:$0xff] }
 0x29d   :  { %6326 = vmatpush1.bf16.msra.mxu1 %v10439_v58  ;;  %6009 = vmatprep.subr.bf16.mxu0 %v10446_v29  ;;  %v10488_v58 = vcombine.high %v1643_v23, %v1647_v26  ;;  %v1650_v29 = vld [vmem:[#allocation9 + $0xe40] sm:$0xff]  ;;  %v1687_v49 = vld [vmem:[#allocation9 + $0xf68] sm:$0xff]  ;;  %v10519_v26 = vcombine.low %v1675_v60, %v1679_v38 }
 0x29e   :  { %6327 = vmatprep.subr.bf16.mxu1 %v10448_v31  ;;  %v1654_v31 = vld [vmem:[#allocation9 + $0xe60] sm:$0xff] }
 0x29f   :  { %v10493_v25 = vcombine.low %v1650_v29, %v1654_v31 }
 0x2a0   :  { %6010 = vmatpush1.bf16.msra.mxu0 %v10445_v44  ;;  %v10494_v44 = vcombine.high %v1650_v29, %v1654_v31  ;;  %v1691_v29 = vld [vmem:[#allocation9 + $0xf88] sm:$0xff] }
 0x2a1   :  { %6328 = vmatpush1.bf16.msra.mxu1 %v10447_v9  ;;  %6011 = vmatprep.subr.bf16.mxu0 %v10454_v11  ;;  %v10496_v9 = vcombine.high %v1651_v19, %v1655_v32  ;;  %v1658_v11 = vld [vmem:[#allocation9 + $0xe80] sm:$0xff]  ;;  %v1695_v31 = vld [vmem:[#allocation9 + $0xfa8] sm:$0xff]  ;;  %v10527_v32 = vcombine.low %v1683_v45, %v1687_v49 }
 0x2a2   :  { %6329 = vmatprep.subr.bf16.mxu1 %v10456_v61  ;;  %v1662_v61 = vld [vmem:[#allocation9 + $0xea0] sm:$0xff] }
 0x2a3   :  { %v10501_v10 = vcombine.low %v1658_v11, %v1662_v61 }
 0x2a4   :  { %6012 = vmatpush1.bf16.msra.mxu0 %v10453_v0  ;;  %v10502_v0 = vcombine.high %v1658_v11, %v1662_v61  ;;  %v1699_v11 = vld [vmem:[#allocation9 + $0xfc8] sm:$0xff] }
 0x2a5   :  { %6330 = vmatpush1.bf16.msra.mxu1 %v10455_v17  ;;  %6013 = vmatprep.subr.bf16.mxu0 %v10462_v14  ;;  %v10504_v17 = vcombine.high %v1659_v20, %v1663_v57  ;;  %v1666_v14 = vld [vmem:[#allocation9 + $0xec0] sm:$0xff]  ;;  %v1703_v61 = vld [vmem:[#allocation9 + $0xfe8] sm:$0xff]  ;;  %v10535_v57 = vcombine.low %v1691_v29, %v1695_v31 }
 0x2a6   :  { %6331 = vmatprep.subr.bf16.mxu1 %v10464_v33  ;;  %v1670_v33 = vld [vmem:[#allocation9 + $0xee0] sm:$0xff] }
 0x2a7   :  { %v10509_v37 = vcombine.low %v1666_v14, %v1670_v33 }
 0x2a8   :  { %6014 = vmatpush1.bf16.msra.mxu0 %v10461_v40  ;;  %v10510_v40 = vcombine.high %v1666_v14, %v1670_v33  ;;  %v1707_v14 = vld [vmem:[#allocation9 + $0x1008] sm:$0xff] }
 0x2a9   :  { %6332 = vmatpush1.bf16.msra.mxu1 %v10463_v12  ;;  %6015 = vmatprep.subr.bf16.mxu0 %v10470_v22  ;;  %v10512_v12 = vcombine.high %v1667_v3, %v1671_v13  ;;  %v1674_v22 = vld [vmem:[#allocation9 + $0xf00] sm:$0xff]  ;;  %v1711_v33 = vld [vmem:[#allocation9 + $0x1028] sm:$0xff]  ;;  %v10543_v13 = vcombine.low %v1699_v11, %v1703_v61 }
 0x2aa   :  { %6333 = vmatprep.subr.bf16.mxu1 %v10472_v28  ;;  %v1678_v28 = vld [vmem:[#allocation9 + $0xf20] sm:$0xff] }
 0x2ab   :  { %v10517_v23 = vcombine.low %v1674_v22, %v1678_v28 }
 0x2ac   :  { %6016 = vmatpush1.bf16.msra.mxu0 %v10469_v5  ;;  %v10518_v5 = vcombine.high %v1674_v22, %v1678_v28  ;;  %v1715_v22 = vld [vmem:[#allocation9 + $0x1048] sm:$0xff] }
 0x2ad   :  { %6334 = vmatpush1.bf16.msra.mxu1 %v10471_v59  ;;  %6017 = vmatprep.subr.bf16.mxu0 %v10478_v30  ;;  %v10520_v59 = vcombine.high %v1675_v60, %v1679_v38  ;;  %v1682_v30 = vld [vmem:[#allocation9 + $0xf40] sm:$0xff]  ;;  %v1719_v28 = vld [vmem:[#allocation9 + $0x1068] sm:$0xff]  ;;  %v10551_v38 = vcombine.low %v1707_v14, %v1711_v33 }
 0x2ae   :  { %6335 = vmatprep.subr.bf16.mxu1 %v10480_v1  ;;  %v1686_v1 = vld [vmem:[#allocation9 + $0xf60] sm:$0xff] }
 0x2af   :  { %v10525_v19 = vcombine.low %v1682_v30, %v1686_v1 }
 0x2b0   :  { %6018 = vmatpush1.bf16.msra.mxu0 %v10477_v54  ;;  %v10526_v54 = vcombine.high %v1682_v30, %v1686_v1  ;;  %v1723_v30 = vld [vmem:[#allocation9 + $0x1088] sm:$0xff] }
 0x2b1   :  { %6336 = vmatpush1.bf16.msra.mxu1 %v10479_v36  ;;  %6019 = vmatprep.subr.bf16.mxu0 %v10486_v53  ;;  %v10528_v36 = vcombine.high %v1683_v45, %v1687_v49  ;;  %v1690_v53 = vld [vmem:[#allocation9 + $0xf80] sm:$0xff]  ;;  %v1727_v1 = vld [vmem:[#allocation9 + $0x10a8] sm:$0xff]  ;;  %v10559_v49 = vcombine.low %v1715_v22, %v1719_v28 }
 0x2b2   :  { %6337 = vmatprep.subr.bf16.mxu1 %v10488_v58  ;;  %v1694_v58 = vld [vmem:[#allocation9 + $0xfa0] sm:$0xff] }
 0x2b3   :  { %v10533_v20 = vcombine.low %v1690_v53, %v1694_v58 }
 0x2b4   :  { %6020 = vmatpush1.bf16.msra.mxu0 %v10485_v55  ;;  %v10534_v55 = vcombine.high %v1690_v53, %v1694_v58  ;;  %v1731_v53 = vld [vmem:[#allocation9 + $0x10c8] sm:$0xff] }
 0x2b5   :  { %6338 = vmatpush1.bf16.msra.mxu1 %v10487_v7  ;;  %6021 = vmatprep.subr.bf16.mxu0 %v10494_v44  ;;  %v10536_v7 = vcombine.high %v1691_v29, %v1695_v31  ;;  %v1698_v44 = vld [vmem:[#allocation9 + $0xfc0] sm:$0xff]  ;;  %v1735_v58 = vld [vmem:[#allocation9 + $0x10e8] sm:$0xff]  ;;  %v10567_v31 = vcombine.low %v1723_v30, %v1727_v1 }
 0x2b6   :  { %6339 = vmatprep.subr.bf16.mxu1 %v10496_v9  ;;  %v1702_v9 = vld [vmem:[#allocation9 + $0xfe0] sm:$0xff] }
 0x2b7   :  { %v10541_v3 = vcombine.low %v1698_v44, %v1702_v9 }
 0x2b8   :  { %6022 = vmatpush1.bf16.msra.mxu0 %v10493_v25  ;;  %v10542_v25 = vcombine.high %v1698_v44, %v1702_v9  ;;  %v1739_v44 = vld [vmem:[#allocation9 + $0x1108] sm:$0xff] }
 0x2b9   :  { %6340 = vmatpush1.bf16.msra.mxu1 %v10495_v51  ;;  %6023 = vmatprep.subr.bf16.mxu0 %v10502_v0  ;;  %v10544_v51 = vcombine.high %v1699_v11, %v1703_v61  ;;  %v1706_v0 = vld [vmem:[#allocation9 + $0x1000] sm:$0xff]  ;;  %v1743_v9 = vld [vmem:[#allocation9 + $0x1128] sm:$0xff]  ;;  %v10575_v61 = vcombine.low %v1731_v53, %v1735_v58 }
 0x2ba   :  { %6341 = vmatprep.subr.bf16.mxu1 %v10504_v17  ;;  %v1710_v17 = vld [vmem:[#allocation9 + $0x1020] sm:$0xff] }
 0x2bb   :  { %v10549_v60 = vcombine.low %v1706_v0, %v1710_v17 }
 0x2bc   :  { %6024 = vmatpush1.bf16.msra.mxu0 %v10501_v10  ;;  %v10550_v10 = vcombine.high %v1706_v0, %v1710_v17  ;;  %v1747_v0 = vld [vmem:[#allocation9 + $0x1148] sm:$0xff] }
 0x2bd   :  { %6342 = vmatpush1.bf16.msra.mxu1 %v10503_v42  ;;  %6025 = vmatprep.subr.bf16.mxu0 %v10510_v40  ;;  %v10552_v42 = vcombine.high %v1707_v14, %v1711_v33  ;;  %v1714_v40 = vld [vmem:[#allocation9 + $0x1040] sm:$0xff]  ;;  %v1751_v17 = vld [vmem:[#allocation9 + $0x1168] sm:$0xff]  ;;  %v10583_v33 = vcombine.low %v1739_v44, %v1743_v9 }
 0x2be   :  { %6343 = vmatprep.subr.bf16.mxu1 %v10512_v12  ;;  %v1718_v12 = vld [vmem:[#allocation9 + $0x1060] sm:$0xff] }
 0x2bf   :  { %v10557_v45 = vcombine.low %v1714_v40, %v1718_v12 }
 0x2c0   :  { %6026 = vmatpush1.bf16.msra.mxu0 %v10509_v37  ;;  %v10558_v37 = vcombine.high %v1714_v40, %v1718_v12  ;;  %v1755_v40 = vld [vmem:[#allocation9 + $0x1188] sm:$0xff] }
 0x2c1   :  { %6344 = vmatpush1.bf16.msra.mxu1 %v10511_v52  ;;  %6027 = vmatprep.subr.bf16.mxu0 %v10518_v5  ;;  %v10560_v52 = vcombine.high %v1715_v22, %v1719_v28  ;;  %v1722_v5 = vld [vmem:[#allocation9 + $0x1080] sm:$0xff]  ;;  %v1759_v12 = vld [vmem:[#allocation9 + $0x11a8] sm:$0xff]  ;;  %v10591_v28 = vcombine.low %v1747_v0, %v1751_v17 }
 0x2c2   :  { %6345 = vmatprep.subr.bf16.mxu1 %v10520_v59  ;;  %v1726_v59 = vld [vmem:[#allocation9 + $0x10a0] sm:$0xff] }
 0x2c3   :  { %v10565_v29 = vcombine.low %v1722_v5, %v1726_v59 }
 0x2c4   :  { %6028 = vmatpush1.bf16.msra.mxu0 %v10517_v23  ;;  %v10566_v23 = vcombine.high %v1722_v5, %v1726_v59  ;;  %v1763_v5 = vld [vmem:[#allocation9 + $0x11c8] sm:$0xff] }
 0x2c5   :  { %6346 = vmatpush1.bf16.msra.mxu1 %v10519_v26  ;;  %6029 = vmatprep.subr.bf16.mxu0 %v10526_v54  ;;  %v10568_v26 = vcombine.high %v1723_v30, %v1727_v1  ;;  %v1730_v54 = vld [vmem:[#allocation9 + $0x10c0] sm:$0xff]  ;;  %v1767_v59 = vld [vmem:[#allocation9 + $0x11e8] sm:$0xff]  ;;  %v10599_v1 = vcombine.low %v1755_v40, %v1759_v12 }
 0x2c6   :  { %6347 = vmatprep.subr.bf16.mxu1 %v10528_v36  ;;  %v1734_v36 = vld [vmem:[#allocation9 + $0x10e0] sm:$0xff] }
 0x2c7   :  { %v10573_v11 = vcombine.low %v1730_v54, %v1734_v36 }
 0x2c8   :  { %6030 = vmatpush1.bf16.msra.mxu0 %v10525_v19  ;;  %v10574_v19 = vcombine.high %v1730_v54, %v1734_v36  ;;  %v1771_v54 = vld [vmem:[#allocation9 + $0x1208] sm:$0xff] }
 0x2c9   :  { %6348 = vmatpush1.bf16.msra.mxu1 %v10527_v32  ;;  %6031 = vmatprep.subr.bf16.mxu0 %v10534_v55  ;;  %v10576_v32 = vcombine.high %v1731_v53, %v1735_v58  ;;  %v1738_v55 = vld [vmem:[#allocation9 + $0x1100] sm:$0xff]  ;;  %v1775_v36 = vld [vmem:[#allocation9 + $0x1228] sm:$0xff]  ;;  %v10607_v58 = vcombine.low %v1763_v5, %v1767_v59 }
 0x2ca   :  { %6349 = vmatprep.subr.bf16.mxu1 %v10536_v7  ;;  %v1742_v7 = vld [vmem:[#allocation9 + $0x1120] sm:$0xff] }
 0x2cb   :  { %v10581_v14 = vcombine.low %v1738_v55, %v1742_v7 }
 0x2cc   :  { %6032 = vmatpush1.bf16.msra.mxu0 %v10533_v20  ;;  %v10582_v20 = vcombine.high %v1738_v55, %v1742_v7  ;;  %v1779_v55 = vld [vmem:[#allocation9 + $0x1248] sm:$0xff] }
 0x2cd   :  { %6350 = vmatpush1.bf16.msra.mxu1 %v10535_v57  ;;  %6033 = vmatprep.subr.bf16.mxu0 %v10542_v25  ;;  %v10584_v57 = vcombine.high %v1739_v44, %v1743_v9  ;;  %v1746_v25 = vld [vmem:[#allocation9 + $0x1140] sm:$0xff]  ;;  %v1783_v7 = vld [vmem:[#allocation9 + $0x1268] sm:$0xff]  ;;  %v10615_v9 = vcombine.low %v1771_v54, %v1775_v36 }
 0x2ce   :  { %6351 = vmatprep.subr.bf16.mxu1 %v10544_v51  ;;  %v1750_v51 = vld [vmem:[#allocation9 + $0x1160] sm:$0xff] }
 0x2cf   :  { %v10589_v22 = vcombine.low %v1746_v25, %v1750_v51 }
 0x2d0   :  { %6034 = vmatpush1.bf16.msra.mxu0 %v10541_v3  ;;  %v10590_v3 = vcombine.high %v1746_v25, %v1750_v51  ;;  %v1787_v25 = vld [vmem:[#allocation9 + $0x1288] sm:$0xff] }
 0x2d1   :  { %6352 = vmatpush1.bf16.msra.mxu1 %v10543_v13  ;;  %6056 = vmatprep.subr.bf16.mxu0 %v10550_v10  ;;  %v10592_v13 = vcombine.high %v1747_v0, %v1751_v17  ;;  %v1754_v10 = vld [vmem:[#allocation9 + $0x1180] sm:$0xff]  ;;  %v1791_v51 = vld [vmem:[#allocation9 + $0x12a8] sm:$0xff]  ;;  %v10623_v17 = vcombine.low %v1779_v55, %v1783_v7 }
 0x2d2   :  { %6374 = vmatprep.subr.bf16.mxu1 %v10552_v42  ;;  %v1758_v42 = vld [vmem:[#allocation9 + $0x11a0] sm:$0xff] }
 0x2d3   :  { %6036 = vmatmul.mubr.bf16.vlgmr.msra.gmra.mrb[28].mxu0 %v13122_v34  ;;  %v10597_v30 = vcombine.low %v1754_v10, %v1758_v42 }
 0x2d4   :  { %6354 = vmatmul.mubr.bf16.vlgmr.msra.gmra.mrb[36].mxu1 %v13122_v34  ;;  %6045 = vmatprep.mubr.bf16.mxu0 %v13139_v8 }
 0x2d5   :  { %6057 = vmatpush1.bf16.msra.mxu0 %v10549_v60  ;;  %6363 = vmatprep.mubr.bf16.mxu1 %v13139_v8  ;;  %v10598_v60 = vcombine.high %v1754_v10, %v1758_v42  ;;  %v1795_v10 = vld [vmem:[#allocation9 + $0x12c8] sm:$0xff] }
 0x2d6   :  { %6375 = vmatpush1.bf16.msra.mxu1 %v10551_v38  ;;  %6058 = vmatprep.subr.bf16.mxu0 %v10558_v37  ;;  %v10600_v38 = vcombine.high %v1755_v40, %v1759_v12  ;;  %v1762_v37 = vld [vmem:[#allocation9 + $0x11c0] sm:$0xff]  ;;  %v1799_v42 = vld [vmem:[#allocation9 + $0x12e8] sm:$0xff]  ;;  %v10631_v12 = vcombine.low %v1787_v25, %v1791_v51 }
 0x2d7   :  { %6376 = vmatprep.subr.bf16.mxu1 %v10560_v52  ;;  %v1766_v52 = vld [vmem:[#allocation9 + $0x11e0] sm:$0xff] }
 0x2d8   :  { %v10605_v53 = vcombine.low %v1762_v37, %v1766_v52 }
 0x2d9   :  { %6059 = vmatpush1.bf16.msra.mxu0 %v10557_v45  ;;  %v10606_v45 = vcombine.high %v1762_v37, %v1766_v52  ;;  %v1803_v37 = vld [vmem:[#allocation9 + $0x1308] sm:$0xff] }
 0x2da   :  { %6377 = vmatpush1.bf16.msra.mxu1 %v10559_v49  ;;  %6060 = vmatprep.subr.bf16.mxu0 %v10566_v23  ;;  %v10608_v49 = vcombine.high %v1763_v5, %v1767_v59  ;;  %v1770_v23 = vld [vmem:[#allocation9 + $0x1200] sm:$0xff]  ;;  %v1807_v52 = vld [vmem:[#allocation9 + $0x1328] sm:$0xff]  ;;  %v10639_v59 = vcombine.low %v1795_v10, %v1799_v42 }
 0x2db   :  { %6046 = vmatmul.mubr.bf16.gmra.mrb[32].mxu0 %v13137_v47  ;;  %6378 = vmatprep.subr.bf16.mxu1 %v10568_v26  ;;  %v1774_v26 = vld [vmem:[#allocation9 + $0x1220] sm:$0xff] }
 0x2dc   :  { %6364 = vmatmul.mubr.bf16.gmra.mrb[40].mxu1 %v13137_v47  ;;  %6088 = vmatprep.mubr.bf16.mxu0 %v12964_v21  ;;  %v10613_v44 = vcombine.low %v1770_v23, %v1774_v26 }
 0x2dd   :  { %6061 = vmatpush1.bf16.msra.mxu0 %v10565_v29  ;;  %6406 = vmatprep.mubr.bf16.mxu1 %v12964_v21  ;;  %v10614_v29 = vcombine.high %v1770_v23, %v1774_v26  ;;  %v1811_v23 = vld [vmem:[#allocation9 + $0x1348] sm:$0xff] }
 0x2de   :  { %6379 = vmatpush1.bf16.msra.mxu1 %v10567_v31  ;;  %6062 = vmatprep.subr.bf16.mxu0 %v10574_v19  ;;  %v10616_v31 = vcombine.high %v1771_v54, %v1775_v36  ;;  %v1778_v19 = vld [vmem:[#allocation9 + $0x1240] sm:$0xff]  ;;  %v1815_v26 = vld [vmem:[#allocation9 + $0x1368] sm:$0xff]  ;;  %v10647_v36 = vcombine.low %v1803_v37, %v1807_v52 }
 0x2df   :  { %6380 = vmatprep.subr.bf16.mxu1 %v10576_v32  ;;  %v1782_v32 = vld [vmem:[#allocation9 + $0x1260] sm:$0xff] }
 0x2e0   :  { %v10621_v0 = vcombine.low %v1778_v19, %v1782_v32 }
 0x2e1   :  { %6063 = vmatpush1.bf16.msra.mxu0 %v10573_v11  ;;  %v10622_v11 = vcombine.high %v1778_v19, %v1782_v32  ;;  %v1819_v19 = vld [vmem:[#allocation9 + $0x1388] sm:$0xff] }
 0x2e2   :  { %6381 = vmatpush1.bf16.msra.mxu1 %v10575_v61  ;;  %6064 = vmatprep.subr.bf16.mxu0 %v10582_v20  ;;  %v10624_v61 = vcombine.high %v1779_v55, %v1783_v7  ;;  %v1786_v20 = vld [vmem:[#allocation9 + $0x1280] sm:$0xff]  ;;  %v1823_v32 = vld [vmem:[#allocation9 + $0x13a8] sm:$0xff]  ;;  %v10655_v7 = vcombine.low %v1811_v23, %v1815_v26 }
 0x2e3   :  { %6382 = vmatprep.subr.bf16.mxu1 %v10584_v57  ;;  %v1790_v57 = vld [vmem:[#allocation9 + $0x12a0] sm:$0xff] }
 0x2e4   :  { %v10629_v40 = vcombine.low %v1786_v20, %v1790_v57 }
 0x2e5   :  { %6065 = vmatpush1.bf16.msra.mxu0 %v10581_v14  ;;  %v10630_v14 = vcombine.high %v1786_v20, %v1790_v57  ;;  %v1827_v20 = vld [vmem:[#allocation9 + $0x13c8] sm:$0xff] }
 0x2e6   :  { %6383 = vmatpush1.bf16.msra.mxu1 %v10583_v33  ;;  %6066 = vmatprep.subr.bf16.mxu0 %v10590_v3  ;;  %v10632_v33 = vcombine.high %v1787_v25, %v1791_v51  ;;  %v1794_v3 = vld [vmem:[#allocation9 + $0x12c0] sm:$0xff]  ;;  %v1831_v57 = vld [vmem:[#allocation9 + $0x13e8] sm:$0xff]  ;;  %v10663_v51 = vcombine.low %v1819_v19, %v1823_v32 }
 0x2e7   :  { %6384 = vmatprep.subr.bf16.mxu1 %v10592_v13  ;;  %v1798_v13 = vld [vmem:[#allocation9 + $0x12e0] sm:$0xff] }
 0x2e8   :  { %v10637_v5 = vcombine.low %v1794_v3, %v1798_v13 }
 0x2e9   :  { %6067 = vmatpush1.bf16.msra.mxu0 %v10589_v22  ;;  %v10638_v22 = vcombine.high %v1794_v3, %v1798_v13  ;;  %v1835_v3 = vld [vmem:[#allocation9 + $0x1408] sm:$0xff] }
 0x2ea   :  { %6385 = vmatpush1.bf16.msra.mxu1 %v10591_v28  ;;  %6068 = vmatprep.subr.bf16.mxu0 %v10598_v60  ;;  %v10640_v28 = vcombine.high %v1795_v10, %v1799_v42  ;;  %v1802_v60 = vld [vmem:[#allocation9 + $0x1300] sm:$0xff]  ;;  %v1839_v13 = vld [vmem:[#allocation9 + $0x1428] sm:$0xff]  ;;  %v10671_v42 = vcombine.low %v1827_v20, %v1831_v57 }
 0x2eb   :  { %6386 = vmatprep.subr.bf16.mxu1 %v10600_v38  ;;  %v1806_v38 = vld [vmem:[#allocation9 + $0x1320] sm:$0xff] }
 0x2ec   :  { %v10645_v54 = vcombine.low %v1802_v60, %v1806_v38 }
 0x2ed   :  { %6069 = vmatpush1.bf16.msra.mxu0 %v10597_v30  ;;  %v10646_v30 = vcombine.high %v1802_v60, %v1806_v38  ;;  %v1843_v60 = vld [vmem:[#allocation9 + $0x1448] sm:$0xff] }
 0x2ee   :  { %6387 = vmatpush1.bf16.msra.mxu1 %v10599_v1  ;;  %6070 = vmatprep.subr.bf16.mxu0 %v10606_v45  ;;  %v10648_v1 = vcombine.high %v1803_v37, %v1807_v52  ;;  %v1810_v45 = vld [vmem:[#allocation9 + $0x1340] sm:$0xff]  ;;  %v1847_v38 = vld [vmem:[#allocation9 + $0x1468] sm:$0xff]  ;;  %v10679_v52 = vcombine.low %v1835_v3, %v1839_v13 }
 0x2ef   :  { %6388 = vmatprep.subr.bf16.mxu1 %v10608_v49  ;;  %v1814_v49 = vld [vmem:[#allocation9 + $0x1360] sm:$0xff] }
 0x2f0   :  { %v10653_v55 = vcombine.low %v1810_v45, %v1814_v49 }
 0x2f1   :  { %6071 = vmatpush1.bf16.msra.mxu0 %v10605_v53  ;;  %v10654_v53 = vcombine.high %v1810_v45, %v1814_v49  ;;  %v1851_v45 = vld [vmem:[#allocation9 + $0x1488] sm:$0xff] }
 0x2f2   :  { %6389 = vmatpush1.bf16.msra.mxu1 %v10607_v58  ;;  %6072 = vmatprep.subr.bf16.mxu0 %v10614_v29  ;;  %v10656_v58 = vcombine.high %v1811_v23, %v1815_v26  ;;  %v1818_v29 = vld [vmem:[#allocation9 + $0x1380] sm:$0xff]  ;;  %v1855_v49 = vld [vmem:[#allocation9 + $0x14a8] sm:$0xff]  ;;  %v10687_v26 = vcombine.low %v1843_v60, %v1847_v38 }
 0x2f3   :  { %6390 = vmatprep.subr.bf16.mxu1 %v10616_v31  ;;  %v1822_v31 = vld [vmem:[#allocation9 + $0x13a0] sm:$0xff] }
 0x2f4   :  { %v10661_v25 = vcombine.low %v1818_v29, %v1822_v31 }
 0x2f5   :  { %6073 = vmatpush1.bf16.msra.mxu0 %v10613_v44  ;;  %v10662_v44 = vcombine.high %v1818_v29, %v1822_v31  ;;  %v1859_v29 = vld [vmem:[#allocation9 + $0x14c8] sm:$0xff] }
 0x2f6   :  { %6391 = vmatpush1.bf16.msra.mxu1 %v10615_v9  ;;  %6074 = vmatprep.subr.bf16.mxu0 %v10622_v11  ;;  %v10664_v9 = vcombine.high %v1819_v19, %v1823_v32  ;;  %v1826_v11 = vld [vmem:[#allocation9 + $0x13c0] sm:$0xff]  ;;  %v1863_v31 = vld [vmem:[#allocation9 + $0x14e8] sm:$0xff]  ;;  %v10695_v32 = vcombine.low %v1851_v45, %v1855_v49 }
 0x2f7   :  { %6392 = vmatprep.subr.bf16.mxu1 %v10624_v61  ;;  %v1830_v61 = vld [vmem:[#allocation9 + $0x13e0] sm:$0xff] }
 0x2f8   :  { %v10669_v10 = vcombine.low %v1826_v11, %v1830_v61 }
 0x2f9   :  { %6075 = vmatpush1.bf16.msra.mxu0 %v10621_v0  ;;  %v10670_v0 = vcombine.high %v1826_v11, %v1830_v61  ;;  %v1867_v11 = vld [vmem:[#allocation9 + $0x1508] sm:$0xff] }
 0x2fa   :  { %6393 = vmatpush1.bf16.msra.mxu1 %v10623_v17  ;;  %6076 = vmatprep.subr.bf16.mxu0 %v10630_v14  ;;  %v10672_v17 = vcombine.high %v1827_v20, %v1831_v57  ;;  %v1834_v14 = vld [vmem:[#allocation9 + $0x1400] sm:$0xff]  ;;  %v1871_v61 = vld [vmem:[#allocation9 + $0x1528] sm:$0xff]  ;;  %v10703_v57 = vcombine.low %v1859_v29, %v1863_v31 }
 0x2fb   :  { %6394 = vmatprep.subr.bf16.mxu1 %v10632_v33  ;;  %v1838_v33 = vld [vmem:[#allocation9 + $0x1420] sm:$0xff] }
 0x2fc   :  { %v10677_v37 = vcombine.low %v1834_v14, %v1838_v33 }
 0x2fd   :  { %6077 = vmatpush1.bf16.msra.mxu0 %v10629_v40  ;;  %v10678_v40 = vcombine.high %v1834_v14, %v1838_v33  ;;  %v1875_v14 = vld [vmem:[#allocation9 + $0x1548] sm:$0xff] }
 0x2fe   :  { %6395 = vmatpush1.bf16.msra.mxu1 %v10631_v12  ;;  %6078 = vmatprep.subr.bf16.mxu0 %v10638_v22  ;;  %v10680_v12 = vcombine.high %v1835_v3, %v1839_v13  ;;  %v1842_v22 = vld [vmem:[#allocation9 + $0x1440] sm:$0xff]  ;;  %v1879_v33 = vld [vmem:[#allocation9 + $0x1568] sm:$0xff]  ;;  %v10711_v13 = vcombine.low %v1867_v11, %v1871_v61 }
 0x2ff   :  { %6396 = vmatprep.subr.bf16.mxu1 %v10640_v28  ;;  %v1846_v28 = vld [vmem:[#allocation9 + $0x1460] sm:$0xff] }
 0x300   :  { %v10685_v23 = vcombine.low %v1842_v22, %v1846_v28 }
 0x301   :  { %6079 = vmatpush1.bf16.msra.mxu0 %v10637_v5  ;;  %v10686_v5 = vcombine.high %v1842_v22, %v1846_v28  ;;  %v1883_v22 = vld [vmem:[#allocation9 + $0x1588] sm:$0xff] }
 0x302   :  { %6397 = vmatpush1.bf16.msra.mxu1 %v10639_v59  ;;  %6080 = vmatprep.subr.bf16.mxu0 %v10646_v30  ;;  %v10688_v59 = vcombine.high %v1843_v60, %v1847_v38  ;;  %v1850_v30 = vld [vmem:[#allocation9 + $0x1480] sm:$0xff]  ;;  %v1887_v28 = vld [vmem:[#allocation9 + $0x15a8] sm:$0xff]  ;;  %v10719_v38 = vcombine.low %v1875_v14, %v1879_v33 }
 0x303   :  { %6398 = vmatprep.subr.bf16.mxu1 %v10648_v1  ;;  %v1854_v1 = vld [vmem:[#allocation9 + $0x14a0] sm:$0xff] }
 0x304   :  { %v10693_v19 = vcombine.low %v1850_v30, %v1854_v1 }
 0x305   :  { %6081 = vmatpush1.bf16.msra.mxu0 %v10645_v54  ;;  %v10694_v54 = vcombine.high %v1850_v30, %v1854_v1  ;;  %v1891_v30 = vld [vmem:[#allocation9 + $0x15c8] sm:$0xff] }
 0x306   :  { %6399 = vmatpush1.bf16.msra.mxu1 %v10647_v36  ;;  %6082 = vmatprep.subr.bf16.mxu0 %v10654_v53  ;;  %v10696_v36 = vcombine.high %v1851_v45, %v1855_v49  ;;  %v1858_v53 = vld [vmem:[#allocation9 + $0x14c0] sm:$0xff]  ;;  %v1895_v1 = vld [vmem:[#allocation9 + $0x15e8] sm:$0xff]  ;;  %v10727_v49 = vcombine.low %v1883_v22, %v1887_v28 }
 0x307   :  { %6400 = vmatprep.subr.bf16.mxu1 %v10656_v58  ;;  %v1862_v58 = vld [vmem:[#allocation9 + $0x14e0] sm:$0xff] }
 0x308   :  { %v10701_v20 = vcombine.low %v1858_v53, %v1862_v58 }
 0x309   :  { %6083 = vmatpush1.bf16.msra.mxu0 %v10653_v55  ;;  %v10702_v55 = vcombine.high %v1858_v53, %v1862_v58  ;;  %v1899_v53 = vld [vmem:[#allocation9 + $0x1608] sm:$0xff] }
 0x30a   :  { %6401 = vmatpush1.bf16.msra.mxu1 %v10655_v7  ;;  %6084 = vmatprep.subr.bf16.mxu0 %v10662_v44  ;;  %v10704_v7 = vcombine.high %v1859_v29, %v1863_v31  ;;  %v1866_v44 = vld [vmem:[#allocation9 + $0x1500] sm:$0xff]  ;;  %v1903_v58 = vld [vmem:[#allocation9 + $0x1628] sm:$0xff]  ;;  %v10735_v31 = vcombine.low %v1891_v30, %v1895_v1 }
 0x30b   :  { %6402 = vmatprep.subr.bf16.mxu1 %v10664_v9  ;;  %v1870_v9 = vld [vmem:[#allocation9 + $0x1520] sm:$0xff] }
 0x30c   :  { %v10709_v3 = vcombine.low %v1866_v44, %v1870_v9 }
 0x30d   :  { %6085 = vmatpush1.bf16.msra.mxu0 %v10661_v25  ;;  %v10710_v25 = vcombine.high %v1866_v44, %v1870_v9  ;;  %v1907_v44 = vld [vmem:[#allocation9 + $0x1648] sm:$0xff] }
 0x30e   :  { %6403 = vmatpush1.bf16.msra.mxu1 %v10663_v51  ;;  %6086 = vmatprep.subr.bf16.mxu0 %v10670_v0  ;;  %v10712_v51 = vcombine.high %v1867_v11, %v1871_v61  ;;  %v1874_v0 = vld [vmem:[#allocation9 + $0x1540] sm:$0xff]  ;;  %v1911_v9 = vld [vmem:[#allocation9 + $0x1668] sm:$0xff]  ;;  %v10743_v61 = vcombine.low %v1899_v53, %v1903_v58 }
 0x30f   :  { %6404 = vmatprep.subr.bf16.mxu1 %v10672_v17  ;;  %v1878_v17 = vld [vmem:[#allocation9 + $0x1560] sm:$0xff] }
 0x310   :  { %v10717_v60 = vcombine.low %v1874_v0, %v1878_v17 }
 0x311   :  { %6087 = vmatpush1.bf16.msra.mxu0 %v10669_v10  ;;  %v10718_v10 = vcombine.high %v1874_v0, %v1878_v17  ;;  %v1915_v0 = vld [vmem:[#allocation9 + $0x1688] sm:$0xff] }
 0x312   :  { %6405 = vmatpush1.bf16.msra.mxu1 %v10671_v42  ;;  %6109 = vmatprep.subr.bf16.mxu0 %v10678_v40  ;;  %v10720_v42 = vcombine.high %v1875_v14, %v1879_v33  ;;  %v1882_v40 = vld [vmem:[#allocation9 + $0x1580] sm:$0xff]  ;;  %v1919_v17 = vld [vmem:[#allocation9 + $0x16a8] sm:$0xff]  ;;  %v10751_v33 = vcombine.low %v1907_v44, %v1911_v9 }
 0x313   :  { %6427 = vmatprep.subr.bf16.mxu1 %v10680_v12  ;;  %v1886_v12 = vld [vmem:[#allocation9 + $0x15a0] sm:$0xff] }
 0x314   :  { %6089 = vmatmul.mubr.bf16.vlgmr.msra.gmra.mrb[28].mxu0 %v12967_v6  ;;  %v10725_v45 = vcombine.low %v1882_v40, %v1886_v12 }
 0x315   :  { %6407 = vmatmul.mubr.bf16.vlgmr.msra.gmra.mrb[36].mxu1 %v12967_v6  ;;  %6098 = vmatprep.mubr.bf16.mxu0 %v13003_v63 }
 0x316   :  { %6110 = vmatpush1.bf16.msra.mxu0 %v10677_v37  ;;  %6416 = vmatprep.mubr.bf16.mxu1 %v13003_v63  ;;  %v10726_v37 = vcombine.high %v1882_v40, %v1886_v12  ;;  %v1923_v40 = vld [vmem:[#allocation9 + $0x16c8] sm:$0xff] }
 0x317   :  { %6428 = vmatpush1.bf16.msra.mxu1 %v10679_v52  ;;  %6111 = vmatprep.subr.bf16.mxu0 %v10686_v5  ;;  %v10728_v52 = vcombine.high %v1883_v22, %v1887_v28  ;;  %v1890_v5 = vld [vmem:[#allocation9 + $0x15c0] sm:$0xff]  ;;  %v1927_v12 = vld [vmem:[#allocation9 + $0x16e8] sm:$0xff]  ;;  %v10759_v28 = vcombine.low %v1915_v0, %v1919_v17 }
 0x318   :  { %6429 = vmatprep.subr.bf16.mxu1 %v10688_v59  ;;  %v1894_v59 = vld [vmem:[#allocation9 + $0x15e0] sm:$0xff] }
 0x319   :  { %v10733_v29 = vcombine.low %v1890_v5, %v1894_v59 }
 0x31a   :  { %6112 = vmatpush1.bf16.msra.mxu0 %v10685_v23  ;;  %v10734_v23 = vcombine.high %v1890_v5, %v1894_v59  ;;  %v1931_v5 = vld [vmem:[#allocation9 + $0x1708] sm:$0xff] }
 0x31b   :  { %6430 = vmatpush1.bf16.msra.mxu1 %v10687_v26  ;;  %6113 = vmatprep.subr.bf16.mxu0 %v10694_v54  ;;  %v10736_v26 = vcombine.high %v1891_v30, %v1895_v1  ;;  %v1898_v54 = vld [vmem:[#allocation9 + $0x1600] sm:$0xff]  ;;  %v1935_v59 = vld [vmem:[#allocation9 + $0x1728] sm:$0xff]  ;;  %v10767_v1 = vcombine.low %v1923_v40, %v1927_v12 }
 0x31c   :  { %6099 = vmatmul.mubr.bf16.gmra.mrb[32].mxu0 %v13038_v2  ;;  %6431 = vmatprep.subr.bf16.mxu1 %v10696_v36  ;;  %v1902_v36 = vld [vmem:[#allocation9 + $0x1620] sm:$0xff] }
 0x31d   :  { %6417 = vmatmul.mubr.bf16.gmra.mrb[40].mxu1 %v13038_v2  ;;  %6141 = vmatprep.mubr.bf16.mxu0 %v13130_v48  ;;  %v10741_v11 = vcombine.low %v1898_v54, %v1902_v36 }
 0x31e   :  { %6114 = vmatpush1.bf16.msra.mxu0 %v10693_v19  ;;  %6459 = vmatprep.mubr.bf16.mxu1 %v13130_v48  ;;  %v10742_v19 = vcombine.high %v1898_v54, %v1902_v36  ;;  %v1939_v54 = vld [vmem:[#allocation9 + $0x1748] sm:$0xff] }
 0x31f   :  { %6432 = vmatpush1.bf16.msra.mxu1 %v10695_v32  ;;  %6115 = vmatprep.subr.bf16.mxu0 %v10702_v55  ;;  %v10744_v32 = vcombine.high %v1899_v53, %v1903_v58  ;;  %v1906_v55 = vld [vmem:[#allocation9 + $0x1640] sm:$0xff]  ;;  %v1943_v36 = vld [vmem:[#allocation9 + $0x1768] sm:$0xff]  ;;  %v10775_v58 = vcombine.low %v1931_v5, %v1935_v59 }
 0x320   :  { %6433 = vmatprep.subr.bf16.mxu1 %v10704_v7  ;;  %v1910_v7 = vld [vmem:[#allocation9 + $0x1660] sm:$0xff] }
 0x321   :  { %v10749_v14 = vcombine.low %v1906_v55, %v1910_v7 }
 0x322   :  { %6116 = vmatpush1.bf16.msra.mxu0 %v10701_v20  ;;  %v10750_v20 = vcombine.high %v1906_v55, %v1910_v7  ;;  %v1947_v55 = vld [vmem:[#allocation9 + $0x1788] sm:$0xff] }
 0x323   :  { %6434 = vmatpush1.bf16.msra.mxu1 %v10703_v57  ;;  %6117 = vmatprep.subr.bf16.mxu0 %v10710_v25  ;;  %v10752_v57 = vcombine.high %v1907_v44, %v1911_v9  ;;  %v1914_v25 = vld [vmem:[#allocation9 + $0x1680] sm:$0xff]  ;;  %v1951_v7 = vld [vmem:[#allocation9 + $0x17a8] sm:$0xff]  ;;  %v10783_v9 = vcombine.low %v1939_v54, %v1943_v36 }
 0x324   :  { %6435 = vmatprep.subr.bf16.mxu1 %v10712_v51  ;;  %v1918_v51 = vld [vmem:[#allocation9 + $0x16a0] sm:$0xff] }
 0x325   :  { %v10757_v22 = vcombine.low %v1914_v25, %v1918_v51 }
 0x326   :  { %6118 = vmatpush1.bf16.msra.mxu0 %v10709_v3  ;;  %v10758_v3 = vcombine.high %v1914_v25, %v1918_v51  ;;  %v1955_v25 = vld [vmem:[#allocation9 + $0x17c8] sm:$0xff] }
 0x327   :  { %6436 = vmatpush1.bf16.msra.mxu1 %v10711_v13  ;;  %6119 = vmatprep.subr.bf16.mxu0 %v10718_v10  ;;  %v10760_v13 = vcombine.high %v1915_v0, %v1919_v17  ;;  %v1922_v10 = vld [vmem:[#allocation9 + $0x16c0] sm:$0xff]  ;;  %v1959_v51 = vld [vmem:[#allocation9 + $0x17e8] sm:$0xff]  ;;  %v10791_v17 = vcombine.low %v1947_v55, %v1951_v7 }
 0x328   :  { %6437 = vmatprep.subr.bf16.mxu1 %v10720_v42  ;;  %v1926_v42 = vld [vmem:[#allocation9 + $0x16e0] sm:$0xff] }
 0x329   :  { %v10765_v30 = vcombine.low %v1922_v10, %v1926_v42 }
 0x32a   :  { %6120 = vmatpush1.bf16.msra.mxu0 %v10717_v60  ;;  %v10766_v60 = vcombine.high %v1922_v10, %v1926_v42  ;;  %v1197_v10 = vld [vmem:[#allocation9 + $0x18] sm:$0xff] }
 0x32b   :  { %6438 = vmatpush1.bf16.msra.mxu1 %v10719_v38  ;;  %6121 = vmatprep.subr.bf16.mxu0 %v10726_v37  ;;  %v10768_v38 = vcombine.high %v1923_v40, %v1927_v12  ;;  %v1930_v37 = vld [vmem:[#allocation9 + $0x1700] sm:$0xff]  ;;  %v1201_v42 = vld [vmem:[#allocation9 + $0x38] sm:$0xff]  ;;  %v10799_v12 = vcombine.low %v1955_v25, %v1959_v51 }
 0x32c   :  { %6439 = vmatprep.subr.bf16.mxu1 %v10728_v52  ;;  %v1934_v52 = vld [vmem:[#allocation9 + $0x1720] sm:$0xff] }
 0x32d   :  { %v10773_v53 = vcombine.low %v1930_v37, %v1934_v52 }
 0x32e   :  { %6122 = vmatpush1.bf16.msra.mxu0 %v10725_v45  ;;  %v10774_v45 = vcombine.high %v1930_v37, %v1934_v52  ;;  %v1205_v37 = vld [vmem:[#allocation9 + $0x58] sm:$0xff] }
 0x32f   :  { %6440 = vmatpush1.bf16.msra.mxu1 %v10727_v49  ;;  %6123 = vmatprep.subr.bf16.mxu0 %v10734_v23  ;;  %v10776_v49 = vcombine.high %v1931_v5, %v1935_v59  ;;  %v1938_v23 = vld [vmem:[#allocation9 + $0x1740] sm:$0xff]  ;;  %v1209_v52 = vld [vmem:[#allocation9 + $0x78] sm:$0xff]  ;;  %v10043_v59 = vcombine.low %v1197_v10, %v1201_v42 }
 0x330   :  { %6441 = vmatprep.subr.bf16.mxu1 %v10736_v26  ;;  %v1942_v26 = vld [vmem:[#allocation9 + $0x1760] sm:$0xff] }
 0x331   :  { %v10781_v44 = vcombine.low %v1938_v23, %v1942_v26 }
 0x332   :  { %6124 = vmatpush1.bf16.msra.mxu0 %v10733_v29  ;;  %v10782_v29 = vcombine.high %v1938_v23, %v1942_v26  ;;  %v1213_v23 = vld [vmem:[#allocation9 + $0x98] sm:$0xff] }
 0x333   :  { %6442 = vmatpush1.bf16.msra.mxu1 %v10735_v31  ;;  %6125 = vmatprep.subr.bf16.mxu0 %v10742_v19  ;;  %v10784_v31 = vcombine.high %v1939_v54, %v1943_v36  ;;  %v1946_v19 = vld [vmem:[#allocation9 + $0x1780] sm:$0xff]  ;;  %v1217_v26 = vld [vmem:[#allocation9 + $0xb8] sm:$0xff]  ;;  %v10051_v36 = vcombine.low %v1205_v37, %v1209_v52 }
 0x334   :  { %6443 = vmatprep.subr.bf16.mxu1 %v10744_v32  ;;  %v1950_v32 = vld [vmem:[#allocation9 + $0x17a0] sm:$0xff] }
 0x335   :  { %v10789_v0 = vcombine.low %v1946_v19, %v1950_v32 }
 0x336   :  { %6126 = vmatpush1.bf16.msra.mxu0 %v10741_v11  ;;  %v10790_v11 = vcombine.high %v1946_v19, %v1950_v32  ;;  %v1221_v19 = vld [vmem:[#allocation9 + $0xd8] sm:$0xff] }
 0x337   :  { %6444 = vmatpush1.bf16.msra.mxu1 %v10743_v61  ;;  %6127 = vmatprep.subr.bf16.mxu0 %v10750_v20  ;;  %v10792_v61 = vcombine.high %v1947_v55, %v1951_v7  ;;  %v1954_v20 = vld [vmem:[#allocation9 + $0x17c0] sm:$0xff]  ;;  %v1225_v32 = vld [vmem:[#allocation9 + $0xf8] sm:$0xff]  ;;  %v10059_v7 = vcombine.low %v1213_v23, %v1217_v26 }
 0x338   :  { %6445 = vmatprep.subr.bf16.mxu1 %v10752_v57  ;;  %v1958_v57 = vld [vmem:[#allocation9 + $0x17e0] sm:$0xff] }
 0x339   :  { %v10797_v40 = vcombine.low %v1954_v20, %v1958_v57 }
 0x33a   :  { %6128 = vmatpush1.bf16.msra.mxu0 %v10749_v14  ;;  %v10798_v14 = vcombine.high %v1954_v20, %v1958_v57  ;;  %v13697_v20 = vld [vmem:[#allocation24_spill] sm:$0xff] }
 0x33b   :  { %6446 = vmatpush1.bf16.msra.mxu1 %v10751_v33  ;;  %6129 = vmatprep.subr.bf16.mxu0 %v10758_v3  ;;  %v10800_v33 = vcombine.high %v1955_v25, %v1959_v51  ;;  %v1196_v3 = vld [vmem:[#allocation9 + $0x10] sm:$0xff]  ;;  %v1229_v57 = vld [vmem:[#allocation9 + $0x118] sm:$0xff] }
 0x33c   :  { %6447 = vmatprep.subr.bf16.mxu1 %v10760_v13  ;;  %v1200_v13 = vld [vmem:[#allocation9 + $0x30] sm:$0xff]  ;;  %v1233_v25 = vld [vmem:[#allocation9 + $0x138] sm:$0xff] }
 0x33d   :  { %v10041_v5 = vcombine.low %v1196_v3, %v1200_v13 }
 0x33e   :  { %6130 = vmatpush1.bf16.msra.mxu0 %v10757_v22  ;;  %v10042_v22 = vcombine.high %v1196_v3, %v1200_v13  ;;  %v1240_v3 = vld [vmem:[#allocation9 + $0x170] sm:$0xff]  ;;  %v1237_v13 = vld [vmem:[#allocation9 + $0x158] sm:$0xff] }
 0x33f   :  { %6448 = vmatpush1.bf16.msra.mxu1 %v10759_v28  ;;  %6131 = vmatprep.subr.bf16.mxu0 %v10766_v60  ;;  %v10044_v28 = vcombine.high %v1197_v10, %v1201_v42  ;;  %v1204_v60 = vld [vmem:[#allocation9 + $0x50] sm:$0xff]  ;;  %v1241_v10 = vld [vmem:[#allocation9 + $0x178] sm:$0xff] }
 0x340   :  { %6449 = vmatprep.subr.bf16.mxu1 %v10768_v38  ;;  %v1208_v38 = vld [vmem:[#allocation9 + $0x70] sm:$0xff] }
 0x341   :  { %v10049_v54 = vcombine.low %v1204_v60, %v1208_v38 }
 0x342   :  { %6132 = vmatpush1.bf16.msra.mxu0 %v10765_v30  ;;  %v10050_v30 = vcombine.high %v1204_v60, %v1208_v38  ;;  %v1248_v60 = vld [vmem:[#allocation9 + $0x1b0] sm:$0xff]  ;;  %v1245_v38 = vld [vmem:[#allocation9 + $0x198] sm:$0xff] }
 0x343   :  { %6450 = vmatpush1.bf16.msra.mxu1 %v10767_v1  ;;  %6133 = vmatprep.subr.bf16.mxu0 %v10774_v45  ;;  %v10052_v1 = vcombine.high %v1205_v37, %v1209_v52  ;;  %v1212_v45 = vld [vmem:[#allocation9 + $0x90] sm:$0xff]  ;;  %v1249_v37 = vld [vmem:[#allocation9 + $0x1b8] sm:$0xff] }
 0x344   :  { %6451 = vmatprep.subr.bf16.mxu1 %v10776_v49  ;;  %v1216_v49 = vld [vmem:[#allocation9 + $0xb0] sm:$0xff] }
 0x345   :  { %v10057_v55 = vcombine.low %v1212_v45, %v1216_v49 }
 0x346   :  { %6134 = vmatpush1.bf16.msra.mxu0 %v10773_v53  ;;  %v10058_v53 = vcombine.high %v1212_v45, %v1216_v49  ;;  %v1256_v45 = vld [vmem:[#allocation9 + $0x1f0] sm:$0xff]  ;;  %v1253_v49 = vld [vmem:[#allocation9 + $0x1d8] sm:$0xff] }
 0x347   :  { %6452 = vmatpush1.bf16.msra.mxu1 %v10775_v58  ;;  %6135 = vmatprep.subr.bf16.mxu0 %v10782_v29  ;;  %v10060_v58 = vcombine.high %v1213_v23, %v1217_v26  ;;  %v1220_v29 = vld [vmem:[#allocation9 + $0xd0] sm:$0xff]  ;;  %v1257_v23 = vld [vmem:[#allocation9 + $0x1f8] sm:$0xff] }
 0x348   :  { %6453 = vmatprep.subr.bf16.mxu1 %v10784_v31  ;;  %v1224_v31 = vld [vmem:[#allocation9 + $0xf0] sm:$0xff] }
 0x349   :  { %v10065_v51 = vcombine.low %v1220_v29, %v1224_v31 }
 0x34a   :  { %6136 = vmatpush1.bf16.msra.mxu0 %v10781_v44  ;;  %v10066_v44 = vcombine.high %v1220_v29, %v1224_v31  ;;  %v1264_v29 = vld [vmem:[#allocation9 + $0x230] sm:$0xff]  ;;  %v1261_v31 = vld [vmem:[#allocation9 + $0x218] sm:$0xff] }
 0x34b   :  { %6454 = vmatpush1.bf16.msra.mxu1 %v10783_v9  ;;  %6137 = vmatprep.subr.bf16.mxu0 %v10790_v11  ;;  %v10068_v9 = vcombine.high %v1221_v19, %v1225_v32  ;;  %v1228_v11 = vld [vmem:[#allocation9 + $0x110] sm:$0xff] }
 0x34c   :  { %6455 = vmatprep.subr.bf16.mxu1 %v10792_v61  ;;  %v1232_v61 = vld [vmem:[#allocation9 + $0x130] sm:$0xff] }
 0x34d   :  { %v10073_v42 = vcombine.low %v1228_v11, %v1232_v61 }
 0x34e   :  { %6138 = vmatpush1.bf16.msra.mxu0 %v10789_v0  ;;  %v10067_v0 = vcombine.low %v1221_v19, %v1225_v32  ;;  %v1265_v19 = vld [vmem:[#allocation9 + $0x238] sm:$0xff] }
 0x34f   :  { %6456 = vmatpush1.bf16.msra.mxu1 %v10791_v17  ;;  %6139 = vmatprep.subr.bf16.mxu0 %v10798_v14  ;;  %v10074_v17 = vcombine.high %v1228_v11, %v1232_v61  ;;  %v10076_v14 = vcombine.high %v1229_v57, %v1233_v25  ;;  %v1272_v11 = vld [vmem:[#allocation9 + $0x270] sm:$0xff]  ;;  %v1269_v61 = vld [vmem:[#allocation9 + $0x258] sm:$0xff] }
 0x350   :  { %6457 = vmatprep.subr.bf16.mxu1 %v10800_v33  ;;  %v1236_v33 = vld [vmem:[#allocation9 + $0x150] sm:$0xff] }
 0x351   :  { %v10081_v52 = vcombine.low %v1236_v33, %v1240_v3 }
 0x352   :  { %6140 = vmatpush1.bf16.msra.mxu0 %v10797_v40  ;;  %v10075_v40 = vcombine.low %v1229_v57, %v1233_v25  ;;  %v10107_v25 = vcombine.low %v1261_v31, %v1265_v19 }
 0x353   :  { %6458 = vmatpush1.bf16.msra.mxu1 %v10799_v12  ;;  %6480 = vmatprep.subr.bf16.mxu0 %v10042_v22  ;;  %v10082_v12 = vcombine.high %v1236_v33, %v1240_v3  ;;  %v10084_v22 = vcombine.high %v1237_v13, %v1241_v10  ;;  %v1277_v33 = vld [vmem:[#allocation9 + $0x298] sm:$0xff] }
 0x354   :  { %6798 = vmatprep.subr.bf16.mxu1 %v10044_v28  ;;  %v1244_v28 = vld [vmem:[#allocation9 + $0x190] sm:$0xff]  ;;  %v1281_v3 = vld [vmem:[#allocation9 + $0x2b8] sm:$0xff] }
 0x355   :  { %6142 = vmatmul.mubr.bf16.vlgmr.msra.gmra.mrb[28].mxu0 %v13133_v24  ;;  %v10089_v26 = vcombine.low %v1244_v28, %v1248_v60 }
 0x356   :  { %6460 = vmatmul.mubr.bf16.vlgmr.msra.gmra.mrb[36].mxu1 %v13133_v24  ;;  %6151 = vmatprep.mubr.bf16.mxu0 %v13143_v56 }
 0x357   :  { %6469 = vmatprep.mubr.bf16.mxu1 %v13143_v56  ;;  %6481 = vmatpush1.bf16.msra.mxu0 %v10041_v5  ;;  %v10083_v5 = vcombine.low %v1237_v13, %v1241_v10 }
 0x358   :  { %6799 = vmatpush1.bf16.msra.mxu1 %v10043_v59  ;;  %6482 = vmatprep.subr.bf16.mxu0 %v10050_v30  ;;  %v10090_v59 = vcombine.high %v1244_v28, %v1248_v60  ;;  %v10092_v30 = vcombine.high %v1245_v38, %v1249_v37  ;;  %v1285_v28 = vld [vmem:[#allocation9 + $0x2d8] sm:$0xff] }
 0x359   :  { %6800 = vmatprep.subr.bf16.mxu1 %v10052_v1  ;;  %v1252_v1 = vld [vmem:[#allocation9 + $0x1d0] sm:$0xff]  ;;  %v1289_v60 = vld [vmem:[#allocation9 + $0x2f8] sm:$0xff] }
 0x35a   :  { %v10097_v32 = vcombine.low %v1252_v1, %v1256_v45 }
 0x35b   :  { %6483 = vmatpush1.bf16.msra.mxu0 %v10049_v54  ;;  %v10091_v54 = vcombine.low %v1245_v38, %v1249_v37  ;;  %v10123_v37 = vcombine.low %v1277_v33, %v1281_v3 }
 0x35c   :  { %6801 = vmatpush1.bf16.msra.mxu1 %v10051_v36  ;;  %6484 = vmatprep.subr.bf16.mxu0 %v10058_v53  ;;  %v10098_v36 = vcombine.high %v1252_v1, %v1256_v45  ;;  %v10100_v53 = vcombine.high %v1253_v49, %v1257_v23  ;;  %v1293_v1 = vld [vmem:[#allocation9 + $0x318] sm:$0xff] }
 0x35d   :  { %6152 = vmatmul.mubr.bf16.gmra.mrb[32].mxu0 %v13145_v27  ;;  %6802 = vmatprep.subr.bf16.mxu1 %v10060_v58  ;;  %v1260_v58 = vld [vmem:[#allocation9 + $0x210] sm:$0xff]  ;;  %v1297_v45 = vld [vmem:[#allocation9 + $0x338] sm:$0xff] }
 0x35e   :  { %6470 = vmatmul.mubr.bf16.gmra.mrb[40].mxu1 %v13145_v27  ;;  %6512 = vmatprep.mubr.bf16.mxu0 %v13697_v20  ;;  %v10105_v57 = vcombine.low %v1260_v58, %v1264_v29 }
 0x35f   :  { %6485 = vmatpush1.bf16.msra.mxu0 %v10057_v55  ;;  %6830 = vmatprep.mubr.bf16.mxu1 %v13697_v20  ;;  %v10099_v55 = vcombine.low %v1253_v49, %v1257_v23  ;;  %v1273_v20 = vld [vmem:[#allocation9 + $0x278] sm:$0xff]  ;;  %v10131_v23 = vcombine.low %v1285_v28, %v1289_v60 }
 0x360   :  { %6803 = vmatpush1.bf16.msra.mxu1 %v10059_v7  ;;  %6486 = vmatprep.subr.bf16.mxu0 %v10066_v44  ;;  %v10106_v7 = vcombine.high %v1260_v58, %v1264_v29  ;;  %v10108_v44 = vcombine.high %v1261_v31, %v1265_v19  ;;  %v10115_v10 = vcombine.low %v1269_v61, %v1273_v20  ;;  %v1301_v58 = vld [vmem:[#allocation9 + $0x358] sm:$0xff] }
 0x361   :  { %6804 = vmatprep.subr.bf16.mxu1 %v10068_v9  ;;  %v1268_v9 = vld [vmem:[#allocation9 + $0x250] sm:$0xff]  ;;  %v1305_v29 = vld [vmem:[#allocation9 + $0x378] sm:$0xff]  ;;  %v10139_v19 = vcombine.low %v1293_v1, %v1297_v45 }
 0x362   :  { %v10113_v13 = vcombine.low %v1268_v9, %v1272_v11 }
 0x363   :  { %6487 = vmatpush1.bf16.msra.mxu0 %v10065_v51  ;;  %v10114_v51 = vcombine.high %v1268_v9, %v1272_v11  ;;  %v1309_v9 = vld [vmem:[#allocation9 + $0x398] sm:$0xff] }
 0x364   :  { %6805 = vmatpush1.bf16.msra.mxu1 %v10067_v0  ;;  %6488 = vmatprep.subr.bf16.mxu0 %v10074_v17  ;;  %v10116_v0 = vcombine.high %v1269_v61, %v1273_v20  ;;  %v1276_v17 = vld [vmem:[#allocation9 + $0x290] sm:$0xff]  ;;  %v1313_v11 = vld [vmem:[#allocation9 + $0x3b8] sm:$0xff]  ;;  %v10147_v20 = vcombine.low %v1301_v58, %v1305_v29 }
 0x365   :  { %6806 = vmatprep.subr.bf16.mxu1 %v10076_v14  ;;  %v1280_v14 = vld [vmem:[#allocation9 + $0x2b0] sm:$0xff] }
 0x366   :  { %v10121_v38 = vcombine.low %v1276_v17, %v1280_v14 }
 0x367   :  { %6489 = vmatpush1.bf16.msra.mxu0 %v10073_v42  ;;  %v10122_v42 = vcombine.high %v1276_v17, %v1280_v14  ;;  %v1317_v17 = vld [vmem:[#allocation9 + $0x3d8] sm:$0xff] }
 0x368   :  { %6807 = vmatpush1.bf16.msra.mxu1 %v10075_v40  ;;  %6490 = vmatprep.subr.bf16.mxu0 %v10082_v12  ;;  %v10124_v40 = vcombine.high %v1277_v33, %v1281_v3  ;;  %v1284_v12 = vld [vmem:[#allocation9 + $0x2d0] sm:$0xff]  ;;  %v1321_v14 = vld [vmem:[#allocation9 + $0x3f8] sm:$0xff]  ;;  %v10155_v3 = vcombine.low %v1309_v9, %v1313_v11 }
 0x369   :  { %6808 = vmatprep.subr.bf16.mxu1 %v10084_v22  ;;  %v1288_v22 = vld [vmem:[#allocation9 + $0x2f0] sm:$0xff] }
 0x36a   :  { %v10129_v49 = vcombine.low %v1284_v12, %v1288_v22 }
 0x36b   :  { %6491 = vmatpush1.bf16.msra.mxu0 %v10081_v52  ;;  %v10130_v52 = vcombine.high %v1284_v12, %v1288_v22  ;;  %v1325_v12 = vld [vmem:[#allocation9 + $0x418] sm:$0xff] }
 0x36c   :  { %6809 = vmatpush1.bf16.msra.mxu1 %v10083_v5  ;;  %6492 = vmatprep.subr.bf16.mxu0 %v10090_v59  ;;  %v10132_v5 = vcombine.high %v1285_v28, %v1289_v60  ;;  %v1292_v59 = vld [vmem:[#allocation9 + $0x310] sm:$0xff]  ;;  %v1329_v22 = vld [vmem:[#allocation9 + $0x438] sm:$0xff]  ;;  %v10163_v60 = vcombine.low %v1317_v17, %v1321_v14 }
 0x36d   :  { %6810 = vmatprep.subr.bf16.mxu1 %v10092_v30  ;;  %v1296_v30 = vld [vmem:[#allocation9 + $0x330] sm:$0xff] }
 0x36e   :  { %v10137_v31 = vcombine.low %v1292_v59, %v1296_v30 }
 0x36f   :  { %6493 = vmatpush1.bf16.msra.mxu0 %v10089_v26  ;;  %v10138_v26 = vcombine.high %v1292_v59, %v1296_v30  ;;  %v1333_v59 = vld [vmem:[#allocation9 + $0x458] sm:$0xff] }
 0x370   :  { %6811 = vmatpush1.bf16.msra.mxu1 %v10091_v54  ;;  %6494 = vmatprep.subr.bf16.mxu0 %v10098_v36  ;;  %v10140_v54 = vcombine.high %v1293_v1, %v1297_v45  ;;  %v1300_v36 = vld [vmem:[#allocation9 + $0x350] sm:$0xff]  ;;  %v1337_v30 = vld [vmem:[#allocation9 + $0x478] sm:$0xff]  ;;  %v10171_v45 = vcombine.low %v1325_v12, %v1329_v22 }
 0x371   :  { %6812 = vmatprep.subr.bf16.mxu1 %v10100_v53  ;;  %v1304_v53 = vld [vmem:[#allocation9 + $0x370] sm:$0xff] }
 0x372   :  { %v10145_v61 = vcombine.low %v1300_v36, %v1304_v53 }
 0x373   :  { %6495 = vmatpush1.bf16.msra.mxu0 %v10097_v32  ;;  %v10146_v32 = vcombine.high %v1300_v36, %v1304_v53  ;;  %v1344_v36 = vld [vmem:[#allocation9 + $0x4b0] sm:$0xff]  ;;  %v1341_v53 = vld [vmem:[#allocation9 + $0x498] sm:$0xff] }
 0x374   :  { %6813 = vmatpush1.bf16.msra.mxu1 %v10099_v55  ;;  %6496 = vmatprep.subr.bf16.mxu0 %v10106_v7  ;;  %v10148_v55 = vcombine.high %v1301_v58, %v1305_v29  ;;  %v1308_v7 = vld [vmem:[#allocation9 + $0x390] sm:$0xff]  ;;  %v1345_v58 = vld [vmem:[#allocation9 + $0x4b8] sm:$0xff] }
 0x375   :  { %6814 = vmatprep.subr.bf16.mxu1 %v10108_v44  ;;  %v1312_v44 = vld [vmem:[#allocation9 + $0x3b0] sm:$0xff] }
 0x376   :  { %v10153_v33 = vcombine.low %v1308_v7, %v1312_v44 }
 0x377   :  { %6497 = vmatpush1.bf16.msra.mxu0 %v10105_v57  ;;  %v10154_v57 = vcombine.high %v1308_v7, %v1312_v44  ;;  %v1352_v7 = vld [vmem:[#allocation9 + $0x4f0] sm:$0xff]  ;;  %v1349_v44 = vld [vmem:[#allocation9 + $0x4d8] sm:$0xff] }
 0x378   :  { %6815 = vmatpush1.bf16.msra.mxu1 %v10107_v25  ;;  %6498 = vmatprep.subr.bf16.mxu0 %v10114_v51  ;;  %v10156_v25 = vcombine.high %v1309_v9, %v1313_v11  ;;  %v1316_v51 = vld [vmem:[#allocation9 + $0x3d0] sm:$0xff]  ;;  %v1353_v9 = vld [vmem:[#allocation9 + $0x4f8] sm:$0xff] }
 0x379   :  { %6816 = vmatprep.subr.bf16.mxu1 %v10116_v0  ;;  %v1320_v0 = vld [vmem:[#allocation9 + $0x3f0] sm:$0xff] }
 0x37a   :  { %v10161_v28 = vcombine.low %v1316_v51, %v1320_v0 }
 0x37b   :  { %6499 = vmatpush1.bf16.msra.mxu0 %v10113_v13  ;;  %v10162_v13 = vcombine.high %v1316_v51, %v1320_v0  ;;  %v1357_v51 = vld [vmem:[#allocation9 + $0x518] sm:$0xff] }
 0x37c   :  { %6817 = vmatpush1.bf16.msra.mxu1 %v10115_v10  ;;  %6500 = vmatprep.subr.bf16.mxu0 %v10122_v42  ;;  %v10164_v10 = vcombine.high %v1317_v17, %v1321_v14  ;;  %v1324_v42 = vld [vmem:[#allocation9 + $0x410] sm:$0xff]  ;;  %v1361_v0 = vld [vmem:[#allocation9 + $0x538] sm:$0xff]  ;;  %v10195_v14 = vcombine.low %v1349_v44, %v1353_v9 }
 0x37d   :  { %6818 = vmatprep.subr.bf16.mxu1 %v10124_v40  ;;  %v1328_v40 = vld [vmem:[#allocation9 + $0x430] sm:$0xff] }
 0x37e   :  { %v10169_v1 = vcombine.low %v1324_v42, %v1328_v40 }
 0x37f   :  { %6501 = vmatpush1.bf16.msra.mxu0 %v10121_v38  ;;  %v10170_v38 = vcombine.high %v1324_v42, %v1328_v40  ;;  %v1365_v42 = vld [vmem:[#allocation9 + $0x558] sm:$0xff] }
 0x380   :  { %6819 = vmatpush1.bf16.msra.mxu1 %v10123_v37  ;;  %6502 = vmatprep.subr.bf16.mxu0 %v10130_v52  ;;  %v10172_v37 = vcombine.high %v1325_v12, %v1329_v22  ;;  %v1332_v52 = vld [vmem:[#allocation9 + $0x450] sm:$0xff]  ;;  %v1369_v40 = vld [vmem:[#allocation9 + $0x578] sm:$0xff]  ;;  %v10203_v12 = vcombine.low %v1357_v51, %v1361_v0 }
 0x381   :  { %6820 = vmatprep.subr.bf16.mxu1 %v10132_v5  ;;  %v1336_v5 = vld [vmem:[#allocation9 + $0x470] sm:$0xff] }
 0x382   :  { %v10177_v29 = vcombine.low %v1332_v52, %v1336_v5 }
 0x383   :  { %6503 = vmatpush1.bf16.msra.mxu0 %v10129_v49  ;;  %v10178_v49 = vcombine.high %v1332_v52, %v1336_v5  ;;  %v10211_v5 = vcombine.low %v1365_v42, %v1369_v40 }
 0x384   :  { %6821 = vmatpush1.bf16.msra.mxu1 %v10131_v23  ;;  %6504 = vmatprep.subr.bf16.mxu0 %v10138_v26  ;;  %v13698_v23 = vld [vmem:[#allocation25_spill] sm:$0xff]  ;;  %v10180_v26 = vcombine.high %v1333_v59, %v1337_v30 }
 0x385   :  { %6822 = vmatprep.subr.bf16.mxu1 %v10140_v54  ;;  %v1340_v54 = vld [vmem:[#allocation9 + $0x490] sm:$0xff] }
 0x386   :  { %v10185_v11 = vcombine.low %v1340_v54, %v1344_v36 }
 0x387   :  { %6505 = vmatpush1.bf16.msra.mxu0 %v10137_v31  ;;  %v10179_v31 = vcombine.low %v1333_v59, %v1337_v30 }
 0x388   :  { %6823 = vmatpush1.bf16.msra.mxu1 %v10139_v19  ;;  %6506 = vmatprep.subr.bf16.mxu0 %v10146_v32  ;;  %v10186_v19 = vcombine.high %v1340_v54, %v1344_v36  ;;  %v10188_v32 = vcombine.high %v1341_v53, %v1345_v58 }
 0x389   :  { %6824 = vmatprep.subr.bf16.mxu1 %v10148_v55  ;;  %v1348_v55 = vld [vmem:[#allocation9 + $0x4d0] sm:$0xff] }
 0x38a   :  { %v10193_v17 = vcombine.low %v1348_v55, %v1352_v7 }
 0x38b   :  { %6507 = vmatpush1.bf16.msra.mxu0 %v10145_v61  ;;  %v10187_v61 = vcombine.low %v1341_v53, %v1345_v58  ;;  %v1388_v58 = vld [vmem:[#allocation9 + $0x610] sm:$0xff] }
 0x38c   :  { %6825 = vmatpush1.bf16.msra.mxu1 %v10147_v20  ;;  %6508 = vmatprep.subr.bf16.mxu0 %v10154_v57  ;;  %v10194_v20 = vcombine.high %v1348_v55, %v1352_v7  ;;  %v1356_v57 = vld [vmem:[#allocation9 + $0x510] sm:$0xff] }
 0x38d   :  { %6826 = vmatprep.subr.bf16.mxu1 %v10156_v25  ;;  %v1360_v25 = vld [vmem:[#allocation9 + $0x530] sm:$0xff] }
 0x38f   :  { %6509 = vmatpush1.bf16.msra.mxu0 %v10153_v33  ;;  %v10202_v33 = vcombine.high %v1356_v57, %v1360_v25 }
 0x390   :  { %6827 = vmatpush1.bf16.msra.mxu1 %v10155_v3  ;;  %6510 = vmatprep.subr.bf16.mxu0 %v10162_v13  ;;  %v10204_v3 = vcombine.high %v1357_v51, %v1361_v0  ;;  %v1364_v13 = vld [vmem:[#allocation9 + $0x550] sm:$0xff] }
 0x391   :  { %6828 = vmatprep.subr.bf16.mxu1 %v10164_v10  ;;  %v1368_v10 = vld [vmem:[#allocation9 + $0x570] sm:$0xff] }
 0x392   :  { %v10210_v22 = vcombine.high %v1364_v13, %v1368_v10  ;;  %v10209_v52 = vcombine.low %v1364_v13, %v1368_v10  ;;  %v1404_v0 = vld [vmem:[#allocation9 + $0x690] sm:$0xff] }
 0x393   :  { %6511 = vmatpush1.bf16.msra.mxu0 %v10161_v28  ;;  %v10212_v28 = vcombine.high %v1365_v42, %v1369_v40  ;;  %v1412_v40 = vld [vmem:[#allocation9 + $0x6d0] sm:$0xff] }
 0x394   :  { %6829 = vmatpush1.bf16.msra.mxu1 %v10163_v60  ;;  %6533 = vmatprep.subr.bf16.mxu0 %v10170_v38  ;;  %v1376_v60 = vld [vmem:[#allocation9 + $0x5b0] sm:$0xff]  ;;  %v1373_v38 = vld [vmem:[#allocation9 + $0x598] sm:$0xff] }
 0x395   :  { %6851 = vmatprep.subr.bf16.mxu1 %v10172_v37  ;;  %v1377_v37 = vld [vmem:[#allocation9 + $0x5b8] sm:$0xff] }
 0x396   :  { %6513 = vmatmul.mubr.bf16.vlgmr.msra.gmra.mrb[36].mxu0 %v13698_v23  ;;  %v10220_v30 = vcombine.high %v1373_v38, %v1377_v37  ;;  %v10219_v54 = vcombine.low %v1373_v38, %v1377_v37  ;;  %v1420_v37 = vld [vmem:[#allocation9 + $0x710] sm:$0xff] }
 0x397   :  { %6831 = vmatmul.mubr.bf16.vlgmr.msra.gmra.mrb[44].mxu1 %v13698_v23  ;;  %6522 = vmatprep.mubr.bf16.mxu0 %v12894_v18  ;;  %v1385_v23 = vld [vmem:[#allocation9 + $0x5f8] sm:$0xff] }
 0x398   :  { %6534 = vmatpush1.bf16.msra.mxu0 %v10169_v1  ;;  %6840 = vmatprep.mubr.bf16.mxu1 %v12894_v18  ;;  %v10196_v18 = vcombine.high %v1349_v44, %v1353_v9  ;;  %v1380_v1 = vld [vmem:[#allocation9 + $0x5d0] sm:$0xff] }
 0x399   :  { %6852 = vmatpush1.bf16.msra.mxu1 %v10171_v45  ;;  %6535 = vmatprep.subr.bf16.mxu0 %v10178_v49  ;;  %v1384_v45 = vld [vmem:[#allocation9 + $0x5f0] sm:$0xff]  ;;  %v1381_v49 = vld [vmem:[#allocation9 + $0x5d8] sm:$0xff] }
 0x39a   :  { %6853 = vmatprep.subr.bf16.mxu1 %v10180_v26  ;;  %v10226_v36 = vcombine.high %v1380_v1, %v1384_v45  ;;  %v10228_v53 = vcombine.high %v1381_v49, %v1385_v23  ;;  %v10227_v55 = vcombine.low %v1381_v49, %v1385_v23  ;;  %v1396_v9 = vld [vmem:[#allocation9 + $0x650] sm:$0xff] }
 0x39b   :  { %v1428_v23 = vld [vmem:[#allocation9 + $0x750] sm:$0xff] }
 0x39c   :  { %6536 = vmatpush1.bf16.msra.mxu0 %v10177_v29  ;;  %v1392_v29 = vld [vmem:[#allocation9 + $0x630] sm:$0xff] }
 0x39d   :  { %6854 = vmatpush1.bf16.msra.mxu1 %v10179_v31  ;;  %6537 = vmatprep.subr.bf16.mxu0 %v10186_v19  ;;  %v1389_v31 = vld [vmem:[#allocation9 + $0x618] sm:$0xff]  ;;  %v10234_v7 = vcombine.high %v1388_v58, %v1392_v29 }
 0x39e   :  { %6523 = vmatmul.mubr.bf16.gmra.mrb[40].mxu0 %v12904_v39  ;;  %6855 = vmatprep.subr.bf16.mxu1 %v10188_v32  ;;  %v1393_v19 = vld [vmem:[#allocation9 + $0x638] sm:$0xff]  ;;  %v10225_v32 = vcombine.low %v1380_v1, %v1384_v45 }
 0x39f   :  { %6841 = vmatmul.mubr.bf16.gmra.mrb[48].mxu1 %v12904_v39  ;;  %6565 = vmatprep.mubr.bf16.mxu0 %v13101_v50  ;;  %v10201_v39 = vcombine.low %v1356_v57, %v1360_v25  ;;  %v10236_v44 = vcombine.high %v1389_v31, %v1393_v19  ;;  %v10235_v57 = vcombine.low %v1389_v31, %v1393_v19  ;;  %v1436_v19 = vld [vmem:[#allocation9 + $0x790] sm:$0xff] }
 0x3a0   :  { %6538 = vmatpush1.bf16.msra.mxu0 %v10185_v11  ;;  %6883 = vmatprep.mubr.bf16.mxu1 %v13101_v50  ;;  %v1372_v50 = vld [vmem:[#allocation9 + $0x590] sm:$0xff] }
 0x3a1   :  { %6856 = vmatpush1.bf16.msra.mxu1 %v10187_v61  ;;  %6539 = vmatprep.subr.bf16.mxu0 %v10194_v20  ;;  %v10218_v59 = vcombine.high %v1372_v50, %v1376_v60  ;;  %v10217_v26 = vcombine.low %v1372_v50, %v1376_v60  ;;  %v1400_v11 = vld [vmem:[#allocation9 + $0x670] sm:$0xff]  ;;  %v1397_v61 = vld [vmem:[#allocation9 + $0x658] sm:$0xff] }
 0x3a2   :  { %6857 = vmatprep.subr.bf16.mxu1 %v10196_v18  ;;  %v1401_v20 = vld [vmem:[#allocation9 + $0x678] sm:$0xff]  ;;  %v10233_v18 = vcombine.low %v1388_v58, %v1392_v29  ;;  %v10242_v25 = vcombine.high %v1396_v9, %v1400_v11 }
 0x3a3   :  { %v10244_v51 = vcombine.high %v1397_v61, %v1401_v20  ;;  %v10243_v13 = vcombine.low %v1397_v61, %v1401_v20  ;;  %v1444_v20 = vld [vmem:[#allocation9 + $0x7d0] sm:$0xff] }
 0x3a4   :  { %6540 = vmatpush1.bf16.msra.mxu0 %v10193_v17  ;;  %v1408_v17 = vld [vmem:[#allocation9 + $0x6b0] sm:$0xff] }
 0x3a5   :  { %6858 = vmatpush1.bf16.msra.mxu1 %v10195_v14  ;;  %6541 = vmatprep.subr.bf16.mxu0 %v10202_v33  ;;  %v1405_v14 = vld [vmem:[#allocation9 + $0x698] sm:$0xff]  ;;  %v10250_v10 = vcombine.high %v1404_v0, %v1408_v17 }
 0x3a6   :  { %6859 = vmatprep.subr.bf16.mxu1 %v10204_v3  ;;  %v1409_v33 = vld [vmem:[#allocation9 + $0x6b8] sm:$0xff]  ;;  %v10241_v3 = vcombine.low %v1396_v9, %v1400_v11 }
 0x3a7   :  { %v10252_v42 = vcombine.high %v1405_v14, %v1409_v33  ;;  %v10251_v50 = vcombine.low %v1405_v14, %v1409_v33  ;;  %v1452_v33 = vld [vmem:[#allocation9 + $0x810] sm:$0xff] }
 0x3a8   :  { %6542 = vmatpush1.bf16.msra.mxu0 %v10201_v39  ;;  %v1416_v39 = vld [vmem:[#allocation9 + $0x6f0] sm:$0xff] }
 0x3a9   :  { %6860 = vmatpush1.bf16.msra.mxu1 %v10203_v12  ;;  %6543 = vmatprep.subr.bf16.mxu0 %v10210_v22  ;;  %v1413_v12 = vld [vmem:[#allocation9 + $0x6d8] sm:$0xff]  ;;  %v10258_v60 = vcombine.high %v1412_v40, %v1416_v39 }
 0x3aa   :  { %6861 = vmatprep.subr.bf16.mxu1 %v10212_v28  ;;  %v1417_v22 = vld [vmem:[#allocation9 + $0x6f8] sm:$0xff]  ;;  %v10249_v28 = vcombine.low %v1404_v0, %v1408_v17 }
 0x3ab   :  { %v10260_v38 = vcombine.high %v1413_v12, %v1417_v22  ;;  %v10259_v1 = vcombine.low %v1413_v12, %v1417_v22  ;;  %v1460_v22 = vld [vmem:[#allocation9 + $0x850] sm:$0xff] }
 0x3ac   :  { %6544 = vmatpush1.bf16.msra.mxu0 %v10209_v52  ;;  %v1424_v52 = vld [vmem:[#allocation9 + $0x730] sm:$0xff] }
 0x3ad   :  { %6862 = vmatpush1.bf16.msra.mxu1 %v10211_v5  ;;  %6545 = vmatprep.subr.bf16.mxu0 %v10218_v59  ;;  %v1421_v5 = vld [vmem:[#allocation9 + $0x718] sm:$0xff]  ;;  %v10266_v45 = vcombine.high %v1420_v37, %v1424_v52 }
 0x3ae   :  { %6863 = vmatprep.subr.bf16.mxu1 %v10220_v30  ;;  %v1425_v59 = vld [vmem:[#allocation9 + $0x738] sm:$0xff]  ;;  %v10257_v30 = vcombine.low %v1412_v40, %v1416_v39 }
 0x3af   :  { %v10268_v49 = vcombine.high %v1421_v5, %v1425_v59  ;;  %v10267_v58 = vcombine.low %v1421_v5, %v1425_v59  ;;  %v1468_v59 = vld [vmem:[#allocation9 + $0x890] sm:$0xff] }
 0x3b0   :  { %6546 = vmatpush1.bf16.msra.mxu0 %v10217_v26  ;;  %v1432_v26 = vld [vmem:[#allocation9 + $0x770] sm:$0xff] }
 0x3b1   :  { %6864 = vmatpush1.bf16.msra.mxu1 %v10219_v54  ;;  %6547 = vmatprep.subr.bf16.mxu0 %v10226_v36  ;;  %v1429_v54 = vld [vmem:[#allocation9 + $0x758] sm:$0xff]  ;;  %v10274_v29 = vcombine.high %v1428_v23, %v1432_v26 }
 0x3b2   :  { %6865 = vmatprep.subr.bf16.mxu1 %v10228_v53  ;;  %v1433_v36 = vld [vmem:[#allocation9 + $0x778] sm:$0xff]  ;;  %v10265_v53 = vcombine.low %v1420_v37, %v1424_v52 }
 0x3b3   :  { %v10276_v31 = vcombine.high %v1429_v54, %v1433_v36  ;;  %v10275_v9 = vcombine.low %v1429_v54, %v1433_v36  ;;  %v1476_v36 = vld [vmem:[#allocation9 + $0x8d0] sm:$0xff] }
 0x3b4   :  { %6548 = vmatpush1.bf16.msra.mxu0 %v10225_v32  ;;  %v1440_v32 = vld [vmem:[#allocation9 + $0x7b0] sm:$0xff] }
 0x3b5   :  { %6866 = vmatpush1.bf16.msra.mxu1 %v10227_v55  ;;  %6549 = vmatprep.subr.bf16.mxu0 %v10234_v7  ;;  %v1437_v55 = vld [vmem:[#allocation9 + $0x798] sm:$0xff]  ;;  %v10282_v11 = vcombine.high %v1436_v19, %v1440_v32 }
 0x3b6   :  { %6867 = vmatprep.subr.bf16.mxu1 %v10236_v44  ;;  %v1441_v7 = vld [vmem:[#allocation9 + $0x7b8] sm:$0xff]  ;;  %v10273_v44 = vcombine.low %v1428_v23, %v1432_v26 }
 0x3b7   :  { %v10284_v61 = vcombine.high %v1437_v55, %v1441_v7  ;;  %v10283_v0 = vcombine.low %v1437_v55, %v1441_v7  ;;  %v1488_v55 = vld [vmem:[#allocation9 + $0x930] sm:$0xff]  ;;  %v1485_v7 = vld [vmem:[#allocation9 + $0x918] sm:$0xff] }
 0x3b8   :  { %6550 = vmatpush1.bf16.msra.mxu0 %v10233_v18  ;;  %v1448_v18 = vld [vmem:[#allocation9 + $0x7f0] sm:$0xff] }
 0x3b9   :  { %6868 = vmatpush1.bf16.msra.mxu1 %v10235_v57  ;;  %6551 = vmatprep.subr.bf16.mxu0 %v10242_v25  ;;  %v1445_v57 = vld [vmem:[#allocation9 + $0x7d8] sm:$0xff]  ;;  %v10290_v17 = vcombine.high %v1444_v20, %v1448_v18 }
 0x3ba   :  { %6869 = vmatprep.subr.bf16.mxu1 %v10244_v51  ;;  %v1449_v25 = vld [vmem:[#allocation9 + $0x7f8] sm:$0xff]  ;;  %v10281_v51 = vcombine.low %v1436_v19, %v1440_v32  ;;  %v1484_v32 = vld [vmem:[#allocation9 + $0x910] sm:$0xff] }
 0x3bb   :  { %v10292_v14 = vcombine.high %v1445_v57, %v1449_v25  ;;  %v10291_v40 = vcombine.low %v1445_v57, %v1449_v25  ;;  %v1496_v57 = vld [vmem:[#allocation9 + $0x970] sm:$0xff]  ;;  %v1493_v25 = vld [vmem:[#allocation9 + $0x958] sm:$0xff] }
 0x3bc   :  { %6552 = vmatpush1.bf16.msra.mxu0 %v10241_v3  ;;  %v1456_v3 = vld [vmem:[#allocation9 + $0x830] sm:$0xff] }
 0x3bd   :  { %6870 = vmatpush1.bf16.msra.mxu1 %v10243_v13  ;;  %6553 = vmatprep.subr.bf16.mxu0 %v10250_v10  ;;  %v1453_v13 = vld [vmem:[#allocation9 + $0x818] sm:$0xff]  ;;  %v10298_v39 = vcombine.high %v1452_v33, %v1456_v3 }
 0x3be   :  { %6871 = vmatprep.subr.bf16.mxu1 %v10252_v42  ;;  %v1457_v10 = vld [vmem:[#allocation9 + $0x838] sm:$0xff]  ;;  %v10289_v42 = vcombine.low %v1444_v20, %v1448_v18  ;;  %v1492_v18 = vld [vmem:[#allocation9 + $0x950] sm:$0xff] }
 0x3bf   :  { %v10300_v12 = vcombine.high %v1453_v13, %v1457_v10  ;;  %v10299_v37 = vcombine.low %v1453_v13, %v1457_v10  ;;  %v1505_v13 = vld [vmem:[#allocation9 + $0x9b8] sm:$0xff]  ;;  %v10337_v10 = vcombine.low %v1492_v18, %v1496_v57 }
 0x3c0   :  { %6554 = vmatpush1.bf16.msra.mxu0 %v10249_v28  ;;  %v1464_v28 = vld [vmem:[#allocation9 + $0x870] sm:$0xff] }
 0x3c1   :  { %6872 = vmatpush1.bf16.msra.mxu1 %v10251_v50  ;;  %6555 = vmatprep.subr.bf16.mxu0 %v10258_v60  ;;  %v1461_v50 = vld [vmem:[#allocation9 + $0x858] sm:$0xff]  ;;  %v10306_v52 = vcombine.high %v1460_v22, %v1464_v28 }
 0x3c2   :  { %6873 = vmatprep.subr.bf16.mxu1 %v10260_v38  ;;  %v1465_v60 = vld [vmem:[#allocation9 + $0x878] sm:$0xff]  ;;  %v10297_v38 = vcombine.low %v1452_v33, %v1456_v3  ;;  %v1504_v33 = vld [vmem:[#allocation9 + $0x9b0] sm:$0xff] }
 0x3c3   :  { %v10308_v5 = vcombine.high %v1461_v50, %v1465_v60  ;;  %v10307_v23 = vcombine.low %v1461_v50, %v1465_v60  ;;  %v1501_v3 = vld [vmem:[#allocation9 + $0x998] sm:$0xff] }
 0x3c4   :  { %6556 = vmatpush1.bf16.msra.mxu0 %v10257_v30  ;;  %v1472_v30 = vld [vmem:[#allocation9 + $0x8b0] sm:$0xff]  ;;  %v1513_v50 = vld [vmem:[#allocation9 + $0x9f8] sm:$0xff] }
 0x3c5   :  { %6874 = vmatpush1.bf16.msra.mxu1 %v10259_v1  ;;  %6557 = vmatprep.subr.bf16.mxu0 %v10266_v45  ;;  %v1469_v1 = vld [vmem:[#allocation9 + $0x898] sm:$0xff]  ;;  %v10314_v26 = vcombine.high %v1468_v59, %v1472_v30 }
 0x3c6   :  { %6875 = vmatprep.subr.bf16.mxu1 %v10268_v49  ;;  %v1473_v45 = vld [vmem:[#allocation9 + $0x8b8] sm:$0xff]  ;;  %v10305_v49 = vcombine.low %v1460_v22, %v1464_v28  ;;  %v1512_v22 = vld [vmem:[#allocation9 + $0x9f0] sm:$0xff] }
 0x3c7   :  { %v10316_v54 = vcombine.high %v1469_v1, %v1473_v45  ;;  %v1509_v28 = vld [vmem:[#allocation9 + $0x9d8] sm:$0xff] }
 0x3c8   :  { %6558 = vmatpush1.bf16.msra.mxu0 %v10265_v53  ;;  %v1480_v53 = vld [vmem:[#allocation9 + $0x8f0] sm:$0xff] }
 0x3c9   :  { %6876 = vmatpush1.bf16.msra.mxu1 %v10267_v58  ;;  %6559 = vmatprep.subr.bf16.mxu0 %v10274_v29  ;;  %v1477_v58 = vld [vmem:[#allocation9 + $0x8d8] sm:$0xff]  ;;  %v10322_v19 = vcombine.high %v1476_v36, %v1480_v53 }
 0x3ca   :  { %6877 = vmatprep.subr.bf16.mxu1 %v10276_v31  ;;  %v1481_v29 = vld [vmem:[#allocation9 + $0x8f8] sm:$0xff]  ;;  %v10315_v31 = vcombine.low %v1469_v1, %v1473_v45 }
 0x3cb   :  { %v1521_v1 = vld [vmem:[#allocation9 + $0xa38] sm:$0xff] }
 0x3cc   :  { %6560 = vmatpush1.bf16.msra.mxu0 %v10273_v44  ;;  %v1489_v44 = vld [vmem:[#allocation9 + $0x938] sm:$0xff] }
 0x3cd   :  { %6878 = vmatpush1.bf16.msra.mxu1 %v10275_v9  ;;  %6561 = vmatprep.subr.bf16.mxu0 %v10282_v11  ;;  %v10321_v9 = vcombine.low %v1476_v36, %v1480_v53  ;;  %v10323_v11 = vcombine.low %v1477_v58, %v1481_v29  ;;  %v10332_v20 = vcombine.high %v1485_v7, %v1489_v44  ;;  %v1528_v36 = vld [vmem:[#allocation9 + $0xa70] sm:$0xff]  ;;  %v1525_v53 = vld [vmem:[#allocation9 + $0xa58] sm:$0xff] }
 0x3ce   :  { %6879 = vmatprep.subr.bf16.mxu1 %v10284_v61  ;;  %v10330_v61 = vcombine.high %v1484_v32, %v1488_v55 }
 0x3d0   :  { %6562 = vmatpush1.bf16.msra.mxu0 %v10281_v51  ;;  %v1497_v51 = vld [vmem:[#allocation9 + $0x978] sm:$0xff] }
 0x3d1   :  { %6880 = vmatpush1.bf16.msra.mxu1 %v10283_v0  ;;  %6563 = vmatprep.subr.bf16.mxu0 %v10290_v17  ;;  %v10331_v0 = vcombine.low %v1485_v7, %v1489_v44  ;;  %v10338_v17 = vcombine.high %v1492_v18, %v1496_v57  ;;  %v1537_v7 = vld [vmem:[#allocation9 + $0xab8] sm:$0xff]  ;;  %v1544_v18 = vld [vmem:[#allocation9 + $0xaf0] sm:$0xff] }
 0x3d2   :  { %6881 = vmatprep.subr.bf16.mxu1 %v10292_v14  ;;  %v10340_v14 = vcombine.high %v1493_v25, %v1497_v51  ;;  %v1541_v57 = vld [vmem:[#allocation9 + $0xad8] sm:$0xff] }
 0x3d4   :  { %6564 = vmatpush1.bf16.msra.mxu0 %v10289_v42  ;;  %v10339_v42 = vcombine.low %v1493_v25, %v1497_v51  ;;  %v1545_v25 = vld [vmem:[#allocation9 + $0xaf8] sm:$0xff] }
 0x3d5   :  { %6882 = vmatpush1.bf16.msra.mxu1 %v10291_v40  ;;  %6586 = vmatprep.subr.bf16.mxu0 %v10298_v39  ;;  %v10348_v39 = vcombine.high %v1501_v3, %v1505_v13 }
 0x3d6   :  { %6904 = vmatprep.subr.bf16.mxu1 %v10300_v12  ;;  %v1508_v12 = vld [vmem:[#allocation9 + $0x9d0] sm:$0xff] }
 0x3d7   :  { %6566 = vmatmul.mubr.bf16.vlgmr.msra.gmra.mrb[36].mxu0 %v13148_v43  ;;  %v10353_v45 = vcombine.low %v1508_v12, %v1512_v22 }
 0x3d8   :  { %6884 = vmatmul.mubr.bf16.vlgmr.msra.gmra.mrb[44].mxu1 %v13148_v43  ;;  %6575 = vmatprep.mubr.bf16.mxu0 %v13150_v41  ;;  %v10313_v43 = vcombine.low %v1468_v59, %v1472_v30  ;;  %v1520_v59 = vld [vmem:[#allocation9 + $0xa30] sm:$0xff]  ;;  %v1517_v30 = vld [vmem:[#allocation9 + $0xa18] sm:$0xff] }
 0x3d9   :  { %6587 = vmatpush1.bf16.msra.mxu0 %v10297_v38  ;;  %6893 = vmatprep.mubr.bf16.mxu1 %v13150_v41  ;;  %v10324_v41 = vcombine.high %v1477_v58, %v1481_v29  ;;  %v10347_v38 = vcombine.low %v1501_v3, %v1505_v13  ;;  %v1529_v58 = vld [vmem:[#allocation9 + $0xa78] sm:$0xff] }
 0x3da   :  { %6905 = vmatpush1.bf16.msra.mxu1 %v10299_v37  ;;  %6588 = vmatprep.subr.bf16.mxu0 %v10306_v52  ;;  %v10354_v37 = vcombine.high %v1508_v12, %v1512_v22  ;;  %v10356_v52 = vcombine.high %v1509_v28, %v1513_v50  ;;  %v1553_v3 = vld [vmem:[#allocation9 + $0xb38] sm:$0xff]  ;;  %v1560_v12 = vld [vmem:[#allocation9 + $0xb70] sm:$0xff] }
 0x3db   :  { %6906 = vmatprep.subr.bf16.mxu1 %v10308_v5  ;;  %v1516_v5 = vld [vmem:[#allocation9 + $0xa10] sm:$0xff]  ;;  %v1557_v22 = vld [vmem:[#allocation9 + $0xb58] sm:$0xff] }
 0x3dc   :  { %v10361_v29 = vcombine.low %v1516_v5, %v1520_v59 }
 0x3dd   :  { %6589 = vmatpush1.bf16.msra.mxu0 %v10305_v49  ;;  %v10355_v49 = vcombine.low %v1509_v28, %v1513_v50  ;;  %v1561_v28 = vld [vmem:[#allocation9 + $0xb78] sm:$0xff] }
 0x3de   :  { %6907 = vmatpush1.bf16.msra.mxu1 %v10307_v23  ;;  %6590 = vmatprep.subr.bf16.mxu0 %v10314_v26  ;;  %v10362_v23 = vcombine.high %v1516_v5, %v1520_v59  ;;  %v10364_v26 = vcombine.high %v1517_v30, %v1521_v1  ;;  %v1568_v5 = vld [vmem:[#allocation9 + $0xbb0] sm:$0xff]  ;;  %v1565_v59 = vld [vmem:[#allocation9 + $0xb98] sm:$0xff] }
 0x3df   :  { %6576 = vmatmul.mubr.bf16.gmra.mrb[40].mxu0 %v13156_v15  ;;  %6908 = vmatprep.subr.bf16.mxu1 %v10316_v54  ;;  %v1524_v54 = vld [vmem:[#allocation9 + $0xa50] sm:$0xff] }
 0x3e0   :  { %6894 = vmatmul.mubr.bf16.gmra.mrb[48].mxu1 %v13156_v15  ;;  %6618 = vmatprep.mubr.bf16.mxu0 %v13160_v16  ;;  %v10329_v15 = vcombine.low %v1484_v32, %v1488_v55  ;;  %v1536_v32 = vld [vmem:[#allocation9 + $0xab0] sm:$0xff]  ;;  %v1533_v55 = vld [vmem:[#allocation9 + $0xa98] sm:$0xff]  ;;  %v10369_v44 = vcombine.low %v1524_v54, %v1528_v36 }
 0x3e1   :  { %6591 = vmatpush1.bf16.msra.mxu0 %v10313_v43  ;;  %6936 = vmatprep.mubr.bf16.mxu1 %v13160_v16  ;;  %v1500_v16 = vld [vmem:[#allocation9 + $0x990] sm:$0xff]  ;;  %v10363_v43 = vcombine.low %v1517_v30, %v1521_v1  ;;  %v1569_v30 = vld [vmem:[#allocation9 + $0xbb8] sm:$0xff] }
 0x3e2   :  { %6909 = vmatpush1.bf16.msra.mxu1 %v10315_v31  ;;  %6592 = vmatprep.subr.bf16.mxu0 %v10322_v19  ;;  %v10346_v40 = vcombine.high %v1500_v16, %v1504_v33  ;;  %v10345_v60 = vcombine.low %v1500_v16, %v1504_v33  ;;  %v10370_v31 = vcombine.high %v1524_v54, %v1528_v36  ;;  %v1552_v16 = vld [vmem:[#allocation9 + $0xb30] sm:$0xff]  ;;  %v1549_v33 = vld [vmem:[#allocation9 + $0xb18] sm:$0xff] }
 0x3e3   :  { %6910 = vmatprep.subr.bf16.mxu1 %v10324_v41  ;;  %v10372_v19 = vcombine.high %v1525_v53, %v1529_v58  ;;  %v1532_v41 = vld [vmem:[#allocation9 + $0xa90] sm:$0xff]  ;;  %v1573_v36 = vld [vmem:[#allocation9 + $0xbd8] sm:$0xff] }
 0x3e4   :  { %v10377_v51 = vcombine.low %v1532_v41, %v1536_v32  ;;  %v1576_v54 = vld [vmem:[#allocation9 + $0xbf0] sm:$0xff] }
 0x3e5   :  { %6593 = vmatpush1.bf16.msra.mxu0 %v10321_v9  ;;  %v10371_v9 = vcombine.low %v1525_v53, %v1529_v58  ;;  %v1577_v53 = vld [vmem:[#allocation9 + $0xbf8] sm:$0xff] }
 0x3e6   :  { %6911 = vmatpush1.bf16.msra.mxu1 %v10323_v11  ;;  %6594 = vmatprep.subr.bf16.mxu0 %v10330_v61  ;;  %v10378_v11 = vcombine.high %v1532_v41, %v1536_v32  ;;  %v10380_v61 = vcombine.high %v1533_v55, %v1537_v7  ;;  %v1584_v41 = vld [vmem:[#allocation9 + $0xc30] sm:$0xff]  ;;  %v1581_v32 = vld [vmem:[#allocation9 + $0xc18] sm:$0xff] }
 0x3e7   :  { %6912 = vmatprep.subr.bf16.mxu1 %v10332_v20  ;;  %v1540_v20 = vld [vmem:[#allocation9 + $0xad0] sm:$0xff] }
 0x3e8   :  { %v10385_v13 = vcombine.low %v1540_v20, %v1544_v18 }
 0x3e9   :  { %6595 = vmatpush1.bf16.msra.mxu0 %v10329_v15  ;;  %v10379_v15 = vcombine.low %v1533_v55, %v1537_v7  ;;  %v1585_v55 = vld [vmem:[#allocation9 + $0xc38] sm:$0xff] }
 0x3ea   :  { %6913 = vmatpush1.bf16.msra.mxu1 %v10331_v0  ;;  %6596 = vmatprep.subr.bf16.mxu0 %v10338_v17  ;;  %v10386_v0 = vcombine.high %v1540_v20, %v1544_v18  ;;  %v10388_v17 = vcombine.high %v1541_v57, %v1545_v25  ;;  %v1592_v20 = vld [vmem:[#allocation9 + $0xc70] sm:$0xff]  ;;  %v1589_v18 = vld [vmem:[#allocation9 + $0xc58] sm:$0xff] }
 0x3eb   :  { %6914 = vmatprep.subr.bf16.mxu1 %v10340_v14  ;;  %v1548_v14 = vld [vmem:[#allocation9 + $0xb10] sm:$0xff] }
 0x3ec   :  { %v10393_v50 = vcombine.low %v1548_v14, %v1552_v16 }
 0x3ed   :  { %6597 = vmatpush1.bf16.msra.mxu0 %v10337_v10  ;;  %v10387_v10 = vcombine.low %v1541_v57, %v1545_v25  ;;  %v1593_v57 = vld [vmem:[#allocation9 + $0xc78] sm:$0xff] }
 0x3ee   :  { %6915 = vmatpush1.bf16.msra.mxu1 %v10339_v42  ;;  %6598 = vmatprep.subr.bf16.mxu0 %v10346_v40  ;;  %v10394_v42 = vcombine.high %v1548_v14, %v1552_v16  ;;  %v10396_v40 = vcombine.high %v1549_v33, %v1553_v3  ;;  %v1600_v14 = vld [vmem:[#allocation9 + $0xcb0] sm:$0xff]  ;;  %v1597_v16 = vld [vmem:[#allocation9 + $0xc98] sm:$0xff] }
 0x3ef   :  { %6916 = vmatprep.subr.bf16.mxu1 %v10348_v39  ;;  %v1556_v39 = vld [vmem:[#allocation9 + $0xb50] sm:$0xff] }
 0x3f0   :  { %v10401_v1 = vcombine.low %v1556_v39, %v1560_v12 }
 0x3f1   :  { %6599 = vmatpush1.bf16.msra.mxu0 %v10345_v60  ;;  %v10395_v60 = vcombine.low %v1549_v33, %v1553_v3  ;;  %v1601_v33 = vld [vmem:[#allocation9 + $0xcb8] sm:$0xff] }
 0x3f2   :  { %6917 = vmatpush1.bf16.msra.mxu1 %v10347_v38  ;;  %6600 = vmatprep.subr.bf16.mxu0 %v10354_v37  ;;  %v10402_v38 = vcombine.high %v1556_v39, %v1560_v12  ;;  %v10404_v37 = vcombine.high %v1557_v22, %v1561_v28  ;;  %v1608_v39 = vld [vmem:[#allocation9 + $0xcf0] sm:$0xff]  ;;  %v1605_v12 = vld [vmem:[#allocation9 + $0xcd8] sm:$0xff] }
 0x3f3   :  { %6918 = vmatprep.subr.bf16.mxu1 %v10356_v52  ;;  %v1564_v52 = vld [vmem:[#allocation9 + $0xb90] sm:$0xff] }
 0x3f4   :  { %v10409_v58 = vcombine.low %v1564_v52, %v1568_v5 }
 0x3f5   :  { %6601 = vmatpush1.bf16.msra.mxu0 %v10353_v45  ;;  %v10403_v45 = vcombine.low %v1557_v22, %v1561_v28  ;;  %v1609_v22 = vld [vmem:[#allocation9 + $0xcf8] sm:$0xff]  ;;  %v10443_v28 = vcombine.low %v1597_v16, %v1601_v33 }
 0x3f6   :  { %6919 = vmatpush1.bf16.msra.mxu1 %v10355_v49  ;;  %6602 = vmatprep.subr.bf16.mxu0 %v10362_v23  ;;  %v10410_v49 = vcombine.high %v1564_v52, %v1568_v5  ;;  %v10412_v23 = vcombine.high %v1565_v59, %v1569_v30  ;;  %v1617_v52 = vld [vmem:[#allocation9 + $0xd38] sm:$0xff] }
 0x3f7   :  { %6920 = vmatprep.subr.bf16.mxu1 %v10364_v26  ;;  %v1572_v26 = vld [vmem:[#allocation9 + $0xbd0] sm:$0xff] }
 0x3f8   :  { %v10417_v7 = vcombine.low %v1572_v26, %v1576_v54 }
 0x3f9   :  { %6603 = vmatpush1.bf16.msra.mxu0 %v10361_v29  ;;  %v10411_v29 = vcombine.low %v1565_v59, %v1569_v30  ;;  %v10451_v59 = vcombine.low %v1605_v12, %v1609_v22 }
 0x3fa   :  { %6921 = vmatpush1.bf16.msra.mxu1 %v10363_v43  ;;  %6604 = vmatprep.subr.bf16.mxu0 %v10370_v31  ;;  %v10418_v43 = vcombine.high %v1572_v26, %v1576_v54  ;;  %v10420_v31 = vcombine.high %v1573_v36, %v1577_v53  ;;  %v1625_v26 = vld [vmem:[#allocation9 + $0xd78] sm:$0xff] }
 0x3fb   :  { %6922 = vmatprep.subr.bf16.mxu1 %v10372_v19  ;;  %v1580_v19 = vld [vmem:[#allocation9 + $0xc10] sm:$0xff] }
 0x3fc   :  { %v10425_v25 = vcombine.low %v1580_v19, %v1584_v41 }
 0x3fd   :  { %6605 = vmatpush1.bf16.msra.mxu0 %v10369_v44  ;;  %v10419_v44 = vcombine.low %v1573_v36, %v1577_v53 }
 0x3fe   :  { %6923 = vmatpush1.bf16.msra.mxu1 %v10371_v9  ;;  %6606 = vmatprep.subr.bf16.mxu0 %v10378_v11  ;;  %v10426_v9 = vcombine.high %v1580_v19, %v1584_v41  ;;  %v10428_v11 = vcombine.high %v1581_v32, %v1585_v55  ;;  %v1629_v19 = vld [vmem:[#allocation9 + $0xd98] sm:$0xff] }
 0x3ff   :  { %6924 = vmatprep.subr.bf16.mxu1 %v10380_v61  ;;  %v1588_v61 = vld [vmem:[#allocation9 + $0xc50] sm:$0xff]  ;;  %v1633_v41 = vld [vmem:[#allocation9 + $0xdb8] sm:$0xff] }
 0x400   :  { %v10433_v3 = vcombine.low %v1588_v61, %v1592_v20 }
 0x401   :  { %6607 = vmatpush1.bf16.msra.mxu0 %v10377_v51  ;;  %v10427_v51 = vcombine.low %v1581_v32, %v1585_v55 }
 0x402   :  { %6925 = vmatpush1.bf16.msra.mxu1 %v10379_v15  ;;  %6608 = vmatprep.subr.bf16.mxu0 %v10386_v0  ;;  %v10434_v15 = vcombine.high %v1588_v61, %v1592_v20  ;;  %v10436_v0 = vcombine.high %v1589_v18, %v1593_v57 }
 0x403   :  { %6926 = vmatprep.subr.bf16.mxu1 %v10388_v17  ;;  %v1596_v17 = vld [vmem:[#allocation9 + $0xc90] sm:$0xff] }
 0x405   :  { %6609 = vmatpush1.bf16.msra.mxu0 %v10385_v13  ;;  %v10435_v13 = vcombine.low %v1589_v18, %v1593_v57  ;;  %v10476_v18 = vcombine.high %v1629_v19, %v1633_v41  ;;  %v1636_v57 = vld [vmem:[#allocation9 + $0xdd0] sm:$0xff] }
 0x406   :  { %6927 = vmatpush1.bf16.msra.mxu1 %v10387_v10  ;;  %6610 = vmatprep.subr.bf16.mxu0 %v10394_v42  ;;  %v10442_v10 = vcombine.high %v1596_v17, %v1600_v14  ;;  %v10444_v42 = vcombine.high %v1597_v16, %v1601_v33 }
 0x407   :  { %6928 = vmatprep.subr.bf16.mxu1 %v10396_v40  ;;  %v1604_v40 = vld [vmem:[#allocation9 + $0xcd0] sm:$0xff] }
 0x408   :  { %v10449_v5 = vcombine.low %v1604_v40, %v1608_v39 }
 0x409   :  { %6611 = vmatpush1.bf16.msra.mxu0 %v10393_v50  ;;  %v10450_v50 = vcombine.high %v1604_v40, %v1608_v39  ;;  %v1645_v40 = vld [vmem:[#allocation9 + $0xe18] sm:$0xff] }
 0x40a   :  { %6929 = vmatpush1.bf16.msra.mxu1 %v10395_v60  ;;  %6612 = vmatprep.subr.bf16.mxu0 %v10402_v38  ;;  %v1612_v60 = vld [vmem:[#allocation9 + $0xd10] sm:$0xff]  ;;  %v1649_v39 = vld [vmem:[#allocation9 + $0xe38] sm:$0xff] }
 0x40b   :  { %6930 = vmatprep.subr.bf16.mxu1 %v10404_v37  ;;  %v1616_v38 = vld [vmem:[#allocation9 + $0xd30] sm:$0xff]  ;;  %v1613_v37 = vld [vmem:[#allocation9 + $0xd18] sm:$0xff] }
 0x40c   :  { %v10458_v30 = vcombine.high %v1612_v60, %v1616_v38  ;;  %v10459_v54 = vcombine.low %v1613_v37, %v1617_v52 }
 0x40d   :  { %6613 = vmatpush1.bf16.msra.mxu0 %v10401_v1  ;;  %v10460_v1 = vcombine.high %v1613_v37, %v1617_v52  ;;  %v10492_v37 = vcombine.high %v1645_v40, %v1649_v39  ;;  %v1652_v52 = vld [vmem:[#allocation9 + $0xe50] sm:$0xff] }
 0x40e   :  { %6931 = vmatpush1.bf16.msra.mxu1 %v10403_v45  ;;  %6614 = vmatprep.subr.bf16.mxu0 %v10410_v49  ;;  %v1620_v45 = vld [vmem:[#allocation9 + $0xd50] sm:$0xff] }
 0x40f   :  { %6932 = vmatprep.subr.bf16.mxu1 %v10412_v23  ;;  %v1624_v49 = vld [vmem:[#allocation9 + $0xd70] sm:$0xff]  ;;  %v1621_v23 = vld [vmem:[#allocation9 + $0xd58] sm:$0xff] }
 0x410   :  { %v10466_v36 = vcombine.high %v1620_v45, %v1624_v49  ;;  %v10465_v55 = vcombine.low %v1620_v45, %v1624_v49  ;;  %v10491_v45 = vcombine.low %v1645_v40, %v1649_v39  ;;  %v1684_v39 = vld [vmem:[#allocation9 + $0xf50] sm:$0xff] }
 0x411   :  { %6615 = vmatpush1.bf16.msra.mxu0 %v10409_v58  ;;  %v1628_v58 = vld [vmem:[#allocation9 + $0xd90] sm:$0xff] }
 0x412   :  { %6933 = vmatpush1.bf16.msra.mxu1 %v10411_v29  ;;  %6616 = vmatprep.subr.bf16.mxu0 %v10418_v43  ;;  %v1632_v29 = vld [vmem:[#allocation9 + $0xdb0] sm:$0xff] }
 0x413   :  { %6934 = vmatprep.subr.bf16.mxu1 %v10420_v31  ;;  %v10474_v61 = vcombine.high %v1628_v58, %v1632_v29 }
 0x415   :  { %6617 = vmatpush1.bf16.msra.mxu0 %v10417_v7 }
 0x416   :  { %6935 = vmatpush1.bf16.msra.mxu1 %v10419_v44  ;;  %6639 = vmatprep.subr.bf16.mxu0 %v10426_v9  ;;  %v10467_v44 = vcombine.low %v1621_v23, %v1625_v26 }
 0x417   :  { %6957 = vmatprep.subr.bf16.mxu1 %v10428_v11 }
 0x418   :  { %6619 = vmatmul.mubr.bf16.vlgmr.msra.gmra.mrb[36].mxu0 %v13167_v35 }
 0x419   :  { %6937 = vmatmul.mubr.bf16.vlgmr.msra.gmra.mrb[44].mxu1 %v13167_v35  ;;  %6628 = vmatprep.mubr.bf16.mxu0 %v13171_v62  ;;  %v10441_v35 = vcombine.low %v1596_v17, %v1600_v14  ;;  %v10475_v17 = vcombine.low %v1629_v19, %v1633_v41  ;;  %v1668_v41 = vld [vmem:[#allocation9 + $0xed0] sm:$0xff] }
 0x41a   :  { %6640 = vmatpush1.bf16.msra.mxu0 %v10425_v25  ;;  %6946 = vmatprep.mubr.bf16.mxu1 %v13171_v62  ;;  %v10452_v62 = vcombine.high %v1605_v12, %v1609_v22  ;;  %v1640_v25 = vld [vmem:[#allocation9 + $0xdf0] sm:$0xff] }
 0x41b   :  { %6958 = vmatpush1.bf16.msra.mxu1 %v10427_v51  ;;  %6641 = vmatprep.subr.bf16.mxu0 %v10434_v15  ;;  %v1637_v51 = vld [vmem:[#allocation9 + $0xdd8] sm:$0xff]  ;;  %v10482_v14 = vcombine.high %v1636_v57, %v1640_v25  ;;  %v10481_v22 = vcombine.low %v1636_v57, %v1640_v25 }
 0x41c   :  { %6959 = vmatprep.subr.bf16.mxu1 %v10436_v0  ;;  %v1641_v15 = vld [vmem:[#allocation9 + $0xdf8] sm:$0xff]  ;;  %v10473_v0 = vcombine.low %v1628_v58, %v1632_v29 }
 0x41d   :  { %v10484_v33 = vcombine.high %v1637_v51, %v1641_v15 }
 0x41e   :  { %6642 = vmatpush1.bf16.msra.mxu0 %v10433_v3  ;;  %v1644_v3 = vld [vmem:[#allocation9 + $0xe10] sm:$0xff] }
 0x41f   :  { %6960 = vmatpush1.bf16.msra.mxu1 %v10435_v13  ;;  %6643 = vmatprep.subr.bf16.mxu0 %v10442_v10  ;;  %v1648_v13 = vld [vmem:[#allocation9 + $0xe30] sm:$0xff] }
 0x420   :  { %6629 = vmatmul.mubr.bf16.gmra.mrb[40].mxu0 %v13178_v4  ;;  %6961 = vmatprep.subr.bf16.mxu1 %v10444_v42 }
 0x421   :  { %6947 = vmatmul.mubr.bf16.gmra.mrb[48].mxu1 %v13178_v4  ;;  %6671 = vmatprep.mubr.bf16.mxu0 %v13115_v46  ;;  %v10457_v4 = vcombine.low %v1612_v60, %v1616_v38  ;;  %v10490_v60 = vcombine.high %v1644_v3, %v1648_v13 }
 0x422   :  { %6644 = vmatpush1.bf16.msra.mxu0 %v10441_v35  ;;  %6989 = vmatprep.mubr.bf16.mxu1 %v13115_v46  ;;  %v10468_v46 = vcombine.high %v1621_v23, %v1625_v26  ;;  %v1660_v26 = vld [vmem:[#allocation9 + $0xe90] sm:$0xff] }
 0x423   :  { %6962 = vmatpush1.bf16.msra.mxu1 %v10443_v28  ;;  %6645 = vmatprep.subr.bf16.mxu0 %v10450_v50  ;;  %v10483_v28 = vcombine.low %v1637_v51, %v1641_v15  ;;  %v1676_v15 = vld [vmem:[#allocation9 + $0xf10] sm:$0xff] }
 0x424   :  { %6963 = vmatprep.subr.bf16.mxu1 %v10452_v62 }
 0x426   :  { %6646 = vmatpush1.bf16.msra.mxu0 %v10449_v5  ;;  %v1656_v5 = vld [vmem:[#allocation9 + $0xe70] sm:$0xff] }
 0x427   :  { %6964 = vmatpush1.bf16.msra.mxu1 %v10451_v59  ;;  %6647 = vmatprep.subr.bf16.mxu0 %v10458_v30  ;;  %v1653_v59 = vld [vmem:[#allocation9 + $0xe58] sm:$0xff]  ;;  %v10498_v49 = vcombine.high %v1652_v52, %v1656_v5 }
 0x428   :  { %6965 = vmatprep.subr.bf16.mxu1 %v10460_v1  ;;  %v13232_v53 = vpop.f32.mrb[28].mxu0  ;;  %v1657_v30 = vld [vmem:[#allocation9 + $0xe78] sm:$0xff]  ;;  %v10489_v1 = vcombine.low %v1644_v3, %v1648_v13 }
 0x429   :  { %v13234_v43 = vpop.f32.mrb[36].mxu1  ;;  %v13236_v31 = vpop.f32.mrb[29].mxu0  ;;  %v10500_v23 = vcombine.high %v1653_v59, %v1657_v30  ;;  %v10499_v58 = vcombine.low %v1653_v59, %v1657_v30  ;;  %v1692_v30 = vld [vmem:[#allocation9 + $0xf90] sm:$0xff] }
 0x42a   :  { %6648 = vmatpush1.bf16.msra.mxu0 %v10457_v4  ;;  %v13238_v32 = vpop.f32.mrb[37].mxu1  ;;  %v13240_v7 = vpop.f32.mrb[30].mxu0  ;;  %v1664_v4 = vld [vmem:[#allocation9 + $0xeb0] sm:$0xff] }
 0x42b   :  { %6966 = vmatpush1.bf16.msra.mxu1 %v10459_v54  ;;  %6649 = vmatprep.subr.bf16.mxu0 %v10466_v36  ;;  %v13242_v9 = vpop.f32.mrb[38].mxu1  ;;  %v13244_v11 = vpop.f32.mrb[31].mxu0  ;;  %v1661_v54 = vld [vmem:[#allocation9 + $0xe98] sm:$0xff]  ;;  %v10506_v29 = vcombine.high %v1660_v26, %v1664_v4 }
 0x42c   :  { %6967 = vmatprep.subr.bf16.mxu1 %v10468_v46  ;;  %v13246_v20 = vpop.f32.mrb[39].mxu1  ;;  %v1665_v36 = vld [vmem:[#allocation9 + $0xeb8] sm:$0xff]  ;;  %v10497_v46 = vcombine.low %v1652_v52, %v1656_v5 }
 0x42d   :  { %v10508_v19 = vcombine.high %v1661_v54, %v1665_v36  ;;  %v10507_v57 = vcombine.low %v1661_v54, %v1665_v36  ;;  %v1700_v36 = vld [vmem:[#allocation9 + $0xfd0] sm:$0xff] }
 0x42e   :  { %6650 = vmatpush1.bf16.msra.mxu0 %v10465_v55  ;;  %v1672_v55 = vld [vmem:[#allocation9 + $0xef0] sm:$0xff] }
 0x42f   :  { %6968 = vmatpush1.bf16.msra.mxu1 %v10467_v44  ;;  %6651 = vmatprep.subr.bf16.mxu0 %v10474_v61  ;;  %v1669_v44 = vld [vmem:[#allocation9 + $0xed8] sm:$0xff]  ;;  %v10514_v25 = vcombine.high %v1668_v41, %v1672_v55 }
 0x430   :  { %6969 = vmatprep.subr.bf16.mxu1 %v10476_v18  ;;  %v13248_v16 = vpop.f32.mrb[32].mxu0  ;;  %v1673_v61 = vld [vmem:[#allocation9 + $0xef8] sm:$0xff]  ;;  %v10505_v18 = vcombine.low %v1660_v26, %v1664_v4 }
 0x431   :  { %v13250_v10 = vpop.f32.mrb[40].mxu1  ;;  %v13252_v42 = vpop.f32.mrb[33].mxu0  ;;  %v10516_v51 = vcombine.high %v1669_v44, %v1673_v61  ;;  %v10515_v3 = vcombine.low %v1669_v44, %v1673_v61  ;;  %v1708_v61 = vld [vmem:[#allocation9 + $0x1010] sm:$0xff] }
 0x432   :  { %6652 = vmatpush1.bf16.msra.mxu0 %v10473_v0  ;;  %v13254_v12 = vpop.f32.mrb[41].mxu1  ;;  %v13256_v35 = vpop.f32.mrb[34].mxu0  ;;  %v1680_v0 = vld [vmem:[#allocation9 + $0xf30] sm:$0xff] }
 0x433   :  { %6970 = vmatpush1.bf16.msra.mxu1 %v10475_v17  ;;  %6653 = vmatprep.subr.bf16.mxu0 %v10482_v14  ;;  %v13258_v50 = vpop.f32.mrb[42].mxu1  ;;  %v13260_v62 = vpop.f32.mrb[35].mxu0  ;;  %v1677_v17 = vld [vmem:[#allocation9 + $0xf18] sm:$0xff]  ;;  %v10522_v13 = vcombine.high %v1676_v15, %v1680_v0 }
 0x434   :  { %6971 = vmatprep.subr.bf16.mxu1 %v10484_v33  ;;  %v13262_v38 = vpop.f32.mrb[43].mxu1  ;;  %v1681_v14 = vld [vmem:[#allocation9 + $0xf38] sm:$0xff]  ;;  %v10513_v33 = vcombine.low %v1668_v41, %v1672_v55 }
 0x435   :  { %v10524_v40 = vcombine.high %v1677_v17, %v1681_v14  ;;  %v10523_v52 = vcombine.low %v1677_v17, %v1681_v14  ;;  %v1716_v14 = vld [vmem:[#allocation9 + $0x1050] sm:$0xff] }
 0x436   :  { %6654 = vmatpush1.bf16.msra.mxu0 %v10481_v22  ;;  %v1688_v22 = vld [vmem:[#allocation9 + $0xf70] sm:$0xff] }
 0x437   :  { %6972 = vmatpush1.bf16.msra.mxu1 %v10483_v28  ;;  %6655 = vmatprep.subr.bf16.mxu0 %v10490_v60  ;;  %v1685_v28 = vld [vmem:[#allocation9 + $0xf58] sm:$0xff]  ;;  %v10530_v5 = vcombine.high %v1684_v39, %v1688_v22 }
 0x438   :  { %6973 = vmatprep.subr.bf16.mxu1 %v10492_v37  ;;  %v1689_v60 = vld [vmem:[#allocation9 + $0xf78] sm:$0xff]  ;;  %v10521_v37 = vcombine.low %v1676_v15, %v1680_v0 }
 0x439   :  { %v10532_v59 = vcombine.high %v1685_v28, %v1689_v60  ;;  %v10531_v26 = vcombine.low %v1685_v28, %v1689_v60  ;;  %v1724_v60 = vld [vmem:[#allocation9 + $0x1090] sm:$0xff] }
 0x43a   :  { %6656 = vmatpush1.bf16.msra.mxu0 %v10489_v1  ;;  %v1696_v1 = vld [vmem:[#allocation9 + $0xfb0] sm:$0xff] }
 0x43b   :  { %6974 = vmatpush1.bf16.msra.mxu1 %v10491_v45  ;;  %6657 = vmatprep.subr.bf16.mxu0 %v10498_v49  ;;  %v1693_v45 = vld [vmem:[#allocation9 + $0xf98] sm:$0xff]  ;;  %v10538_v4 = vcombine.high %v1692_v30, %v1696_v1 }
 0x43c   :  { %6975 = vmatprep.subr.bf16.mxu1 %v10500_v23  ;;  %v1697_v49 = vld [vmem:[#allocation9 + $0xfb8] sm:$0xff]  ;;  %v10529_v23 = vcombine.low %v1684_v39, %v1688_v22 }
 0x43d   :  { %v10540_v54 = vcombine.high %v1693_v45, %v1697_v49  ;;  %v10539_v41 = vcombine.low %v1693_v45, %v1697_v49  ;;  %v1732_v49 = vld [vmem:[#allocation9 + $0x10d0] sm:$0xff] }
 0x43e   :  { %6658 = vmatpush1.bf16.msra.mxu0 %v10497_v46  ;;  %v1704_v46 = vld [vmem:[#allocation9 + $0xff0] sm:$0xff] }
 0x43f   :  { %6976 = vmatpush1.bf16.msra.mxu1 %v10499_v58  ;;  %6659 = vmatprep.subr.bf16.mxu0 %v10506_v29  ;;  %v1701_v58 = vld [vmem:[#allocation9 + $0xfd8] sm:$0xff]  ;;  %v10546_v55 = vcombine.high %v1700_v36, %v1704_v46 }
 0x440   :  { %6977 = vmatprep.subr.bf16.mxu1 %v10508_v19  ;;  %v1705_v29 = vld [vmem:[#allocation9 + $0xff8] sm:$0xff]  ;;  %v10537_v19 = vcombine.low %v1692_v30, %v1696_v1 }
 0x441   :  { %v10548_v44 = vcombine.high %v1701_v58, %v1705_v29  ;;  %v10547_v15 = vcombine.low %v1701_v58, %v1705_v29  ;;  %v1744_v58 = vld [vmem:[#allocation9 + $0x1130] sm:$0xff]  ;;  %v1741_v29 = vld [vmem:[#allocation9 + $0x1118] sm:$0xff] }
 0x442   :  { %6660 = vmatpush1.bf16.msra.mxu0 %v10505_v18  ;;  %v1712_v18 = vld [vmem:[#allocation9 + $0x1030] sm:$0xff] }
 0x443   :  { %6978 = vmatpush1.bf16.msra.mxu1 %v10507_v57  ;;  %6661 = vmatprep.subr.bf16.mxu0 %v10514_v25  ;;  %v1709_v57 = vld [vmem:[#allocation9 + $0x1018] sm:$0xff]  ;;  %v10554_v0 = vcombine.high %v1708_v61, %v1712_v18 }
 0x444   :  { %6979 = vmatprep.subr.bf16.mxu1 %v10516_v51  ;;  %v1713_v25 = vld [vmem:[#allocation9 + $0x1038] sm:$0xff]  ;;  %v10545_v51 = vcombine.low %v1700_v36, %v1704_v46  ;;  %v1740_v46 = vld [vmem:[#allocation9 + $0x1110] sm:$0xff] }
 0x445   :  { %v10556_v17 = vcombine.high %v1709_v57, %v1713_v25  ;;  %v10555_v39 = vcombine.low %v1709_v57, %v1713_v25  ;;  %v1752_v57 = vld [vmem:[#allocation9 + $0x1170] sm:$0xff]  ;;  %v1749_v25 = vld [vmem:[#allocation9 + $0x1158] sm:$0xff] }
 0x446   :  { %6662 = vmatpush1.bf16.msra.mxu0 %v10513_v33  ;;  %v1720_v33 = vld [vmem:[#allocation9 + $0x1070] sm:$0xff] }
 0x447   :  { %6980 = vmatpush1.bf16.msra.mxu1 %v10515_v3  ;;  %6663 = vmatprep.subr.bf16.mxu0 %v10522_v13  ;;  %v1717_v3 = vld [vmem:[#allocation9 + $0x1058] sm:$0xff]  ;;  %v10562_v22 = vcombine.high %v1716_v14, %v1720_v33 }
 0x448   :  { %6981 = vmatprep.subr.bf16.mxu1 %v10524_v40  ;;  %v1721_v13 = vld [vmem:[#allocation9 + $0x1078] sm:$0xff]  ;;  %v10553_v40 = vcombine.low %v1708_v61, %v1712_v18  ;;  %v1748_v18 = vld [vmem:[#allocation9 + $0x1150] sm:$0xff] }
 0x449   :  { %v10564_v28 = vcombine.high %v1717_v3, %v1721_v13  ;;  %v10563_v30 = vcombine.low %v1717_v3, %v1721_v13  ;;  %v1761_v3 = vld [vmem:[#allocation9 + $0x11b8] sm:$0xff]  ;;  %v10593_v13 = vcombine.low %v1748_v18, %v1752_v57 }
 0x44a   :  { %6664 = vmatpush1.bf16.msra.mxu0 %v10521_v37  ;;  %v1728_v37 = vld [vmem:[#allocation9 + $0x10b0] sm:$0xff] }
 0x44b   :  { %6982 = vmatpush1.bf16.msra.mxu1 %v10523_v52  ;;  %6665 = vmatprep.subr.bf16.mxu0 %v10530_v5  ;;  %v1725_v52 = vld [vmem:[#allocation9 + $0x1098] sm:$0xff]  ;;  %v10570_v1 = vcombine.high %v1724_v60, %v1728_v37 }
 0x44c   :  { %6983 = vmatprep.subr.bf16.mxu1 %v10532_v59  ;;  %v1729_v5 = vld [vmem:[#allocation9 + $0x10b8] sm:$0xff]  ;;  %v10561_v59 = vcombine.low %v1716_v14, %v1720_v33  ;;  %v1760_v14 = vld [vmem:[#allocation9 + $0x11b0] sm:$0xff] }
 0x44d   :  { %v10572_v45 = vcombine.high %v1725_v52, %v1729_v5  ;;  %v1757_v33 = vld [vmem:[#allocation9 + $0x1198] sm:$0xff] }
 0x44e   :  { %6666 = vmatpush1.bf16.msra.mxu0 %v10529_v23  ;;  %v1736_v23 = vld [vmem:[#allocation9 + $0x10f0] sm:$0xff] }
 0x44f   :  { %6984 = vmatpush1.bf16.msra.mxu1 %v10531_v26  ;;  %6667 = vmatprep.subr.bf16.mxu0 %v10538_v4  ;;  %v1733_v26 = vld [vmem:[#allocation9 + $0x10d8] sm:$0xff]  ;;  %v10578_v36 = vcombine.high %v1732_v49, %v1736_v23 }
 0x450   :  { %6985 = vmatprep.subr.bf16.mxu1 %v10540_v54  ;;  %v1737_v4 = vld [vmem:[#allocation9 + $0x10f8] sm:$0xff]  ;;  %v10571_v54 = vcombine.low %v1725_v52, %v1729_v5 }
 0x451   :  { %v1769_v52 = vld [vmem:[#allocation9 + $0x11f8] sm:$0xff] }
 0x452   :  { %6668 = vmatpush1.bf16.msra.mxu0 %v10537_v19  ;;  %v1745_v19 = vld [vmem:[#allocation9 + $0x1138] sm:$0xff] }
 0x453   :  { %6986 = vmatpush1.bf16.msra.mxu1 %v10539_v41  ;;  %6669 = vmatprep.subr.bf16.mxu0 %v10546_v55  ;;  %v10577_v41 = vcombine.low %v1732_v49, %v1736_v23  ;;  %v10579_v55 = vcombine.low %v1733_v26, %v1737_v4  ;;  %v10588_v61 = vcombine.high %v1741_v29, %v1745_v19  ;;  %v1776_v49 = vld [vmem:[#allocation9 + $0x1230] sm:$0xff]  ;;  %v1773_v23 = vld [vmem:[#allocation9 + $0x1218] sm:$0xff] }
 0x454   :  { %6987 = vmatprep.subr.bf16.mxu1 %v10548_v44  ;;  %v10586_v44 = vcombine.high %v1740_v46, %v1744_v58 }
 0x456   :  { %6670 = vmatpush1.bf16.msra.mxu0 %v10545_v51  ;;  %v1753_v51 = vld [vmem:[#allocation9 + $0x1178] sm:$0xff] }
 0x457   :  { %6988 = vmatpush1.bf16.msra.mxu1 %v10547_v15  ;;  %6692 = vmatprep.subr.bf16.mxu0 %v10554_v0  ;;  %v10587_v15 = vcombine.low %v1741_v29, %v1745_v19  ;;  %v10594_v0 = vcombine.high %v1748_v18, %v1752_v57  ;;  %v1785_v29 = vld [vmem:[#allocation9 + $0x1278] sm:$0xff]  ;;  %v1792_v18 = vld [vmem:[#allocation9 + $0x12b0] sm:$0xff] }
 0x458   :  { %7010 = vmatprep.subr.bf16.mxu1 %v10556_v17  ;;  %v10596_v17 = vcombine.high %v1749_v25, %v1753_v51  ;;  %v1789_v57 = vld [vmem:[#allocation9 + $0x1298] sm:$0xff] }
 0x459   :  { %6672 = vmatmul.mubr.bf16.vlgmr.msra.gmra.mrb[36].mxu0 %v13122_v34 }
 0x45a   :  { %6990 = vmatmul.mubr.bf16.vlgmr.msra.gmra.mrb[44].mxu1 %v13122_v34  ;;  %6681 = vmatprep.mubr.bf16.mxu0 %v13139_v8  ;;  %v10569_v34 = vcombine.low %v1724_v60, %v1728_v37  ;;  %v1768_v60 = vld [vmem:[#allocation9 + $0x11f0] sm:$0xff]  ;;  %v1765_v37 = vld [vmem:[#allocation9 + $0x11d8] sm:$0xff] }
 0x45b   :  { %6693 = vmatpush1.bf16.msra.mxu0 %v10553_v40  ;;  %6999 = vmatprep.mubr.bf16.mxu1 %v13139_v8  ;;  %v10580_v8 = vcombine.high %v1733_v26, %v1737_v4  ;;  %v10595_v40 = vcombine.low %v1749_v25, %v1753_v51  ;;  %v1777_v26 = vld [vmem:[#allocation9 + $0x1238] sm:$0xff] }
 0x45c   :  { %7011 = vmatpush1.bf16.msra.mxu1 %v10555_v39  ;;  %6694 = vmatprep.subr.bf16.mxu0 %v10562_v22  ;;  %v10604_v22 = vcombine.high %v1757_v33, %v1761_v3  ;;  %v1793_v25 = vld [vmem:[#allocation9 + $0x12b8] sm:$0xff] }
 0x45d   :  { %7012 = vmatprep.subr.bf16.mxu1 %v10564_v28  ;;  %v1764_v28 = vld [vmem:[#allocation9 + $0x11d0] sm:$0xff] }
 0x45e   :  { %v10609_v4 = vcombine.low %v1764_v28, %v1768_v60 }
 0x45f   :  { %6695 = vmatpush1.bf16.msra.mxu0 %v10561_v59  ;;  %v10603_v59 = vcombine.low %v1757_v33, %v1761_v3  ;;  %v1801_v33 = vld [vmem:[#allocation9 + $0x12f8] sm:$0xff] }
 0x460   :  { %7013 = vmatpush1.bf16.msra.mxu1 %v10563_v30  ;;  %6696 = vmatprep.subr.bf16.mxu0 %v10570_v1  ;;  %v10610_v30 = vcombine.high %v1764_v28, %v1768_v60  ;;  %v10612_v1 = vcombine.high %v1765_v37, %v1769_v52  ;;  %v1808_v28 = vld [vmem:[#allocation9 + $0x1330] sm:$0xff]  ;;  %v1805_v60 = vld [vmem:[#allocation9 + $0x1318] sm:$0xff] }
 0x461   :  { %6682 = vmatmul.mubr.bf16.gmra.mrb[40].mxu0 %v13137_v47  ;;  %7014 = vmatprep.subr.bf16.mxu1 %v10572_v45  ;;  %v1772_v45 = vld [vmem:[#allocation9 + $0x1210] sm:$0xff] }
 0x462   :  { %7000 = vmatmul.mubr.bf16.gmra.mrb[48].mxu1 %v13137_v47  ;;  %6724 = vmatprep.mubr.bf16.mxu0 %v12964_v21  ;;  %v10585_v47 = vcombine.low %v1740_v46, %v1744_v58  ;;  %v1784_v46 = vld [vmem:[#allocation9 + $0x1270] sm:$0xff]  ;;  %v1781_v58 = vld [vmem:[#allocation9 + $0x1258] sm:$0xff]  ;;  %v10617_v19 = vcombine.low %v1772_v45, %v1776_v49 }
 0x463   :  { %6697 = vmatpush1.bf16.msra.mxu0 %v10569_v34  ;;  %7042 = vmatprep.mubr.bf16.mxu1 %v12964_v21  ;;  %v1756_v21 = vld [vmem:[#allocation9 + $0x1190] sm:$0xff]  ;;  %v10611_v34 = vcombine.low %v1765_v37, %v1769_v52  ;;  %v1809_v37 = vld [vmem:[#allocation9 + $0x1338] sm:$0xff] }
 0x464   :  { %7015 = vmatpush1.bf16.msra.mxu1 %v10571_v54  ;;  %6698 = vmatprep.subr.bf16.mxu0 %v10578_v36  ;;  %v10602_v39 = vcombine.high %v1756_v21, %v1760_v14  ;;  %v10601_v5 = vcombine.low %v1756_v21, %v1760_v14  ;;  %v10618_v54 = vcombine.high %v1772_v45, %v1776_v49  ;;  %v1800_v21 = vld [vmem:[#allocation9 + $0x12f0] sm:$0xff]  ;;  %v1797_v14 = vld [vmem:[#allocation9 + $0x12d8] sm:$0xff] }
 0x465   :  { %7016 = vmatprep.subr.bf16.mxu1 %v10580_v8  ;;  %v10620_v36 = vcombine.high %v1773_v23, %v1777_v26  ;;  %v1780_v8 = vld [vmem:[#allocation9 + $0x1250] sm:$0xff]  ;;  %v1813_v49 = vld [vmem:[#allocation9 + $0x1358] sm:$0xff] }
 0x466   :  { %v10625_v51 = vcombine.low %v1780_v8, %v1784_v46  ;;  %v1816_v45 = vld [vmem:[#allocation9 + $0x1370] sm:$0xff] }
 0x467   :  { %6699 = vmatpush1.bf16.msra.mxu0 %v10577_v41  ;;  %v10619_v41 = vcombine.low %v1773_v23, %v1777_v26  ;;  %v1817_v23 = vld [vmem:[#allocation9 + $0x1378] sm:$0xff] }
 0x468   :  { %7017 = vmatpush1.bf16.msra.mxu1 %v10579_v55  ;;  %6700 = vmatprep.subr.bf16.mxu0 %v10586_v44  ;;  %v10626_v55 = vcombine.high %v1780_v8, %v1784_v46  ;;  %v10628_v44 = vcombine.high %v1781_v58, %v1785_v29  ;;  %v1824_v8 = vld [vmem:[#allocation9 + $0x13b0] sm:$0xff]  ;;  %v1821_v46 = vld [vmem:[#allocation9 + $0x1398] sm:$0xff] }
 0x469   :  { %7018 = vmatprep.subr.bf16.mxu1 %v10588_v61  ;;  %v1788_v61 = vld [vmem:[#allocation9 + $0x1290] sm:$0xff] }
 0x46a   :  { %v10633_v3 = vcombine.low %v1788_v61, %v1792_v18 }
 0x46b   :  { %6701 = vmatpush1.bf16.msra.mxu0 %v10585_v47  ;;  %v10627_v47 = vcombine.low %v1781_v58, %v1785_v29  ;;  %v1825_v58 = vld [vmem:[#allocation9 + $0x13b8] sm:$0xff] }
 0x46c   :  { %7019 = vmatpush1.bf16.msra.mxu1 %v10587_v15  ;;  %6702 = vmatprep.subr.bf16.mxu0 %v10594_v0  ;;  %v10634_v15 = vcombine.high %v1788_v61, %v1792_v18  ;;  %v10636_v0 = vcombine.high %v1789_v57, %v1793_v25  ;;  %v1832_v61 = vld [vmem:[#allocation9 + $0x13f0] sm:$0xff]  ;;  %v1829_v18 = vld [vmem:[#allocation9 + $0x13d8] sm:$0xff] }
 0x46d   :  { %7020 = vmatprep.subr.bf16.mxu1 %v10596_v17  ;;  %v1796_v17 = vld [vmem:[#allocation9 + $0x12d0] sm:$0xff] }
 0x46e   :  { %v10641_v52 = vcombine.low %v1796_v17, %v1800_v21 }
 0x46f   :  { %6703 = vmatpush1.bf16.msra.mxu0 %v10593_v13  ;;  %v10635_v13 = vcombine.low %v1789_v57, %v1793_v25  ;;  %v1833_v57 = vld [vmem:[#allocation9 + $0x13f8] sm:$0xff] }
 0x470   :  { %7021 = vmatpush1.bf16.msra.mxu1 %v10595_v40  ;;  %6704 = vmatprep.subr.bf16.mxu0 %v10602_v39  ;;  %v10642_v40 = vcombine.high %v1796_v17, %v1800_v21  ;;  %v10644_v39 = vcombine.high %v1797_v14, %v1801_v33  ;;  %v1840_v17 = vld [vmem:[#allocation9 + $0x1430] sm:$0xff]  ;;  %v1837_v21 = vld [vmem:[#allocation9 + $0x1418] sm:$0xff] }
 0x471   :  { %7022 = vmatprep.subr.bf16.mxu1 %v10604_v22  ;;  %v1804_v22 = vld [vmem:[#allocation9 + $0x1310] sm:$0xff] }
 0x472   :  { %v10649_v26 = vcombine.low %v1804_v22, %v1808_v28 }
 0x473   :  { %6705 = vmatpush1.bf16.msra.mxu0 %v10601_v5  ;;  %v10643_v5 = vcombine.low %v1797_v14, %v1801_v33  ;;  %v1841_v14 = vld [vmem:[#allocation9 + $0x1438] sm:$0xff] }
 0x474   :  { %7023 = vmatpush1.bf16.msra.mxu1 %v10603_v59  ;;  %6706 = vmatprep.subr.bf16.mxu0 %v10610_v30  ;;  %v10650_v59 = vcombine.high %v1804_v22, %v1808_v28  ;;  %v10652_v30 = vcombine.high %v1805_v60, %v1809_v37  ;;  %v1848_v22 = vld [vmem:[#allocation9 + $0x1470] sm:$0xff]  ;;  %v1845_v28 = vld [vmem:[#allocation9 + $0x1458] sm:$0xff] }
 0x475   :  { %7024 = vmatprep.subr.bf16.mxu1 %v10612_v1  ;;  %v1812_v1 = vld [vmem:[#allocation9 + $0x1350] sm:$0xff] }
 0x476   :  { %v10657_v29 = vcombine.low %v1812_v1, %v1816_v45 }
 0x477   :  { %6707 = vmatpush1.bf16.msra.mxu0 %v10609_v4  ;;  %v10651_v4 = vcombine.low %v1805_v60, %v1809_v37  ;;  %v1849_v60 = vld [vmem:[#allocation9 + $0x1478] sm:$0xff] }
 0x478   :  { %7025 = vmatpush1.bf16.msra.mxu1 %v10611_v34  ;;  %6708 = vmatprep.subr.bf16.mxu0 %v10618_v54  ;;  %v10658_v34 = vcombine.high %v1812_v1, %v1816_v45  ;;  %v10660_v54 = vcombine.high %v1813_v49, %v1817_v23  ;;  %v1856_v1 = vld [vmem:[#allocation9 + $0x14b0] sm:$0xff]  ;;  %v1853_v45 = vld [vmem:[#allocation9 + $0x1498] sm:$0xff] }
 0x479   :  { %7026 = vmatprep.subr.bf16.mxu1 %v10620_v36  ;;  %v1820_v36 = vld [vmem:[#allocation9 + $0x1390] sm:$0xff] }
 0x47a   :  { %v10665_v25 = vcombine.low %v1820_v36, %v1824_v8 }
 0x47b   :  { %6709 = vmatpush1.bf16.msra.mxu0 %v10617_v19  ;;  %v10659_v19 = vcombine.low %v1813_v49, %v1817_v23  ;;  %v1857_v49 = vld [vmem:[#allocation9 + $0x14b8] sm:$0xff] }
 0x47c   :  { %7027 = vmatpush1.bf16.msra.mxu1 %v10619_v41  ;;  %6710 = vmatprep.subr.bf16.mxu0 %v10626_v55  ;;  %v10666_v41 = vcombine.high %v1820_v36, %v1824_v8  ;;  %v10668_v55 = vcombine.high %v1821_v46, %v1825_v58  ;;  %v1864_v36 = vld [vmem:[#allocation9 + $0x14f0] sm:$0xff]  ;;  %v1861_v8 = vld [vmem:[#allocation9 + $0x14d8] sm:$0xff] }
 0x47d   :  { %7028 = vmatprep.subr.bf16.mxu1 %v10628_v44  ;;  %v1828_v44 = vld [vmem:[#allocation9 + $0x13d0] sm:$0xff] }
 0x47e   :  { %v10673_v33 = vcombine.low %v1828_v44, %v1832_v61 }
 0x47f   :  { %6711 = vmatpush1.bf16.msra.mxu0 %v10625_v51  ;;  %v10667_v51 = vcombine.low %v1821_v46, %v1825_v58  ;;  %v1865_v46 = vld [vmem:[#allocation9 + $0x14f8] sm:$0xff]  ;;  %v10699_v58 = vcombine.low %v1853_v45, %v1857_v49 }
 0x480   :  { %7029 = vmatpush1.bf16.msra.mxu1 %v10627_v47  ;;  %6712 = vmatprep.subr.bf16.mxu0 %v10634_v15  ;;  %v10674_v47 = vcombine.high %v1828_v44, %v1832_v61  ;;  %v10676_v15 = vcombine.high %v1829_v18, %v1833_v57  ;;  %v1873_v44 = vld [vmem:[#allocation9 + $0x1538] sm:$0xff] }
 0x481   :  { %7030 = vmatprep.subr.bf16.mxu1 %v10636_v0  ;;  %v1836_v0 = vld [vmem:[#allocation9 + $0x1410] sm:$0xff] }
 0x482   :  { %v10681_v37 = vcombine.low %v1836_v0, %v1840_v17 }
 0x483   :  { %6713 = vmatpush1.bf16.msra.mxu0 %v10633_v3  ;;  %v10675_v3 = vcombine.low %v1829_v18, %v1833_v57  ;;  %v10707_v18 = vcombine.low %v1861_v8, %v1865_v46 }
 0x484   :  { %7031 = vmatpush1.bf16.msra.mxu1 %v10635_v13  ;;  %6714 = vmatprep.subr.bf16.mxu0 %v10642_v40  ;;  %v10682_v13 = vcombine.high %v1836_v0, %v1840_v17  ;;  %v10684_v40 = vcombine.high %v1837_v21, %v1841_v14  ;;  %v1881_v0 = vld [vmem:[#allocation9 + $0x1578] sm:$0xff] }
 0x485   :  { %7032 = vmatprep.subr.bf16.mxu1 %v10644_v39  ;;  %v1844_v39 = vld [vmem:[#allocation9 + $0x1450] sm:$0xff] }
 0x486   :  { %v10689_v23 = vcombine.low %v1844_v39, %v1848_v22 }
 0x487   :  { %6715 = vmatpush1.bf16.msra.mxu0 %v10641_v52  ;;  %v10683_v52 = vcombine.low %v1837_v21, %v1841_v14 }
 0x488   :  { %7033 = vmatpush1.bf16.msra.mxu1 %v10643_v5  ;;  %6716 = vmatprep.subr.bf16.mxu0 %v10650_v59  ;;  %v10690_v5 = vcombine.high %v1844_v39, %v1848_v22  ;;  %v10692_v59 = vcombine.high %v1845_v28, %v1849_v60 }
 0x489   :  { %7034 = vmatprep.subr.bf16.mxu1 %v10652_v30  ;;  %v1852_v30 = vld [vmem:[#allocation9 + $0x1490] sm:$0xff] }
 0x48b   :  { %6717 = vmatpush1.bf16.msra.mxu0 %v10649_v26  ;;  %v10691_v26 = vcombine.low %v1845_v28, %v1849_v60  ;;  %v1892_v60 = vld [vmem:[#allocation9 + $0x15d0] sm:$0xff] }
 0x48c   :  { %7035 = vmatpush1.bf16.msra.mxu1 %v10651_v4  ;;  %6718 = vmatprep.subr.bf16.mxu0 %v10658_v34  ;;  %v10698_v4 = vcombine.high %v1852_v30, %v1856_v1  ;;  %v10700_v34 = vcombine.high %v1853_v45, %v1857_v49  ;;  %v1900_v49 = vld [vmem:[#allocation9 + $0x1610] sm:$0xff] }
 0x48d   :  { %7036 = vmatprep.subr.bf16.mxu1 %v10660_v54  ;;  %v1860_v54 = vld [vmem:[#allocation9 + $0x14d0] sm:$0xff] }
 0x48e   :  { %v10705_v61 = vcombine.low %v1860_v54, %v1864_v36 }
 0x48f   :  { %6719 = vmatpush1.bf16.msra.mxu0 %v10657_v29  ;;  %v10706_v29 = vcombine.high %v1860_v54, %v1864_v36 }
 0x490   :  { %7037 = vmatpush1.bf16.msra.mxu1 %v10659_v19  ;;  %6720 = vmatprep.subr.bf16.mxu0 %v10666_v41  ;;  %v1868_v19 = vld [vmem:[#allocation9 + $0x1510] sm:$0xff] }
 0x491   :  { %7038 = vmatprep.subr.bf16.mxu1 %v10668_v55  ;;  %v1872_v41 = vld [vmem:[#allocation9 + $0x1530] sm:$0xff]  ;;  %v1869_v55 = vld [vmem:[#allocation9 + $0x1518] sm:$0xff] }
 0x492   :  { %v10714_v57 = vcombine.high %v1868_v19, %v1872_v41  ;;  %v10715_v17 = vcombine.low %v1869_v55, %v1873_v44 }
 0x493   :  { %6721 = vmatpush1.bf16.msra.mxu0 %v10665_v25  ;;  %v10716_v25 = vcombine.high %v1869_v55, %v1873_v44  ;;  %v1916_v44 = vld [vmem:[#allocation9 + $0x1690] sm:$0xff] }
 0x494   :  { %7039 = vmatpush1.bf16.msra.mxu1 %v10667_v51  ;;  %6722 = vmatprep.subr.bf16.mxu0 %v10674_v47  ;;  %v1876_v51 = vld [vmem:[#allocation9 + $0x1550] sm:$0xff] }
 0x495   :  { %7040 = vmatprep.subr.bf16.mxu1 %v10676_v15  ;;  %v1880_v47 = vld [vmem:[#allocation9 + $0x1570] sm:$0xff]  ;;  %v1877_v15 = vld [vmem:[#allocation9 + $0x1558] sm:$0xff] }
 0x496   :  { %v10722_v21 = vcombine.high %v1876_v51, %v1880_v47  ;;  %v10724_v14 = vcombine.high %v1877_v15, %v1881_v0  ;;  %v10723_v39 = vcombine.low %v1877_v15, %v1881_v0  ;;  %v1924_v0 = vld [vmem:[#allocation9 + $0x16d0] sm:$0xff] }
 0x497   :  { %6723 = vmatpush1.bf16.msra.mxu0 %v10673_v33  ;;  %v1888_v33 = vld [vmem:[#allocation9 + $0x15b0] sm:$0xff] }
 0x498   :  { %7041 = vmatpush1.bf16.msra.mxu1 %v10675_v3  ;;  %6745 = vmatprep.subr.bf16.mxu0 %v10682_v13  ;;  %v1885_v3 = vld [vmem:[#allocation9 + $0x1598] sm:$0xff] }
 0x499   :  { %7063 = vmatprep.subr.bf16.mxu1 %v10684_v40  ;;  %v1889_v13 = vld [vmem:[#allocation9 + $0x15b8] sm:$0xff]  ;;  %v10721_v40 = vcombine.low %v1876_v51, %v1880_v47 }
 0x49a   :  { %6725 = vmatmul.mubr.bf16.vlgmr.msra.gmra.mrb[36].mxu0 %v12967_v6  ;;  %v10732_v28 = vcombine.high %v1885_v3, %v1889_v13 }
 0x49b   :  { %7043 = vmatmul.mubr.bf16.vlgmr.msra.gmra.mrb[44].mxu1 %v12967_v6  ;;  %6734 = vmatprep.mubr.bf16.mxu0 %v13003_v63  ;;  %v10697_v6 = vcombine.low %v1852_v30, %v1856_v1  ;;  %v10731_v30 = vcombine.low %v1885_v3, %v1889_v13  ;;  %v1932_v13 = vld [vmem:[#allocation9 + $0x1710] sm:$0xff] }
 0x49c   :  { %6746 = vmatpush1.bf16.msra.mxu0 %v10681_v37  ;;  %7052 = vmatprep.mubr.bf16.mxu1 %v13003_v63  ;;  %v10708_v63 = vcombine.high %v1861_v8, %v1865_v46  ;;  %v1896_v37 = vld [vmem:[#allocation9 + $0x15f0] sm:$0xff] }
 0x49d   :  { %7064 = vmatpush1.bf16.msra.mxu1 %v10683_v52  ;;  %6747 = vmatprep.subr.bf16.mxu0 %v10690_v5  ;;  %v1893_v52 = vld [vmem:[#allocation9 + $0x15d8] sm:$0xff]  ;;  %v10738_v1 = vcombine.high %v1892_v60, %v1896_v37  ;;  %v1908_v46 = vld [vmem:[#allocation9 + $0x1650] sm:$0xff] }
 0x49e   :  { %7065 = vmatprep.subr.bf16.mxu1 %v10692_v59  ;;  %v1897_v5 = vld [vmem:[#allocation9 + $0x15f8] sm:$0xff] }
 0x49f   :  { %v10740_v45 = vcombine.high %v1893_v52, %v1897_v5  ;;  %v10739_v54 = vcombine.low %v1893_v52, %v1897_v5  ;;  %v1940_v5 = vld [vmem:[#allocation9 + $0x1750] sm:$0xff] }
 0x4a0   :  { %6748 = vmatpush1.bf16.msra.mxu0 %v10689_v23  ;;  %v1904_v23 = vld [vmem:[#allocation9 + $0x1630] sm:$0xff] }
 0x4a1   :  { %7066 = vmatpush1.bf16.msra.mxu1 %v10691_v26  ;;  %6749 = vmatprep.subr.bf16.mxu0 %v10698_v4  ;;  %v1901_v26 = vld [vmem:[#allocation9 + $0x1618] sm:$0xff]  ;;  %v10746_v36 = vcombine.high %v1900_v49, %v1904_v23 }
 0x4a2   :  { %6735 = vmatmul.mubr.bf16.gmra.mrb[40].mxu0 %v13038_v2  ;;  %7067 = vmatprep.subr.bf16.mxu1 %v10700_v34  ;;  %v1905_v4 = vld [vmem:[#allocation9 + $0x1638] sm:$0xff]  ;;  %v10737_v34 = vcombine.low %v1892_v60, %v1896_v37 }
 0x4a3   :  { %7053 = vmatmul.mubr.bf16.gmra.mrb[48].mxu1 %v13038_v2  ;;  %6777 = vmatprep.mubr.bf16.mxu0 %v13130_v48  ;;  %v10713_v2 = vcombine.low %v1868_v19, %v1872_v41  ;;  %v10748_v8 = vcombine.high %v1901_v26, %v1905_v4  ;;  %v10747_v19 = vcombine.low %v1901_v26, %v1905_v4  ;;  %v1948_v4 = vld [vmem:[#allocation9 + $0x1790] sm:$0xff] }
 0x4a4   :  { %6750 = vmatpush1.bf16.msra.mxu0 %v10697_v6  ;;  %7095 = vmatprep.mubr.bf16.mxu1 %v13130_v48  ;;  %v1884_v48 = vld [vmem:[#allocation9 + $0x1590] sm:$0xff] }
 0x4a5   :  { %7068 = vmatpush1.bf16.msra.mxu1 %v10699_v58  ;;  %6751 = vmatprep.subr.bf16.mxu0 %v10706_v29  ;;  %v10730_v22 = vcombine.high %v1884_v48, %v1888_v33  ;;  %v10729_v59 = vcombine.low %v1884_v48, %v1888_v33  ;;  %v1912_v6 = vld [vmem:[#allocation9 + $0x1670] sm:$0xff]  ;;  %v1909_v58 = vld [vmem:[#allocation9 + $0x1658] sm:$0xff] }
 0x4a6   :  { %7069 = vmatprep.subr.bf16.mxu1 %v10708_v63  ;;  %v1913_v29 = vld [vmem:[#allocation9 + $0x1678] sm:$0xff]  ;;  %v10745_v63 = vcombine.low %v1900_v49, %v1904_v23  ;;  %v10754_v41 = vcombine.high %v1908_v46, %v1912_v6 }
 0x4a7   :  { %v10756_v55 = vcombine.high %v1909_v58, %v1913_v29  ;;  %v10755_v51 = vcombine.low %v1909_v58, %v1913_v29  ;;  %v1956_v29 = vld [vmem:[#allocation9 + $0x17d0] sm:$0xff] }
 0x4a8   :  { %6752 = vmatpush1.bf16.msra.mxu0 %v10705_v61  ;;  %v1920_v61 = vld [vmem:[#allocation9 + $0x16b0] sm:$0xff] }
 0x4a9   :  { %7070 = vmatpush1.bf16.msra.mxu1 %v10707_v18  ;;  %6753 = vmatprep.subr.bf16.mxu0 %v10714_v57  ;;  %v1917_v18 = vld [vmem:[#allocation9 + $0x1698] sm:$0xff]  ;;  %v10762_v47 = vcombine.high %v1916_v44, %v1920_v61 }
 0x4aa   :  { %7071 = vmatprep.subr.bf16.mxu1 %v10716_v25  ;;  %v1921_v57 = vld [vmem:[#allocation9 + $0x16b8] sm:$0xff]  ;;  %v10753_v25 = vcombine.low %v1908_v46, %v1912_v6 }
 0x4ab   :  { %v10764_v15 = vcombine.high %v1917_v18, %v1921_v57  ;;  %v10763_v48 = vcombine.low %v1917_v18, %v1921_v57 }
 0x4ac   :  { %6754 = vmatpush1.bf16.msra.mxu0 %v10713_v2  ;;  %v1928_v2 = vld [vmem:[#allocation9 + $0x16f0] sm:$0xff] }
 0x4ad   :  { %7072 = vmatpush1.bf16.msra.mxu1 %v10715_v17  ;;  %6755 = vmatprep.subr.bf16.mxu0 %v10722_v21  ;;  %v1925_v17 = vld [vmem:[#allocation9 + $0x16d8] sm:$0xff]  ;;  %v10770_v33 = vcombine.high %v1924_v0, %v1928_v2 }
 0x4ae   :  { %7073 = vmatprep.subr.bf16.mxu1 %v10724_v14  ;;  %v1929_v21 = vld [vmem:[#allocation9 + $0x16f8] sm:$0xff]  ;;  %v10761_v14 = vcombine.low %v1916_v44, %v1920_v61 }
 0x4af   :  { %v10772_v3 = vcombine.high %v1925_v17, %v1929_v21  ;;  %v10771_v60 = vcombine.low %v1925_v17, %v1929_v21  ;;  %v11680_v17 = vld [vmem:[#allocation12 + $0x1c8] sm:$0xff]  }
 0x4b0   :  { %6756 = vmatpush1.bf16.msra.mxu0 %v10721_v40  ;;  %v1936_v40 = vld [vmem:[#allocation9 + $0x1730] sm:$0xff] }
 0x4b1   :  { %7074 = vmatpush1.bf16.msra.mxu1 %v10723_v39  ;;  %6757 = vmatprep.subr.bf16.mxu0 %v10730_v22  ;;  %v1933_v39 = vld [vmem:[#allocation9 + $0x1718] sm:$0xff]  ;;  %v10778_v37 = vcombine.high %v1932_v13, %v1936_v40  ;;  %v11681_v21 = vld [vmem:[#allocation12 + $0x108] sm:$0xff]  }
 0x4b2   :  { %7075 = vmatprep.subr.bf16.mxu1 %v10732_v28  ;;  %v1937_v22 = vld [vmem:[#allocation9 + $0x1738] sm:$0xff]  ;;  %v10769_v28 = vcombine.low %v1924_v0, %v1928_v2  ;;  %v11678_v0 = vld [vmem:[#allocation12 + $0x180] sm:$0xff]   ;;  %v11679_v2 = vld [vmem:[#allocation12 + $0x148] sm:$0xff]  }
 0x4b3   :  { %v10780_v52 = vcombine.high %v1933_v39, %v1937_v22  ;;  %v10779_v49 = vcombine.low %v1933_v39, %v1937_v22  ;;  %v11691_v39 = vld [vmem:[#allocation12 + $0x160] sm:$0xff]  }
 0x4b4   :  { %6758 = vmatpush1.bf16.msra.mxu0 %v10729_v59  ;;  %v1944_v59 = vld [vmem:[#allocation9 + $0x1770] sm:$0xff]  ;;  %v11692_v22 = vld [vmem:[#allocation12 + $0x1e0] sm:$0xff]  }
 0x4b5   :  { %7076 = vmatpush1.bf16.msra.mxu1 %v10731_v30  ;;  %6759 = vmatprep.subr.bf16.mxu0 %v10738_v1  ;;  %v1941_v30 = vld [vmem:[#allocation9 + $0x1758] sm:$0xff]  ;;  %v10786_v23 = vcombine.high %v1940_v5, %v1944_v59 }
 0x4b6   :  { %7077 = vmatprep.subr.bf16.mxu1 %v10740_v45  ;;  %v1945_v1 = vld [vmem:[#allocation9 + $0x1778] sm:$0xff]  ;;  %v10777_v45 = vcombine.low %v1932_v13, %v1936_v40  ;;  %v11689_v13 = vld [vmem:[#allocation12 + $0x118] sm:$0xff]  }
 0x4b7   :  { %v10788_v26 = vcombine.high %v1941_v30, %v1945_v1  ;;  %v10787_v46 = vcombine.low %v1941_v30, %v1945_v1  ;;  %v11690_v40 = vld [vmem:[#allocation12 + $0x198] sm:$0xff]   ;;  %v11699_v30 = vld [vmem:[#allocation12 + $0x170] sm:$0xff]  }
 0x4b8   :  { %6760 = vmatpush1.bf16.msra.mxu0 %v10737_v34  ;;  %v1952_v34 = vld [vmem:[#allocation9 + $0x17b0] sm:$0xff]  ;;  %v11700_v1 = vld [vmem:[#allocation12 + $0x1f0] sm:$0xff]  }
 0x4b9   :  { %7078 = vmatpush1.bf16.msra.mxu1 %v10739_v54  ;;  %6761 = vmatprep.subr.bf16.mxu0 %v10746_v36  ;;  %v1949_v54 = vld [vmem:[#allocation9 + $0x1798] sm:$0xff]  ;;  %v10794_v6 = vcombine.high %v1948_v4, %v1952_v34 }
 0x4ba   :  { %7079 = vmatprep.subr.bf16.mxu1 %v10748_v8  ;;  %v1953_v36 = vld [vmem:[#allocation9 + $0x17b8] sm:$0xff]  ;;  %v10785_v8 = vcombine.low %v1940_v5, %v1944_v59  ;;  %v11697_v5 = vld [vmem:[#allocation12 + $0x128] sm:$0xff]  }
 0x4bb   :  { %v10796_v58 = vcombine.high %v1949_v54, %v1953_v36  ;;  %v10795_v44 = vcombine.low %v1949_v54, %v1953_v36  ;;  %v11698_v59 = vld [vmem:[#allocation12 + $0x1a8] sm:$0xff]   ;;  %v11715_v54 = vld [vmem:[#allocation12 + $0x40] sm:$0xff]  }
 0x4bc   :  { %6762 = vmatpush1.bf16.msra.mxu0 %v10745_v63  ;;  %v1960_v63 = vld [vmem:[#allocation9 + $0x17f0] sm:$0xff]  ;;  %v11716_v36 = vld [vmem:[#allocation12 + $0xc0] sm:$0xff]  }
 0x4bd   :  { %7080 = vmatpush1.bf16.msra.mxu1 %v10747_v19  ;;  %6763 = vmatprep.subr.bf16.mxu0 %v10754_v41  ;;  %v1957_v19 = vld [vmem:[#allocation9 + $0x17d8] sm:$0xff]  ;;  %v10802_v61 = vcombine.high %v1956_v29, %v1960_v63  ;;  %v10801_v57 = vcombine.low %v1956_v29, %v1960_v63 }
 0x4be   :  { %7081 = vmatprep.subr.bf16.mxu1 %v10756_v55  ;;  %v1961_v41 = vld [vmem:[#allocation9 + $0x17f8] sm:$0xff]  ;;  %v10793_v55 = vcombine.low %v1948_v4, %v1952_v34  ;;  %v11705_v4 = vld [vmem:[#allocation12 + $0x138] sm:$0xff]  }
 0x4bf   :  { %v10804_v18 = vcombine.high %v1957_v19, %v1961_v41  ;;  %v11706_v34 = vld [vmem:[#allocation12 + $0x1b8] sm:$0xff]  }
 0x4c0   :  { %6764 = vmatpush1.bf16.msra.mxu0 %v10753_v25  ;;  %v10803_v25 = vcombine.low %v1957_v19, %v1961_v41 }
 0x4c1   :  { %7082 = vmatpush1.bf16.msra.mxu1 %v10755_v51  ;;  %6765 = vmatprep.subr.bf16.mxu0 %v10762_v47  ;;  %v11675_v51 = vld [vmem:[#allocation12 + $0x140] sm:$0xff]  }
 0x4c2   :  { %7083 = vmatprep.subr.bf16.mxu1 %v10764_v15  ;;  %v11676_v47 = vld [vmem:[#allocation12 + $0x1c0] sm:$0xff]  }
 0x4c3   :  { %v11677_v15 = vld [vmem:[#allocation12 + $0x100] sm:$0xff]  }
 0x4c4   :  { %6766 = vmatpush1.bf16.msra.mxu0 %v10761_v14  ;;  %v11684_v14 = vld [vmem:[#allocation12 + $0x1d0] sm:$0xff]  }
 0x4c5   :  { %7084 = vmatpush1.bf16.msra.mxu1 %v10763_v48  ;;  %6767 = vmatprep.subr.bf16.mxu0 %v10770_v33  ;;  %v11685_v48 = vld [vmem:[#allocation12 + $0x110] sm:$0xff]   ;;  %v11687_v33 = vld [vmem:[#allocation12 + $0x158] sm:$0xff]  }
 0x4c6   :  { %7085 = vmatprep.subr.bf16.mxu1 %v10772_v3  ;;  %v11688_v3 = vld [vmem:[#allocation12 + $0x1d8] sm:$0xff]  }
 0x4c8   :  { %6768 = vmatpush1.bf16.msra.mxu0 %v10769_v28  ;;  %v11693_v28 = vld [vmem:[#allocation12 + $0x120] sm:$0xff]  }
 0x4c9   :  { %7086 = vmatpush1.bf16.msra.mxu1 %v10771_v60  ;;  %6769 = vmatprep.subr.bf16.mxu0 %v10778_v37  ;;  %v11694_v60 = vld [vmem:[#allocation12 + $0x1a0] sm:$0xff]   ;;  %v11695_v37 = vld [vmem:[#allocation12 + $0x168] sm:$0xff]  }
 0x4ca   :  { %7087 = vmatprep.subr.bf16.mxu1 %v10780_v52  ;;  %v11696_v52 = vld [vmem:[#allocation12 + $0x1e8] sm:$0xff]  }
 0x4cc   :  { %6770 = vmatpush1.bf16.msra.mxu0 %v10777_v45  ;;  %v11701_v45 = vld [vmem:[#allocation12 + $0x130] sm:$0xff]  }
 0x4cd   :  { %7088 = vmatpush1.bf16.msra.mxu1 %v10779_v49  ;;  %6771 = vmatprep.subr.bf16.mxu0 %v10786_v23  ;;  %v11702_v49 = vld [vmem:[#allocation12 + $0x1b0] sm:$0xff]   ;;  %v11703_v23 = vld [vmem:[#allocation12 + $0x178] sm:$0xff]  }
 0x4ce   :  { %7089 = vmatprep.subr.bf16.mxu1 %v10788_v26  ;;  %v11704_v26 = vld [vmem:[#allocation12 + $0x1f8] sm:$0xff]  }
 0x4d0   :  { %6772 = vmatpush1.bf16.msra.mxu0 %v10785_v8  ;;  %v1962_v8 = vld [vmem:[#allocation10] sm:$0xff] }
 0x4d1   :  { %7090 = vmatpush1.bf16.msra.mxu1 %v10787_v46  ;;  %6773 = vmatprep.subr.bf16.mxu0 %v10794_v6  ;;  %v13699_v46 = vld [vmem:[#allocation22_spill] sm:$0xff] }
 0x4d2   :  { %7091 = vmatprep.subr.bf16.mxu1 %v10796_v58  ;;  %v13700_v6 = vsub.s32 0, %v13699_v46  ;;  %v13701_v29 = vsub.s32 2, %v13699_v46  ;;  %v13702_v19 = vsub.s32 1, %v13699_v46 }
 0x4d4   :  { %6774 = vmatpush1.bf16.msra.mxu0 %v10793_v55  ;;  %v1967_v58 = vrot.slane %v1962_v8, %v13700_v6  ;;  %v1975_v63 = vrot.slane %v1962_v8, %v13701_v29  ;;  %v1971_v41 = vrot.slane %v1962_v8, %v13702_v19  ;;  %v13703_v55 = vsub.s32 3, %v13699_v46 }
 0x4d5   :  { %7092 = vmatpush1.bf16.msra.mxu1 %v10795_v44  ;;  %6775 = vmatprep.subr.bf16.mxu0 %v10802_v61 }
 0x4d6   :  { %7093 = vmatprep.subr.bf16.mxu1 %v10804_v18  ;;  %v1979_v44 = vrot.slane %v1962_v8, %v13703_v55  ;;  %v11428_v61 = vadd.f32 %v13232_v53, %v1967_v58  ;;  %v11436_v18 = vadd.f32 %v13234_v43, %v1975_v63  ;;  %v13306_v53 = vadd.f32 %v13250_v10, %v1975_v63 }
 0x4d7   :  { %v13704_v43 = vsub.s32 4, %v13699_v46 }
 0x4d8   :  { %6776 = vmatpush1.bf16.msra.mxu0 %v10801_v57  ;;  %v11429_v57 = vadd.f32 %v13236_v31, %v1971_v41 }
 0x4d9   :  { %7094 = vmatpush1.bf16.msra.mxu1 %v10803_v25  ;;  %11079 = vmatprep.subr.bf16.mxu0 %v11675_v51  ;;  %v11437_v25 = vadd.f32 %v13238_v32, %v1979_v44  ;;  %v11430_v51 = vadd.f32 %v13240_v7, %v1967_v58  ;;  %v13310_v31 = vrot.slane %v1962_v8, %v13704_v43  ;;  %v7118_v32 = vmax.f32 %v11436_v18, 0.0 }
 0x4da   :  { %11101 = vmatprep.subr.bf16.mxu1 %v11676_v47  ;;  %v11438_v47 = vadd.f32 %v13242_v9, %v1975_v63  ;;  %v13313_v7 = vadd.f32 %v13252_v42, %v1971_v41  ;;  %v13705_v9 = vsub.s32 6, %v13699_v46 }
 0x4db   :  { %6778 = vmatmul.mubr.bf16.vlgmr.msra.gmra.mrb[36].mxu0 %v13133_v24  ;;  %v7124_v10 = vmax.f32 %v11430_v51, 0.0 }
 0x4dc   :  { %7096 = vmatmul.mubr.bf16.vlgmr.msra.gmra.mrb[44].mxu1 %v13133_v24  ;;  %6787 = vmatprep.mubr.bf16.mxu0 %v13143_v56  ;;  %v11682_v24 = vld [vmem:[#allocation12 + $0x188] sm:$0xff]  }
 0x4dd   :  { %7105 = vmatprep.mubr.bf16.mxu1 %v13143_v56  ;;  %11080 = vmatpush3.bf16.msra.mxu0 %v11677_v15  ;;  %v11683_v56 = vld [vmem:[#allocation12 + $0x150] sm:$0xff]   ;;  %v11431_v15 = vadd.f32 %v13244_v11, %v1971_v41  ;;  %v13317_v11 = vrot.slane %v1962_v8, %v13705_v9 }
 0x4de   :  { %11102 = vmatpush3.bf16.msra.mxu1 %v11678_v0  ;;  %11081 = vmatprep.subr.bf16.mxu0 %v11679_v2  ;;  %v11439_v0 = vadd.f32 %v13246_v20, %v1979_v44  ;;  %v13303_v2 = vadd.f32 %v13248_v16, %v1967_v58  ;;  %v13706_v20 = vsub.s32 5, %v13699_v46 }
 0x4df   :  { %11103 = vmatprep.subr.bf16.mxu1 %v11680_v17  ;;  %v7116_v17 = vmax.f32 %v11428_v61, 0.0 }
 0x4e0   :  { %v13321_v16 = vrot.slane %v1962_v8, %v13706_v20  ;;  %v7132_v42 = vmax.f32 %v13303_v2, 0.0 }
 0x4e1   :  { %11082 = vmatpush3.bf16.msra.mxu0 %v11681_v21  ;;  %v7117_v21 = vmax.f32 %v11429_v57, 0.0 }
 0x4e2   :  { %11104 = vmatpush3.bf16.msra.mxu1 %v11682_v24  ;;  %11083 = vmatprep.subr.bf16.mxu0 %v11683_v56  ;;  %v7119_v24 = vmax.f32 %v11437_v25, 0.0  ;;  %v13707_v56 = vsub.s32 7, %v13699_v46  ;;  %v11443_v25 = vadd.f32 %v13262_v38, %v1979_v44 }
 0x4e3   :  { %6788 = vmatmul.mubr.bf16.gmra.mrb[40].mxu0 %v13145_v27  ;;  %11105 = vmatprep.subr.bf16.mxu1 %v11684_v14 }
 0x4e4   :  { %7106 = vmatmul.mubr.bf16.gmra.mrb[48].mxu1 %v13145_v27  ;;  %v11686_v27 = vld [vmem:[#allocation12 + $0x190] sm:$0xff]   ;;  %v13325_v14 = vrot.slane %v1962_v8, %v13707_v56 }
 0x4e5   :  { %11084 = vmatpush3.bf16.msra.mxu0 %v11685_v48  ;;  %v7126_v48 = vmax.f32 %v11438_v47, 0.0 }
 0x4e6   :  { %11106 = vmatpush3.bf16.msra.mxu1 %v11686_v27  ;;  %11085 = vmatprep.subr.bf16.mxu0 %v11687_v33  ;;  %v7125_v27 = vmax.f32 %v11431_v15, 0.0  ;;  %v7127_v33 = vmax.f32 %v11439_v0, 0.0 }
 0x4e7   :  { %11107 = vmatprep.subr.bf16.mxu1 %v11688_v3 }
 0x4e9   :  { %11086 = vmatpush3.bf16.msra.mxu0 %v11689_v13  ;;  %v7134_v13 = vmax.f32 %v13306_v53, 0.0 }
 0x4ea   :  { %11108 = vmatpush3.bf16.msra.mxu1 %v11690_v40  ;;  %11087 = vmatprep.subr.bf16.mxu0 %v11691_v39  ;;  %v13330_v40 = vadd.f32 %v13254_v12, %v1979_v44  ;;  %v13333_v39 = vadd.f32 %v13256_v35, %v1967_v58  ;;  %v13343_v12 = vadd.f32 %v13260_v62, %v1971_v41 }
 0x4eb   :  { %11109 = vmatprep.subr.bf16.mxu1 %v11692_v22 }
 0x4ec   :  { %v7135_v41 = vmax.f32 %v13330_v40, 0.0  ;;  %v7140_v57 = vmax.f32 %v13333_v39, 0.0  ;;  %v7141_v2 = vmax.f32 %v13343_v12, 0.0 }
 0x4ed   :  { %11088 = vmatpush3.bf16.msra.mxu0 %v11693_v28 }
 0x4ee   :  { %11110 = vmatpush3.bf16.msra.mxu1 %v11694_v60  ;;  %11089 = vmatprep.subr.bf16.mxu0 %v11695_v37  ;;  %v7133_v37 = vmax.f32 %v13313_v7, 0.0 }
 0x4ef   :  { %11111 = vmatprep.subr.bf16.mxu1 %v11696_v52  ;;  %v13338_v52 = vadd.f32 %v13258_v50, %v1975_v63 }
 0x4f1   :  { %11090 = vmatpush3.bf16.msra.mxu0 %v11697_v5  ;;  %v7142_v0 = vmax.f32 %v13338_v52, 0.0 }
 0x4f2   :  { %11112 = vmatpush3.bf16.msra.mxu1 %v11698_v59  ;;  %11091 = vmatprep.subr.bf16.mxu0 %v11699_v30 }
 0x4f3   :  { %11113 = vmatprep.subr.bf16.mxu1 %v11700_v1 }
 0x4f5   :  { %11092 = vmatpush3.bf16.msra.mxu0 %v11701_v45 }
 0x4f6   :  { %11114 = vmatpush3.bf16.msra.mxu1 %v11702_v49  ;;  %11093 = vmatprep.subr.bf16.mxu0 %v11703_v23 }
 0x4f7   :  { %11115 = vmatprep.subr.bf16.mxu1 %v11704_v26 }
 0x4f9   :  { %11094 = vmatpush3.bf16.msra.mxu0 %v11705_v4 }
 0x4fa   :  { %11116 = vmatpush3.bf16.msra.mxu1 %v11706_v34  ;;  %11123 = vmatprep.subr.bf16.mxu0 %v11715_v54 }
 0x4fb   :  { %11145 = vmatprep.subr.bf16.mxu1 %v11716_v36 }
 0x5ae   :  { %v6779_v3 = vpop.f32.mrb[36].mxu0 }
 0x5af   :  { %v11444_v22 = vadd.f32 %v6779_v3, %v13310_v31  ;;  %v7097_v28 = vpop.f32.mrb[44].mxu1  ;;  %v6781_v60 = vpop.f32.mrb[37].mxu0 }
 0x5b0   :  { %v11452_v5 = vadd.f32 %v7097_v28, %v13317_v11  ;;  %v11445_v59 = vadd.f32 %v6781_v60, %v13321_v16  ;;  %v7099_v30 = vpop.f32.mrb[45].mxu1  ;;  %v6783_v1 = vpop.f32.mrb[38].mxu0 }
 0x5b1   :  { %v7120_v35 = vmax.f32 %v11444_v22, 0.0  ;;  %v11453_v45 = vadd.f32 %v7099_v30, %v13325_v14  ;;  %v11446_v49 = vadd.f32 %v6783_v1, %v13310_v31  ;;  %v7101_v23 = vpop.f32.mrb[46].mxu1  ;;  %v6785_v26 = vpop.f32.mrb[39].mxu0 }
 0x5b2   :  { %v7122_v4 = vmax.f32 %v11452_v5, 0.0  ;;  %v7121_v34 = vmax.f32 %v11445_v59, 0.0  ;;  %v11454_v50 = vadd.f32 %v7101_v23, %v13317_v11  ;;  %v11447_v54 = vadd.f32 %v6785_v26, %v13321_v16  ;;  %v7103_v36 = vpop.f32.mrb[47].mxu1 }
 0x5b3   :  { %v7148_v8 = vmax.f32 %v7116_v17, %v7120_v35  ;;  %v7123_v46 = vmax.f32 %v11453_v45, 0.0  ;;  %v7128_v6 = vmax.f32 %v11446_v49, 0.0  ;;  %v11455_v62 = vadd.f32 %v7103_v36, %v13325_v14 }
 0x5b4   :  { %v7150_v58 = vmax.f32 %v7118_v32, %v7122_v4  ;;  %v7149_v29 = vmax.f32 %v7117_v21, %v7121_v34  ;;  %v7130_v63 = vmax.f32 %v11454_v50, 0.0  ;;  %v7129_v19 = vmax.f32 %v11447_v54, 0.0 }
 0x5b5   :  { %v7151_v55 = vmax.f32 %v7119_v24, %v7123_v46  ;;  %v7152_v61 = vmax.f32 %v7124_v10, %v7128_v6  ;;  %v7131_v18 = vmax.f32 %v11455_v62, 0.0  ;;  %v7143_v50 = vmax.f32 %v11443_v25, 0.0 }
 0x5b6   :  { %v7154_v51 = vmax.f32 %v7126_v48, %v7130_v63  ;;  %v7153_v47 = vmax.f32 %v7125_v27, %v7129_v19  ;;  %v6789_v15 = vpop.f32.mrb[40].mxu0 }
 0x5b7   :  { %v7164_v17 = vmax.f32 %v7148_v8, %v7152_v61  ;;  %v7155_v43 = vmax.f32 %v7127_v33, %v7131_v18  ;;  %v11448_v32 = vadd.f32 %v6789_v15, %v13310_v31  ;;  %v7107_v9 = vpop.f32.mrb[48].mxu1  ;;  %v6791_v20 = vpop.f32.mrb[41].mxu0 }
 0x5b8   :  { %v7166_v21 = vmax.f32 %v7150_v58, %v7154_v51  ;;  %v7165_v56 = vmax.f32 %v7149_v29, %v7153_v47  ;;  %v11456_v24 = vadd.f32 %v7107_v9, %v13317_v11  ;;  %v11449_v10 = vadd.f32 %v6791_v20, %v13321_v16  ;;  %v7109_v3 = vpop.f32.mrb[49].mxu1  ;;  %v6793_v40 = vpop.f32.mrb[42].mxu0 }
 0x5b9   :  { %v7167_v38 = vmax.f32 %v7151_v55, %v7155_v43  ;;  %v7136_v44 = vmax.f32 %v11448_v32, 0.0  ;;  %v11457_v48 = vadd.f32 %v7109_v3, %v13325_v14  ;;  %v11450_v27 = vadd.f32 %v6793_v40, %v13310_v31  ;;  %v7111_v39 = vpop.f32.mrb[50].mxu1  ;;  %v6795_v33 = vpop.f32.mrb[43].mxu0 }
 0x5ba   :  { %v11075_v22 = vpack.c.bf16 %v7165_v56, %v7164_v17  ;;  %v7138_v28 = vmax.f32 %v11456_v24, 0.0  ;;  %v7137_v60 = vmax.f32 %v11449_v10, 0.0  ;;  %v11458_v52 = vadd.f32 %v7111_v39, %v13317_v11  ;;  %v7113_v5 = vpop.f32.mrb[51].mxu1 }
 0x5bb   :  { %v11076_v59 = vpack.c.bf16 %v7167_v38, %v7166_v21  ;;  %v7156_v30 = vmax.f32 %v7132_v42, %v7136_v44  ;;  %v7139_v1 = vmax.f32 %v11457_v48, 0.0  ;;  %v7144_v35 = vmax.f32 %v11450_v27, 0.0  ;;  %v11717_v48 = vld [vmem:[#allocation12] sm:$0xff]  }
 0x5bc   :  { %7204 = vst [vmem:[#allocation3] sm:$0xff] %v11075_v22  ;;  %v7158_v45 = vmax.f32 %v7134_v13, %v7138_v28  ;;  %v7157_v31 = vmax.f32 %v7133_v37, %v7137_v60  ;;  %v7146_v49 = vmax.f32 %v11458_v52, 0.0  ;;  %v11451_v23 = vadd.f32 %v6795_v33, %v13321_v16  ;;  %v11718_v33 = vld [vmem:[#allocation12 + $0x80] sm:$0xff]   ;;  %v11719_v52 = vld [vmem:[#allocation12 + $0x48] sm:$0xff]  }
 0x5bd   :  { %7205 = vst [vmem:[#allocation3 + $0x8] sm:$0xff] %v11076_v59  ;;  %v7159_v26 = vmax.f32 %v7135_v41, %v7139_v1  ;;  %v7160_v11 = vmax.f32 %v7140_v57, %v7144_v35  ;;  %v11459_v4 = vadd.f32 %v7113_v5, %v13325_v14  ;;  %v11720_v59 = vld [vmem:[#allocation12 + $0xc8] sm:$0xff]  }
 0x5be   :  { %v7162_v42 = vmax.f32 %v7142_v0, %v7146_v49  ;;  %v7145_v34 = vmax.f32 %v11451_v23, 0.0  ;;  %v11721_v1 = vld [vmem:[#allocation12 + $0x8] sm:$0xff]   ;;  %v11725_v49 = vld [vmem:[#allocation12 + $0x10] sm:$0xff]  }
 0x5bf   :  { %v7168_v54 = vmax.f32 %v7156_v30, %v7160_v11  ;;  %v7147_v36 = vmax.f32 %v11459_v4, 0.0  ;;  %v11722_v35 = vld [vmem:[#allocation12 + $0x88] sm:$0xff]   ;;  %v11726_v23 = vld [vmem:[#allocation12 + $0x90] sm:$0xff]   ;;  %v11728_v11 = vld [vmem:[#allocation12 + $0xd8] sm:$0xff]  }
 0x5c0   :  { %v7170_v53 = vmax.f32 %v7158_v45, %v7162_v42  ;;  %v7161_v13 = vmax.f32 %v7141_v2, %v7145_v34  ;;  %v11723_v45 = vld [vmem:[#allocation12 + $0x50] sm:$0xff]   ;;  %v11729_v4 = vld [vmem:[#allocation12 + $0x18] sm:$0xff]   ;;  %v11731_v42 = vld [vmem:[#allocation12 + $0x60] sm:$0xff]  }
 0x5c1   :  { %v7163_v8 = vmax.f32 %v7143_v50, %v7147_v36  ;;  %v11730_v2 = vld [vmem:[#allocation12 + $0x98] sm:$0xff]   ;;  %v11732_v34 = vld [vmem:[#allocation12 + $0xe0] sm:$0xff]   ;;  %v11735_v36 = vld [vmem:[#allocation12 + $0x68] sm:$0xff]  }
 0x5c2   :  { %v7169_v7 = vmax.f32 %v7157_v31, %v7161_v13  ;;  %v11724_v31 = vld [vmem:[#allocation12 + $0xd0] sm:$0xff]   ;;  %v11733_v50 = vld [vmem:[#allocation12 + $0x20] sm:$0xff]   ;;  %v11736_v13 = vld [vmem:[#allocation12 + $0xe8] sm:$0xff]  }
 0x5c3   :  { %v7171_v37 = vmax.f32 %v7159_v26, %v7163_v8  ;;  %v7208_v16 = vld [vmem:[#allocation3] sm:$0x11]  ;;  %v11727_v26 = vld [vmem:[#allocation12 + $0x58] sm:$0xff]  }
 0x5c4   :  { %v11077_v46 = vpack.c.bf16 %v7169_v7, %v7168_v54  ;;  %v7209_v62 = vld [vmem:[#allocation3 + $0x8] sm:$0x11]  ;;  %v10809_v58 = vcombine.low %v7208_v16, %v7208_v16  ;;  %v10810_v14 = vcombine.high %v7208_v16, %v7208_v16  ;;  %v11734_v54 = vld [vmem:[#allocation12 + $0xa0] sm:$0xff]   ;;  %v13391_v7 = vld [vmem:[#allocation3] sm:$0x22] }
 0x5c5   :  { %v11078_v6 = vpack.c.bf16 %v7171_v37, %v7170_v53  ;;  %v10811_v29 = vcombine.low %v7209_v62, %v7209_v62  ;;  %v10812_v12 = vcombine.high %v7209_v62, %v7209_v62  ;;  %v11737_v37 = vld [vmem:[#allocation12 + $0x28] sm:$0xff]   ;;  %v11739_v62 = vld [vmem:[#allocation12 + $0x70] sm:$0xff]  }
 0x5c6   :  { %7206 = vst [vmem:[#allocation3 + $0x10] sm:$0xff] %v11077_v46  ;;  %v13369_v63 = vunpack.c.l.b16 %v10809_v58  ;;  %v7362_v19 = vunpack.c.l.b16 %v10810_v14  ;;  %v11738_v16 = vld [vmem:[#allocation12 + $0xa8] sm:$0xff]   ;;  %v11740_v14 = vld [vmem:[#allocation12 + $0xf0] sm:$0xff]  }
 0x5c7   :  { %7207 = vst [vmem:[#allocation3 + $0x18] sm:$0xff] %v11078_v6  ;;  %v13371_v55 = vunpack.c.l.b16 %v10811_v29  ;;  %v7364_v61 = vunpack.c.l.b16 %v10812_v12  ;;  %v13395_v6 = vld [vmem:[#allocation3 + $0x8] sm:$0x22]  ;;  %v10882_v29 = vcombine.high %v13391_v7, %v13391_v7 }
 0x5c8   :  { %v7369_v17 = vrot.slane %v13369_v63, 1  ;;  %v7372_v43 = vrot.slane %v7362_v19, 1  ;;  %v10884_v12 = vcombine.high %v13395_v6, %v13395_v6 }
 0x5c9   :  { %v7374_v20 = vrot.slane %v13371_v55, 1  ;;  %v7376_v21 = vrot.slane %v7364_v61, 1 }
 0x5cd   :  { %v7210_v41 = vld [vmem:[#allocation3 + $0x10] sm:$0x11]  ;;  %v13387_v53 = vld [vmem:[#allocation3 + $0x10] sm:$0x22] }
 0x5ce   :  { %v10813_v18 = vcombine.low %v7210_v41, %v7210_v41  ;;  %v10814_v57 = vcombine.high %v7210_v41, %v7210_v41  ;;  %v7211_v25 = vld [vmem:[#allocation3 + $0x18] sm:$0x11]  ;;  %v13389_v8 = vld [vmem:[#allocation3 + $0x18] sm:$0x22]  ;;  %v10886_v46 = vcombine.high %v13387_v53, %v13387_v53 }
 0x5cf   :  { %v10815_v51 = vcombine.low %v7211_v25, %v7211_v25  ;;  %v10816_v47 = vcombine.high %v7211_v25, %v7211_v25  ;;  %v10888_v58 = vcombine.high %v13389_v8, %v13389_v8  ;;  %v11744_v25 = vld [vmem:[#allocation12 + $0xf8] sm:$0xff]  }
 0x5d0   :  { %v13373_v15 = vunpack.c.l.b16 %v10813_v18  ;;  %v7366_v0 = vunpack.c.l.b16 %v10814_v57  ;;  %v13403_v41 = vunpack.c.l.b16 %v10886_v46  ;;  %v11743_v18 = vld [vmem:[#allocation12 + $0x78] sm:$0xff]  }
 0x5d1   :  { %v13376_v32 = vunpack.c.l.b16 %v10815_v51  ;;  %v7368_v9 = vunpack.c.l.b16 %v10816_v47  ;;  %v13405_v57 = vunpack.c.l.b16 %v10888_v58  ;;  %v13408_v47 = vunpack.c.l.b16 %v10882_v29  ;;  %v11782_v58 = vld [vmem:[#allocation12 + $0x2b0] sm:$0xff]  }
 0x5d2   :  { %v7373_v56 = vsel %vm7370_vm5, %v7366_v0, %v7372_v43  ;;  %v7371_v24 = vsel %vm7370_vm5, %v13373_v15, %v7369_v17  ;;  %v7660_v10 = vrot.slane %v7366_v0, 7  ;;  %v7658_v51 = vrot.slane %v13373_v15, 7  ;;  %v11745_v43 = vld [vmem:[#allocation12 + $0x38] sm:$0xff]  }
 0x5d3   :  { %v7379_v3 = vpack.c.b16 %v7373_v56, %v7373_v56  ;;  %v7377_v40 = vsel %vm7370_vm5, %v7368_v9, %v7376_v21  ;;  %v7378_v38 = vpack.c.b16 %v7371_v24, %v7371_v24  ;;  %v7375_v44 = vsel %vm7370_vm5, %v13376_v32, %v7374_v20  ;;  %v11746_v20 = vld [vmem:[#allocation12 + $0xb8] sm:$0xff]   ;;  %v11747_v21 = vld [vmem:[#allocation12 + $0x240] sm:$0xff]  }
 0x5d4   :  { %v7381_v27 = vpack.c.b16 %v7377_v40, %v7377_v40  ;;  %v7380_v39 = vpack.c.b16 %v7375_v44, %v7375_v44  ;;  %v7661_v22 = vsel %vm7370_vm5, %v7660_v10, %v7362_v19  ;;  %v7664_v28 = vrot.slane %v7368_v9, 7  ;;  %v11741_v19 = vld [vmem:[#allocation12 + $0x30] sm:$0xff]   ;;  %v11748_v24 = vld [vmem:[#allocation12 + $0x2c0] sm:$0xff]  }
 0x5d5   :  { %7610 = vmatprep.mubr.bf16.mxu0 %v7379_v3  ;;  %v7667_v60 = vpack.c.b16 %v7661_v22, %v7661_v22  ;;  %v7662_v0 = vrot.slane %v13376_v32, 7  ;;  %v13411_v17 = vunpack.c.l.b16 %v10884_v12  ;;  %v8047_v9 = vrot.slane %v13403_v41, 1  ;;  %v11749_v40 = vld [vmem:[#allocation12 + $0x200] sm:$0xff]   ;;  %v11760_v22 = vld [vmem:[#allocation12 + $0x2c8] sm:$0xff]  }
 0x5d6   :  { %7650 = vmatprep.mubr.bf16.mxu1 %v7381_v27  ;;  %7611 = vmatmul.mubr.bf16.vlgmr.msra.gmra.mrb[44].mxu0 %v7378_v38  ;;  %v7665_v5 = vsel %vm7370_vm5, %v7664_v28, %v7364_v61  ;;  %v11742_v61 = vld [vmem:[#allocation12 + $0xb0] sm:$0xff]   ;;  %v8053_v56 = vrot.slane %v13405_v57, 1  ;;  %v7659_v15 = vsel %vm7370_vm5, %v7658_v51, %v13369_v63  ;;  %v8046_v10 = vrot.slane %v13408_v47, 2  ;;  %v11759_v63 = vld [vmem:[#allocation12 + $0x248] sm:$0xff]  }
 0x5d7   :  { %7651 = vmatmul.mubr.bf16.vlgmr.msra.gmra.mrb[52].mxu1 %v7380_v39  ;;  %11124 = vmatpush3.bf16.msra.mxu0 %v11717_v48  ;;  %v7669_v30 = vpack.c.b16 %v7665_v5, %v7665_v5  ;;  %v7663_v32 = vsel %vm7370_vm5, %v7662_v0, %v13371_v55  ;;  %v8052_v3 = vrot.slane %v13411_v17, 2  ;;  %v7666_v44 = vpack.c.b16 %v7659_v15, %v7659_v15  ;;  %v11754_v48 = vld [vmem:[#allocation12 + $0x280] sm:$0xff]   ;;  %v11761_v28 = vld [vmem:[#allocation12 + $0x208] sm:$0xff]   ;;  %v11764_v5 = vld [vmem:[#allocation12 + $0x2d0] sm:$0xff]  }
 0x5d8   :  { %11146 = vmatpush3.bf16.msra.mxu1 %v11718_v33  ;;  %7898 = vmatprep.mubr.bf16.mxu0 %v7667_v60  ;;  %v8048_v38 = vsel %vm7370_vm5, %v8047_v9, %v8046_v10  ;;  %v7668_v39 = vpack.c.b16 %v7663_v32, %v7663_v32  ;;  %v11762_v60 = vld [vmem:[#allocation12 + $0x288] sm:$0xff]   ;;  %v11787_v0 = vld [vmem:[#allocation12 + $0x340] sm:$0xff]   ;;  %v8410_v15 = vrot.slane %v13411_v17, 3 }
 0x5d9   :  { %7938 = vmatprep.mubr.bf16.mxu1 %v7669_v30  ;;  %11125 = vmatprep.subr.bf16.mxu0 %v11719_v52  ;;  %v8054_v27 = vsel %vm7370_vm5, %v8053_v56, %v8052_v3  ;;  %v8056_v33 = vpack.c.b16 %v8048_v38, %v8048_v38  ;;  %v11763_v52 = vld [vmem:[#allocation12 + $0x250] sm:$0xff]   ;;  %v11790_v32 = vld [vmem:[#allocation12 + $0x380] sm:$0xff]   ;;  %v11793_v17 = vld [vmem:[#allocation12 + $0x308] sm:$0xff]  }
 0x5da   :  { %11147 = vmatprep.subr.bf16.mxu1 %v11720_v59  ;;  %v8058_v55 = vpack.c.b16 %v8054_v27, %v8054_v27  ;;  %v11765_v59 = vld [vmem:[#allocation12 + $0x210] sm:$0xff]  }
 0x5db   :  { %11126 = vmatpush3.bf16.msra.mxu0 %v11721_v1  ;;  %v11766_v30 = vld [vmem:[#allocation12 + $0x290] sm:$0xff]   ;;  %v11767_v1 = vld [vmem:[#allocation12 + $0x258] sm:$0xff]  }
 0x5dc   :  { %11148 = vmatpush3.bf16.msra.mxu1 %v11722_v35  ;;  %11127 = vmatprep.subr.bf16.mxu0 %v11723_v45  ;;  %v11768_v35 = vld [vmem:[#allocation12 + $0x2d8] sm:$0xff]   ;;  %v11795_v27 = vld [vmem:[#allocation12 + $0x350] sm:$0xff]  }
 0x5dd   :  { %11149 = vmatprep.subr.bf16.mxu1 %v11724_v31  ;;  %v11769_v45 = vld [vmem:[#allocation12 + $0x218] sm:$0xff]  }
 0x5de   :  { %v11770_v31 = vld [vmem:[#allocation12 + $0x298] sm:$0xff]  }
 0x5df   :  { %11128 = vmatpush3.bf16.msra.mxu0 %v11725_v49  ;;  %v11771_v49 = vld [vmem:[#allocation12 + $0x260] sm:$0xff]  }
 0x5e0   :  { %11150 = vmatpush3.bf16.msra.mxu1 %v11726_v23  ;;  %11129 = vmatprep.subr.bf16.mxu0 %v11727_v26  ;;  %v11772_v23 = vld [vmem:[#allocation12 + $0x2e0] sm:$0xff]  }
 0x5e1   :  { %11151 = vmatprep.subr.bf16.mxu1 %v11728_v11  ;;  %v11773_v26 = vld [vmem:[#allocation12 + $0x220] sm:$0xff]  }
 0x5e2   :  { %v11774_v11 = vld [vmem:[#allocation12 + $0x2a0] sm:$0xff]  }
 0x5e3   :  { %11130 = vmatpush3.bf16.msra.mxu0 %v11729_v4  ;;  %v11775_v4 = vld [vmem:[#allocation12 + $0x268] sm:$0xff]  }
 0x5e4   :  { %11152 = vmatpush3.bf16.msra.mxu1 %v11730_v2  ;;  %11131 = vmatprep.subr.bf16.mxu0 %v11731_v42  ;;  %v10885_v2 = vcombine.low %v13387_v53, %v13387_v53  ;;  %v11776_v42 = vld [vmem:[#allocation12 + $0x2e8] sm:$0xff]   ;;  %v11780_v53 = vld [vmem:[#allocation12 + $0x2f0] sm:$0xff]  }
 0x5e5   :  { %11153 = vmatprep.subr.bf16.mxu1 %v11732_v34  ;;  %v10887_v34 = vcombine.low %v13389_v8, %v13389_v8  ;;  %v11781_v8 = vld [vmem:[#allocation12 + $0x230] sm:$0xff]  }
 0x5e6   :  { %v13431_v46 = vunpack.c.l.b16 %v10885_v2  ;;  %v11811_v2 = vld [vmem:[#allocation12 + $0x370] sm:$0xff]  }
 0x5e7   :  { %11132 = vmatpush3.bf16.msra.mxu0 %v11733_v50  ;;  %v10881_v50 = vcombine.low %v13391_v7, %v13391_v7 }
 0x5e8   :  { %11154 = vmatpush3.bf16.msra.mxu1 %v11734_v54  ;;  %11133 = vmatprep.subr.bf16.mxu0 %v11735_v36  ;;  %v11777_v54 = vld [vmem:[#allocation12 + $0x228] sm:$0xff]   ;;  %v10883_v36 = vcombine.low %v13395_v6, %v13395_v6  ;;  %v11783_v6 = vld [vmem:[#allocation12 + $0x278] sm:$0xff]   ;;  %v8044_v29 = vrot.slane %v13431_v46, 1 }
 0x5e9   :  { %11155 = vmatprep.subr.bf16.mxu1 %v11736_v13  ;;  %v11778_v13 = vld [vmem:[#allocation12 + $0x2a8] sm:$0xff]  }
 0x5ea   :  { %v13437_v7 = vunpack.c.l.b16 %v10883_v36  ;;  %v11813_v36 = vld [vmem:[#allocation12 + $0x330] sm:$0xff]  }
 0x5eb   :  { %11134 = vmatpush3.bf16.msra.mxu0 %v11737_v37  ;;  %v11779_v37 = vld [vmem:[#allocation12 + $0x270] sm:$0xff]  }
 0x5ec   :  { %11156 = vmatpush3.bf16.msra.mxu1 %v11738_v16  ;;  %11135 = vmatprep.subr.bf16.mxu0 %v11739_v62  ;;  %v13433_v16 = vunpack.c.l.b16 %v10887_v34  ;;  %v13435_v62 = vunpack.c.l.b16 %v10881_v50  ;;  %v8049_v51 = vrot.slane %v13437_v7, 2  ;;  %v11812_v34 = vld [vmem:[#allocation12 + $0x3f0] sm:$0xff]  }
 0x5ed   :  { %11157 = vmatprep.subr.bf16.mxu1 %v11740_v14  ;;  %v11784_v14 = vld [vmem:[#allocation12 + $0x2f8] sm:$0xff]  }
 0x5ee   :  { %v8050_v12 = vrot.slane %v13433_v16, 1 }
 0x5ef   :  { %11136 = vmatpush3.bf16.msra.mxu0 %v11741_v19  ;;  %v11785_v19 = vld [vmem:[#allocation12 + $0x238] sm:$0xff]  }
 0x5f0   :  { %11158 = vmatpush3.bf16.msra.mxu1 %v11742_v61  ;;  %11137 = vmatprep.subr.bf16.mxu0 %v11743_v18  ;;  %v8043_v61 = vrot.slane %v13435_v62, 2  ;;  %v8405_v18 = vrot.slane %v13403_v41, 2  ;;  %v8051_v56 = vsel %vm7370_vm5, %v8050_v12, %v8049_v51  ;;  %v11789_v41 = vld [vmem:[#allocation12 + $0x300] sm:$0xff]   ;;  %v8407_v51 = vrot.slane %v13437_v7, 3 }
 0x5f1   :  { %11159 = vmatprep.subr.bf16.mxu1 %v11744_v25  ;;  %v11786_v25 = vld [vmem:[#allocation12 + $0x2b8] sm:$0xff]   ;;  %v8057_v3 = vpack.c.b16 %v8051_v56, %v8051_v56  ;;  %v11826_v7 = vld [vmem:[#allocation12 + $0x480] sm:$0xff]  }
 0x5f2   :  { %v8045_v9 = vsel %vm7370_vm5, %v8044_v29, %v8043_v61  ;;  %v8408_v29 = vrot.slane %v13433_v16, 2  ;;  %v8401_v61 = vrot.slane %v13435_v62, 3  ;;  %v11820_v16 = vld [vmem:[#allocation12 + $0x4c0] sm:$0xff]  }
 0x5f3   :  { %11138 = vmatpush3.bf16.msra.mxu0 %v11745_v43  ;;  %v8411_v43 = vrot.slane %v13405_v57, 2  ;;  %v8055_v10 = vpack.c.b16 %v8045_v9, %v8045_v9 }
 0x5f4   :  { %11160 = vmatpush3.bf16.msra.mxu1 %v11746_v20  ;;  %11167 = vmatprep.subr.bf16.mxu0 %v11747_v21  ;;  %v11788_v20 = vld [vmem:[#allocation12 + $0x3c0] sm:$0xff]   ;;  %v8404_v21 = vrot.slane %v13408_v47, 3  ;;  %v11792_v47 = vld [vmem:[#allocation12 + $0x3c8] sm:$0xff]  }
 0x5f5   :  { %11189 = vmatprep.subr.bf16.mxu1 %v11748_v24  ;;  %v8412_v57 = vsel %vm7370_vm5, %v8411_v43, %v8410_v15 }
 0x5f6   :  { %7899 = vmatmul.mubr.bf16.vlgmr.msra.gmra.mrb[48].mxu0 %v7666_v44  ;;  %v8406_v24 = vsel %vm7370_vm5, %v8405_v18, %v8404_v21  ;;  %v8416_v44 = vpack.c.b16 %v8412_v57, %v8412_v57  ;;  %v11821_v21 = vld [vmem:[#allocation12 + $0x400] sm:$0xff]   ;;  %v11832_v57 = vld [vmem:[#allocation12 + $0x4c8] sm:$0xff]  }
 0x5f7   :  { %7939 = vmatmul.mubr.bf16.vlgmr.msra.gmra.mrb[56].mxu1 %v7668_v39  ;;  %11168 = vmatpush3.bf16.msra.mxu0 %v11749_v40  ;;  %v11791_v40 = vld [vmem:[#allocation12 + $0x348] sm:$0xff]   ;;  %v8414_v38 = vpack.c.b16 %v8406_v24, %v8406_v24  ;;  %v11796_v39 = vld [vmem:[#allocation12 + $0x3d0] sm:$0xff]  }
 0x5f8   :  { %8287 = vmatprep.mubr.bf16.mxu0 %v8056_v33  ;;  %11190 = vmatpush3.bf16.msra.mxu1 %v11754_v48  ;;  %v11794_v48 = vld [vmem:[#allocation12 + $0x388] sm:$0xff]   ;;  %v11798_v33 = vld [vmem:[#allocation12 + $0x390] sm:$0xff]  }
 0x5f9   :  { %8327 = vmatprep.mubr.bf16.mxu1 %v8058_v55  ;;  %11169 = vmatprep.subr.bf16.mxu0 %v11759_v63  ;;  %v11797_v63 = vld [vmem:[#allocation12 + $0x310] sm:$0xff]   ;;  %v11800_v55 = vld [vmem:[#allocation12 + $0x3d8] sm:$0xff]  }
 0x5fa   :  { %11191 = vmatprep.subr.bf16.mxu1 %v11760_v22  ;;  %v11799_v22 = vld [vmem:[#allocation12 + $0x358] sm:$0xff]  }
 0x5fb   :  { %11170 = vmatpush3.bf16.msra.mxu0 %v11761_v28  ;;  %v11801_v28 = vld [vmem:[#allocation12 + $0x318] sm:$0xff]  }
 0x5fc   :  { %11192 = vmatpush3.bf16.msra.mxu1 %v11762_v60  ;;  %11171 = vmatprep.subr.bf16.mxu0 %v11763_v52  ;;  %v11802_v60 = vld [vmem:[#allocation12 + $0x398] sm:$0xff]   ;;  %v11803_v52 = vld [vmem:[#allocation12 + $0x360] sm:$0xff]  }
 0x5fd   :  { %11193 = vmatprep.subr.bf16.mxu1 %v11764_v5  ;;  %v11804_v5 = vld [vmem:[#allocation12 + $0x3e0] sm:$0xff]  }
 0x5ff   :  { %11172 = vmatpush3.bf16.msra.mxu0 %v11765_v59  ;;  %v11805_v59 = vld [vmem:[#allocation12 + $0x320] sm:$0xff]  }
 0x600   :  { %11194 = vmatpush3.bf16.msra.mxu1 %v11766_v30  ;;  %11173 = vmatprep.subr.bf16.mxu0 %v11767_v1  ;;  %v11806_v30 = vld [vmem:[#allocation12 + $0x3a0] sm:$0xff]   ;;  %v11807_v1 = vld [vmem:[#allocation12 + $0x368] sm:$0xff]  }
 0x601   :  { %11195 = vmatprep.subr.bf16.mxu1 %v11768_v35  ;;  %v13451_v35 = vld [vmem:[#allocation3 + $0x10] sm:$0x44] }
 0x603   :  { %11174 = vmatpush3.bf16.msra.mxu0 %v11769_v45  ;;  %v11808_v45 = vld [vmem:[#allocation12 + $0x3e8] sm:$0xff]  }
 0x604   :  { %11196 = vmatpush3.bf16.msra.mxu1 %v11770_v31  ;;  %11175 = vmatprep.subr.bf16.mxu0 %v11771_v49  ;;  %v13453_v31 = vld [vmem:[#allocation3 + $0x18] sm:$0x44]  ;;  %v13455_v49 = vld [vmem:[#allocation3] sm:$0x44] }
 0x605   :  { %11197 = vmatprep.subr.bf16.mxu1 %v11772_v23  ;;  %v11809_v23 = vld [vmem:[#allocation12 + $0x328] sm:$0xff]   ;;  %v10954_v50 = vcombine.high %v13455_v49, %v13455_v49 }
 0x607   :  { %11176 = vmatpush3.bf16.msra.mxu0 %v11773_v26  ;;  %v10958_v26 = vcombine.high %v13451_v35, %v13451_v35 }
 0x608   :  { %11198 = vmatpush3.bf16.msra.mxu1 %v11774_v11  ;;  %11177 = vmatprep.subr.bf16.mxu0 %v11775_v4  ;;  %v13459_v11 = vld [vmem:[#allocation3 + $0x8] sm:$0x44]  ;;  %v11810_v4 = vld [vmem:[#allocation12 + $0x3a8] sm:$0xff]  }
 0x609   :  { %11199 = vmatprep.subr.bf16.mxu1 %v11776_v42  ;;  %v10960_v42 = vcombine.high %v13453_v31, %v13453_v31 }
 0x60b   :  { %11178 = vmatpush3.bf16.msra.mxu0 %v11777_v54  ;;  %v10956_v54 = vcombine.high %v13459_v11, %v13459_v11 }
 0x60c   :  { %11200 = vmatpush3.bf16.msra.mxu1 %v11778_v13  ;;  %11179 = vmatprep.subr.bf16.mxu0 %v11779_v37  ;;  %v13467_v13 = vunpack.c.l.b16 %v10958_v26  ;;  %v11814_v37 = vld [vmem:[#allocation12 + $0x3b0] sm:$0xff]   ;;  %v11850_v26 = vld [vmem:[#allocation12 + $0x4a8] sm:$0xff]  }
 0x60d   :  { %11201 = vmatprep.subr.bf16.mxu1 %v11780_v53  ;;  %v11815_v53 = vld [vmem:[#allocation12 + $0x378] sm:$0xff]   ;;  %v13475_v12 = vunpack.c.l.b16 %v10956_v54 }
 0x60e   :  { %v8795_v18 = vrot.slane %v13467_v13, 3  ;;  %v11856_v54 = vld [vmem:[#allocation12 + $0x4f8] sm:$0xff]  }
 0x60f   :  { %11180 = vmatpush3.bf16.msra.mxu0 %v11781_v8  ;;  %v13469_v8 = vunpack.c.l.b16 %v10960_v42  ;;  %v8800_v62 = vrot.slane %v13475_v12, 4 }
 0x610   :  { %11202 = vmatpush3.bf16.msra.mxu1 %v11782_v58  ;;  %11181 = vmatprep.subr.bf16.mxu0 %v11783_v6  ;;  %v11816_v58 = vld [vmem:[#allocation12 + $0x3f8] sm:$0xff]   ;;  %v8402_v6 = vrot.slane %v13431_v46, 2 }
 0x611   :  { %11203 = vmatprep.subr.bf16.mxu1 %v11784_v14  ;;  %v13472_v14 = vunpack.c.l.b16 %v10954_v50  ;;  %v8801_v46 = vrot.slane %v13469_v8, 3  ;;  %v11854_v50 = vld [vmem:[#allocation12 + $0x4b0] sm:$0xff]  }
 0x612   :  { %v8403_v43 = vsel %vm7370_vm5, %v8402_v6, %v8401_v61  ;;  %v9153_v6 = vrot.slane %v13467_v13, 4  ;;  %v11859_v61 = vld [vmem:[#allocation12 + $0x540] sm:$0xff]  }
 0x613   :  { %11182 = vmatpush3.bf16.msra.mxu0 %v11785_v19  ;;  %v11817_v19 = vld [vmem:[#allocation12 + $0x338] sm:$0xff]   ;;  %v8794_v9 = vrot.slane %v13472_v14, 4  ;;  %v8413_v15 = vpack.c.b16 %v8403_v43, %v8403_v43  ;;  %v9158_v43 = vrot.slane %v13475_v12, 5  ;;  %v11861_v13 = vld [vmem:[#allocation12 + $0x500] sm:$0xff]   ;;  %v11865_v12 = vld [vmem:[#allocation12 + $0x508] sm:$0xff]  }
 0x614   :  { %11204 = vmatpush3.bf16.msra.mxu1 %v11786_v25  ;;  %11211 = vmatprep.subr.bf16.mxu0 %v11787_v0  ;;  %v11818_v25 = vld [vmem:[#allocation12 + $0x3b8] sm:$0xff]   ;;  %v11819_v0 = vld [vmem:[#allocation12 + $0x440] sm:$0xff]  }
 0x615   :  { %11233 = vmatprep.subr.bf16.mxu1 %v11788_v20  ;;  %v8409_v20 = vsel %vm7370_vm5, %v8408_v29, %v8407_v51  ;;  %v8796_v56 = vsel %vm7370_vm5, %v8795_v18, %v8794_v9  ;;  %v11858_v29 = vld [vmem:[#allocation12 + $0x4b8] sm:$0xff]   ;;  %v9159_v18 = vrot.slane %v13469_v8, 4  ;;  %v11860_v51 = vld [vmem:[#allocation12 + $0x5c0] sm:$0xff]  }
 0x616   :  { %8288 = vmatmul.mubr.bf16.vlgmr.msra.gmra.mrb[52].mxu0 %v8055_v10  ;;  %v8415_v24 = vpack.c.b16 %v8409_v20, %v8409_v20  ;;  %v11831_v10 = vld [vmem:[#allocation12 + $0x448] sm:$0xff]   ;;  %v11862_v20 = vld [vmem:[#allocation12 + $0x580] sm:$0xff]  }
 0x617   :  { %8328 = vmatmul.mubr.bf16.vlgmr.msra.gmra.mrb[60].mxu1 %v8057_v3  ;;  %11212 = vmatpush3.bf16.msra.mxu0 %v11789_v41  ;;  %v8802_v41 = vsel %vm7370_vm5, %v8801_v46, %v8800_v62  ;;  %v9160_v8 = vsel %vm7370_vm5, %v9159_v18, %v9158_v43 }
 0x618   :  { %8645 = vmatprep.mubr.bf16.mxu0 %v8414_v38  ;;  %11234 = vmatpush3.bf16.msra.mxu1 %v11790_v32  ;;  %v8804_v32 = vpack.c.b16 %v8796_v56, %v8796_v56  ;;  %v8806_v3 = vpack.c.b16 %v8802_v41, %v8802_v41  ;;  %v11834_v38 = vld [vmem:[#allocation12 + $0x488] sm:$0xff]   ;;  %v11867_v41 = vld [vmem:[#allocation12 + $0x550] sm:$0xff]  }
 0x619   :  { %8685 = vmatprep.mubr.bf16.mxu1 %v8416_v44  ;;  %11213 = vmatprep.subr.bf16.mxu0 %v11791_v40  ;;  %v11833_v40 = vld [vmem:[#allocation12 + $0x408] sm:$0xff]   ;;  %v11836_v44 = vld [vmem:[#allocation12 + $0x4d0] sm:$0xff]  }
 0x61a   :  { %11235 = vmatprep.subr.bf16.mxu1 %v11792_v47  ;;  %v11835_v47 = vld [vmem:[#allocation12 + $0x450] sm:$0xff]  }
 0x61b   :  { %11214 = vmatpush3.bf16.msra.mxu0 %v11793_v17  ;;  %v11837_v17 = vld [vmem:[#allocation12 + $0x410] sm:$0xff]  }
 0x61c   :  { %11236 = vmatpush3.bf16.msra.mxu1 %v11794_v48  ;;  %11215 = vmatprep.subr.bf16.mxu0 %v11795_v27  ;;  %v11838_v48 = vld [vmem:[#allocation12 + $0x490] sm:$0xff]   ;;  %v11839_v27 = vld [vmem:[#allocation12 + $0x458] sm:$0xff]  }
 0x61d   :  { %11237 = vmatprep.subr.bf16.mxu1 %v11796_v39  ;;  %v11840_v39 = vld [vmem:[#allocation12 + $0x4d8] sm:$0xff]  }
 0x61f   :  { %11216 = vmatpush3.bf16.msra.mxu0 %v11797_v63  ;;  %v11841_v63 = vld [vmem:[#allocation12 + $0x418] sm:$0xff]  }
 0x620   :  { %11238 = vmatpush3.bf16.msra.mxu1 %v11798_v33  ;;  %11217 = vmatprep.subr.bf16.mxu0 %v11799_v22  ;;  %v11842_v33 = vld [vmem:[#allocation12 + $0x498] sm:$0xff]   ;;  %v11843_v22 = vld [vmem:[#allocation12 + $0x460] sm:$0xff]  }
 0x621   :  { %11239 = vmatprep.subr.bf16.mxu1 %v11800_v55  ;;  %v11844_v55 = vld [vmem:[#allocation12 + $0x4e0] sm:$0xff]  }
 0x623   :  { %11218 = vmatpush3.bf16.msra.mxu0 %v11801_v28  ;;  %v11845_v28 = vld [vmem:[#allocation12 + $0x420] sm:$0xff]  }
 0x624   :  { %11240 = vmatpush3.bf16.msra.mxu1 %v11802_v60  ;;  %11219 = vmatprep.subr.bf16.mxu0 %v11803_v52  ;;  %v11846_v60 = vld [vmem:[#allocation12 + $0x4a0] sm:$0xff]   ;;  %v11847_v52 = vld [vmem:[#allocation12 + $0x468] sm:$0xff]  }
 0x625   :  { %11241 = vmatprep.subr.bf16.mxu1 %v11804_v5  ;;  %v10957_v5 = vcombine.low %v13451_v35, %v13451_v35  ;;  %v11852_v35 = vld [vmem:[#allocation12 + $0x4f0] sm:$0xff]  }
 0x627   :  { %11220 = vmatpush3.bf16.msra.mxu0 %v11805_v59  ;;  %v11848_v59 = vld [vmem:[#allocation12 + $0x4e8] sm:$0xff]  }
 0x628   :  { %11242 = vmatpush3.bf16.msra.mxu1 %v11806_v30  ;;  %11221 = vmatprep.subr.bf16.mxu0 %v11807_v1  ;;  %v10959_v30 = vcombine.low %v13453_v31, %v13453_v31  ;;  %v10953_v1 = vcombine.low %v13455_v49, %v13455_v49  ;;  %v11853_v31 = vld [vmem:[#allocation12 + $0x430] sm:$0xff]  }
 0x629   :  { %11243 = vmatprep.subr.bf16.mxu1 %v11808_v45  ;;  %v11849_v45 = vld [vmem:[#allocation12 + $0x428] sm:$0xff]  }
 0x62a   :  { %v13497_v42 = vunpack.c.l.b16 %v10959_v30  ;;  %v11884_v30 = vld [vmem:[#allocation12 + $0x5f0] sm:$0xff]  }
 0x62b   :  { %11222 = vmatpush3.bf16.msra.mxu0 %v11809_v23  ;;  %v10955_v23 = vcombine.low %v13459_v11, %v13459_v11  ;;  %v11855_v11 = vld [vmem:[#allocation12 + $0x478] sm:$0xff]  }
 0x62c   :  { %11244 = vmatpush3.bf16.msra.mxu1 %v11810_v4  ;;  %11223 = vmatprep.subr.bf16.mxu0 %v11811_v2  ;;  %v11851_v4 = vld [vmem:[#allocation12 + $0x470] sm:$0xff]   ;;  %v13495_v2 = vunpack.c.l.b16 %v10957_v5 }
 0x62d   :  { %11245 = vmatprep.subr.bf16.mxu1 %v11812_v34  ;;  %v13499_v34 = vunpack.c.l.b16 %v10953_v1  ;;  %v13501_v49 = vunpack.c.l.b16 %v10955_v23  ;;  %v11883_v5 = vld [vmem:[#allocation12 + $0x570] sm:$0xff]  }
 0x62e   :  { %v11885_v23 = vld [vmem:[#allocation12 + $0x530] sm:$0xff]  }
 0x62f   :  { %11224 = vmatpush3.bf16.msra.mxu0 %v11813_v36  ;;  %v8792_v36 = vrot.slane %v13495_v2, 3 }
 0x630   :  { %11246 = vmatpush3.bf16.msra.mxu1 %v11814_v37  ;;  %11225 = vmatprep.subr.bf16.mxu0 %v11815_v53  ;;  %v8798_v37 = vrot.slane %v13497_v42, 3  ;;  %v11857_v53 = vld [vmem:[#allocation12 + $0x438] sm:$0xff]  }
 0x631   :  { %11247 = vmatprep.subr.bf16.mxu1 %v11816_v58  ;;  %v8791_v58 = vrot.slane %v13499_v34, 4 }
 0x633   :  { %11226 = vmatpush3.bf16.msra.mxu0 %v11817_v19  ;;  %v8797_v19 = vrot.slane %v13501_v49, 4 }
 0x634   :  { %11248 = vmatpush3.bf16.msra.mxu1 %v11818_v25  ;;  %11255 = vmatprep.subr.bf16.mxu0 %v11819_v0  ;;  %v8793_v25 = vsel %vm7370_vm5, %v8792_v36, %v8791_v58  ;;  %v9152_v0 = vrot.slane %v13472_v14, 5  ;;  %v11864_v14 = vld [vmem:[#allocation12 + $0x5c8] sm:$0xff]   ;;  %v9156_v36 = vrot.slane %v13497_v42, 4  ;;  %v9149_v58 = vrot.slane %v13499_v34, 5 }
 0x635   :  { %11277 = vmatprep.subr.bf16.mxu1 %v11820_v16  ;;  %v8799_v46 = vsel %vm7370_vm5, %v8798_v37, %v8797_v19  ;;  %v8803_v9 = vpack.c.b16 %v8793_v25, %v8793_v25  ;;  %v9155_v19 = vrot.slane %v13501_v49, 5 }
 0x636   :  { %8646 = vmatmul.mubr.bf16.vlgmr.msra.gmra.mrb[56].mxu0 %v8413_v15  ;;  %v9154_v16 = vsel %vm7370_vm5, %v9153_v6, %v9152_v0  ;;  %v8805_v62 = vpack.c.b16 %v8799_v46, %v8799_v46  ;;  %v9164_v15 = vpack.c.b16 %v9160_v8, %v9160_v8  ;;  %v11893_v46 = vld [vmem:[#allocation12 + $0x600] sm:$0xff]   ;;  %v11904_v8 = vld [vmem:[#allocation12 + $0x6c8] sm:$0xff]  }
 0x637   :  { %8686 = vmatmul.mubr.bf16.vlgmr.msra.gmra.mrb[64].mxu1 %v8415_v24  ;;  %11256 = vmatpush3.bf16.msra.mxu0 %v11821_v21  ;;  %v11863_v21 = vld [vmem:[#allocation12 + $0x548] sm:$0xff]   ;;  %v9162_v56 = vpack.c.b16 %v9154_v16, %v9154_v16  ;;  %v11868_v24 = vld [vmem:[#allocation12 + $0x5d0] sm:$0xff]   ;;  %v9157_v42 = vsel %vm7370_vm5, %v9156_v36, %v9155_v19 }
 0x638   :  { %9035 = vmatprep.mubr.bf16.mxu0 %v8804_v32  ;;  %11278 = vmatpush3.bf16.msra.mxu1 %v11826_v7  ;;  %v11866_v7 = vld [vmem:[#allocation12 + $0x588] sm:$0xff]   ;;  %v11870_v32 = vld [vmem:[#allocation12 + $0x590] sm:$0xff]   ;;  %v9163_v16 = vpack.c.b16 %v9157_v42, %v9157_v42 }
 0x639   :  { %9075 = vmatprep.mubr.bf16.mxu1 %v8806_v3  ;;  %11257 = vmatprep.subr.bf16.mxu0 %v11831_v10  ;;  %v11869_v10 = vld [vmem:[#allocation12 + $0x510] sm:$0xff]   ;;  %v11872_v3 = vld [vmem:[#allocation12 + $0x5d8] sm:$0xff]  }
 0x63a   :  { %11279 = vmatprep.subr.bf16.mxu1 %v11832_v57  ;;  %v11871_v57 = vld [vmem:[#allocation12 + $0x558] sm:$0xff]  }
 0x63b   :  { %11258 = vmatpush3.bf16.msra.mxu0 %v11833_v40  ;;  %v11873_v40 = vld [vmem:[#allocation12 + $0x518] sm:$0xff]  }
 0x63c   :  { %11280 = vmatpush3.bf16.msra.mxu1 %v11834_v38  ;;  %11259 = vmatprep.subr.bf16.mxu0 %v11835_v47  ;;  %v11874_v38 = vld [vmem:[#allocation12 + $0x598] sm:$0xff]   ;;  %v11875_v47 = vld [vmem:[#allocation12 + $0x560] sm:$0xff]  }
 0x63d   :  { %11281 = vmatprep.subr.bf16.mxu1 %v11836_v44  ;;  %v11876_v44 = vld [vmem:[#allocation12 + $0x5e0] sm:$0xff]  }
 0x63f   :  { %11260 = vmatpush3.bf16.msra.mxu0 %v11837_v17  ;;  %v11877_v17 = vld [vmem:[#allocation12 + $0x520] sm:$0xff]  }
 0x640   :  { %11282 = vmatpush3.bf16.msra.mxu1 %v11838_v48  ;;  %11261 = vmatprep.subr.bf16.mxu0 %v11839_v27  ;;  %v11878_v48 = vld [vmem:[#allocation12 + $0x5a0] sm:$0xff]   ;;  %v11879_v27 = vld [vmem:[#allocation12 + $0x568] sm:$0xff]  }
 0x641   :  { %11283 = vmatprep.subr.bf16.mxu1 %v11840_v39  ;;  %v13515_v39 = vld [vmem:[#allocation3 + $0x10] sm:$0x88] }
 0x643   :  { %11262 = vmatpush3.bf16.msra.mxu0 %v11841_v63  ;;  %v11880_v63 = vld [vmem:[#allocation12 + $0x5e8] sm:$0xff]  }
 0x644   :  { %11284 = vmatpush3.bf16.msra.mxu1 %v11842_v33  ;;  %11263 = vmatprep.subr.bf16.mxu0 %v11843_v22  ;;  %v13517_v33 = vld [vmem:[#allocation3 + $0x18] sm:$0x88]  ;;  %v13519_v22 = vld [vmem:[#allocation3] sm:$0x88] }
 0x645   :  { %11285 = vmatprep.subr.bf16.mxu1 %v11844_v55  ;;  %v11881_v55 = vld [vmem:[#allocation12 + $0x528] sm:$0xff]   ;;  %v11026_v1 = vcombine.high %v13519_v22, %v13519_v22 }
 0x647   :  { %11264 = vmatpush3.bf16.msra.mxu0 %v11845_v28  ;;  %v11030_v28 = vcombine.high %v13515_v39, %v13515_v39 }
 0x648   :  { %11286 = vmatpush3.bf16.msra.mxu1 %v11846_v60  ;;  %11265 = vmatprep.subr.bf16.mxu0 %v11847_v52  ;;  %v13523_v60 = vld [vmem:[#allocation3 + $0x8] sm:$0x88]  ;;  %v11882_v52 = vld [vmem:[#allocation12 + $0x5a8] sm:$0xff]  }
 0x649   :  { %11287 = vmatprep.subr.bf16.mxu1 %v11848_v59  ;;  %v11032_v59 = vcombine.high %v13517_v33, %v13517_v33 }
 0x64b   :  { %11266 = vmatpush3.bf16.msra.mxu0 %v11849_v45  ;;  %v11028_v45 = vcombine.high %v13523_v60, %v13523_v60 }
 0x64c   :  { %11288 = vmatpush3.bf16.msra.mxu1 %v11850_v26  ;;  %11267 = vmatprep.subr.bf16.mxu0 %v11851_v4  ;;  %v9536_v26 = vunpack.c.l.b16 %v11030_v28  ;;  %v11886_v4 = vld [vmem:[#allocation12 + $0x5b0] sm:$0xff]   ;;  %v11922_v28 = vld [vmem:[#allocation12 + $0x6a8] sm:$0xff]  }
 0x64d   :  { %11289 = vmatprep.subr.bf16.mxu1 %v11852_v35  ;;  %v11887_v35 = vld [vmem:[#allocation12 + $0x578] sm:$0xff]   ;;  %v9534_v37 = vunpack.c.l.b16 %v11028_v45 }
 0x64e   :  { %v9543_v6 = vrot.slane %v9536_v26, 5  ;;  %v11927_v45 = vld [vmem:[#allocation12 + $0x678] sm:$0xff]  }
 0x64f   :  { %11268 = vmatpush3.bf16.msra.mxu0 %v11853_v31  ;;  %v9538_v31 = vunpack.c.l.b16 %v11032_v59  ;;  %v9548_v0 = vrot.slane %v9534_v37, 6  ;;  %v13708_v37 = vmov 0.0  }
 0x650   :  { %11290 = vmatpush3.bf16.msra.mxu1 %v11854_v50  ;;  %11269 = vmatprep.subr.bf16.mxu0 %v11855_v11  ;;  %v11888_v50 = vld [vmem:[#allocation12 + $0x5f8] sm:$0xff]   ;;  %v9150_v11 = vrot.slane %v13495_v2, 4  ;;  %v11892_v2 = vld [vmem:[#allocation12 + $0x6c0] sm:$0xff]  }
 0x651   :  { %11291 = vmatprep.subr.bf16.mxu1 %v11856_v54  ;;  %v9532_v54 = vunpack.c.l.b16 %v11026_v1  ;;  %v9549_v18 = vrot.slane %v9538_v31, 5  ;;  %v11925_v1 = vld [vmem:[#allocation12 + $0x630] sm:$0xff]   ;;  %v11930_v31 = vld [vmem:[#allocation12 + $0x6b8] sm:$0xff]  }
 0x652   :  { %v9151_v25 = vsel %vm7370_vm5, %v9150_v11, %v9149_v58 }
 0x653   :  { %11270 = vmatpush3.bf16.msra.mxu0 %v11857_v53  ;;  %v11889_v53 = vld [vmem:[#allocation12 + $0x538] sm:$0xff]   ;;  %v9161_v43 = vpack.c.b16 %v9151_v25, %v9151_v25  ;;  %v9550_v49 = vsel %vm7370_vm5, %v9549_v18, %v9548_v0 }
 0x654   :  { %11292 = vmatpush3.bf16.msra.mxu1 %v11858_v29  ;;  %11299 = vmatprep.subr.bf16.mxu0 %v11859_v61  ;;  %v11890_v29 = vld [vmem:[#allocation12 + $0x5b8] sm:$0xff]   ;;  %v11891_v61 = vld [vmem:[#allocation12 + $0x640] sm:$0xff]  }
 0x655   :  { %11321 = vmatprep.subr.bf16.mxu1 %v11860_v51  ;;  %v9542_v51 = vrot.slane %v9532_v54, 6 }
 0x656   :  { %9036 = vmatmul.mubr.bf16.vlgmr.msra.gmra.mrb[60].mxu0 %v8803_v9  ;;  %v11903_v9 = vld [vmem:[#allocation12 + $0x648] sm:$0xff]  }
 0x657   :  { %9076 = vmatmul.mubr.bf16.vlgmr.msra.gmra.mrb[68].mxu1 %v8805_v62  ;;  %11300 = vmatpush3.bf16.msra.mxu0 %v11861_v13  ;;  %v9544_v34 = vsel %vm7370_vm5, %v9543_v6, %v9542_v51  ;;  %v11898_v13 = vld [vmem:[#allocation12 + $0x680] sm:$0xff]   ;;  %v9554_v62 = vpack.c.b16 %v9550_v49, %v9550_v49 }
 0x658   :  { %9393 = vmatprep.mubr.bf16.mxu0 %v9162_v56  ;;  %11322 = vmatpush3.bf16.msra.mxu1 %v11862_v20  ;;  %v9552_v20 = vpack.c.b16 %v9544_v34, %v9544_v34  ;;  %v11906_v56 = vld [vmem:[#allocation12 + $0x688] sm:$0xff]  }
 0x659   :  { %9433 = vmatprep.mubr.bf16.mxu1 %v9164_v15  ;;  %11301 = vmatprep.subr.bf16.mxu0 %v11863_v21  ;;  %v11905_v21 = vld [vmem:[#allocation12 + $0x608] sm:$0xff]   ;;  %v11908_v15 = vld [vmem:[#allocation12 + $0x6d0] sm:$0xff]  }
 0x65a   :  { %11323 = vmatprep.subr.bf16.mxu1 %v11864_v14  ;;  %v11907_v14 = vld [vmem:[#allocation12 + $0x650] sm:$0xff]  }
 0x65b   :  { %11302 = vmatpush3.bf16.msra.mxu0 %v11865_v12  ;;  %v11909_v12 = vld [vmem:[#allocation12 + $0x610] sm:$0xff]  }
 0x65c   :  { %11324 = vmatpush3.bf16.msra.mxu1 %v11866_v7  ;;  %11303 = vmatprep.subr.bf16.mxu0 %v11867_v41  ;;  %v11910_v7 = vld [vmem:[#allocation12 + $0x690] sm:$0xff]   ;;  %v11911_v41 = vld [vmem:[#allocation12 + $0x658] sm:$0xff]  }
 0x65d   :  { %11325 = vmatprep.subr.bf16.mxu1 %v11868_v24  ;;  %v11912_v24 = vld [vmem:[#allocation12 + $0x6d8] sm:$0xff]  }
 0x65f   :  { %11304 = vmatpush3.bf16.msra.mxu0 %v11869_v10  ;;  %v11913_v10 = vld [vmem:[#allocation12 + $0x618] sm:$0xff]  }
 0x660   :  { %11326 = vmatpush3.bf16.msra.mxu1 %v11870_v32  ;;  %11305 = vmatprep.subr.bf16.mxu0 %v11871_v57  ;;  %v11914_v32 = vld [vmem:[#allocation12 + $0x698] sm:$0xff]   ;;  %v11915_v57 = vld [vmem:[#allocation12 + $0x660] sm:$0xff]  }
 0x661   :  { %11327 = vmatprep.subr.bf16.mxu1 %v11872_v3  ;;  %v11916_v3 = vld [vmem:[#allocation12 + $0x6e0] sm:$0xff]  }
 0x663   :  { %11306 = vmatpush3.bf16.msra.mxu0 %v11873_v40  ;;  %v11917_v40 = vld [vmem:[#allocation12 + $0x620] sm:$0xff]  }
 0x664   :  { %11328 = vmatpush3.bf16.msra.mxu1 %v11874_v38  ;;  %11307 = vmatprep.subr.bf16.mxu0 %v11875_v47  ;;  %v11918_v38 = vld [vmem:[#allocation12 + $0x6a0] sm:$0xff]   ;;  %v11919_v47 = vld [vmem:[#allocation12 + $0x668] sm:$0xff]  }
 0x665   :  { %11329 = vmatprep.subr.bf16.mxu1 %v11876_v44  ;;  %v11029_v44 = vcombine.low %v13515_v39, %v13515_v39  ;;  %v11924_v39 = vld [vmem:[#allocation12 + $0x6f0] sm:$0xff]  }
 0x667   :  { %11308 = vmatpush3.bf16.msra.mxu0 %v11877_v17  ;;  %v11920_v17 = vld [vmem:[#allocation12 + $0x6e8] sm:$0xff]  }
 0x668   :  { %11330 = vmatpush3.bf16.msra.mxu1 %v11878_v48  ;;  %11309 = vmatprep.subr.bf16.mxu0 %v11879_v27  ;;  %v11031_v48 = vcombine.low %v13517_v33, %v13517_v33  ;;  %v11025_v27 = vcombine.low %v13519_v22, %v13519_v22  ;;  %v11926_v22 = vld [vmem:[#allocation12 + $0x6b0] sm:$0xff]  }
 0x669   :  { %11331 = vmatprep.subr.bf16.mxu1 %v11880_v63  ;;  %v11921_v63 = vld [vmem:[#allocation12 + $0x628] sm:$0xff]  }
 0x66a   :  { %v9537_v59 = vunpack.c.l.b16 %v11031_v48 }
 0x66b   :  { %11310 = vmatpush3.bf16.msra.mxu0 %v11881_v55  ;;  %v11027_v55 = vcombine.low %v13523_v60, %v13523_v60 }
 0x66c   :  { %11332 = vmatpush3.bf16.msra.mxu1 %v11882_v52  ;;  %11311 = vmatprep.subr.bf16.mxu0 %v11883_v5  ;;  %v11923_v52 = vld [vmem:[#allocation12 + $0x670] sm:$0xff]   ;;  %v9535_v5 = vunpack.c.l.b16 %v11029_v44  ;;  %v9546_v60 = vrot.slane %v9537_v59, 5 }
 0x66d   :  { %11333 = vmatprep.subr.bf16.mxu1 %v11884_v30  ;;  %v9531_v30 = vunpack.c.l.b16 %v11025_v27  ;;  %v9533_v33 = vunpack.c.l.b16 %v11027_v55  ;;  %v11937_v55 = vld [vmem:[%s13601_s7 + $0x30] sm:$0xff]  }
 0x66e   :  { %v9540_v26 = vrot.slane %v9535_v5, 5 }
 0x66f   :  { %11312 = vmatpush3.bf16.msra.mxu0 %v11885_v23  ;;  %v11928_v23 = vld [vmem:[#allocation12 + $0x6f8] sm:$0xff]  }
 0x670   :  { %11334 = vmatpush3.bf16.msra.mxu1 %v11886_v4  ;;  %11313 = vmatprep.subr.bf16.mxu0 %v11887_v35  ;;  %v11929_v4 = vld [vmem:[#allocation12 + $0x638] sm:$0xff]   ;;  %v9539_v35 = vrot.slane %v9531_v30, 6 }
 0x671   :  { %11335 = vmatprep.subr.bf16.mxu1 %v11888_v50  ;;  %v9545_v50 = vrot.slane %v9533_v33, 6 }
 0x672   :  { %v9541_v11 = vsel %vm7370_vm5, %v9540_v26, %v9539_v35 }
 0x673   :  { %11314 = vmatpush3.bf16.msra.mxu0 %v11889_v53  ;;  %v9547_v54 = vsel %vm7370_vm5, %v9546_v60, %v9545_v50  ;;  %v9551_v36 = vpack.c.b16 %v9541_v11, %v9541_v11 }
 0x674   :  { %11336 = vmatpush3.bf16.msra.mxu1 %v11890_v29  ;;  %11343 = vmatprep.subr.bf16.mxu0 %v11891_v61  ;;  %v9553_v53 = vpack.c.b16 %v9547_v54, %v9547_v54 }
 0x675   :  { %11365 = vmatprep.subr.bf16.mxu1 %v11892_v2 }
 0x676   :  { %9394 = vmatmul.mubr.bf16.vlgmr.msra.gmra.mrb[64].mxu0 %v9161_v43 }
 0x677   :  { %9434 = vmatmul.mubr.bf16.vlgmr.msra.gmra.mrb[72].mxu1 %v9163_v16  ;;  %11344 = vmatpush3.bf16.msra.mxu0 %v11893_v46 }
 0x678   :  { %9783 = vmatprep.mubr.bf16.mxu0 %v9552_v20  ;;  %11366 = vmatpush3.bf16.msra.mxu1 %v11898_v13 }
 0x679   :  { %9823 = vmatprep.mubr.bf16.mxu1 %v9554_v62  ;;  %11345 = vmatprep.subr.bf16.mxu0 %v11903_v9 }
 0x67a   :  { %11367 = vmatprep.subr.bf16.mxu1 %v11904_v8 }
 0x67b   :  { %11346 = vmatpush3.bf16.msra.mxu0 %v11905_v21 }
 0x67c   :  { %11368 = vmatpush3.bf16.msra.mxu1 %v11906_v56  ;;  %11347 = vmatprep.subr.bf16.mxu0 %v11907_v14  ;;  %v11931_v14 = vld [vmem:[%s13601_s7] sm:$0xff]  }
 0x67d   :  { %11369 = vmatprep.subr.bf16.mxu1 %v11908_v15  ;;  %v11932_v15 = vld [vmem:[%s13601_s7 + $0x8] sm:$0xff]  }
 0x67f   :  { %11348 = vmatpush3.bf16.msra.mxu0 %v11909_v12  ;;  %v11933_v12 = vld [vmem:[%s13601_s7 + $0x10] sm:$0xff]  }
 0x680   :  { %11370 = vmatpush3.bf16.msra.mxu1 %v11910_v7  ;;  %11349 = vmatprep.subr.bf16.mxu0 %v11911_v41  ;;  %v11934_v7 = vld [vmem:[%s13601_s7 + $0x18] sm:$0xff]   ;;  %v11935_v41 = vld [vmem:[%s13601_s7 + $0x20] sm:$0xff]  }
 0x681   :  { %11371 = vmatprep.subr.bf16.mxu1 %v11912_v24 }
 0x683   :  { %11350 = vmatpush3.bf16.msra.mxu0 %v11913_v10 }
 0x684   :  { %11372 = vmatpush3.bf16.msra.mxu1 %v11914_v32  ;;  %11351 = vmatprep.subr.bf16.mxu0 %v11915_v57 }
 0x685   :  { %11373 = vmatprep.subr.bf16.mxu1 %v11916_v3 }
 0x687   :  { %11352 = vmatpush3.bf16.msra.mxu0 %v11917_v40 }
 0x688   :  { %11374 = vmatpush3.bf16.msra.mxu1 %v11918_v38  ;;  %11353 = vmatprep.subr.bf16.mxu0 %v11919_v47 }
 0x689   :  { %11375 = vmatprep.subr.bf16.mxu1 %v11920_v17 }
 0x68b   :  { %11354 = vmatpush3.bf16.msra.mxu0 %v11921_v63  ;;  %v11936_v63 = vld [vmem:[%s13601_s7 + $0x28] sm:$0xff]  }
 0x68c   :  { %11376 = vmatpush3.bf16.msra.mxu1 %v11922_v28  ;;  %11355 = vmatprep.subr.bf16.mxu0 %v11923_v52  ;;  %v11938_v28 = vld [vmem:[%s13601_s7 + $0x38] sm:$0xff]   ;;  %s12141_s7 = smov [#allocation16]  }
 0x68d   :  { %11377 = vmatprep.subr.bf16.mxu1 %v11924_v39  ;;  %s9961_s14 = sshll.u32 %s12141_s7, 4  ;;  %s9962_s14 = int_to_ptr.vmem [resolvable:$true] %s9961_s14 }
 0x68e   :  { %s12095_s16 = scalar_lea.vmem %s9962_s14, 32  ;;  %p12100_p1 = scmp.lt.s32.totalorder %s9962_s14, %s9962_s14 }
 0x68f   :  { %11356 = vmatpush3.bf16.msra.mxu0 %v11925_v1  ;;  %p12096_p0 = scmp.ne.s32.totalorder %s9962_s14, %s12095_s16  ;;  %p12101_p2 = scmp.lt.s32.totalorder %s12095_s16, %s12095_s16 }
 0x690   :  { %11378 = vmatpush3.bf16.msra.mxu1 %v11926_v22  ;;  %11357 = vmatprep.subr.bf16.mxu0 %v11927_v45 }
 0x691   :  { %11379 = vmatprep.subr.bf16.mxu1 %v11928_v23  ;;  %p12102_p3 = por %p12101_p2, %p12100_p1 }
 0x693   :  { %11358 = vmatpush3.bf16.msra.mxu0 %v11929_v4  ;;  %p12103_p4 = pnand %p12102_p3, %p12096_p0 }
 0x694   :  { %11380 = vmatpush3.bf16.msra.mxu1 %v11930_v31  ;;  %11396 = vmatprep.subr.bf16.mxu0 %v13708_v37 }
 0x696   :  { %9784 = vmatmul.mubr.bf16.vlgmr.msra.gmra.mrb[68].mxu0 %v9551_v36 }
 0x697   :  { %9824 = vmatmul.mubr.bf16.vlgmr.msra.gmra.mrb[76].mxu1 %v9553_v53  ;;  %11397 = vmatpush3.bf16.msra.mxu0 %v11931_v14 }
 0x698   :  { %11398 = vmatprep.subr.bf16.mxu0 %v13708_v37  ;;  %11412 = vmatprep.mubr.msk.bf16.mxu0 %vm12140_vm6, %v13708_v37 }
 0x69b   :  { %11399 = vmatpush3.bf16.msra.mxu0 %v11932_v15 }
 0x69c   :  { %11400 = vmatprep.subr.bf16.mxu0 %v13708_v37 }
 0x69f   :  { %11401 = vmatpush3.bf16.msra.mxu0 %v11933_v12 }
 0x6a0   :  { %11402 = vmatprep.subr.bf16.mxu0 %v13708_v37 }
 0x6a3   :  { %11403 = vmatpush3.bf16.msra.mxu0 %v11934_v7  ;;  %v11065_v7 = vld [vmem:[#allocation13] ss:$0 sm:$0xff] }
 0x6a4   :  { %11404 = vmatprep.subr.bf16.mxu0 %v13708_v37 }
 0x6a7   :  { %11405 = vmatpush3.bf16.msra.mxu0 %v11935_v41 }
 0x6a8   :  { %11406 = vmatprep.subr.bf16.mxu0 %v13708_v37 }
 0x6a9   :  { %v11095_v58 = vpop.f32.mrb[44].mxu0 }
 0x6aa   :  { %v11117_v6 = vpop.f32.mrb[52].mxu1  ;;  %v11096_v29 = vpop.f32.mrb[45].mxu0 }
 0x6ab   :  { %v11097_v19 = vadd.f32 %v11096_v29, %v11095_v58  ;;  %v11118_v61 = vpop.f32.mrb[53].mxu1  ;;  %v11098_v18 = vpop.f32.mrb[46].mxu0  ;;  %11407 = vmatpush3.bf16.msra.mxu0 %v11936_v63 }
 0x6ac   :  { %v11119_v25 = vadd.f32 %v11118_v61, %v11117_v6  ;;  %v11120_v2 = vpop.f32.mrb[54].mxu1  ;;  %v11099_v51 = vpop.f32.mrb[47].mxu0  ;;  %11408 = vmatprep.subr.bf16.mxu0 %v13708_v37 }
 0x6ad   :  { %v11121_v42 = vpop.f32.mrb[55].mxu1 }
 0x6ae   :  { %v7653_v0 = vadd.f32 %v11119_v25, %v11097_v19 }
 0x6af   :  { %11409 = vmatpush3.bf16.msra.mxu0 %v11937_v55 }
 0x6b0   :  { %11410 = vmatprep.subr.bf16.mxu0 %v13708_v37 }
 0x6b3   :  { %11411 = vmatpush3.bf16.msra.mxu0 %v11938_v28 }
 0x6c9   :  { %v11139_v46 = vpop.f32.mrb[48].mxu0 }
 0x6ca   :  { %v11161_v34 = vpop.f32.mrb[56].mxu1  ;;  %v11140_v43 = vpop.f32.mrb[49].mxu0 }
 0x6cb   :  { %v11141_v13 = vadd.f32 %v11140_v43, %v11139_v46  ;;  %v11162_v49 = vpop.f32.mrb[57].mxu1  ;;  %v11142_v16 = vpop.f32.mrb[50].mxu0 }
 0x6cc   :  { %v11163_v9 = vadd.f32 %v11162_v49, %v11161_v34  ;;  %v11164_v20 = vpop.f32.mrb[58].mxu1  ;;  %v11143_v8 = vpop.f32.mrb[51].mxu0 }
 0x6cd   :  { %v7901_v62 = vadd.f32 %v11141_v13, %v7653_v0  ;;  %v11165_v21 = vpop.f32.mrb[59].mxu1 }
 0x6cf   :  { %v7941_v56 = vadd.f32 %v11163_v9, %v7901_v62 }
 0x6e9   :  { %v11183_v24 = vpop.f32.mrb[52].mxu0 }
 0x6ea   :  { %v11205_v10 = vpop.f32.mrb[60].mxu1  ;;  %v11184_v32 = vpop.f32.mrb[53].mxu0 }
 0x6eb   :  { %v11185_v57 = vadd.f32 %v11184_v32, %v11183_v24  ;;  %v11206_v3 = vpop.f32.mrb[61].mxu1  ;;  %v11186_v40 = vpop.f32.mrb[54].mxu0 }
 0x6ec   :  { %v11207_v38 = vadd.f32 %v11206_v3, %v11205_v10  ;;  %v11208_v47 = vpop.f32.mrb[62].mxu1  ;;  %v11187_v44 = vpop.f32.mrb[55].mxu0 }
 0x6ed   :  { %v11209_v17 = vpop.f32.mrb[63].mxu1 }
 0x6ee   :  { %v8330_v48 = vadd.f32 %v11207_v38, %v11185_v57  ;;  %v11066_v57 = vld [vmem:[#allocation15] ss:$0 sm:$0xff] }
 0x6f0   :  { %v8335_v27 = vadd.f32 %v8330_v48, %v7941_v56 }
 0x709   :  { %v11227_v52 = vpop.f32.mrb[56].mxu0 }
 0x70a   :  { %v11249_v5 = vpop.f32.mrb[64].mxu1  ;;  %v11228_v39 = vpop.f32.mrb[57].mxu0 }
 0x70b   :  { %v11229_v59 = vadd.f32 %v11228_v39, %v11227_v52  ;;  %v11250_v30 = vpop.f32.mrb[65].mxu1  ;;  %v11230_v1 = vpop.f32.mrb[58].mxu0 }
 0x70c   :  { %v11251_v33 = vadd.f32 %v11250_v30, %v11249_v5  ;;  %v11252_v22 = vpop.f32.mrb[66].mxu1  ;;  %v11231_v45 = vpop.f32.mrb[59].mxu0 }
 0x70d   :  { %v11253_v23 = vpop.f32.mrb[67].mxu1 }
 0x70e   :  { %v8688_v26 = vadd.f32 %v11251_v33, %v11229_v59 }
 0x710   :  { %v8693_v60 = vadd.f32 %v8688_v26, %v8335_v27 }
 0x729   :  { %v11271_v4 = vpop.f32.mrb[60].mxu0 }
 0x72a   :  { %v11293_v35 = vpop.f32.mrb[68].mxu1  ;;  %v11272_v31 = vpop.f32.mrb[61].mxu0 }
 0x72b   :  { %v11273_v50 = vadd.f32 %v11272_v31, %v11271_v4  ;;  %v11294_v11 = vpop.f32.mrb[69].mxu1  ;;  %v11274_v54 = vpop.f32.mrb[62].mxu0 }
 0x72c   :  { %v11295_v36 = vadd.f32 %v11294_v11, %v11293_v35  ;;  %v11296_v37 = vpop.f32.mrb[70].mxu1  ;;  %v11275_v53 = vpop.f32.mrb[63].mxu0 }
 0x72d   :  { %v11297_v58 = vpop.f32.mrb[71].mxu1 }
 0x72e   :  { %v9078_v6 = vadd.f32 %v11295_v36, %v11273_v50 }
 0x730   :  { %v9083_v29 = vadd.f32 %v9078_v6, %v8693_v60 }
 0x749   :  { %v11315_v19 = vpop.f32.mrb[64].mxu0 }
 0x74a   :  { %v11337_v61 = vpop.f32.mrb[72].mxu1  ;;  %v11316_v18 = vpop.f32.mrb[65].mxu0 }
 0x74b   :  { %v11317_v25 = vadd.f32 %v11316_v18, %v11315_v19  ;;  %v11338_v2 = vpop.f32.mrb[73].mxu1  ;;  %v11318_v51 = vpop.f32.mrb[66].mxu0 }
 0x74c   :  { %v11339_v42 = vadd.f32 %v11338_v2, %v11337_v61  ;;  %v11340_v0 = vpop.f32.mrb[74].mxu1  ;;  %v11319_v46 = vpop.f32.mrb[67].mxu0 }
 0x74d   :  { %v11341_v34 = vpop.f32.mrb[75].mxu1 }
 0x74e   :  { %v9436_v43 = vadd.f32 %v11339_v42, %v11317_v25 }
 0x750   :  { %v9441_v13 = vadd.f32 %v9436_v43, %v9083_v29 }
 0x769   :  { %v11359_v49 = vpop.f32.mrb[68].mxu0 }
 0x76a   :  { %v11381_v16 = vpop.f32.mrb[76].mxu1  ;;  %v11360_v9 = vpop.f32.mrb[69].mxu0 }
 0x76b   :  { %v11361_v20 = vadd.f32 %v11360_v9, %v11359_v49  ;;  %v11382_v8 = vpop.f32.mrb[77].mxu1  ;;  %v11362_v62 = vpop.f32.mrb[70].mxu0 }
 0x76c   :  { %v11383_v21 = vadd.f32 %v11382_v8, %v11381_v16  ;;  %v11384_v56 = vpop.f32.mrb[78].mxu1  ;;  %v11363_v14 = vpop.f32.mrb[71].mxu0 }
 0x76d   :  { %v11385_v15 = vpop.f32.mrb[79].mxu1 }
 0x76e   :  { %v9826_v12 = vadd.f32 %v11383_v21, %v11361_v20 }
 0x770   :  { %v9831_v41 = vadd.f32 %v9826_v12, %v9441_v13 }
 0x772   :  { %v9839_v24 = vadd.f32 %v11065_v7, %v9831_v41 }
 0x774   :  { %v9840_v10 = vmax.f32 %v9839_v24, 0.0 }
 0x776   :  { %v9841_v32 = vpack.c.bf16 %v9840_v10, %v9840_v10 }
 0x778   :  { %11413 = vmatmul.mubr.bf16.vlgmr.msra.gmra.mrb[72].mxu0 %v9841_v32 }
 0x84b   :  { %v9947_v3 = vpop.f32.mrb[72].mxu0 }
 0x84c   :  { %v9948_v40 = vadd.f32 %v11066_v57, %v9947_v3  ;;  %v11414_v38 = vpop.f32.mrb[73].mxu0 }
 0x84d   :  { %v9950_v47 = vpop.f32.mrb[74].mxu0 }
 0x84e   :  { %v11415_v44 = vpop.f32.mrb[75].mxu0  ;;  %9954 = vst.msk [vmem:[#allocation16] sm:$0x3] %vm9953_vm7, %v9948_v40 }
 0x84f   :  { %12106 = shalt.err (!%p12103_p4)
}
 0x850   :  { %s12107_s20 = scalar_lea.hbm %s13603_s9, 32 }
 0x851   :  { %p12108_p5 = scmp.ne.s32.totalorder %s13603_s9, %s12107_s20  ;;  %p12111_p6 = scmp.lt.u32.totalorder %s12107_s20, %s13603_s9 }
 0x853   :  { %p12113_p7 = pnand %p12111_p6, %p12108_p5 }
 0x855   :  { %12116 = shalt.err (!%p12113_p7)
}
 0x856   :  { %9964 = dma.vmem_to_hbm [thread:$0]  %s9962_s14, 32, %s13603_s9, [#allocation6]  }
 0x857   :  { %12125 = dma.done.wait [#allocation6], 32  }
 0x858   :  { %12126 = vsyncadd [#allocation6], 4294967264 }
 0x859   :  { %9968 = vsyncpa [#allocation5], 1 }
 0x85a   :  { %9969 = vsyncpa [#allocation8], 1 }
 0x85b   :  { %9970 = vsyncpa [#allocation11], 1 }
 0x85c   :  { %9971 = vsyncpa [#allocation14], 1 }
 0x85d   :  { %9972 = vsyncpa [#allocation6], 1 }

</bundles_post_ra>
